<compile_context>
chip_gen: v5e
topology: v5e:2x2
jax: 0.10.0
libtpu: 0.0.40
codegen_flags: <defaults>
</compile_context>

<pallas_src>
import math

import jax
import jax.numpy as jnp
from jax.experimental import pallas as pl
from jax.experimental.pallas import tpu as pltpu

# Synthetic "distilrubert-tiny"-like config (hidden must be 264 to match fc).
HIDDEN = 264
N_HEADS = 4
HEAD_DIM = HIDDEN // N_HEADS      # 66
FFN = 512
N_LAYERS = 2
VOCAB = 1000
MAX_POS = 64
LN_EPS = 1e-12


def _gelu(x):
    # TODO(synk): HF DistilBERT uses erf-GELU; tanh approximation differs at
    # ~1e-3 level but lowers cleanly on Mosaic.
    c = math.sqrt(2.0 / math.pi)
    return 0.5 * x * (1.0 + jnp.tanh(c * (x + 0.044715 * x * x * x)))


# ----------------------------------------------------- fused encoder kernel --
def _encoder_kernel(h_ref, m_ref, eg_ref, eb_ref,
                    wqkv_ref, bqkv_ref, wo_ref, bo_ref,
                    ln1g_ref, ln1b_ref, w1_ref, b1_ref,
                    w2_ref, b2_ref, ln2g_ref, ln2b_ref,
                    fcw_ref, fcb_ref, o_ref):
    """One grid step = one batch element, full encoder + classifier head."""
    S, D = h_ref.shape[1], h_ref.shape[2]
    n_layers = w1_ref.shape[0]
    n_heads = wo_ref.shape[0] // n_layers
    dh = wo_ref.shape[1]
    scale = 1.0 / math.sqrt(dh)

    def ln(x, g, b):
        # Layernorm (f32 stats); residual is added by the caller before this.
        mu = jnp.mean(x, axis=-1, keepdims=True)
        var = jnp.mean(jnp.square(x - mu), axis=-1, keepdims=True)
        return (x - mu) * jax.lax.rsqrt(var + LN_EPS) * g + b

    h = ln(h_ref[0], eg_ref[...], eb_ref[...])            # (S, D) f32
    m = m_ref[0]                                          # (1, S) f32, 1=keep

    for l in range(n_layers):
        # ---- multi-head self-attention (per-head weight blocks) ----
        h_bf = h.astype(jnp.bfloat16)
        acc = jnp.zeros((S, D), jnp.float32)
        for hh in range(n_heads):
            def proj(which, _l=l, _hh=hh):
                idx = (_l * 3 + which) * n_heads + _hh
                y = jnp.dot(h_bf, wqkv_ref[idx],
                            preferred_element_type=jnp.float32)
                return y + bqkv_ref[idx]                  # (S, Dh) f32

            q, k, v = proj(0), proj(1), proj(2)
            s = jnp.einsum("qd,kd->qk",
                           q.astype(jnp.bfloat16), k.astype(jnp.bfloat16),
                           preferred_element_type=jnp.float32) * scale
            s = jnp.where(m > 0.5, s, jnp.float32(-1e30))  # mask padded keys
            s = s - jnp.max(s, axis=-1, keepdims=True)
            p = jnp.exp(s)
            p = p / jnp.sum(p, axis=-1, keepdims=True)     # softmax in f32
            ctx = jnp.dot(p.astype(jnp.bfloat16), v.astype(jnp.bfloat16),
                          preferred_element_type=jnp.float32)      # (S, Dh)
            acc = acc + jnp.dot(ctx.astype(jnp.bfloat16),
                                wo_ref[l * n_heads + hh],
                                preferred_element_type=jnp.float32)  # (S, D)
        attn_out = acc + bo_ref[l]
        h = ln(attn_out + h, ln1g_ref[l], ln1b_ref[l])     # fused residual+LN

        # ---- feed-forward ----
        h_bf = h.astype(jnp.bfloat16)
        f = jnp.dot(h_bf, w1_ref[l],
                    preferred_element_type=jnp.float32) + b1_ref[l]
        f = _gelu(f)                                       # f32 elementwise
        f = jnp.dot(f.astype(jnp.bfloat16), w2_ref[l],
                    preferred_element_type=jnp.float32) + b2_ref[l]
        h = ln(f + h, ln2g_ref[l], ln2b_ref[l])            # fused residual+LN

    # ---- classifier head: CLS token -> (dropout=identity) -> fc -> sigmoid --
    # TODO(synk): nn.Dropout is identity at inference; no stochastic drop here.
    cls = h[0:1, :]                                        # (1, D)
    logit = jnp.sum(cls * fcw_ref[...], axis=-1, keepdims=True) + fcb_ref[...]
    o_ref[...] = jax.nn.sigmoid(logit).reshape(1, 1, 1)


# ------------------------------------------------------------ parameters ----
def init_params(key):
    """Weights in 'natural' (in, out) layout, f32 (synthetic pretrained)."""
    keys = iter(jax.random.split(key, 8 * N_LAYERS + 8))

    def nrm(shape):
        return 0.02 * jax.random.normal(next(keys), shape, jnp.float32)

    def zeros(shape):
        return jnp.zeros(shape, jnp.float32)

    def ones(shape):
        return jnp.ones(shape, jnp.float32)

    layers = []
    for _ in range(N_LAYERS):
        layers.append(dict(
            wq=nrm((HIDDEN, HIDDEN)), bq=zeros((HIDDEN,)),
            wk=nrm((HIDDEN, HIDDEN)), bk=zeros((HIDDEN,)),
            wv=nrm((HIDDEN, HIDDEN)), bv=zeros((HIDDEN,)),
            wo=nrm((HIDDEN, HIDDEN)), bo=zeros((HIDDEN,)),
            ln1_g=ones((HIDDEN,)), ln1_b=zeros((HIDDEN,)),
            w1=nrm((HIDDEN, FFN)), b1=zeros((FFN,)),
            w2=nrm((FFN, HIDDEN)), b2=zeros((HIDDEN,)),
            ln2_g=ones((HIDDEN,)), ln2_b=zeros((HIDDEN,)),
        ))
    return dict(
        word_emb=nrm((VOCAB, HIDDEN)),
        pos_emb=nrm((MAX_POS, HIDDEN)),
        emb_ln_g=ones((HIDDEN,)), emb_ln_b=zeros((HIDDEN,)),
        layers=layers,
        fc_w=nrm((HIDDEN, 1)), fc_b=zeros((1,)),
    )


def pack_params(p):
    """Repack into kernel layout: stacked per-layer/per-head blocks, bf16 for
    all matmul weights, f32 for biases / layernorm / classifier head."""
    L = len(p["layers"])

    def per_head_out(w):                 # (D, D) -> (H, D, Dh), head = out cols
        return w.reshape(HIDDEN, N_HEADS, HEAD_DIM).transpose(1, 0, 2)

    wqkv, bqkv = [], []
    for lyr in p["layers"]:
        for wn, bn in (("wq", "bq"), ("wk", "bk"), ("wv", "bv")):
            wqkv.append(per_head_out(lyr[wn]))
            bqkv.append(lyr[bn].reshape(N_HEADS, 1, HEAD_DIM))

    stk = lambda name: jnp.stack([lyr[name] for lyr in p["layers"]])
    return dict(
        word_emb=p["word_emb"],
        pos_emb=p["pos_emb"],
        emb_ln_g=p["emb_ln_g"].reshape(1, HIDDEN),
        emb_ln_b=p["emb_ln_b"].reshape(1, HIDDEN),
        wqkv=jnp.concatenate(wqkv, axis=0).astype(jnp.bfloat16),   # (L*3*H,D,Dh)
        bqkv=jnp.concatenate(bqkv, axis=0),                        # (L*3*H,1,Dh)
        wo=jnp.concatenate(
            [lyr["wo"].reshape(N_HEADS, HEAD_DIM, HIDDEN)
             for lyr in p["layers"]], axis=0).astype(jnp.bfloat16),  # (L*H,Dh,D)
        bo=stk("bo").reshape(L, 1, HIDDEN),
        ln1_g=stk("ln1_g").reshape(L, 1, HIDDEN),
        ln1_b=stk("ln1_b").reshape(L, 1, HIDDEN),
        w1=stk("w1").astype(jnp.bfloat16),                          # (L,D,FFN)
        b1=stk("b1").reshape(L, 1, FFN),
        w2=stk("w2").astype(jnp.bfloat16),                          # (L,FFN,D)
        b2=stk("b2").reshape(L, 1, HIDDEN),
        ln2_g=stk("ln2_g").reshape(L, 1, HIDDEN),
        ln2_b=stk("ln2_b").reshape(L, 1, HIDDEN),
        fc_w=p["fc_w"].reshape(1, HIDDEN),                          # row vector
        fc_b=p["fc_b"].reshape(1, 1),
    )


# ----------------------------------------------------------- full forward ---
def distilbert_classifier(params, ids, mask):
    B, S = ids.shape
    # Embedding gather + positional add (plain-JAX glue).
    h0 = jnp.take(params["word_emb"], ids, axis=0) + params["pos_emb"][None, :S, :]
    maskf = mask.astype(jnp.float32).reshape(B, 1, S)

    def full(arr):
        shape = arr.shape
        n = len(shape)
        return pl.BlockSpec(shape, lambda b: (0,) * n)

    in_specs = [
        pl.BlockSpec((1, S, HIDDEN), lambda b: (b, 0, 0)),   # h0, per batch
        pl.BlockSpec((1, 1, S), lambda b: (b, 0, 0)),        # mask, per batch
        full(params["emb_ln_g"]), full(params["emb_ln_b"]),
        full(params["wqkv"]), full(params["bqkv"]),
        full(params["wo"]), full(params["bo"]),
        full(params["ln1_g"]), full(params["ln1_b"]),
        full(params["w1"]), full(params["b1"]),
        full(params["w2"]), full(params["b2"]),
        full(params["ln2_g"]), full(params["ln2_b"]),
        full(params["fc_w"]), full(params["fc_b"]),
    ]

    out = pl.pallas_call(
        _encoder_kernel,
        out_shape=jax.ShapeDtypeStruct((B, 1, 1), jnp.float32),
        grid=(B,),
        in_specs=in_specs,
        out_specs=pl.BlockSpec((1, 1, 1), lambda b: (b, 0, 0)),
        compiler_params=pltpu.CompilerParams(
            dimension_semantics=("parallel",)),
    )(h0, maskf,
      params["emb_ln_g"], params["emb_ln_b"],
      params["wqkv"], params["bqkv"], params["wo"], params["bo"],
      params["ln1_g"], params["ln1_b"], params["w1"], params["b1"],
      params["w2"], params["b2"], params["ln2_g"], params["ln2_b"],
      params["fc_w"], params["fc_b"])

    return jnp.squeeze(out.reshape(B, 1))     # matches torch .squeeze()


# ------------------------------------------------------------------ main ----
if __name__ == "__main__":
    key = jax.random.PRNGKey(0)
    pkey, ikey = jax.random.split(key)
    params = pack_params(init_params(pkey))

    B, S = 2, 8
    ids = jax.random.randint(ikey, (B, S), 0, VOCAB, dtype=jnp.int32)
    mask = jnp.ones((B, S), jnp.int32).at[1, 6:].set(0)  # pad tail of sample 1

    fwd = jax.jit(distilbert_classifier)
    out = fwd(params, ids, mask)
    out = jax.block_until_ready(out)

    assert out.shape == (B,)
    assert bool(jnp.all(jnp.isfinite(out)))
    assert bool(jnp.all((out >= 0.0) & (out <= 1.0)))
    print("KERNEL_OK")
</pallas_src>

<mosaic_0001>
module attributes {stable_mosaic.version = 11 : i64} {
  func.func @_encoder_kernel(%arg0: i32, %arg1: memref<1x8x264xf32, #tpu.memory_space<vmem>>, %arg2: memref<1x1x8xf32, #tpu.memory_space<vmem>>, %arg3: memref<1x264xf32, #tpu.memory_space<vmem>>, %arg4: memref<1x264xf32, #tpu.memory_space<vmem>>, %arg5: memref<24x264x66xbf16, #tpu.memory_space<vmem>>, %arg6: memref<24x1x66xf32, #tpu.memory_space<vmem>>, %arg7: memref<8x66x264xbf16, #tpu.memory_space<vmem>>, %arg8: memref<2x1x264xf32, #tpu.memory_space<vmem>>, %arg9: memref<2x1x264xf32, #tpu.memory_space<vmem>>, %arg10: memref<2x1x264xf32, #tpu.memory_space<vmem>>, %arg11: memref<2x264x512xbf16, #tpu.memory_space<vmem>>, %arg12: memref<2x1x512xf32, #tpu.memory_space<vmem>>, %arg13: memref<2x512x264xbf16, #tpu.memory_space<vmem>>, %arg14: memref<2x1x264xf32, #tpu.memory_space<vmem>>, %arg15: memref<2x1x264xf32, #tpu.memory_space<vmem>>, %arg16: memref<2x1x264xf32, #tpu.memory_space<vmem>>, %arg17: memref<1x264xf32, #tpu.memory_space<vmem>>, %arg18: memref<1x1xf32, #tpu.memory_space<vmem>>, %arg19: memref<1x1x1xf32, #tpu.memory_space<vmem>>) attributes {dimension_semantics = [#tpu.dimension_semantics<parallel>], iteration_bounds = array<i64: 2>, scalar_prefetch = 0 : i64, scratch_operands = 0 : i64, tpu.core_type = #tpu.core_type<tc>, window_params = [{transform_indices = @transform_0, window_bounds = array<i64: 1, 8, 264>}, {transform_indices = @transform_1, window_bounds = array<i64: 1, 1, 8>}, {pipeline_mode = #tpu.pipeline_mode<synchronous>, transform_indices = @transform_2, window_bounds = array<i64: 1, 264>}, {pipeline_mode = #tpu.pipeline_mode<synchronous>, transform_indices = @transform_3, window_bounds = array<i64: 1, 264>}, {pipeline_mode = #tpu.pipeline_mode<synchronous>, transform_indices = @transform_4, window_bounds = array<i64: 24, 264, 66>}, {pipeline_mode = #tpu.pipeline_mode<synchronous>, transform_indices = @transform_5, window_bounds = array<i64: 24, 1, 66>}, {pipeline_mode = #tpu.pipeline_mode<synchronous>, transform_indices = @transform_6, window_bounds = array<i64: 8, 66, 264>}, {pipeline_mode = #tpu.pipeline_mode<synchronous>, transform_indices = @transform_7, window_bounds = array<i64: 2, 1, 264>}, {pipeline_mode = #tpu.pipeline_mode<synchronous>, transform_indices = @transform_8, window_bounds = array<i64: 2, 1, 264>}, {pipeline_mode = #tpu.pipeline_mode<synchronous>, transform_indices = @transform_9, window_bounds = array<i64: 2, 1, 264>}, {pipeline_mode = #tpu.pipeline_mode<synchronous>, transform_indices = @transform_10, window_bounds = array<i64: 2, 264, 512>}, {pipeline_mode = #tpu.pipeline_mode<synchronous>, transform_indices = @transform_11, window_bounds = array<i64: 2, 1, 512>}, {pipeline_mode = #tpu.pipeline_mode<synchronous>, transform_indices = @transform_12, window_bounds = array<i64: 2, 512, 264>}, {pipeline_mode = #tpu.pipeline_mode<synchronous>, transform_indices = @transform_13, window_bounds = array<i64: 2, 1, 264>}, {pipeline_mode = #tpu.pipeline_mode<synchronous>, transform_indices = @transform_14, window_bounds = array<i64: 2, 1, 264>}, {pipeline_mode = #tpu.pipeline_mode<synchronous>, transform_indices = @transform_15, window_bounds = array<i64: 2, 1, 264>}, {pipeline_mode = #tpu.pipeline_mode<synchronous>, transform_indices = @transform_16, window_bounds = array<i64: 1, 264>}, {pipeline_mode = #tpu.pipeline_mode<synchronous>, transform_indices = @transform_17, window_bounds = array<i64: 1, 1>}, {transform_indices = @transform_18, window_bounds = array<i64: 1, 1, 1>}]} {
    %c0 = arith.constant 0 : index
    %c0_0 = arith.constant 0 : index
    %c0_1 = arith.constant 0 : index
    %0 = vector.load %arg1[%c0, %c0_0, %c0_1] : memref<1x8x264xf32, #tpu.memory_space<vmem>>, vector<1x8x264xf32>
    %1 = vector.shape_cast %0 : vector<1x8x264xf32> to vector<8x264xf32>
    %c0_2 = arith.constant 0 : index
    %c0_3 = arith.constant 0 : index
    %2 = vector.load %arg3[%c0_2, %c0_3] : memref<1x264xf32, #tpu.memory_space<vmem>>, vector<1x264xf32>
    %c0_4 = arith.constant 0 : index
    %c0_5 = arith.constant 0 : index
    %3 = vector.load %arg4[%c0_4, %c0_5] : memref<1x264xf32, #tpu.memory_space<vmem>>, vector<1x264xf32>
    %cst = arith.constant dense<0.000000e+00> : vector<8xf32>
    %4 = vector.multi_reduction <add>, %1, %cst [1] : vector<8x264xf32> to vector<8xf32>
    %5 = vector.shape_cast %4 : vector<8xf32> to vector<8x1xf32>
    %cst_6 = arith.constant 2.640000e+02 : f32
    %6 = vector.broadcast %cst_6 : f32 to vector<8x1xf32>
    %7 = arith.divf %5, %6 : vector<8x1xf32>
    %8 = vector.broadcast %7 : vector<8x1xf32> to vector<8x264xf32>
    %9 = arith.subf %1, %8 : vector<8x264xf32>
    %10 = arith.mulf %9, %9 : vector<8x264xf32>
    %cst_7 = arith.constant dense<0.000000e+00> : vector<8xf32>
    %11 = vector.multi_reduction <add>, %10, %cst_7 [1] : vector<8x264xf32> to vector<8xf32>
    %12 = vector.shape_cast %11 : vector<8xf32> to vector<8x1xf32>
    %cst_8 = arith.constant 2.640000e+02 : f32
    %13 = vector.broadcast %cst_8 : f32 to vector<8x1xf32>
    %14 = arith.divf %12, %13 : vector<8x1xf32>
    %15 = vector.broadcast %7 : vector<8x1xf32> to vector<8x264xf32>
    %16 = arith.subf %1, %15 : vector<8x264xf32>
    %cst_9 = arith.constant 9.99999996E-13 : f32
    %17 = vector.broadcast %cst_9 : f32 to vector<8x1xf32>
    %18 = arith.addf %14, %17 : vector<8x1xf32>
    %19 = math.rsqrt %18 : vector<8x1xf32>
    %20 = vector.broadcast %19 : vector<8x1xf32> to vector<8x264xf32>
    %21 = arith.mulf %16, %20 : vector<8x264xf32>
    %22 = vector.broadcast %2 : vector<1x264xf32> to vector<8x264xf32>
    %23 = arith.mulf %21, %22 : vector<8x264xf32>
    %24 = vector.broadcast %3 : vector<1x264xf32> to vector<8x264xf32>
    %25 = arith.addf %23, %24 : vector<8x264xf32>
    %c0_10 = arith.constant 0 : index
    %c0_11 = arith.constant 0 : index
    %c0_12 = arith.constant 0 : index
    %26 = vector.load %arg2[%c0_10, %c0_11, %c0_12] : memref<1x1x8xf32, #tpu.memory_space<vmem>>, vector<1x1x8xf32>
    %27 = vector.shape_cast %26 : vector<1x1x8xf32> to vector<1x8xf32>
    %28 = arith.truncf %25 : vector<8x264xf32> to vector<8x264xbf16>
    %cst_13 = arith.constant 0.000000e+00 : f32
    %29 = vector.broadcast %cst_13 : f32 to vector<8x264xf32>
    %c0_14 = arith.constant 0 : index
    %c0_15 = arith.constant 0 : index
    %c0_16 = arith.constant 0 : index
    %30 = vector.load %arg5[%c0_14, %c0_15, %c0_16] : memref<24x264x66xbf16, #tpu.memory_space<vmem>>, vector<1x264x66xbf16>
    %31 = vector.shape_cast %30 : vector<1x264x66xbf16> to vector<264x66xbf16>
    %cst_17 = arith.constant dense<0.000000e+00> : vector<8x66xf32>
    %32 = tpu.matmul %28, %31, %cst_17 {dimension_numbers = #tpu.dot_dimension_numbers<[1], [0], [0], [1], [0, 0, 1, 1], [], []>} : vector<8x264xbf16>, vector<264x66xbf16>, vector<8x66xf32> -> vector<8x66xf32>
    %c0_18 = arith.constant 0 : index
    %c0_19 = arith.constant 0 : index
    %c0_20 = arith.constant 0 : index
    %33 = vector.load %arg6[%c0_18, %c0_19, %c0_20] : memref<24x1x66xf32, #tpu.memory_space<vmem>>, vector<1x1x66xf32>
    %34 = vector.shape_cast %33 : vector<1x1x66xf32> to vector<1x66xf32>
    %35 = vector.broadcast %34 : vector<1x66xf32> to vector<8x66xf32>
    %36 = arith.addf %32, %35 : vector<8x66xf32>
    %c4 = arith.constant 4 : index
    %c0_21 = arith.constant 0 : index
    %c0_22 = arith.constant 0 : index
    %37 = vector.load %arg5[%c4, %c0_21, %c0_22] : memref<24x264x66xbf16, #tpu.memory_space<vmem>>, vector<1x264x66xbf16>
    %38 = vector.shape_cast %37 : vector<1x264x66xbf16> to vector<264x66xbf16>
    %cst_23 = arith.constant dense<0.000000e+00> : vector<8x66xf32>
    %39 = tpu.matmul %28, %38, %cst_23 {dimension_numbers = #tpu.dot_dimension_numbers<[1], [0], [0], [1], [0, 0, 1, 1], [], []>} : vector<8x264xbf16>, vector<264x66xbf16>, vector<8x66xf32> -> vector<8x66xf32>
    %c4_24 = arith.constant 4 : index
    %c0_25 = arith.constant 0 : index
    %c0_26 = arith.constant 0 : index
    %40 = vector.load %arg6[%c4_24, %c0_25, %c0_26] : memref<24x1x66xf32, #tpu.memory_space<vmem>>, vector<1x1x66xf32>
    %41 = vector.shape_cast %40 : vector<1x1x66xf32> to vector<1x66xf32>
    %42 = vector.broadcast %41 : vector<1x66xf32> to vector<8x66xf32>
    %43 = arith.addf %39, %42 : vector<8x66xf32>
    %c8 = arith.constant 8 : index
    %c0_27 = arith.constant 0 : index
    %c0_28 = arith.constant 0 : index
    %44 = vector.load %arg5[%c8, %c0_27, %c0_28] : memref<24x264x66xbf16, #tpu.memory_space<vmem>>, vector<1x264x66xbf16>
    %45 = vector.shape_cast %44 : vector<1x264x66xbf16> to vector<264x66xbf16>
    %cst_29 = arith.constant dense<0.000000e+00> : vector<8x66xf32>
    %46 = tpu.matmul %28, %45, %cst_29 {dimension_numbers = #tpu.dot_dimension_numbers<[1], [0], [0], [1], [0, 0, 1, 1], [], []>} : vector<8x264xbf16>, vector<264x66xbf16>, vector<8x66xf32> -> vector<8x66xf32>
    %c8_30 = arith.constant 8 : index
    %c0_31 = arith.constant 0 : index
    %c0_32 = arith.constant 0 : index
    %47 = vector.load %arg6[%c8_30, %c0_31, %c0_32] : memref<24x1x66xf32, #tpu.memory_space<vmem>>, vector<1x1x66xf32>
    %48 = vector.shape_cast %47 : vector<1x1x66xf32> to vector<1x66xf32>
    %49 = vector.broadcast %48 : vector<1x66xf32> to vector<8x66xf32>
    %50 = arith.addf %46, %49 : vector<8x66xf32>
    %51 = arith.truncf %36 : vector<8x66xf32> to vector<8x66xbf16>
    %52 = arith.truncf %43 : vector<8x66xf32> to vector<8x66xbf16>
    "tpu.trace_start"() <{level = 10 : i32, message = "qd,kd->qk"}> : () -> ()
    %cst_33 = arith.constant dense<0.000000e+00> : vector<8x8xf32>
    %53 = tpu.matmul %51, %52, %cst_33 {dimension_numbers = #tpu.dot_dimension_numbers<[1], [1], [0], [0], [0, 0, 1, 0], [], []>} : vector<8x66xbf16>, vector<8x66xbf16>, vector<8x8xf32> -> vector<8x8xf32>
    "tpu.trace_stop"() : () -> ()
    %cst_34 = arith.constant 0.123091489 : f32
    %54 = vector.broadcast %cst_34 : f32 to vector<8x8xf32>
    %55 = arith.mulf %53, %54 : vector<8x8xf32>
    %cst_35 = arith.constant 5.000000e-01 : f32
    %56 = vector.broadcast %cst_35 : f32 to vector<1x8xf32>
    %57 = arith.cmpf ogt, %27, %56 : vector<1x8xf32>
    %cst_36 = arith.constant -1.000000e+30 : f32
    %58 = vector.shape_cast %57 : vector<1x8xi1> to vector<1x8xi1>
    %59 = vector.broadcast %58 : vector<1x8xi1> to vector<8x8xi1>
    %60 = vector.broadcast %cst_36 : f32 to vector<8x8xf32>
    %61 = arith.select %59, %55, %60 : vector<8x8xi1>, vector<8x8xf32>
    %cst_37 = arith.constant dense<0xFF800000> : vector<8xf32>
    %62 = vector.multi_reduction <maximumf>, %61, %cst_37 [1] : vector<8x8xf32> to vector<8xf32>
    %63 = vector.shape_cast %62 : vector<8xf32> to vector<8x1xf32>
    %64 = vector.broadcast %63 : vector<8x1xf32> to vector<8x8xf32>
    %65 = arith.subf %61, %64 : vector<8x8xf32>
    %66 = math.exp %65 : vector<8x8xf32>
    %cst_38 = arith.constant dense<0.000000e+00> : vector<8xf32>
    %67 = vector.multi_reduction <add>, %66, %cst_38 [1] : vector<8x8xf32> to vector<8xf32>
    %68 = vector.shape_cast %67 : vector<8xf32> to vector<8x1xf32>
    %69 = vector.broadcast %68 : vector<8x1xf32> to vector<8x8xf32>
    %70 = arith.divf %66, %69 : vector<8x8xf32>
    %71 = arith.truncf %70 : vector<8x8xf32> to vector<8x8xbf16>
    %72 = arith.truncf %50 : vector<8x66xf32> to vector<8x66xbf16>
    %cst_39 = arith.constant dense<0.000000e+00> : vector<8x66xf32>
    %73 = tpu.matmul %71, %72, %cst_39 {dimension_numbers = #tpu.dot_dimension_numbers<[1], [0], [0], [1], [0, 0, 1, 1], [], []>} : vector<8x8xbf16>, vector<8x66xbf16>, vector<8x66xf32> -> vector<8x66xf32>
    %74 = arith.truncf %73 : vector<8x66xf32> to vector<8x66xbf16>
    %c0_40 = arith.constant 0 : index
    %c0_41 = arith.constant 0 : index
    %c0_42 = arith.constant 0 : index
    %75 = vector.load %arg7[%c0_40, %c0_41, %c0_42] : memref<8x66x264xbf16, #tpu.memory_space<vmem>>, vector<1x66x264xbf16>
    %76 = vector.shape_cast %75 : vector<1x66x264xbf16> to vector<66x264xbf16>
    %cst_43 = arith.constant dense<0.000000e+00> : vector<8x264xf32>
    %77 = tpu.matmul %74, %76, %cst_43 {dimension_numbers = #tpu.dot_dimension_numbers<[1], [0], [0], [1], [0, 0, 1, 1], [], []>} : vector<8x66xbf16>, vector<66x264xbf16>, vector<8x264xf32> -> vector<8x264xf32>
    %78 = arith.addf %29, %77 : vector<8x264xf32>
    %c1 = arith.constant 1 : index
    %c0_44 = arith.constant 0 : index
    %c0_45 = arith.constant 0 : index
    %79 = vector.load %arg5[%c1, %c0_44, %c0_45] : memref<24x264x66xbf16, #tpu.memory_space<vmem>>, vector<1x264x66xbf16>
    %80 = vector.shape_cast %79 : vector<1x264x66xbf16> to vector<264x66xbf16>
    %cst_46 = arith.constant dense<0.000000e+00> : vector<8x66xf32>
    %81 = tpu.matmul %28, %80, %cst_46 {dimension_numbers = #tpu.dot_dimension_numbers<[1], [0], [0], [1], [0, 0, 1, 1], [], []>} : vector<8x264xbf16>, vector<264x66xbf16>, vector<8x66xf32> -> vector<8x66xf32>
    %c1_47 = arith.constant 1 : index
    %c0_48 = arith.constant 0 : index
    %c0_49 = arith.constant 0 : index
    %82 = vector.load %arg6[%c1_47, %c0_48, %c0_49] : memref<24x1x66xf32, #tpu.memory_space<vmem>>, vector<1x1x66xf32>
    %83 = vector.shape_cast %82 : vector<1x1x66xf32> to vector<1x66xf32>
    %84 = vector.broadcast %83 : vector<1x66xf32> to vector<8x66xf32>
    %85 = arith.addf %81, %84 : vector<8x66xf32>
    %c5 = arith.constant 5 : index
    %c0_50 = arith.constant 0 : index
    %c0_51 = arith.constant 0 : index
    %86 = vector.load %arg5[%c5, %c0_50, %c0_51] : memref<24x264x66xbf16, #tpu.memory_space<vmem>>, vector<1x264x66xbf16>
    %87 = vector.shape_cast %86 : vector<1x264x66xbf16> to vector<264x66xbf16>
    %cst_52 = arith.constant dense<0.000000e+00> : vector<8x66xf32>
    %88 = tpu.matmul %28, %87, %cst_52 {dimension_numbers = #tpu.dot_dimension_numbers<[1], [0], [0], [1], [0, 0, 1, 1], [], []>} : vector<8x264xbf16>, vector<264x66xbf16>, vector<8x66xf32> -> vector<8x66xf32>
    %c5_53 = arith.constant 5 : index
    %c0_54 = arith.constant 0 : index
    %c0_55 = arith.constant 0 : index
    %89 = vector.load %arg6[%c5_53, %c0_54, %c0_55] : memref<24x1x66xf32, #tpu.memory_space<vmem>>, vector<1x1x66xf32>
    %90 = vector.shape_cast %89 : vector<1x1x66xf32> to vector<1x66xf32>
    %91 = vector.broadcast %90 : vector<1x66xf32> to vector<8x66xf32>
    %92 = arith.addf %88, %91 : vector<8x66xf32>
    %c9 = arith.constant 9 : index
    %c0_56 = arith.constant 0 : index
    %c0_57 = arith.constant 0 : index
    %93 = vector.load %arg5[%c9, %c0_56, %c0_57] : memref<24x264x66xbf16, #tpu.memory_space<vmem>>, vector<1x264x66xbf16>
    %94 = vector.shape_cast %93 : vector<1x264x66xbf16> to vector<264x66xbf16>
    %cst_58 = arith.constant dense<0.000000e+00> : vector<8x66xf32>
    %95 = tpu.matmul %28, %94, %cst_58 {dimension_numbers = #tpu.dot_dimension_numbers<[1], [0], [0], [1], [0, 0, 1, 1], [], []>} : vector<8x264xbf16>, vector<264x66xbf16>, vector<8x66xf32> -> vector<8x66xf32>
    %c9_59 = arith.constant 9 : index
    %c0_60 = arith.constant 0 : index
    %c0_61 = arith.constant 0 : index
    %96 = vector.load %arg6[%c9_59, %c0_60, %c0_61] : memref<24x1x66xf32, #tpu.memory_space<vmem>>, vector<1x1x66xf32>
    %97 = vector.shape_cast %96 : vector<1x1x66xf32> to vector<1x66xf32>
    %98 = vector.broadcast %97 : vector<1x66xf32> to vector<8x66xf32>
    %99 = arith.addf %95, %98 : vector<8x66xf32>
    %100 = arith.truncf %85 : vector<8x66xf32> to vector<8x66xbf16>
    %101 = arith.truncf %92 : vector<8x66xf32> to vector<8x66xbf16>
    "tpu.trace_start"() <{level = 10 : i32, message = "qd,kd->qk"}> : () -> ()
    %cst_62 = arith.constant dense<0.000000e+00> : vector<8x8xf32>
    %102 = tpu.matmul %100, %101, %cst_62 {dimension_numbers = #tpu.dot_dimension_numbers<[1], [1], [0], [0], [0, 0, 1, 0], [], []>} : vector<8x66xbf16>, vector<8x66xbf16>, vector<8x8xf32> -> vector<8x8xf32>
    "tpu.trace_stop"() : () -> ()
    %cst_63 = arith.constant 0.123091489 : f32
    %103 = vector.broadcast %cst_63 : f32 to vector<8x8xf32>
    %104 = arith.mulf %102, %103 : vector<8x8xf32>
    %cst_64 = arith.constant 5.000000e-01 : f32
    %105 = vector.broadcast %cst_64 : f32 to vector<1x8xf32>
    %106 = arith.cmpf ogt, %27, %105 : vector<1x8xf32>
    %cst_65 = arith.constant -1.000000e+30 : f32
    %107 = vector.shape_cast %106 : vector<1x8xi1> to vector<1x8xi1>
    %108 = vector.broadcast %107 : vector<1x8xi1> to vector<8x8xi1>
    %109 = vector.broadcast %cst_65 : f32 to vector<8x8xf32>
    %110 = arith.select %108, %104, %109 : vector<8x8xi1>, vector<8x8xf32>
    %cst_66 = arith.constant dense<0xFF800000> : vector<8xf32>
    %111 = vector.multi_reduction <maximumf>, %110, %cst_66 [1] : vector<8x8xf32> to vector<8xf32>
    %112 = vector.shape_cast %111 : vector<8xf32> to vector<8x1xf32>
    %113 = vector.broadcast %112 : vector<8x1xf32> to vector<8x8xf32>
    %114 = arith.subf %110, %113 : vector<8x8xf32>
    %115 = math.exp %114 : vector<8x8xf32>
    %cst_67 = arith.constant dense<0.000000e+00> : vector<8xf32>
    %116 = vector.multi_reduction <add>, %115, %cst_67 [1] : vector<8x8xf32> to vector<8xf32>
    %117 = vector.shape_cast %116 : vector<8xf32> to vector<8x1xf32>
    %118 = vector.broadcast %117 : vector<8x1xf32> to vector<8x8xf32>
    %119 = arith.divf %115, %118 : vector<8x8xf32>
    %120 = arith.truncf %119 : vector<8x8xf32> to vector<8x8xbf16>
    %121 = arith.truncf %99 : vector<8x66xf32> to vector<8x66xbf16>
    %cst_68 = arith.constant dense<0.000000e+00> : vector<8x66xf32>
    %122 = tpu.matmul %120, %121, %cst_68 {dimension_numbers = #tpu.dot_dimension_numbers<[1], [0], [0], [1], [0, 0, 1, 1], [], []>} : vector<8x8xbf16>, vector<8x66xbf16>, vector<8x66xf32> -> vector<8x66xf32>
    %123 = arith.truncf %122 : vector<8x66xf32> to vector<8x66xbf16>
    %c1_69 = arith.constant 1 : index
    %c0_70 = arith.constant 0 : index
    %c0_71 = arith.constant 0 : index
    %124 = vector.load %arg7[%c1_69, %c0_70, %c0_71] : memref<8x66x264xbf16, #tpu.memory_space<vmem>>, vector<1x66x264xbf16>
    %125 = vector.shape_cast %124 : vector<1x66x264xbf16> to vector<66x264xbf16>
    %cst_72 = arith.constant dense<0.000000e+00> : vector<8x264xf32>
    %126 = tpu.matmul %123, %125, %cst_72 {dimension_numbers = #tpu.dot_dimension_numbers<[1], [0], [0], [1], [0, 0, 1, 1], [], []>} : vector<8x66xbf16>, vector<66x264xbf16>, vector<8x264xf32> -> vector<8x264xf32>
    %127 = arith.addf %78, %126 : vector<8x264xf32>
    %c2 = arith.constant 2 : index
    %c0_73 = arith.constant 0 : index
    %c0_74 = arith.constant 0 : index
    %128 = vector.load %arg5[%c2, %c0_73, %c0_74] : memref<24x264x66xbf16, #tpu.memory_space<vmem>>, vector<1x264x66xbf16>
    %129 = vector.shape_cast %128 : vector<1x264x66xbf16> to vector<264x66xbf16>
    %cst_75 = arith.constant dense<0.000000e+00> : vector<8x66xf32>
    %130 = tpu.matmul %28, %129, %cst_75 {dimension_numbers = #tpu.dot_dimension_numbers<[1], [0], [0], [1], [0, 0, 1, 1], [], []>} : vector<8x264xbf16>, vector<264x66xbf16>, vector<8x66xf32> -> vector<8x66xf32>
    %c2_76 = arith.constant 2 : index
    %c0_77 = arith.constant 0 : index
    %c0_78 = arith.constant 0 : index
    %131 = vector.load %arg6[%c2_76, %c0_77, %c0_78] : memref<24x1x66xf32, #tpu.memory_space<vmem>>, vector<1x1x66xf32>
    %132 = vector.shape_cast %131 : vector<1x1x66xf32> to vector<1x66xf32>
    %133 = vector.broadcast %132 : vector<1x66xf32> to vector<8x66xf32>
    %134 = arith.addf %130, %133 : vector<8x66xf32>
    %c6 = arith.constant 6 : index
    %c0_79 = arith.constant 0 : index
    %c0_80 = arith.constant 0 : index
    %135 = vector.load %arg5[%c6, %c0_79, %c0_80] : memref<24x264x66xbf16, #tpu.memory_space<vmem>>, vector<1x264x66xbf16>
    %136 = vector.shape_cast %135 : vector<1x264x66xbf16> to vector<264x66xbf16>
    %cst_81 = arith.constant dense<0.000000e+00> : vector<8x66xf32>
    %137 = tpu.matmul %28, %136, %cst_81 {dimension_numbers = #tpu.dot_dimension_numbers<[1], [0], [0], [1], [0, 0, 1, 1], [], []>} : vector<8x264xbf16>, vector<264x66xbf16>, vector<8x66xf32> -> vector<8x66xf32>
    %c6_82 = arith.constant 6 : index
    %c0_83 = arith.constant 0 : index
    %c0_84 = arith.constant 0 : index
    %138 = vector.load %arg6[%c6_82, %c0_83, %c0_84] : memref<24x1x66xf32, #tpu.memory_space<vmem>>, vector<1x1x66xf32>
    %139 = vector.shape_cast %138 : vector<1x1x66xf32> to vector<1x66xf32>
    %140 = vector.broadcast %139 : vector<1x66xf32> to vector<8x66xf32>
    %141 = arith.addf %137, %140 : vector<8x66xf32>
    %c10 = arith.constant 10 : index
    %c0_85 = arith.constant 0 : index
    %c0_86 = arith.constant 0 : index
    %142 = vector.load %arg5[%c10, %c0_85, %c0_86] : memref<24x264x66xbf16, #tpu.memory_space<vmem>>, vector<1x264x66xbf16>
    %143 = vector.shape_cast %142 : vector<1x264x66xbf16> to vector<264x66xbf16>
    %cst_87 = arith.constant dense<0.000000e+00> : vector<8x66xf32>
    %144 = tpu.matmul %28, %143, %cst_87 {dimension_numbers = #tpu.dot_dimension_numbers<[1], [0], [0], [1], [0, 0, 1, 1], [], []>} : vector<8x264xbf16>, vector<264x66xbf16>, vector<8x66xf32> -> vector<8x66xf32>
    %c10_88 = arith.constant 10 : index
    %c0_89 = arith.constant 0 : index
    %c0_90 = arith.constant 0 : index
    %145 = vector.load %arg6[%c10_88, %c0_89, %c0_90] : memref<24x1x66xf32, #tpu.memory_space<vmem>>, vector<1x1x66xf32>
    %146 = vector.shape_cast %145 : vector<1x1x66xf32> to vector<1x66xf32>
    %147 = vector.broadcast %146 : vector<1x66xf32> to vector<8x66xf32>
    %148 = arith.addf %144, %147 : vector<8x66xf32>
    %149 = arith.truncf %134 : vector<8x66xf32> to vector<8x66xbf16>
    %150 = arith.truncf %141 : vector<8x66xf32> to vector<8x66xbf16>
    "tpu.trace_start"() <{level = 10 : i32, message = "qd,kd->qk"}> : () -> ()
    %cst_91 = arith.constant dense<0.000000e+00> : vector<8x8xf32>
    %151 = tpu.matmul %149, %150, %cst_91 {dimension_numbers = #tpu.dot_dimension_numbers<[1], [1], [0], [0], [0, 0, 1, 0], [], []>} : vector<8x66xbf16>, vector<8x66xbf16>, vector<8x8xf32> -> vector<8x8xf32>
    "tpu.trace_stop"() : () -> ()
    %cst_92 = arith.constant 0.123091489 : f32
    %152 = vector.broadcast %cst_92 : f32 to vector<8x8xf32>
    %153 = arith.mulf %151, %152 : vector<8x8xf32>
    %cst_93 = arith.constant 5.000000e-01 : f32
    %154 = vector.broadcast %cst_93 : f32 to vector<1x8xf32>
    %155 = arith.cmpf ogt, %27, %154 : vector<1x8xf32>
    %cst_94 = arith.constant -1.000000e+30 : f32
    %156 = vector.shape_cast %155 : vector<1x8xi1> to vector<1x8xi1>
    %157 = vector.broadcast %156 : vector<1x8xi1> to vector<8x8xi1>
    %158 = vector.broadcast %cst_94 : f32 to vector<8x8xf32>
    %159 = arith.select %157, %153, %158 : vector<8x8xi1>, vector<8x8xf32>
    %cst_95 = arith.constant dense<0xFF800000> : vector<8xf32>
    %160 = vector.multi_reduction <maximumf>, %159, %cst_95 [1] : vector<8x8xf32> to vector<8xf32>
    %161 = vector.shape_cast %160 : vector<8xf32> to vector<8x1xf32>
    %162 = vector.broadcast %161 : vector<8x1xf32> to vector<8x8xf32>
    %163 = arith.subf %159, %162 : vector<8x8xf32>
    %164 = math.exp %163 : vector<8x8xf32>
    %cst_96 = arith.constant dense<0.000000e+00> : vector<8xf32>
    %165 = vector.multi_reduction <add>, %164, %cst_96 [1] : vector<8x8xf32> to vector<8xf32>
    %166 = vector.shape_cast %165 : vector<8xf32> to vector<8x1xf32>
    %167 = vector.broadcast %166 : vector<8x1xf32> to vector<8x8xf32>
    %168 = arith.divf %164, %167 : vector<8x8xf32>
    %169 = arith.truncf %168 : vector<8x8xf32> to vector<8x8xbf16>
    %170 = arith.truncf %148 : vector<8x66xf32> to vector<8x66xbf16>
    %cst_97 = arith.constant dense<0.000000e+00> : vector<8x66xf32>
    %171 = tpu.matmul %169, %170, %cst_97 {dimension_numbers = #tpu.dot_dimension_numbers<[1], [0], [0], [1], [0, 0, 1, 1], [], []>} : vector<8x8xbf16>, vector<8x66xbf16>, vector<8x66xf32> -> vector<8x66xf32>
    %172 = arith.truncf %171 : vector<8x66xf32> to vector<8x66xbf16>
    %c2_98 = arith.constant 2 : index
    %c0_99 = arith.constant 0 : index
    %c0_100 = arith.constant 0 : index
    %173 = vector.load %arg7[%c2_98, %c0_99, %c0_100] : memref<8x66x264xbf16, #tpu.memory_space<vmem>>, vector<1x66x264xbf16>
    %174 = vector.shape_cast %173 : vector<1x66x264xbf16> to vector<66x264xbf16>
    %cst_101 = arith.constant dense<0.000000e+00> : vector<8x264xf32>
    %175 = tpu.matmul %172, %174, %cst_101 {dimension_numbers = #tpu.dot_dimension_numbers<[1], [0], [0], [1], [0, 0, 1, 1], [], []>} : vector<8x66xbf16>, vector<66x264xbf16>, vector<8x264xf32> -> vector<8x264xf32>
    %176 = arith.addf %127, %175 : vector<8x264xf32>
    %c3 = arith.constant 3 : index
    %c0_102 = arith.constant 0 : index
    %c0_103 = arith.constant 0 : index
    %177 = vector.load %arg5[%c3, %c0_102, %c0_103] : memref<24x264x66xbf16, #tpu.memory_space<vmem>>, vector<1x264x66xbf16>
    %178 = vector.shape_cast %177 : vector<1x264x66xbf16> to vector<264x66xbf16>
    %cst_104 = arith.constant dense<0.000000e+00> : vector<8x66xf32>
    %179 = tpu.matmul %28, %178, %cst_104 {dimension_numbers = #tpu.dot_dimension_numbers<[1], [0], [0], [1], [0, 0, 1, 1], [], []>} : vector<8x264xbf16>, vector<264x66xbf16>, vector<8x66xf32> -> vector<8x66xf32>
    %c3_105 = arith.constant 3 : index
    %c0_106 = arith.constant 0 : index
    %c0_107 = arith.constant 0 : index
    %180 = vector.load %arg6[%c3_105, %c0_106, %c0_107] : memref<24x1x66xf32, #tpu.memory_space<vmem>>, vector<1x1x66xf32>
    %181 = vector.shape_cast %180 : vector<1x1x66xf32> to vector<1x66xf32>
    %182 = vector.broadcast %181 : vector<1x66xf32> to vector<8x66xf32>
    %183 = arith.addf %179, %182 : vector<8x66xf32>
    %c7 = arith.constant 7 : index
    %c0_108 = arith.constant 0 : index
    %c0_109 = arith.constant 0 : index
    %184 = vector.load %arg5[%c7, %c0_108, %c0_109] : memref<24x264x66xbf16, #tpu.memory_space<vmem>>, vector<1x264x66xbf16>
    %185 = vector.shape_cast %184 : vector<1x264x66xbf16> to vector<264x66xbf16>
    %cst_110 = arith.constant dense<0.000000e+00> : vector<8x66xf32>
    %186 = tpu.matmul %28, %185, %cst_110 {dimension_numbers = #tpu.dot_dimension_numbers<[1], [0], [0], [1], [0, 0, 1, 1], [], []>} : vector<8x264xbf16>, vector<264x66xbf16>, vector<8x66xf32> -> vector<8x66xf32>
    %c7_111 = arith.constant 7 : index
    %c0_112 = arith.constant 0 : index
    %c0_113 = arith.constant 0 : index
    %187 = vector.load %arg6[%c7_111, %c0_112, %c0_113] : memref<24x1x66xf32, #tpu.memory_space<vmem>>, vector<1x1x66xf32>
    %188 = vector.shape_cast %187 : vector<1x1x66xf32> to vector<1x66xf32>
    %189 = vector.broadcast %188 : vector<1x66xf32> to vector<8x66xf32>
    %190 = arith.addf %186, %189 : vector<8x66xf32>
    %c11 = arith.constant 11 : index
    %c0_114 = arith.constant 0 : index
    %c0_115 = arith.constant 0 : index
    %191 = vector.load %arg5[%c11, %c0_114, %c0_115] : memref<24x264x66xbf16, #tpu.memory_space<vmem>>, vector<1x264x66xbf16>
    %192 = vector.shape_cast %191 : vector<1x264x66xbf16> to vector<264x66xbf16>
    %cst_116 = arith.constant dense<0.000000e+00> : vector<8x66xf32>
    %193 = tpu.matmul %28, %192, %cst_116 {dimension_numbers = #tpu.dot_dimension_numbers<[1], [0], [0], [1], [0, 0, 1, 1], [], []>} : vector<8x264xbf16>, vector<264x66xbf16>, vector<8x66xf32> -> vector<8x66xf32>
    %c11_117 = arith.constant 11 : index
    %c0_118 = arith.constant 0 : index
    %c0_119 = arith.constant 0 : index
    %194 = vector.load %arg6[%c11_117, %c0_118, %c0_119] : memref<24x1x66xf32, #tpu.memory_space<vmem>>, vector<1x1x66xf32>
    %195 = vector.shape_cast %194 : vector<1x1x66xf32> to vector<1x66xf32>
    %196 = vector.broadcast %195 : vector<1x66xf32> to vector<8x66xf32>
    %197 = arith.addf %193, %196 : vector<8x66xf32>
    %198 = arith.truncf %183 : vector<8x66xf32> to vector<8x66xbf16>
    %199 = arith.truncf %190 : vector<8x66xf32> to vector<8x66xbf16>
    "tpu.trace_start"() <{level = 10 : i32, message = "qd,kd->qk"}> : () -> ()
    %cst_120 = arith.constant dense<0.000000e+00> : vector<8x8xf32>
    %200 = tpu.matmul %198, %199, %cst_120 {dimension_numbers = #tpu.dot_dimension_numbers<[1], [1], [0], [0], [0, 0, 1, 0], [], []>} : vector<8x66xbf16>, vector<8x66xbf16>, vector<8x8xf32> -> vector<8x8xf32>
    "tpu.trace_stop"() : () -> ()
    %cst_121 = arith.constant 0.123091489 : f32
    %201 = vector.broadcast %cst_121 : f32 to vector<8x8xf32>
    %202 = arith.mulf %200, %201 : vector<8x8xf32>
    %cst_122 = arith.constant 5.000000e-01 : f32
    %203 = vector.broadcast %cst_122 : f32 to vector<1x8xf32>
    %204 = arith.cmpf ogt, %27, %203 : vector<1x8xf32>
    %cst_123 = arith.constant -1.000000e+30 : f32
    %205 = vector.shape_cast %204 : vector<1x8xi1> to vector<1x8xi1>
    %206 = vector.broadcast %205 : vector<1x8xi1> to vector<8x8xi1>
    %207 = vector.broadcast %cst_123 : f32 to vector<8x8xf32>
    %208 = arith.select %206, %202, %207 : vector<8x8xi1>, vector<8x8xf32>
    %cst_124 = arith.constant dense<0xFF800000> : vector<8xf32>
    %209 = vector.multi_reduction <maximumf>, %208, %cst_124 [1] : vector<8x8xf32> to vector<8xf32>
    %210 = vector.shape_cast %209 : vector<8xf32> to vector<8x1xf32>
    %211 = vector.broadcast %210 : vector<8x1xf32> to vector<8x8xf32>
    %212 = arith.subf %208, %211 : vector<8x8xf32>
    %213 = math.exp %212 : vector<8x8xf32>
    %cst_125 = arith.constant dense<0.000000e+00> : vector<8xf32>
    %214 = vector.multi_reduction <add>, %213, %cst_125 [1] : vector<8x8xf32> to vector<8xf32>
    %215 = vector.shape_cast %214 : vector<8xf32> to vector<8x1xf32>
    %216 = vector.broadcast %215 : vector<8x1xf32> to vector<8x8xf32>
    %217 = arith.divf %213, %216 : vector<8x8xf32>
    %218 = arith.truncf %217 : vector<8x8xf32> to vector<8x8xbf16>
    %219 = arith.truncf %197 : vector<8x66xf32> to vector<8x66xbf16>
    %cst_126 = arith.constant dense<0.000000e+00> : vector<8x66xf32>
    %220 = tpu.matmul %218, %219, %cst_126 {dimension_numbers = #tpu.dot_dimension_numbers<[1], [0], [0], [1], [0, 0, 1, 1], [], []>} : vector<8x8xbf16>, vector<8x66xbf16>, vector<8x66xf32> -> vector<8x66xf32>
    %221 = arith.truncf %220 : vector<8x66xf32> to vector<8x66xbf16>
    %c3_127 = arith.constant 3 : index
    %c0_128 = arith.constant 0 : index
    %c0_129 = arith.constant 0 : index
    %222 = vector.load %arg7[%c3_127, %c0_128, %c0_129] : memref<8x66x264xbf16, #tpu.memory_space<vmem>>, vector<1x66x264xbf16>
    %223 = vector.shape_cast %222 : vector<1x66x264xbf16> to vector<66x264xbf16>
    %cst_130 = arith.constant dense<0.000000e+00> : vector<8x264xf32>
    %224 = tpu.matmul %221, %223, %cst_130 {dimension_numbers = #tpu.dot_dimension_numbers<[1], [0], [0], [1], [0, 0, 1, 1], [], []>} : vector<8x66xbf16>, vector<66x264xbf16>, vector<8x264xf32> -> vector<8x264xf32>
    %225 = arith.addf %176, %224 : vector<8x264xf32>
    %c0_131 = arith.constant 0 : index
    %c0_132 = arith.constant 0 : index
    %c0_133 = arith.constant 0 : index
    %226 = vector.load %arg8[%c0_131, %c0_132, %c0_133] : memref<2x1x264xf32, #tpu.memory_space<vmem>>, vector<1x1x264xf32>
    %227 = vector.shape_cast %226 : vector<1x1x264xf32> to vector<1x264xf32>
    %228 = vector.broadcast %227 : vector<1x264xf32> to vector<8x264xf32>
    %229 = arith.addf %225, %228 : vector<8x264xf32>
    %230 = arith.addf %229, %25 : vector<8x264xf32>
    %c0_134 = arith.constant 0 : index
    %c0_135 = arith.constant 0 : index
    %c0_136 = arith.constant 0 : index
    %231 = vector.load %arg9[%c0_134, %c0_135, %c0_136] : memref<2x1x264xf32, #tpu.memory_space<vmem>>, vector<1x1x264xf32>
    %232 = vector.shape_cast %231 : vector<1x1x264xf32> to vector<1x264xf32>
    %c0_137 = arith.constant 0 : index
    %c0_138 = arith.constant 0 : index
    %c0_139 = arith.constant 0 : index
    %233 = vector.load %arg10[%c0_137, %c0_138, %c0_139] : memref<2x1x264xf32, #tpu.memory_space<vmem>>, vector<1x1x264xf32>
    %234 = vector.shape_cast %233 : vector<1x1x264xf32> to vector<1x264xf32>
    %cst_140 = arith.constant dense<0.000000e+00> : vector<8xf32>
    %235 = vector.multi_reduction <add>, %230, %cst_140 [1] : vector<8x264xf32> to vector<8xf32>
    %236 = vector.shape_cast %235 : vector<8xf32> to vector<8x1xf32>
    %cst_141 = arith.constant 2.640000e+02 : f32
    %237 = vector.broadcast %cst_141 : f32 to vector<8x1xf32>
    %238 = arith.divf %236, %237 : vector<8x1xf32>
    %239 = vector.broadcast %238 : vector<8x1xf32> to vector<8x264xf32>
    %240 = arith.subf %230, %239 : vector<8x264xf32>
    %241 = arith.mulf %240, %240 : vector<8x264xf32>
    %cst_142 = arith.constant dense<0.000000e+00> : vector<8xf32>
    %242 = vector.multi_reduction <add>, %241, %cst_142 [1] : vector<8x264xf32> to vector<8xf32>
    %243 = vector.shape_cast %242 : vector<8xf32> to vector<8x1xf32>
    %cst_143 = arith.constant 2.640000e+02 : f32
    %244 = vector.broadcast %cst_143 : f32 to vector<8x1xf32>
    %245 = arith.divf %243, %244 : vector<8x1xf32>
    %246 = vector.broadcast %238 : vector<8x1xf32> to vector<8x264xf32>
    %247 = arith.subf %230, %246 : vector<8x264xf32>
    %cst_144 = arith.constant 9.99999996E-13 : f32
    %248 = vector.broadcast %cst_144 : f32 to vector<8x1xf32>
    %249 = arith.addf %245, %248 : vector<8x1xf32>
    %250 = math.rsqrt %249 : vector<8x1xf32>
    %251 = vector.broadcast %250 : vector<8x1xf32> to vector<8x264xf32>
    %252 = arith.mulf %247, %251 : vector<8x264xf32>
    %253 = vector.broadcast %232 : vector<1x264xf32> to vector<8x264xf32>
    %254 = arith.mulf %252, %253 : vector<8x264xf32>
    %255 = vector.broadcast %234 : vector<1x264xf32> to vector<8x264xf32>
    %256 = arith.addf %254, %255 : vector<8x264xf32>
    %257 = arith.truncf %256 : vector<8x264xf32> to vector<8x264xbf16>
    %c0_145 = arith.constant 0 : index
    %c0_146 = arith.constant 0 : index
    %c0_147 = arith.constant 0 : index
    %258 = vector.load %arg11[%c0_145, %c0_146, %c0_147] : memref<2x264x512xbf16, #tpu.memory_space<vmem>>, vector<1x264x512xbf16>
    %259 = vector.shape_cast %258 : vector<1x264x512xbf16> to vector<264x512xbf16>
    %cst_148 = arith.constant dense<0.000000e+00> : vector<8x512xf32>
    %260 = tpu.matmul %257, %259, %cst_148 {dimension_numbers = #tpu.dot_dimension_numbers<[1], [0], [0], [1], [0, 0, 1, 1], [], []>} : vector<8x264xbf16>, vector<264x512xbf16>, vector<8x512xf32> -> vector<8x512xf32>
    %c0_149 = arith.constant 0 : index
    %c0_150 = arith.constant 0 : index
    %c0_151 = arith.constant 0 : index
    %261 = vector.load %arg12[%c0_149, %c0_150, %c0_151] : memref<2x1x512xf32, #tpu.memory_space<vmem>>, vector<1x1x512xf32>
    %262 = vector.shape_cast %261 : vector<1x1x512xf32> to vector<1x512xf32>
    %263 = vector.broadcast %262 : vector<1x512xf32> to vector<8x512xf32>
    %264 = arith.addf %260, %263 : vector<8x512xf32>
    %cst_152 = arith.constant 5.000000e-01 : f32
    %265 = vector.broadcast %cst_152 : f32 to vector<8x512xf32>
    %266 = arith.mulf %265, %264 : vector<8x512xf32>
    %cst_153 = arith.constant 4.471500e-02 : f32
    %267 = vector.broadcast %cst_153 : f32 to vector<8x512xf32>
    %268 = arith.mulf %267, %264 : vector<8x512xf32>
    %269 = arith.mulf %268, %264 : vector<8x512xf32>
    %270 = arith.mulf %269, %264 : vector<8x512xf32>
    %271 = arith.addf %264, %270 : vector<8x512xf32>
    %cst_154 = arith.constant 0.797884583 : f32
    %272 = vector.broadcast %cst_154 : f32 to vector<8x512xf32>
    %273 = arith.mulf %272, %271 : vector<8x512xf32>
    %274 = math.tanh %273 : vector<8x512xf32>
    %cst_155 = arith.constant 1.000000e+00 : f32
    %275 = vector.broadcast %cst_155 : f32 to vector<8x512xf32>
    %276 = arith.addf %275, %274 : vector<8x512xf32>
    %277 = arith.mulf %266, %276 : vector<8x512xf32>
    %278 = arith.truncf %277 : vector<8x512xf32> to vector<8x512xbf16>
    %c0_156 = arith.constant 0 : index
    %c0_157 = arith.constant 0 : index
    %c0_158 = arith.constant 0 : index
    %279 = vector.load %arg13[%c0_156, %c0_157, %c0_158] : memref<2x512x264xbf16, #tpu.memory_space<vmem>>, vector<1x512x264xbf16>
    %280 = vector.shape_cast %279 : vector<1x512x264xbf16> to vector<512x264xbf16>
    %cst_159 = arith.constant dense<0.000000e+00> : vector<8x264xf32>
    %281 = tpu.matmul %278, %280, %cst_159 {dimension_numbers = #tpu.dot_dimension_numbers<[1], [0], [0], [1], [0, 0, 1, 1], [], []>} : vector<8x512xbf16>, vector<512x264xbf16>, vector<8x264xf32> -> vector<8x264xf32>
    %c0_160 = arith.constant 0 : index
    %c0_161 = arith.constant 0 : index
    %c0_162 = arith.constant 0 : index
    %282 = vector.load %arg14[%c0_160, %c0_161, %c0_162] : memref<2x1x264xf32, #tpu.memory_space<vmem>>, vector<1x1x264xf32>
    %283 = vector.shape_cast %282 : vector<1x1x264xf32> to vector<1x264xf32>
    %284 = vector.broadcast %283 : vector<1x264xf32> to vector<8x264xf32>
    %285 = arith.addf %281, %284 : vector<8x264xf32>
    %286 = arith.addf %285, %256 : vector<8x264xf32>
    %c0_163 = arith.constant 0 : index
    %c0_164 = arith.constant 0 : index
    %c0_165 = arith.constant 0 : index
    %287 = vector.load %arg15[%c0_163, %c0_164, %c0_165] : memref<2x1x264xf32, #tpu.memory_space<vmem>>, vector<1x1x264xf32>
    %288 = vector.shape_cast %287 : vector<1x1x264xf32> to vector<1x264xf32>
    %c0_166 = arith.constant 0 : index
    %c0_167 = arith.constant 0 : index
    %c0_168 = arith.constant 0 : index
    %289 = vector.load %arg16[%c0_166, %c0_167, %c0_168] : memref<2x1x264xf32, #tpu.memory_space<vmem>>, vector<1x1x264xf32>
    %290 = vector.shape_cast %289 : vector<1x1x264xf32> to vector<1x264xf32>
    %cst_169 = arith.constant dense<0.000000e+00> : vector<8xf32>
    %291 = vector.multi_reduction <add>, %286, %cst_169 [1] : vector<8x264xf32> to vector<8xf32>
    %292 = vector.shape_cast %291 : vector<8xf32> to vector<8x1xf32>
    %cst_170 = arith.constant 2.640000e+02 : f32
    %293 = vector.broadcast %cst_170 : f32 to vector<8x1xf32>
    %294 = arith.divf %292, %293 : vector<8x1xf32>
    %295 = vector.broadcast %294 : vector<8x1xf32> to vector<8x264xf32>
    %296 = arith.subf %286, %295 : vector<8x264xf32>
    %297 = arith.mulf %296, %296 : vector<8x264xf32>
    %cst_171 = arith.constant dense<0.000000e+00> : vector<8xf32>
    %298 = vector.multi_reduction <add>, %297, %cst_171 [1] : vector<8x264xf32> to vector<8xf32>
    %299 = vector.shape_cast %298 : vector<8xf32> to vector<8x1xf32>
    %cst_172 = arith.constant 2.640000e+02 : f32
    %300 = vector.broadcast %cst_172 : f32 to vector<8x1xf32>
    %301 = arith.divf %299, %300 : vector<8x1xf32>
    %302 = vector.broadcast %294 : vector<8x1xf32> to vector<8x264xf32>
    %303 = arith.subf %286, %302 : vector<8x264xf32>
    %cst_173 = arith.constant 9.99999996E-13 : f32
    %304 = vector.broadcast %cst_173 : f32 to vector<8x1xf32>
    %305 = arith.addf %301, %304 : vector<8x1xf32>
    %306 = math.rsqrt %305 : vector<8x1xf32>
    %307 = vector.broadcast %306 : vector<8x1xf32> to vector<8x264xf32>
    %308 = arith.mulf %303, %307 : vector<8x264xf32>
    %309 = vector.broadcast %288 : vector<1x264xf32> to vector<8x264xf32>
    %310 = arith.mulf %308, %309 : vector<8x264xf32>
    %311 = vector.broadcast %290 : vector<1x264xf32> to vector<8x264xf32>
    %312 = arith.addf %310, %311 : vector<8x264xf32>
    %313 = arith.truncf %312 : vector<8x264xf32> to vector<8x264xbf16>
    %cst_174 = arith.constant 0.000000e+00 : f32
    %314 = vector.broadcast %cst_174 : f32 to vector<8x264xf32>
    %c12 = arith.constant 12 : index
    %c0_175 = arith.constant 0 : index
    %c0_176 = arith.constant 0 : index
    %315 = vector.load %arg5[%c12, %c0_175, %c0_176] : memref<24x264x66xbf16, #tpu.memory_space<vmem>>, vector<1x264x66xbf16>
    %316 = vector.shape_cast %315 : vector<1x264x66xbf16> to vector<264x66xbf16>
    %cst_177 = arith.constant dense<0.000000e+00> : vector<8x66xf32>
    %317 = tpu.matmul %313, %316, %cst_177 {dimension_numbers = #tpu.dot_dimension_numbers<[1], [0], [0], [1], [0, 0, 1, 1], [], []>} : vector<8x264xbf16>, vector<264x66xbf16>, vector<8x66xf32> -> vector<8x66xf32>
    %c12_178 = arith.constant 12 : index
    %c0_179 = arith.constant 0 : index
    %c0_180 = arith.constant 0 : index
    %318 = vector.load %arg6[%c12_178, %c0_179, %c0_180] : memref<24x1x66xf32, #tpu.memory_space<vmem>>, vector<1x1x66xf32>
    %319 = vector.shape_cast %318 : vector<1x1x66xf32> to vector<1x66xf32>
    %320 = vector.broadcast %319 : vector<1x66xf32> to vector<8x66xf32>
    %321 = arith.addf %317, %320 : vector<8x66xf32>
    %c16 = arith.constant 16 : index
    %c0_181 = arith.constant 0 : index
    %c0_182 = arith.constant 0 : index
    %322 = vector.load %arg5[%c16, %c0_181, %c0_182] : memref<24x264x66xbf16, #tpu.memory_space<vmem>>, vector<1x264x66xbf16>
    %323 = vector.shape_cast %322 : vector<1x264x66xbf16> to vector<264x66xbf16>
    %cst_183 = arith.constant dense<0.000000e+00> : vector<8x66xf32>
    %324 = tpu.matmul %313, %323, %cst_183 {dimension_numbers = #tpu.dot_dimension_numbers<[1], [0], [0], [1], [0, 0, 1, 1], [], []>} : vector<8x264xbf16>, vector<264x66xbf16>, vector<8x66xf32> -> vector<8x66xf32>
    %c16_184 = arith.constant 16 : index
    %c0_185 = arith.constant 0 : index
    %c0_186 = arith.constant 0 : index
    %325 = vector.load %arg6[%c16_184, %c0_185, %c0_186] : memref<24x1x66xf32, #tpu.memory_space<vmem>>, vector<1x1x66xf32>
    %326 = vector.shape_cast %325 : vector<1x1x66xf32> to vector<1x66xf32>
    %327 = vector.broadcast %326 : vector<1x66xf32> to vector<8x66xf32>
    %328 = arith.addf %324, %327 : vector<8x66xf32>
    %c20 = arith.constant 20 : index
    %c0_187 = arith.constant 0 : index
    %c0_188 = arith.constant 0 : index
    %329 = vector.load %arg5[%c20, %c0_187, %c0_188] : memref<24x264x66xbf16, #tpu.memory_space<vmem>>, vector<1x264x66xbf16>
    %330 = vector.shape_cast %329 : vector<1x264x66xbf16> to vector<264x66xbf16>
    %cst_189 = arith.constant dense<0.000000e+00> : vector<8x66xf32>
    %331 = tpu.matmul %313, %330, %cst_189 {dimension_numbers = #tpu.dot_dimension_numbers<[1], [0], [0], [1], [0, 0, 1, 1], [], []>} : vector<8x264xbf16>, vector<264x66xbf16>, vector<8x66xf32> -> vector<8x66xf32>
    %c20_190 = arith.constant 20 : index
    %c0_191 = arith.constant 0 : index
    %c0_192 = arith.constant 0 : index
    %332 = vector.load %arg6[%c20_190, %c0_191, %c0_192] : memref<24x1x66xf32, #tpu.memory_space<vmem>>, vector<1x1x66xf32>
    %333 = vector.shape_cast %332 : vector<1x1x66xf32> to vector<1x66xf32>
    %334 = vector.broadcast %333 : vector<1x66xf32> to vector<8x66xf32>
    %335 = arith.addf %331, %334 : vector<8x66xf32>
    %336 = arith.truncf %321 : vector<8x66xf32> to vector<8x66xbf16>
    %337 = arith.truncf %328 : vector<8x66xf32> to vector<8x66xbf16>
    "tpu.trace_start"() <{level = 10 : i32, message = "qd,kd->qk"}> : () -> ()
    %cst_193 = arith.constant dense<0.000000e+00> : vector<8x8xf32>
    %338 = tpu.matmul %336, %337, %cst_193 {dimension_numbers = #tpu.dot_dimension_numbers<[1], [1], [0], [0], [0, 0, 1, 0], [], []>} : vector<8x66xbf16>, vector<8x66xbf16>, vector<8x8xf32> -> vector<8x8xf32>
    "tpu.trace_stop"() : () -> ()
    %cst_194 = arith.constant 0.123091489 : f32
    %339 = vector.broadcast %cst_194 : f32 to vector<8x8xf32>
    %340 = arith.mulf %338, %339 : vector<8x8xf32>
    %cst_195 = arith.constant 5.000000e-01 : f32
    %341 = vector.broadcast %cst_195 : f32 to vector<1x8xf32>
    %342 = arith.cmpf ogt, %27, %341 : vector<1x8xf32>
    %cst_196 = arith.constant -1.000000e+30 : f32
    %343 = vector.shape_cast %342 : vector<1x8xi1> to vector<1x8xi1>
    %344 = vector.broadcast %343 : vector<1x8xi1> to vector<8x8xi1>
    %345 = vector.broadcast %cst_196 : f32 to vector<8x8xf32>
    %346 = arith.select %344, %340, %345 : vector<8x8xi1>, vector<8x8xf32>
    %cst_197 = arith.constant dense<0xFF800000> : vector<8xf32>
    %347 = vector.multi_reduction <maximumf>, %346, %cst_197 [1] : vector<8x8xf32> to vector<8xf32>
    %348 = vector.shape_cast %347 : vector<8xf32> to vector<8x1xf32>
    %349 = vector.broadcast %348 : vector<8x1xf32> to vector<8x8xf32>
    %350 = arith.subf %346, %349 : vector<8x8xf32>
    %351 = math.exp %350 : vector<8x8xf32>
    %cst_198 = arith.constant dense<0.000000e+00> : vector<8xf32>
    %352 = vector.multi_reduction <add>, %351, %cst_198 [1] : vector<8x8xf32> to vector<8xf32>
    %353 = vector.shape_cast %352 : vector<8xf32> to vector<8x1xf32>
    %354 = vector.broadcast %353 : vector<8x1xf32> to vector<8x8xf32>
    %355 = arith.divf %351, %354 : vector<8x8xf32>
    %356 = arith.truncf %355 : vector<8x8xf32> to vector<8x8xbf16>
    %357 = arith.truncf %335 : vector<8x66xf32> to vector<8x66xbf16>
    %cst_199 = arith.constant dense<0.000000e+00> : vector<8x66xf32>
    %358 = tpu.matmul %356, %357, %cst_199 {dimension_numbers = #tpu.dot_dimension_numbers<[1], [0], [0], [1], [0, 0, 1, 1], [], []>} : vector<8x8xbf16>, vector<8x66xbf16>, vector<8x66xf32> -> vector<8x66xf32>
    %359 = arith.truncf %358 : vector<8x66xf32> to vector<8x66xbf16>
    %c4_200 = arith.constant 4 : index
    %c0_201 = arith.constant 0 : index
    %c0_202 = arith.constant 0 : index
    %360 = vector.load %arg7[%c4_200, %c0_201, %c0_202] : memref<8x66x264xbf16, #tpu.memory_space<vmem>>, vector<1x66x264xbf16>
    %361 = vector.shape_cast %360 : vector<1x66x264xbf16> to vector<66x264xbf16>
    %cst_203 = arith.constant dense<0.000000e+00> : vector<8x264xf32>
    %362 = tpu.matmul %359, %361, %cst_203 {dimension_numbers = #tpu.dot_dimension_numbers<[1], [0], [0], [1], [0, 0, 1, 1], [], []>} : vector<8x66xbf16>, vector<66x264xbf16>, vector<8x264xf32> -> vector<8x264xf32>
    %363 = arith.addf %314, %362 : vector<8x264xf32>
    %c13 = arith.constant 13 : index
    %c0_204 = arith.constant 0 : index
    %c0_205 = arith.constant 0 : index
    %364 = vector.load %arg5[%c13, %c0_204, %c0_205] : memref<24x264x66xbf16, #tpu.memory_space<vmem>>, vector<1x264x66xbf16>
    %365 = vector.shape_cast %364 : vector<1x264x66xbf16> to vector<264x66xbf16>
    %cst_206 = arith.constant dense<0.000000e+00> : vector<8x66xf32>
    %366 = tpu.matmul %313, %365, %cst_206 {dimension_numbers = #tpu.dot_dimension_numbers<[1], [0], [0], [1], [0, 0, 1, 1], [], []>} : vector<8x264xbf16>, vector<264x66xbf16>, vector<8x66xf32> -> vector<8x66xf32>
    %c13_207 = arith.constant 13 : index
    %c0_208 = arith.constant 0 : index
    %c0_209 = arith.constant 0 : index
    %367 = vector.load %arg6[%c13_207, %c0_208, %c0_209] : memref<24x1x66xf32, #tpu.memory_space<vmem>>, vector<1x1x66xf32>
    %368 = vector.shape_cast %367 : vector<1x1x66xf32> to vector<1x66xf32>
    %369 = vector.broadcast %368 : vector<1x66xf32> to vector<8x66xf32>
    %370 = arith.addf %366, %369 : vector<8x66xf32>
    %c17 = arith.constant 17 : index
    %c0_210 = arith.constant 0 : index
    %c0_211 = arith.constant 0 : index
    %371 = vector.load %arg5[%c17, %c0_210, %c0_211] : memref<24x264x66xbf16, #tpu.memory_space<vmem>>, vector<1x264x66xbf16>
    %372 = vector.shape_cast %371 : vector<1x264x66xbf16> to vector<264x66xbf16>
    %cst_212 = arith.constant dense<0.000000e+00> : vector<8x66xf32>
    %373 = tpu.matmul %313, %372, %cst_212 {dimension_numbers = #tpu.dot_dimension_numbers<[1], [0], [0], [1], [0, 0, 1, 1], [], []>} : vector<8x264xbf16>, vector<264x66xbf16>, vector<8x66xf32> -> vector<8x66xf32>
    %c17_213 = arith.constant 17 : index
    %c0_214 = arith.constant 0 : index
    %c0_215 = arith.constant 0 : index
    %374 = vector.load %arg6[%c17_213, %c0_214, %c0_215] : memref<24x1x66xf32, #tpu.memory_space<vmem>>, vector<1x1x66xf32>
    %375 = vector.shape_cast %374 : vector<1x1x66xf32> to vector<1x66xf32>
    %376 = vector.broadcast %375 : vector<1x66xf32> to vector<8x66xf32>
    %377 = arith.addf %373, %376 : vector<8x66xf32>
    %c21 = arith.constant 21 : index
    %c0_216 = arith.constant 0 : index
    %c0_217 = arith.constant 0 : index
    %378 = vector.load %arg5[%c21, %c0_216, %c0_217] : memref<24x264x66xbf16, #tpu.memory_space<vmem>>, vector<1x264x66xbf16>
    %379 = vector.shape_cast %378 : vector<1x264x66xbf16> to vector<264x66xbf16>
    %cst_218 = arith.constant dense<0.000000e+00> : vector<8x66xf32>
    %380 = tpu.matmul %313, %379, %cst_218 {dimension_numbers = #tpu.dot_dimension_numbers<[1], [0], [0], [1], [0, 0, 1, 1], [], []>} : vector<8x264xbf16>, vector<264x66xbf16>, vector<8x66xf32> -> vector<8x66xf32>
    %c21_219 = arith.constant 21 : index
    %c0_220 = arith.constant 0 : index
    %c0_221 = arith.constant 0 : index
    %381 = vector.load %arg6[%c21_219, %c0_220, %c0_221] : memref<24x1x66xf32, #tpu.memory_space<vmem>>, vector<1x1x66xf32>
    %382 = vector.shape_cast %381 : vector<1x1x66xf32> to vector<1x66xf32>
    %383 = vector.broadcast %382 : vector<1x66xf32> to vector<8x66xf32>
    %384 = arith.addf %380, %383 : vector<8x66xf32>
    %385 = arith.truncf %370 : vector<8x66xf32> to vector<8x66xbf16>
    %386 = arith.truncf %377 : vector<8x66xf32> to vector<8x66xbf16>
    "tpu.trace_start"() <{level = 10 : i32, message = "qd,kd->qk"}> : () -> ()
    %cst_222 = arith.constant dense<0.000000e+00> : vector<8x8xf32>
    %387 = tpu.matmul %385, %386, %cst_222 {dimension_numbers = #tpu.dot_dimension_numbers<[1], [1], [0], [0], [0, 0, 1, 0], [], []>} : vector<8x66xbf16>, vector<8x66xbf16>, vector<8x8xf32> -> vector<8x8xf32>
    "tpu.trace_stop"() : () -> ()
    %cst_223 = arith.constant 0.123091489 : f32
    %388 = vector.broadcast %cst_223 : f32 to vector<8x8xf32>
    %389 = arith.mulf %387, %388 : vector<8x8xf32>
    %cst_224 = arith.constant 5.000000e-01 : f32
    %390 = vector.broadcast %cst_224 : f32 to vector<1x8xf32>
    %391 = arith.cmpf ogt, %27, %390 : vector<1x8xf32>
    %cst_225 = arith.constant -1.000000e+30 : f32
    %392 = vector.shape_cast %391 : vector<1x8xi1> to vector<1x8xi1>
    %393 = vector.broadcast %392 : vector<1x8xi1> to vector<8x8xi1>
    %394 = vector.broadcast %cst_225 : f32 to vector<8x8xf32>
    %395 = arith.select %393, %389, %394 : vector<8x8xi1>, vector<8x8xf32>
    %cst_226 = arith.constant dense<0xFF800000> : vector<8xf32>
    %396 = vector.multi_reduction <maximumf>, %395, %cst_226 [1] : vector<8x8xf32> to vector<8xf32>
    %397 = vector.shape_cast %396 : vector<8xf32> to vector<8x1xf32>
    %398 = vector.broadcast %397 : vector<8x1xf32> to vector<8x8xf32>
    %399 = arith.subf %395, %398 : vector<8x8xf32>
    %400 = math.exp %399 : vector<8x8xf32>
    %cst_227 = arith.constant dense<0.000000e+00> : vector<8xf32>
    %401 = vector.multi_reduction <add>, %400, %cst_227 [1] : vector<8x8xf32> to vector<8xf32>
    %402 = vector.shape_cast %401 : vector<8xf32> to vector<8x1xf32>
    %403 = vector.broadcast %402 : vector<8x1xf32> to vector<8x8xf32>
    %404 = arith.divf %400, %403 : vector<8x8xf32>
    %405 = arith.truncf %404 : vector<8x8xf32> to vector<8x8xbf16>
    %406 = arith.truncf %384 : vector<8x66xf32> to vector<8x66xbf16>
    %cst_228 = arith.constant dense<0.000000e+00> : vector<8x66xf32>
    %407 = tpu.matmul %405, %406, %cst_228 {dimension_numbers = #tpu.dot_dimension_numbers<[1], [0], [0], [1], [0, 0, 1, 1], [], []>} : vector<8x8xbf16>, vector<8x66xbf16>, vector<8x66xf32> -> vector<8x66xf32>
    %408 = arith.truncf %407 : vector<8x66xf32> to vector<8x66xbf16>
    %c5_229 = arith.constant 5 : index
    %c0_230 = arith.constant 0 : index
    %c0_231 = arith.constant 0 : index
    %409 = vector.load %arg7[%c5_229, %c0_230, %c0_231] : memref<8x66x264xbf16, #tpu.memory_space<vmem>>, vector<1x66x264xbf16>
    %410 = vector.shape_cast %409 : vector<1x66x264xbf16> to vector<66x264xbf16>
    %cst_232 = arith.constant dense<0.000000e+00> : vector<8x264xf32>
    %411 = tpu.matmul %408, %410, %cst_232 {dimension_numbers = #tpu.dot_dimension_numbers<[1], [0], [0], [1], [0, 0, 1, 1], [], []>} : vector<8x66xbf16>, vector<66x264xbf16>, vector<8x264xf32> -> vector<8x264xf32>
    %412 = arith.addf %363, %411 : vector<8x264xf32>
    %c14 = arith.constant 14 : index
    %c0_233 = arith.constant 0 : index
    %c0_234 = arith.constant 0 : index
    %413 = vector.load %arg5[%c14, %c0_233, %c0_234] : memref<24x264x66xbf16, #tpu.memory_space<vmem>>, vector<1x264x66xbf16>
    %414 = vector.shape_cast %413 : vector<1x264x66xbf16> to vector<264x66xbf16>
    %cst_235 = arith.constant dense<0.000000e+00> : vector<8x66xf32>
    %415 = tpu.matmul %313, %414, %cst_235 {dimension_numbers = #tpu.dot_dimension_numbers<[1], [0], [0], [1], [0, 0, 1, 1], [], []>} : vector<8x264xbf16>, vector<264x66xbf16>, vector<8x66xf32> -> vector<8x66xf32>
    %c14_236 = arith.constant 14 : index
    %c0_237 = arith.constant 0 : index
    %c0_238 = arith.constant 0 : index
    %416 = vector.load %arg6[%c14_236, %c0_237, %c0_238] : memref<24x1x66xf32, #tpu.memory_space<vmem>>, vector<1x1x66xf32>
    %417 = vector.shape_cast %416 : vector<1x1x66xf32> to vector<1x66xf32>
    %418 = vector.broadcast %417 : vector<1x66xf32> to vector<8x66xf32>
    %419 = arith.addf %415, %418 : vector<8x66xf32>
    %c18 = arith.constant 18 : index
    %c0_239 = arith.constant 0 : index
    %c0_240 = arith.constant 0 : index
    %420 = vector.load %arg5[%c18, %c0_239, %c0_240] : memref<24x264x66xbf16, #tpu.memory_space<vmem>>, vector<1x264x66xbf16>
    %421 = vector.shape_cast %420 : vector<1x264x66xbf16> to vector<264x66xbf16>
    %cst_241 = arith.constant dense<0.000000e+00> : vector<8x66xf32>
    %422 = tpu.matmul %313, %421, %cst_241 {dimension_numbers = #tpu.dot_dimension_numbers<[1], [0], [0], [1], [0, 0, 1, 1], [], []>} : vector<8x264xbf16>, vector<264x66xbf16>, vector<8x66xf32> -> vector<8x66xf32>
    %c18_242 = arith.constant 18 : index
    %c0_243 = arith.constant 0 : index
    %c0_244 = arith.constant 0 : index
    %423 = vector.load %arg6[%c18_242, %c0_243, %c0_244] : memref<24x1x66xf32, #tpu.memory_space<vmem>>, vector<1x1x66xf32>
    %424 = vector.shape_cast %423 : vector<1x1x66xf32> to vector<1x66xf32>
    %425 = vector.broadcast %424 : vector<1x66xf32> to vector<8x66xf32>
    %426 = arith.addf %422, %425 : vector<8x66xf32>
    %c22 = arith.constant 22 : index
    %c0_245 = arith.constant 0 : index
    %c0_246 = arith.constant 0 : index
    %427 = vector.load %arg5[%c22, %c0_245, %c0_246] : memref<24x264x66xbf16, #tpu.memory_space<vmem>>, vector<1x264x66xbf16>
    %428 = vector.shape_cast %427 : vector<1x264x66xbf16> to vector<264x66xbf16>
    %cst_247 = arith.constant dense<0.000000e+00> : vector<8x66xf32>
    %429 = tpu.matmul %313, %428, %cst_247 {dimension_numbers = #tpu.dot_dimension_numbers<[1], [0], [0], [1], [0, 0, 1, 1], [], []>} : vector<8x264xbf16>, vector<264x66xbf16>, vector<8x66xf32> -> vector<8x66xf32>
    %c22_248 = arith.constant 22 : index
    %c0_249 = arith.constant 0 : index
    %c0_250 = arith.constant 0 : index
    %430 = vector.load %arg6[%c22_248, %c0_249, %c0_250] : memref<24x1x66xf32, #tpu.memory_space<vmem>>, vector<1x1x66xf32>
    %431 = vector.shape_cast %430 : vector<1x1x66xf32> to vector<1x66xf32>
    %432 = vector.broadcast %431 : vector<1x66xf32> to vector<8x66xf32>
    %433 = arith.addf %429, %432 : vector<8x66xf32>
    %434 = arith.truncf %419 : vector<8x66xf32> to vector<8x66xbf16>
    %435 = arith.truncf %426 : vector<8x66xf32> to vector<8x66xbf16>
    "tpu.trace_start"() <{level = 10 : i32, message = "qd,kd->qk"}> : () -> ()
    %cst_251 = arith.constant dense<0.000000e+00> : vector<8x8xf32>
    %436 = tpu.matmul %434, %435, %cst_251 {dimension_numbers = #tpu.dot_dimension_numbers<[1], [1], [0], [0], [0, 0, 1, 0], [], []>} : vector<8x66xbf16>, vector<8x66xbf16>, vector<8x8xf32> -> vector<8x8xf32>
    "tpu.trace_stop"() : () -> ()
    %cst_252 = arith.constant 0.123091489 : f32
    %437 = vector.broadcast %cst_252 : f32 to vector<8x8xf32>
    %438 = arith.mulf %436, %437 : vector<8x8xf32>
    %cst_253 = arith.constant 5.000000e-01 : f32
    %439 = vector.broadcast %cst_253 : f32 to vector<1x8xf32>
    %440 = arith.cmpf ogt, %27, %439 : vector<1x8xf32>
    %cst_254 = arith.constant -1.000000e+30 : f32
    %441 = vector.shape_cast %440 : vector<1x8xi1> to vector<1x8xi1>
    %442 = vector.broadcast %441 : vector<1x8xi1> to vector<8x8xi1>
    %443 = vector.broadcast %cst_254 : f32 to vector<8x8xf32>
    %444 = arith.select %442, %438, %443 : vector<8x8xi1>, vector<8x8xf32>
    %cst_255 = arith.constant dense<0xFF800000> : vector<8xf32>
    %445 = vector.multi_reduction <maximumf>, %444, %cst_255 [1] : vector<8x8xf32> to vector<8xf32>
    %446 = vector.shape_cast %445 : vector<8xf32> to vector<8x1xf32>
    %447 = vector.broadcast %446 : vector<8x1xf32> to vector<8x8xf32>
    %448 = arith.subf %444, %447 : vector<8x8xf32>
    %449 = math.exp %448 : vector<8x8xf32>
    %cst_256 = arith.constant dense<0.000000e+00> : vector<8xf32>
    %450 = vector.multi_reduction <add>, %449, %cst_256 [1] : vector<8x8xf32> to vector<8xf32>
    %451 = vector.shape_cast %450 : vector<8xf32> to vector<8x1xf32>
    %452 = vector.broadcast %451 : vector<8x1xf32> to vector<8x8xf32>
    %453 = arith.divf %449, %452 : vector<8x8xf32>
    %454 = arith.truncf %453 : vector<8x8xf32> to vector<8x8xbf16>
    %455 = arith.truncf %433 : vector<8x66xf32> to vector<8x66xbf16>
    %cst_257 = arith.constant dense<0.000000e+00> : vector<8x66xf32>
    %456 = tpu.matmul %454, %455, %cst_257 {dimension_numbers = #tpu.dot_dimension_numbers<[1], [0], [0], [1], [0, 0, 1, 1], [], []>} : vector<8x8xbf16>, vector<8x66xbf16>, vector<8x66xf32> -> vector<8x66xf32>
    %457 = arith.truncf %456 : vector<8x66xf32> to vector<8x66xbf16>
    %c6_258 = arith.constant 6 : index
    %c0_259 = arith.constant 0 : index
    %c0_260 = arith.constant 0 : index
    %458 = vector.load %arg7[%c6_258, %c0_259, %c0_260] : memref<8x66x264xbf16, #tpu.memory_space<vmem>>, vector<1x66x264xbf16>
    %459 = vector.shape_cast %458 : vector<1x66x264xbf16> to vector<66x264xbf16>
    %cst_261 = arith.constant dense<0.000000e+00> : vector<8x264xf32>
    %460 = tpu.matmul %457, %459, %cst_261 {dimension_numbers = #tpu.dot_dimension_numbers<[1], [0], [0], [1], [0, 0, 1, 1], [], []>} : vector<8x66xbf16>, vector<66x264xbf16>, vector<8x264xf32> -> vector<8x264xf32>
    %461 = arith.addf %412, %460 : vector<8x264xf32>
    %c15 = arith.constant 15 : index
    %c0_262 = arith.constant 0 : index
    %c0_263 = arith.constant 0 : index
    %462 = vector.load %arg5[%c15, %c0_262, %c0_263] : memref<24x264x66xbf16, #tpu.memory_space<vmem>>, vector<1x264x66xbf16>
    %463 = vector.shape_cast %462 : vector<1x264x66xbf16> to vector<264x66xbf16>
    %cst_264 = arith.constant dense<0.000000e+00> : vector<8x66xf32>
    %464 = tpu.matmul %313, %463, %cst_264 {dimension_numbers = #tpu.dot_dimension_numbers<[1], [0], [0], [1], [0, 0, 1, 1], [], []>} : vector<8x264xbf16>, vector<264x66xbf16>, vector<8x66xf32> -> vector<8x66xf32>
    %c15_265 = arith.constant 15 : index
    %c0_266 = arith.constant 0 : index
    %c0_267 = arith.constant 0 : index
    %465 = vector.load %arg6[%c15_265, %c0_266, %c0_267] : memref<24x1x66xf32, #tpu.memory_space<vmem>>, vector<1x1x66xf32>
    %466 = vector.shape_cast %465 : vector<1x1x66xf32> to vector<1x66xf32>
    %467 = vector.broadcast %466 : vector<1x66xf32> to vector<8x66xf32>
    %468 = arith.addf %464, %467 : vector<8x66xf32>
    %c19 = arith.constant 19 : index
    %c0_268 = arith.constant 0 : index
    %c0_269 = arith.constant 0 : index
    %469 = vector.load %arg5[%c19, %c0_268, %c0_269] : memref<24x264x66xbf16, #tpu.memory_space<vmem>>, vector<1x264x66xbf16>
    %470 = vector.shape_cast %469 : vector<1x264x66xbf16> to vector<264x66xbf16>
    %cst_270 = arith.constant dense<0.000000e+00> : vector<8x66xf32>
    %471 = tpu.matmul %313, %470, %cst_270 {dimension_numbers = #tpu.dot_dimension_numbers<[1], [0], [0], [1], [0, 0, 1, 1], [], []>} : vector<8x264xbf16>, vector<264x66xbf16>, vector<8x66xf32> -> vector<8x66xf32>
    %c19_271 = arith.constant 19 : index
    %c0_272 = arith.constant 0 : index
    %c0_273 = arith.constant 0 : index
    %472 = vector.load %arg6[%c19_271, %c0_272, %c0_273] : memref<24x1x66xf32, #tpu.memory_space<vmem>>, vector<1x1x66xf32>
    %473 = vector.shape_cast %472 : vector<1x1x66xf32> to vector<1x66xf32>
    %474 = vector.broadcast %473 : vector<1x66xf32> to vector<8x66xf32>
    %475 = arith.addf %471, %474 : vector<8x66xf32>
    %c23 = arith.constant 23 : index
    %c0_274 = arith.constant 0 : index
    %c0_275 = arith.constant 0 : index
    %476 = vector.load %arg5[%c23, %c0_274, %c0_275] : memref<24x264x66xbf16, #tpu.memory_space<vmem>>, vector<1x264x66xbf16>
    %477 = vector.shape_cast %476 : vector<1x264x66xbf16> to vector<264x66xbf16>
    %cst_276 = arith.constant dense<0.000000e+00> : vector<8x66xf32>
    %478 = tpu.matmul %313, %477, %cst_276 {dimension_numbers = #tpu.dot_dimension_numbers<[1], [0], [0], [1], [0, 0, 1, 1], [], []>} : vector<8x264xbf16>, vector<264x66xbf16>, vector<8x66xf32> -> vector<8x66xf32>
    %c23_277 = arith.constant 23 : index
    %c0_278 = arith.constant 0 : index
    %c0_279 = arith.constant 0 : index
    %479 = vector.load %arg6[%c23_277, %c0_278, %c0_279] : memref<24x1x66xf32, #tpu.memory_space<vmem>>, vector<1x1x66xf32>
    %480 = vector.shape_cast %479 : vector<1x1x66xf32> to vector<1x66xf32>
    %481 = vector.broadcast %480 : vector<1x66xf32> to vector<8x66xf32>
    %482 = arith.addf %478, %481 : vector<8x66xf32>
    %483 = arith.truncf %468 : vector<8x66xf32> to vector<8x66xbf16>
    %484 = arith.truncf %475 : vector<8x66xf32> to vector<8x66xbf16>
    "tpu.trace_start"() <{level = 10 : i32, message = "qd,kd->qk"}> : () -> ()
    %cst_280 = arith.constant dense<0.000000e+00> : vector<8x8xf32>
    %485 = tpu.matmul %483, %484, %cst_280 {dimension_numbers = #tpu.dot_dimension_numbers<[1], [1], [0], [0], [0, 0, 1, 0], [], []>} : vector<8x66xbf16>, vector<8x66xbf16>, vector<8x8xf32> -> vector<8x8xf32>
    "tpu.trace_stop"() : () -> ()
    %cst_281 = arith.constant 0.123091489 : f32
    %486 = vector.broadcast %cst_281 : f32 to vector<8x8xf32>
    %487 = arith.mulf %485, %486 : vector<8x8xf32>
    %cst_282 = arith.constant 5.000000e-01 : f32
    %488 = vector.broadcast %cst_282 : f32 to vector<1x8xf32>
    %489 = arith.cmpf ogt, %27, %488 : vector<1x8xf32>
    %cst_283 = arith.constant -1.000000e+30 : f32
    %490 = vector.shape_cast %489 : vector<1x8xi1> to vector<1x8xi1>
    %491 = vector.broadcast %490 : vector<1x8xi1> to vector<8x8xi1>
    %492 = vector.broadcast %cst_283 : f32 to vector<8x8xf32>
    %493 = arith.select %491, %487, %492 : vector<8x8xi1>, vector<8x8xf32>
    %cst_284 = arith.constant dense<0xFF800000> : vector<8xf32>
    %494 = vector.multi_reduction <maximumf>, %493, %cst_284 [1] : vector<8x8xf32> to vector<8xf32>
    %495 = vector.shape_cast %494 : vector<8xf32> to vector<8x1xf32>
    %496 = vector.broadcast %495 : vector<8x1xf32> to vector<8x8xf32>
    %497 = arith.subf %493, %496 : vector<8x8xf32>
    %498 = math.exp %497 : vector<8x8xf32>
    %cst_285 = arith.constant dense<0.000000e+00> : vector<8xf32>
    %499 = vector.multi_reduction <add>, %498, %cst_285 [1] : vector<8x8xf32> to vector<8xf32>
    %500 = vector.shape_cast %499 : vector<8xf32> to vector<8x1xf32>
    %501 = vector.broadcast %500 : vector<8x1xf32> to vector<8x8xf32>
    %502 = arith.divf %498, %501 : vector<8x8xf32>
    %503 = arith.truncf %502 : vector<8x8xf32> to vector<8x8xbf16>
    %504 = arith.truncf %482 : vector<8x66xf32> to vector<8x66xbf16>
    %cst_286 = arith.constant dense<0.000000e+00> : vector<8x66xf32>
    %505 = tpu.matmul %503, %504, %cst_286 {dimension_numbers = #tpu.dot_dimension_numbers<[1], [0], [0], [1], [0, 0, 1, 1], [], []>} : vector<8x8xbf16>, vector<8x66xbf16>, vector<8x66xf32> -> vector<8x66xf32>
    %506 = arith.truncf %505 : vector<8x66xf32> to vector<8x66xbf16>
    %c7_287 = arith.constant 7 : index
    %c0_288 = arith.constant 0 : index
    %c0_289 = arith.constant 0 : index
    %507 = vector.load %arg7[%c7_287, %c0_288, %c0_289] : memref<8x66x264xbf16, #tpu.memory_space<vmem>>, vector<1x66x264xbf16>
    %508 = vector.shape_cast %507 : vector<1x66x264xbf16> to vector<66x264xbf16>
    %cst_290 = arith.constant dense<0.000000e+00> : vector<8x264xf32>
    %509 = tpu.matmul %506, %508, %cst_290 {dimension_numbers = #tpu.dot_dimension_numbers<[1], [0], [0], [1], [0, 0, 1, 1], [], []>} : vector<8x66xbf16>, vector<66x264xbf16>, vector<8x264xf32> -> vector<8x264xf32>
    %510 = arith.addf %461, %509 : vector<8x264xf32>
    %c1_291 = arith.constant 1 : index
    %c0_292 = arith.constant 0 : index
    %c0_293 = arith.constant 0 : index
    %511 = vector.load %arg8[%c1_291, %c0_292, %c0_293] : memref<2x1x264xf32, #tpu.memory_space<vmem>>, vector<1x1x264xf32>
    %512 = vector.shape_cast %511 : vector<1x1x264xf32> to vector<1x264xf32>
    %513 = vector.broadcast %512 : vector<1x264xf32> to vector<8x264xf32>
    %514 = arith.addf %510, %513 : vector<8x264xf32>
    %515 = arith.addf %514, %312 : vector<8x264xf32>
    %c1_294 = arith.constant 1 : index
    %c0_295 = arith.constant 0 : index
    %c0_296 = arith.constant 0 : index
    %516 = vector.load %arg9[%c1_294, %c0_295, %c0_296] : memref<2x1x264xf32, #tpu.memory_space<vmem>>, vector<1x1x264xf32>
    %517 = vector.shape_cast %516 : vector<1x1x264xf32> to vector<1x264xf32>
    %c1_297 = arith.constant 1 : index
    %c0_298 = arith.constant 0 : index
    %c0_299 = arith.constant 0 : index
    %518 = vector.load %arg10[%c1_297, %c0_298, %c0_299] : memref<2x1x264xf32, #tpu.memory_space<vmem>>, vector<1x1x264xf32>
    %519 = vector.shape_cast %518 : vector<1x1x264xf32> to vector<1x264xf32>
    %cst_300 = arith.constant dense<0.000000e+00> : vector<8xf32>
    %520 = vector.multi_reduction <add>, %515, %cst_300 [1] : vector<8x264xf32> to vector<8xf32>
    %521 = vector.shape_cast %520 : vector<8xf32> to vector<8x1xf32>
    %cst_301 = arith.constant 2.640000e+02 : f32
    %522 = vector.broadcast %cst_301 : f32 to vector<8x1xf32>
    %523 = arith.divf %521, %522 : vector<8x1xf32>
    %524 = vector.broadcast %523 : vector<8x1xf32> to vector<8x264xf32>
    %525 = arith.subf %515, %524 : vector<8x264xf32>
    %526 = arith.mulf %525, %525 : vector<8x264xf32>
    %cst_302 = arith.constant dense<0.000000e+00> : vector<8xf32>
    %527 = vector.multi_reduction <add>, %526, %cst_302 [1] : vector<8x264xf32> to vector<8xf32>
    %528 = vector.shape_cast %527 : vector<8xf32> to vector<8x1xf32>
    %cst_303 = arith.constant 2.640000e+02 : f32
    %529 = vector.broadcast %cst_303 : f32 to vector<8x1xf32>
    %530 = arith.divf %528, %529 : vector<8x1xf32>
    %531 = vector.broadcast %523 : vector<8x1xf32> to vector<8x264xf32>
    %532 = arith.subf %515, %531 : vector<8x264xf32>
    %cst_304 = arith.constant 9.99999996E-13 : f32
    %533 = vector.broadcast %cst_304 : f32 to vector<8x1xf32>
    %534 = arith.addf %530, %533 : vector<8x1xf32>
    %535 = math.rsqrt %534 : vector<8x1xf32>
    %536 = vector.broadcast %535 : vector<8x1xf32> to vector<8x264xf32>
    %537 = arith.mulf %532, %536 : vector<8x264xf32>
    %538 = vector.broadcast %517 : vector<1x264xf32> to vector<8x264xf32>
    %539 = arith.mulf %537, %538 : vector<8x264xf32>
    %540 = vector.broadcast %519 : vector<1x264xf32> to vector<8x264xf32>
    %541 = arith.addf %539, %540 : vector<8x264xf32>
    %542 = arith.truncf %541 : vector<8x264xf32> to vector<8x264xbf16>
    %c1_305 = arith.constant 1 : index
    %c0_306 = arith.constant 0 : index
    %c0_307 = arith.constant 0 : index
    %543 = vector.load %arg11[%c1_305, %c0_306, %c0_307] : memref<2x264x512xbf16, #tpu.memory_space<vmem>>, vector<1x264x512xbf16>
    %544 = vector.shape_cast %543 : vector<1x264x512xbf16> to vector<264x512xbf16>
    %cst_308 = arith.constant dense<0.000000e+00> : vector<8x512xf32>
    %545 = tpu.matmul %542, %544, %cst_308 {dimension_numbers = #tpu.dot_dimension_numbers<[1], [0], [0], [1], [0, 0, 1, 1], [], []>} : vector<8x264xbf16>, vector<264x512xbf16>, vector<8x512xf32> -> vector<8x512xf32>
    %c1_309 = arith.constant 1 : index
    %c0_310 = arith.constant 0 : index
    %c0_311 = arith.constant 0 : index
    %546 = vector.load %arg12[%c1_309, %c0_310, %c0_311] : memref<2x1x512xf32, #tpu.memory_space<vmem>>, vector<1x1x512xf32>
    %547 = vector.shape_cast %546 : vector<1x1x512xf32> to vector<1x512xf32>
    %548 = vector.broadcast %547 : vector<1x512xf32> to vector<8x512xf32>
    %549 = arith.addf %545, %548 : vector<8x512xf32>
    %cst_312 = arith.constant 5.000000e-01 : f32
    %550 = vector.broadcast %cst_312 : f32 to vector<8x512xf32>
    %551 = arith.mulf %550, %549 : vector<8x512xf32>
    %cst_313 = arith.constant 4.471500e-02 : f32
    %552 = vector.broadcast %cst_313 : f32 to vector<8x512xf32>
    %553 = arith.mulf %552, %549 : vector<8x512xf32>
    %554 = arith.mulf %553, %549 : vector<8x512xf32>
    %555 = arith.mulf %554, %549 : vector<8x512xf32>
    %556 = arith.addf %549, %555 : vector<8x512xf32>
    %cst_314 = arith.constant 0.797884583 : f32
    %557 = vector.broadcast %cst_314 : f32 to vector<8x512xf32>
    %558 = arith.mulf %557, %556 : vector<8x512xf32>
    %559 = math.tanh %558 : vector<8x512xf32>
    %cst_315 = arith.constant 1.000000e+00 : f32
    %560 = vector.broadcast %cst_315 : f32 to vector<8x512xf32>
    %561 = arith.addf %560, %559 : vector<8x512xf32>
    %562 = arith.mulf %551, %561 : vector<8x512xf32>
    %563 = arith.truncf %562 : vector<8x512xf32> to vector<8x512xbf16>
    %c1_316 = arith.constant 1 : index
    %c0_317 = arith.constant 0 : index
    %c0_318 = arith.constant 0 : index
    %564 = vector.load %arg13[%c1_316, %c0_317, %c0_318] : memref<2x512x264xbf16, #tpu.memory_space<vmem>>, vector<1x512x264xbf16>
    %565 = vector.shape_cast %564 : vector<1x512x264xbf16> to vector<512x264xbf16>
    %cst_319 = arith.constant dense<0.000000e+00> : vector<8x264xf32>
    %566 = tpu.matmul %563, %565, %cst_319 {dimension_numbers = #tpu.dot_dimension_numbers<[1], [0], [0], [1], [0, 0, 1, 1], [], []>} : vector<8x512xbf16>, vector<512x264xbf16>, vector<8x264xf32> -> vector<8x264xf32>
    %c1_320 = arith.constant 1 : index
    %c0_321 = arith.constant 0 : index
    %c0_322 = arith.constant 0 : index
    %567 = vector.load %arg14[%c1_320, %c0_321, %c0_322] : memref<2x1x264xf32, #tpu.memory_space<vmem>>, vector<1x1x264xf32>
    %568 = vector.shape_cast %567 : vector<1x1x264xf32> to vector<1x264xf32>
    %569 = vector.broadcast %568 : vector<1x264xf32> to vector<8x264xf32>
    %570 = arith.addf %566, %569 : vector<8x264xf32>
    %571 = arith.addf %570, %541 : vector<8x264xf32>
    %c1_323 = arith.constant 1 : index
    %c0_324 = arith.constant 0 : index
    %c0_325 = arith.constant 0 : index
    %572 = vector.load %arg15[%c1_323, %c0_324, %c0_325] : memref<2x1x264xf32, #tpu.memory_space<vmem>>, vector<1x1x264xf32>
    %573 = vector.shape_cast %572 : vector<1x1x264xf32> to vector<1x264xf32>
    %c1_326 = arith.constant 1 : index
    %c0_327 = arith.constant 0 : index
    %c0_328 = arith.constant 0 : index
    %574 = vector.load %arg16[%c1_326, %c0_327, %c0_328] : memref<2x1x264xf32, #tpu.memory_space<vmem>>, vector<1x1x264xf32>
    %575 = vector.shape_cast %574 : vector<1x1x264xf32> to vector<1x264xf32>
    %cst_329 = arith.constant dense<0.000000e+00> : vector<8xf32>
    %576 = vector.multi_reduction <add>, %571, %cst_329 [1] : vector<8x264xf32> to vector<8xf32>
    %577 = vector.shape_cast %576 : vector<8xf32> to vector<8x1xf32>
    %cst_330 = arith.constant 2.640000e+02 : f32
    %578 = vector.broadcast %cst_330 : f32 to vector<8x1xf32>
    %579 = arith.divf %577, %578 : vector<8x1xf32>
    %580 = vector.broadcast %579 : vector<8x1xf32> to vector<8x264xf32>
    %581 = arith.subf %571, %580 : vector<8x264xf32>
    %582 = arith.mulf %581, %581 : vector<8x264xf32>
    %cst_331 = arith.constant dense<0.000000e+00> : vector<8xf32>
    %583 = vector.multi_reduction <add>, %582, %cst_331 [1] : vector<8x264xf32> to vector<8xf32>
    %584 = vector.shape_cast %583 : vector<8xf32> to vector<8x1xf32>
    %cst_332 = arith.constant 2.640000e+02 : f32
    %585 = vector.broadcast %cst_332 : f32 to vector<8x1xf32>
    %586 = arith.divf %584, %585 : vector<8x1xf32>
    %587 = vector.broadcast %579 : vector<8x1xf32> to vector<8x264xf32>
    %588 = arith.subf %571, %587 : vector<8x264xf32>
    %cst_333 = arith.constant 9.99999996E-13 : f32
    %589 = vector.broadcast %cst_333 : f32 to vector<8x1xf32>
    %590 = arith.addf %586, %589 : vector<8x1xf32>
    %591 = math.rsqrt %590 : vector<8x1xf32>
    %592 = vector.broadcast %591 : vector<8x1xf32> to vector<8x264xf32>
    %593 = arith.mulf %588, %592 : vector<8x264xf32>
    %594 = vector.broadcast %573 : vector<1x264xf32> to vector<8x264xf32>
    %595 = arith.mulf %593, %594 : vector<8x264xf32>
    %596 = vector.broadcast %575 : vector<1x264xf32> to vector<8x264xf32>
    %597 = arith.addf %595, %596 : vector<8x264xf32>
    %598 = vector.extract_strided_slice %597 {offsets = [0, 0], sizes = [1, 264], strides = [1, 1]} : vector<8x264xf32> to vector<1x264xf32>
    %c0_334 = arith.constant 0 : index
    %c0_335 = arith.constant 0 : index
    %599 = vector.load %arg17[%c0_334, %c0_335] : memref<1x264xf32, #tpu.memory_space<vmem>>, vector<1x264xf32>
    %600 = arith.mulf %598, %599 : vector<1x264xf32>
    %cst_336 = arith.constant dense<0.000000e+00> : vector<1xf32>
    %601 = vector.multi_reduction <add>, %600, %cst_336 [1] : vector<1x264xf32> to vector<1xf32>
    %602 = vector.shape_cast %601 : vector<1xf32> to vector<1x1xf32>
    %c0_337 = arith.constant 0 : index
    %c0_338 = arith.constant 0 : index
    %603 = vector.load %arg18[%c0_337, %c0_338] : memref<1x1xf32, #tpu.memory_space<vmem>>, vector<1x1xf32>
    %604 = arith.addf %602, %603 : vector<1x1xf32>
    %605 = arith.negf %604 : vector<1x1xf32>
    %606 = math.exp %605 : vector<1x1xf32>
    %cst_339 = arith.constant 1.000000e+00 : f32
    %607 = vector.broadcast %cst_339 : f32 to vector<1x1xf32>
    %608 = arith.addf %607, %606 : vector<1x1xf32>
    %609 = arith.divf %607, %608 : vector<1x1xf32>
    %610 = vector.shape_cast %609 : vector<1x1xf32> to vector<1x1x1xf32>
    %c0_340 = arith.constant 0 : index
    %c0_341 = arith.constant 0 : index
    %c0_342 = arith.constant 0 : index
    %611 = vector.load %arg19[%c0_340, %c0_341, %c0_342] : memref<1x1x1xf32, #tpu.memory_space<vmem>>, vector<1x1x1xf32>
    tpu.vector_store %arg19[%c0_340, %c0_341, %c0_342], %610 {strides = array<i32>} : memref<1x1x1xf32, #tpu.memory_space<vmem>>, vector<1x1x1xf32>,
    return
  }
  func.func @transform_0(%arg0: i32) -> (i32, i32, i32) {
    %c0_i32 = arith.constant 0 : i32
    %c0_i32_0 = arith.constant 0 : i32
    %c0_i32_1 = arith.constant 0 : i32
    return %arg0, %c0_i32, %c0_i32_0 : i32, i32, i32
  }
  func.func @transform_1(%arg0: i32) -> (i32, i32, i32) {
    %c0_i32 = arith.constant 0 : i32
    %c0_i32_0 = arith.constant 0 : i32
    %c0_i32_1 = arith.constant 0 : i32
    return %arg0, %c0_i32, %c0_i32_0 : i32, i32, i32
  }
  func.func @transform_2(%arg0: i32) -> (i32, i32) {
    %c0_i32 = arith.constant 0 : i32
    %c0_i32_0 = arith.constant 0 : i32
    %c0_i32_1 = arith.constant 0 : i32
    return %c0_i32, %c0_i32_0 : i32, i32
  }
  func.func @transform_3(%arg0: i32) -> (i32, i32) {
    %c0_i32 = arith.constant 0 : i32
    %c0_i32_0 = arith.constant 0 : i32
    %c0_i32_1 = arith.constant 0 : i32
    return %c0_i32, %c0_i32_0 : i32, i32
  }
  func.func @transform_4(%arg0: i32) -> (i32, i32, i32) {
    %c0_i32 = arith.constant 0 : i32
    %c0_i32_0 = arith.constant 0 : i32
    %c0_i32_1 = arith.constant 0 : i32
    %c0_i32_2 = arith.constant 0 : i32
    return %c0_i32, %c0_i32_0, %c0_i32_1 : i32, i32, i32
  }
  func.func @transform_5(%arg0: i32) -> (i32, i32, i32) {
    %c0_i32 = arith.constant 0 : i32
    %c0_i32_0 = arith.constant 0 : i32
    %c0_i32_1 = arith.constant 0 : i32
    %c0_i32_2 = arith.constant 0 : i32
    return %c0_i32, %c0_i32_0, %c0_i32_1 : i32, i32, i32
  }
  func.func @transform_6(%arg0: i32) -> (i32, i32, i32) {
    %c0_i32 = arith.constant 0 : i32
    %c0_i32_0 = arith.constant 0 : i32
    %c0_i32_1 = arith.constant 0 : i32
    %c0_i32_2 = arith.constant 0 : i32
    return %c0_i32, %c0_i32_0, %c0_i32_1 : i32, i32, i32
  }
  func.func @transform_7(%arg0: i32) -> (i32, i32, i32) {
    %c0_i32 = arith.constant 0 : i32
    %c0_i32_0 = arith.constant 0 : i32
    %c0_i32_1 = arith.constant 0 : i32
    %c0_i32_2 = arith.constant 0 : i32
    return %c0_i32, %c0_i32_0, %c0_i32_1 : i32, i32, i32
  }
  func.func @transform_8(%arg0: i32) -> (i32, i32, i32) {
    %c0_i32 = arith.constant 0 : i32
    %c0_i32_0 = arith.constant 0 : i32
    %c0_i32_1 = arith.constant 0 : i32
    %c0_i32_2 = arith.constant 0 : i32
    return %c0_i32, %c0_i32_0, %c0_i32_1 : i32, i32, i32
  }
  func.func @transform_9(%arg0: i32) -> (i32, i32, i32) {
    %c0_i32 = arith.constant 0 : i32
    %c0_i32_0 = arith.constant 0 : i32
    %c0_i32_1 = arith.constant 0 : i32
    %c0_i32_2 = arith.constant 0 : i32
    return %c0_i32, %c0_i32_0, %c0_i32_1 : i32, i32, i32
  }
  func.func @transform_10(%arg0: i32) -> (i32, i32, i32) {
    %c0_i32 = arith.constant 0 : i32
    %c0_i32_0 = arith.constant 0 : i32
    %c0_i32_1 = arith.constant 0 : i32
    %c0_i32_2 = arith.constant 0 : i32
    return %c0_i32, %c0_i32_0, %c0_i32_1 : i32, i32, i32
  }
  func.func @transform_11(%arg0: i32) -> (i32, i32, i32) {
    %c0_i32 = arith.constant 0 : i32
    %c0_i32_0 = arith.constant 0 : i32
    %c0_i32_1 = arith.constant 0 : i32
    %c0_i32_2 = arith.constant 0 : i32
    return %c0_i32, %c0_i32_0, %c0_i32_1 : i32, i32, i32
  }
  func.func @transform_12(%arg0: i32) -> (i32, i32, i32) {
    %c0_i32 = arith.constant 0 : i32
    %c0_i32_0 = arith.constant 0 : i32
    %c0_i32_1 = arith.constant 0 : i32
    %c0_i32_2 = arith.constant 0 : i32
    return %c0_i32, %c0_i32_0, %c0_i32_1 : i32, i32, i32
  }
  func.func @transform_13(%arg0: i32) -> (i32, i32, i32) {
    %c0_i32 = arith.constant 0 : i32
    %c0_i32_0 = arith.constant 0 : i32
    %c0_i32_1 = arith.constant 0 : i32
    %c0_i32_2 = arith.constant 0 : i32
    return %c0_i32, %c0_i32_0, %c0_i32_1 : i32, i32, i32
  }
  func.func @transform_14(%arg0: i32) -> (i32, i32, i32) {
    %c0_i32 = arith.constant 0 : i32
    %c0_i32_0 = arith.constant 0 : i32
    %c0_i32_1 = arith.constant 0 : i32
    %c0_i32_2 = arith.constant 0 : i32
    return %c0_i32, %c0_i32_0, %c0_i32_1 : i32, i32, i32
  }
  func.func @transform_15(%arg0: i32) -> (i32, i32, i32) {
    %c0_i32 = arith.constant 0 : i32
    %c0_i32_0 = arith.constant 0 : i32
    %c0_i32_1 = arith.constant 0 : i32
    %c0_i32_2 = arith.constant 0 : i32
    return %c0_i32, %c0_i32_0, %c0_i32_1 : i32, i32, i32
  }
  func.func @transform_16(%arg0: i32) -> (i32, i32) {
    %c0_i32 = arith.constant 0 : i32
    %c0_i32_0 = arith.constant 0 : i32
    %c0_i32_1 = arith.constant 0 : i32
    return %c0_i32, %c0_i32_0 : i32, i32
  }
  func.func @transform_17(%arg0: i32) -> (i32, i32) {
    %c0_i32 = arith.constant 0 : i32
    %c0_i32_0 = arith.constant 0 : i32
    %c0_i32_1 = arith.constant 0 : i32
    return %c0_i32, %c0_i32_0 : i32, i32
  }
  func.func @transform_18(%arg0: i32) -> (i32, i32, i32) {
    %c0_i32 = arith.constant 0 : i32
    %c0_i32_0 = arith.constant 0 : i32
    %c0_i32_1 = arith.constant 0 : i32
    return %arg0, %c0_i32, %c0_i32_0 : i32, i32, i32
  }
}

</mosaic_0001>

<bundles_post_ra>
// kernel: distilbert_classifier.1
= control target key start
LH: loop header
LB: loop body
LE: loop exit
PB: predicated region body
PF: predicated region fallthrough
CT: control target
= control target key end

     0   :  { %s15293_s29 = smov 0   ;;  %s19903_s0 = inlined_call_operand.vmem [shape: f32[2,8,264], index: 0, kind: input, shape index: {}]   ;;  %s19904_s1 = inlined_call_operand.vmem [shape: f32[2,1,8], index: 1, kind: input, shape index: {}]   ;;  %s19905_s2 = inlined_call_operand.vmem [shape: f32[1,264], index: 2, kind: input, shape index: {}]   ;;  %s19906_s3 = inlined_call_operand.vmem [shape: f32[1,264], index: 3, kind: input, shape index: {}]   ;;  %s19907_s4 = inlined_call_operand.vmem [shape: bf16[24,264,66], index: 4, kind: input, shape index: {}]   ;;  %s19908_s5 = inlined_call_operand.vmem [shape: f32[24,1,66], index: 5, kind: input, shape index: {}]   ;;  %s19909_s6 = inlined_call_operand.vmem [shape: bf16[8,66,264], index: 6, kind: input, shape index: {}]   ;;  %s19910_s7 = inlined_call_operand.vmem [shape: f32[2,1,264], index: 7, kind: input, shape index: {}]   ;;  %s19911_s8 = inlined_call_operand.vmem [shape: f32[2,1,264], index: 8, kind: input, shape index: {}]   ;;  %s19912_s9 = inlined_call_operand.vmem [shape: f32[2,1,264], index: 9, kind: input, shape index: {}]   ;;  %s19913_s10 = inlined_call_operand.vmem [shape: bf16[2,264,512], index: 10, kind: input, shape index: {}]   ;;  %s19914_s11 = inlined_call_operand.vmem [shape: f32[2,1,512], index: 11, kind: input, shape index: {}]   ;;  %s19915_s12 = inlined_call_operand.vmem [shape: bf16[2,512,264], index: 12, kind: input, shape index: {}]   ;;  %s19916_s13 = inlined_call_operand.vmem [shape: f32[2,1,264], index: 13, kind: input, shape index: {}]   ;;  %s19917_s14 = inlined_call_operand.vmem [shape: f32[2,1,264], index: 14, kind: input, shape index: {}]   ;;  %s19918_s15 = inlined_call_operand.vmem [shape: f32[2,1,264], index: 15, kind: input, shape index: {}]   ;;  %s19919_s16 = inlined_call_operand.vmem [shape: f32[1,264], index: 16, kind: input, shape index: {}]   ;;  %s19920_s17 = inlined_call_operand.<no memory space> [shape: f32[1,1], index: 17, kind: input, shape index: {}]   ;;  %s19921_s18 = inlined_call_operand.vmem [shape: f32[2,1,1], index: 18, kind: output, shape index: {}]  }
   0x1   :  { %19922 = sst [smem:[#allocation3_spill]] %s19903_s0  ;;  %v23_v0 = vstv %s19920_s17 }
   0x2   :  { %19923 = sst [smem:[#allocation4_spill]] %s19904_s1  ;;  %24 = vst [vmem:[#allocation2] sm:$0x1] %v23_v0 }
   0x3   :  { %19924 = sst [smem:[#allocation5_spill]] %s19905_s2 }
   0x4 LB: > { %s9896_s30 = sadd.s32 4294967295, %s15191_s29   ;;  %p9900_p0 = scmp.ge.s32.totalorder %s15191_s29, 1  ;;  %s15191_s29 = sphi %s15293_s29, %s30_s29  }
   0x5   : > { %p522_p1 = scmp.lt.s32.totalorder %s15191_s29, 3 }
   0x7   : > { %p523_p2 = pnand %p9900_p0, %p522_p1 }
   0x8   : > { %p577_p3 = scmp.lt.s32.totalorder (!%p523_p2), %s9896_s30, 1  ;;  %s19925_s1 = sld [smem:[#allocation3_spill]] (!%p523_p2) }
   0x9   : > { %526 = sbr.rel (%p523_p2) target bundleno = 7908 (0x1ee4), region = 92  ;;  %s19926_s24 = sld [smem:[#allocation5_spill]] (!%p523_p2) }
   0xa   : > { %s19927_s23 = sld [smem:[#allocation4_spill]] (!%p523_p2) }
   0xe   : > { %s19931_s30 = smov (!%p577_p3, %s9896_s30), 1  ;;  %vm595_vm0 = vcmask 64512   ;;  %v15193_v7 = vmov 264.0   ;;  %v14301_v9 = vld [vmem:[%s19907_s4 + $0x78] sm:$0xff]  ;;  %v14309_v10 = vld [vmem:[%s19907_s4 + $0x248] sm:$0xff]  ;;  %v14300_v11 = vld [vmem:[%s19907_s4 + $0x70] sm:$0xff] }
   0xf   : > { %s15086_s17 = smul.u32 24, %s19931_s30  ;;  %15121 = vrcp.f32 %v15193_v7  ;;  %814 = vmatpush.bf16.msra.mxu1 %v14301_v9  ;;  %981 = vmatpush.bf16.msra.mxu3 %v14309_v10  ;;  %v14308_v13 = vld [vmem:[%s19907_s4 + $0x240] sm:$0xff]  ;;  %v14293_v14 = vld [vmem:[%s19907_s4 + $0x38] sm:$0xff]  ;;  %v14299_v15 = vld [vmem:[%s19907_s4 + $0x68] sm:$0xff]  ;;  %vm797_vm2 = vcmask 1043456   ;;  %vm1202_vm6 = vcmask 539648   ;;  %s587_s25 = scalar_lea.vmem %s19921_s18, %s19931_s30 }
  0x10   : > { %801 = vmatpush.bf16.msra.mxu0 %v14293_v14  ;;  %v14307_v17 = vld [vmem:[%s19907_s4 + $0x238] sm:$0xff]  ;;  %v14298_v18 = vld [vmem:[%s19907_s4 + $0x60] sm:$0xff]  ;;  %v14306_v20 = vld [vmem:[%s19907_s4 + $0x230] sm:$0xff]  ;;  %vm1995_vm13 = vcmask 1040384  }
  0x11   : > { %s581_s20 = scalar_lea.vmem %s19925_s1, %s15086_s17  ;;  %v14297_v21 = vld [vmem:[%s19907_s4 + $0x58] sm:$0xff]  ;;  %v14296_v23 = vld [vmem:[%s19907_s4 + $0x50] sm:$0xff]  ;;  %v14295_v27 = vld [vmem:[%s19907_s4 + $0x48] sm:$0xff] }
  0x12   : > { %v589_v1 = vld [vmem:[%s581_s20] sm:$0xff]  ;;  %v590_v2 = vld [vmem:[%s581_s20 + $0x8] sm:$0xff]  ;;  %v591_v3 = vld [vmem:[%s581_s20 + $0x10] sm:$0xff] }
  0x13   : > { %v594_v4 = vadd.f32 %v590_v2, %v589_v1  ;;  %v596_v5 = vsel %vm595_vm0, %v591_v3, 0.0  ;;  %815 = vmatpush.bf16.msra.mxu1 %v14300_v11  ;;  %982 = vmatpush.bf16.msra.mxu3 %v14308_v13  ;;  %v14294_v37 = vld [vmem:[%s19907_s4 + $0x40] sm:$0xff]  ;;  %v14325_v38 = vld [vmem:[%s19907_s4 + $0x458] sm:$0xff]  ;;  %v14305_v39 = vld [vmem:[%s19907_s4 + $0x228] sm:$0xff] }
  0x14   : > { %v14292_v40 = vld [vmem:[%s19907_s4 + $0x30] sm:$0xff]  ;;  %v14304_v42 = vld [vmem:[%s19907_s4 + $0x220] sm:$0xff]  ;;  %v14291_v43 = vld [vmem:[%s19907_s4 + $0x28] sm:$0xff] }
  0x15   : > { %v597_v6 = vadd.f32 %v596_v5, %v594_v4  ;;  %v15122_v8 = vpop.eup %15121  ;;  %802 = vmatpush.bf16.msra.mxu0 %v14292_v40  ;;  %v14324_v41 = vld [vmem:[%s19907_s4 + $0x450] sm:$0xff]  ;;  %v14323_v44 = vld [vmem:[%s19907_s4 + $0x448] sm:$0xff]  ;;  %v14303_v45 = vld [vmem:[%s19907_s4 + $0x218] sm:$0xff] }
  0x16   : > { %v601_v12 = vmul.f32 264.0, %v15122_v8  ;;  %vm605_vm1 = vweird.f32 %v15122_v8  ;;  %v690_v46 = vld [vmem:[%s19907_s4 + $0x80] sm:$0xf]  ;;  %v14302_v51 = vld [vmem:[%s19907_s4 + $0x210] sm:$0xff]  ;;  %v14289_v53 = vld [vmem:[%s19907_s4 + $0x18] sm:$0xff] }
  0x17   : > { %598 = vadd.xlane.f32.xlu0 %v597_v6  ;;  %816 = vmatpush.bf16.msra.mxu1 %v14299_v15  ;;  %v14290_v47 = vld [vmem:[%s19907_s4 + $0x20] sm:$0xff]  ;;  %v760_v48 = vunpack.c.l.b16 %v690_v46  ;;  %v14317_v54 = vld [vmem:[%s19907_s4 + $0x288] sm:$0xff]  ;;  %v14333_v55 = vld [vmem:[%s19907_s4 + $0x498] sm:$0xff] }
  0x18   : > { %v602_v16 = vsub.f32 1.0, %v601_v12  ;;  %983 = vmatpush.bf16.msra.mxu3 %v14307_v17  ;;  %v14322_v49 = vld [vmem:[%s19907_s4 + $0x440] sm:$0xff]  ;;  %v14321_v56 = vld [vmem:[%s19907_s4 + $0x438] sm:$0xff]  ;;  %v14288_v57 = vld [vmem:[%s19907_s4 + $0x10] sm:$0xff] }
  0x19   : > { %803 = vmatpush.bf16.msra.mxu0 %v14291_v43  ;;  %v777_v50 = vpack.c.b16 %v760_v48, %v760_v48  ;;  %v14316_v58 = vld [vmem:[%s19907_s4 + $0x280] sm:$0xff]  ;;  %v14332_v59 = vld [vmem:[%s19907_s4 + $0x490] sm:$0xff]  ;;  %v14287_v61 = vld [vmem:[%s19907_s4 + $0x8] sm:$0xff] }
  0x1a   : > { %v603_v19 = vmul.f32 %v15122_v8, %v602_v16  ;;  %v14320_v60 = vld [vmem:[%s19907_s4 + $0x430] sm:$0xff]  ;;  %v14315_v62 = vld [vmem:[%s19907_s4 + $0x278] sm:$0xff]  ;;  %v14331_v63 = vld [vmem:[%s19907_s4 + $0x488] sm:$0xff] }
  0x1b   : > { %817 = vmatpush.bf16.msra.mxu1 %v14298_v18  ;;  %v799_v52 = vsel %vm797_vm2, %v777_v50, 0  ;;  %v14319_v0 = vld [vmem:[%s19907_s4 + $0x428] sm:$0xff]  ;;  %v14318_v4 = vld [vmem:[%s19907_s4 + $0x420] sm:$0xff]  ;;  %v14329_v7 = vld [vmem:[%s19907_s4 + $0x478] sm:$0xff] }
  0x1c   : > { %v604_v22 = vadd.f32 %v15122_v8, %v603_v19  ;;  %984 = vmatpush.bf16.msra.mxu3 %v14306_v20  ;;  %834 = vmatpush.bf16.msra.mxu2 %v799_v52  ;;  %v14313_v6 = vld [vmem:[%s19907_s4 + $0x268] sm:$0xff]  ;;  %v14312_v10 = vld [vmem:[%s19907_s4 + $0x260] sm:$0xff]  ;;  %v14328_v11 = vld [vmem:[%s19907_s4 + $0x470] sm:$0xff] }
  0x1d   : > { %804 = vmatpush.bf16.msra.mxu0 %v14290_v47  ;;  %v14311_v12 = vld [vmem:[%s19907_s4 + $0x258] sm:$0xff]  ;;  %v14327_v13 = vld [vmem:[%s19907_s4 + $0x468] sm:$0xff]  ;;  %v9999_v14 = vld [vmem:[%s19907_s4 + $0x290] sm:$0xf] }
  0x1e   : > { %v15341_v24 = vsel %vm605_vm1, %v15122_v8, %v604_v22  ;;  %v944_v15 = vunpack.c.l.b16 %v9999_v14  ;;  %v14310_v19 = vld [vmem:[%s19907_s4 + $0x250] sm:$0xff]  ;;  %v14326_v20 = vld [vmem:[%s19907_s4 + $0x460] sm:$0xff] }
  0x1f   : > { %818 = vmatpush.bf16.msra.mxu1 %v14297_v21  ;;  %v14379_v14 = vld [vmem:[%s19907_s4 + $0x4ac] sm:$0xff] }
  0x20   : > { %985 = vmatpush.bf16.msra.mxu3 %v14305_v39  ;;  %994 = vmatpush.bf16.msrb.mxu2 %v14317_v54  ;;  %v961_v17 = vpack.c.b16 %v944_v15, %v944_v15  ;;  %v14361_v54 = vld [vmem:[%s19907_s4 + $0xfc] sm:$0xff]  ;;  %v14378_v15 = vld [vmem:[%s19907_s4 + $0x4a4] sm:$0xff] }
  0x21   : > { %805 = vmatpush.bf16.msra.mxu0 %v14289_v53 }
  0x22   : > { %v979_v21 = vsel %vm797_vm2, %v961_v17, 0 }
  0x23   : > { %819 = vmatpush.bf16.msra.mxu1 %v14296_v23 }
  0x24   : > { %986 = vmatpush.bf16.msra.mxu3 %v14304_v42  ;;  %995 = vmatpush.bf16.msrb.mxu2 %v14316_v58  ;;  %v14359_v58 = vld [vmem:[%s19907_s4 + $0xec] sm:$0xff] }
  0x25   : > { %806 = vmatpush.bf16.msra.mxu0 %v14288_v57  ;;  %v14360_v57 = vld [vmem:[%s19907_s4 + $0xf4] sm:$0xff] }
  0x27   : > { %820 = vmatpush.bf16.msra.mxu1 %v14295_v27  ;;  %v593_v27 = vld [vmem:[%s19906_s3] sm:$0x7] }
  0x28   : > { %987 = vmatpush.bf16.msra.mxu3 %v14303_v45  ;;  %996 = vmatpush.bf16.msrb.mxu2 %v14315_v62  ;;  %v647_v40 = vperm.slane %v593_v27, 2  ;;  %v14356_v62 = vld [vmem:[%s19907_s4 + $0xd4] sm:$0xff] }
  0x29   : > { %807 = vmatpush.bf16.msra.mxu0 %v14287_v61  ;;  %v14377_v61 = vld [vmem:[%s19907_s4 + $0x30c] sm:$0xff] }
  0x2b   : > { %821 = vmatpush.bf16.msra.mxu1 %v14294_v37  ;;  %v646_v37 = vperm.slane %v593_v27, 1 }
  0x2c   : > { %988 = vmatpush.bf16.msra.mxu3 %v14302_v51 }
  0x2f   : > { %1161 = vmatpush.bf16.msrb.mxu1 %v14325_v38 }
  0x30   : > { %1174 = vmatpush.bf16.msrb.mxu3 %v14333_v55 }
  0x33   : > { %1162 = vmatpush.bf16.msrb.mxu1 %v14324_v41 }
  0x34   : > { %1175 = vmatpush.bf16.msrb.mxu3 %v14332_v59  ;;  %v14358_v59 = vld [vmem:[%s19907_s4 + $0xe4] sm:$0xff] }
  0x37   : > { %1163 = vmatpush.bf16.msrb.mxu1 %v14323_v44  ;;  %v10098_v44 = vld [vmem:[%s19907_s4 + $0x4a0] sm:$0xf] }
  0x38   : > { %1176 = vmatpush.bf16.msrb.mxu3 %v14331_v63  ;;  %v1124_v48 = vunpack.c.l.b16 %v10098_v44  ;;  %v14376_v63 = vld [vmem:[%s19907_s4 + $0x304] sm:$0xff] }
  0x3b   : > { %1164 = vmatpush.bf16.msrb.mxu1 %v14322_v49 }
  0x3f   : > { %1165 = vmatpush.bf16.msrb.mxu1 %v14321_v56 }
  0x43   : > { %1166 = vmatpush.bf16.msrb.mxu1 %v14320_v60  ;;  %v14357_v60 = vld [vmem:[%s19907_s4 + $0xdc] sm:$0xff] }
  0x47   : > { %1167 = vmatpush.bf16.msrb.mxu1 %v14319_v0  ;;  %v14355_v0 = vld [vmem:[%s19907_s4 + $0xcc] sm:$0xff] }
  0x4b   : > { %1168 = vmatpush.bf16.msrb.mxu1 %v14318_v4  ;;  %v14385_v4 = vld [vmem:[%s19907_s4 + $0x4dc] sm:$0xff] }
  0x8a   : > { %v599_v25 = vpop.xlane.xlu0 %598 }
  0x8b   : > { %v607_v26 = vmul.f32 %v15341_v24, %v599_v25  ;;  %v592_v25 = vld [vmem:[%s19926_s24] sm:$0x7]  ;;  %s584_s24 = scalar_lea.vmem %s19927_s23, %s19931_s30 }
  0x8d   : > { %v15347_v28 = vsub.f32 %v589_v1, %v607_v26  ;;  %v15349_v29 = vsub.f32 %v590_v2, %v607_v26  ;;  %v15351_v30 = vsub.f32 %v591_v3, %v607_v26  ;;  %v14286_v1 = vld [vmem:[%s19907_s4] sm:$0xff]  ;;  %v14314_v2 = vld [vmem:[%s19907_s4 + $0x270] sm:$0xff] }
  0x8e   : > { %v14330_v3 = vld [vmem:[%s19907_s4 + $0x480] sm:$0xff]  ;;  %808 = vmatpush.bf16.msra.mxu0 %v14286_v1  ;;  %997 = vmatpush.bf16.msrb.mxu2 %v14314_v2 }
  0x8f   : > { %v611_v31 = vmul.f32 %v15347_v28, %v15347_v28  ;;  %v612_v32 = vmul.f32 %v15349_v29, %v15349_v29  ;;  %v613_v33 = vmul.f32 %v15351_v30, %v15351_v30  ;;  %1177 = vmatpush.bf16.msrb.mxu3 %v14330_v3  ;;  %v14375_v1 = vld [vmem:[%s19907_s4 + $0x2fc] sm:$0xff]  ;;  %v14354_v2 = vld [vmem:[%s19907_s4 + $0xc4] sm:$0xff]  ;;  %v14374_v3 = vld [vmem:[%s19907_s4 + $0x2f4] sm:$0xff] }
  0x91   : > { %v614_v34 = vadd.f32 %v612_v32, %v611_v31  ;;  %v615_v35 = vsel %vm595_vm0, %v613_v33, 0.0  ;;  %v10199_v31 = vld [vmem:[%s19907_s4 + $0x104] sm:$0xf]  ;;  %v635_v33 = vperm.slane %v592_v25, 0 }
  0x92   : > { %998 = vmatpush.bf16.msrb.mxu2 %v14313_v6  ;;  %1014 = vmatpush.bf16.msrb.mxu0 %v979_v21  ;;  %v1396_v39 = vunpack.c.l.b16 %v10199_v31  ;;  %v14384_v6 = vld [vmem:[%s19907_s4 + $0x4d4] sm:$0xff]  ;;  %v15097_v31 = vld [vmem:[%s19908_s5] ss:$0 sm:$0xff] }
  0x93   : > { %v616_v36 = vadd.f32 %v615_v35, %v614_v34  ;;  %1178 = vmatpush.bf16.msrb.mxu3 %v14329_v7  ;;  %v636_v34 = vperm.slane %v592_v25, 1  ;;  %v637_v35 = vperm.slane %v592_v25, 2  ;;  %v14372_v7 = vld [vmem:[%s19907_s4 + $0x2e4] sm:$0xff] }
  0x94   : > { %v1413_v49 = vpack.c.b16 %v1396_v39, %v1396_v39 }
  0x95   : > { %617 = vadd.xlane.f32.xlu0 %v616_v36  ;;  %v645_v36 = vperm.slane %v593_v27, 0  ;;  %v15098_v27 = vld [vmem:[%s19908_s5 + $0x4] ss:$0 sm:$0xff] }
  0x96   : > { %999 = vmatpush.bf16.msrb.mxu2 %v14312_v10  ;;  %v1431_v55 = vsel %vm797_vm2, %v1413_v49, 0  ;;  %v14382_v10 = vld [vmem:[%s19907_s4 + $0x4c4] sm:$0xff] }
  0x97   : > { %1179 = vmatpush.bf16.msrb.mxu3 %v14328_v11  ;;  %v14370_v11 = vld [vmem:[%s19907_s4 + $0x2d4] sm:$0xff] }
  0x9a   : > { %1000 = vmatpush.bf16.msrb.mxu2 %v14311_v12  ;;  %v14381_v12 = vld [vmem:[%s19907_s4 + $0x4bc] sm:$0xff] }
  0x9b   : > { %1180 = vmatpush.bf16.msrb.mxu3 %v14327_v13  ;;  %v14380_v13 = vld [vmem:[%s19907_s4 + $0x4b4] sm:$0xff] }
  0x9e   : > { %1001 = vmatpush.bf16.msrb.mxu2 %v14310_v19 }
  0x9f   : > { %1181 = vmatpush.bf16.msrb.mxu3 %v14326_v20 }
 0x108   : > { %v618_v5 = vpop.xlane.xlu0 %617 }
 0x109   : > { %v619_v8 = vmul.f32 %v618_v5, %v15341_v24  ;;  %v14373_v5 = vld [vmem:[%s19907_s4 + $0x2ec] sm:$0xff] }
 0x10b   : > { %v620_v9 = vadd.f32 1e-12, %v619_v8  ;;  %v14383_v8 = vld [vmem:[%s19907_s4 + $0x4cc] sm:$0xff] }
 0x10d   : > { %15123 = vrsqrt.f32 %v620_v9  ;;  %vm627_vm4 = vweird.f32 %v620_v9 }
 0x113   : > { %v15124_v16 = vpop.eup %15123 }
 0x114   : > { %v622_v18 = vmul.f32 %v15124_v16, %v620_v9  ;;  %vm628_vm3 = vweird.f32 %v15124_v16  ;;  %v14371_v9 = vld [vmem:[%s19907_s4 + $0x2dc] sm:$0xff] }
 0x115   : > { %vm629_vm5 = vmor %vm627_vm4, %vm628_vm3 }
 0x116   : > { %v623_v22 = vmul.f32 %v15124_v16, %v622_v18 }
 0x118   : > { %v624_v23 = vmul.f32 0.5, %v623_v22 }
 0x11a   : > { %v625_v26 = vsub.f32 1.5, %v624_v23 }
 0x11c   : > { %v626_v32 = vmul.f32 %v15124_v16, %v625_v26 }
 0x11e   : > { %v630_v38 = vsel %vm629_vm5, %v15124_v16, %v626_v32 }
 0x11f   : > { %v631_v41 = vmul.f32 %v630_v38, %v15347_v28  ;;  %v632_v42 = vmul.f32 %v630_v38, %v15349_v29  ;;  %v633_v43 = vmul.f32 %v630_v38, %v15351_v30  ;;  %v1141_v28 = vpack.c.b16 %v1124_v48, %v1124_v48  ;;  %v14352_v48 = vld [vmem:[%s19907_s4 + $0xb4] sm:$0xff] }
 0x121   : > { %v641_v45 = vmul.f32 %v635_v33, %v631_v41  ;;  %v642_v46 = vmul.f32 %v636_v34, %v632_v42  ;;  %v643_v47 = vmul.f32 %v637_v35, %v633_v43  ;;  %v1159_v56 = vsel %vm797_vm2, %v1141_v28, 0  ;;  %v14353_v41 = vld [vmem:[%s19907_s4 + $0xbc] sm:$0xff] }
 0x123   : > { %v15492_v50 = vadd.f32 %v645_v36, %v641_v45  ;;  %v15494_v51 = vadd.f32 %v646_v37, %v642_v46  ;;  %v15496_v52 = vadd.f32 %v647_v40, %v643_v47  ;;  %v15099_v47 = vld [vmem:[%s19908_s5 + $0x8] ss:$0 sm:$0xff] }
 0x125   : > { %v15500_v29 = vpack.c.bf16 %v15492_v50, %v15492_v50  ;;  %v15504_v30 = vpack.c.bf16 %v15494_v51, %v15494_v51  ;;  %v15508_v53 = vpack.c.bf16 %v15496_v52, %v15496_v52 }
 0x127   : > { %809 = vmatmul.bf16.vlgmr.msra.gmra.mxu0 %v15500_v29  ;;  %822 = vmatmul.bf16.vlgmr.msra.gmra.mxu1 %v15504_v30 }
 0x128   : > { %9966 = vmatmul.msk.bf16.vlgmr.msra.gmra.mxu2 %vm595_vm0, %v15508_v53  ;;  %989 = vmatmul.bf16.vlgmr.msra.gmra.mxu3 %v15500_v29 }
 0x129   : > { %1446 = vmatpush.bf16.msra.mxu1 %v14361_v54  ;;  %1466 = vmatpush.bf16.msra.mxu3 %v1431_v55  ;;  %v14351_v55 = vld [vmem:[%s19907_s4 + $0xac] sm:$0xff] }
 0x12a   : > { %1194 = vmatpush.bf16.msra.mxu2 %v1159_v56 }
 0x12d   : > { %1447 = vmatpush.bf16.msra.mxu1 %v14360_v57 }
 0x131   : > { %1448 = vmatpush.bf16.msra.mxu1 %v14359_v58 }
 0x135   : > { %1449 = vmatpush.bf16.msra.mxu1 %v14358_v59 }
 0x137   : > { %10065 = vmatmul.msk.bf16.vlgmr.msrb.gmra.mxu0 %vm595_vm0, %v15508_v53  ;;  %1169 = vmatmul.bf16.vlgmr.msrb.gmra.mxu1 %v15500_v29 }
 0x138   : > { %1002 = vmatmul.bf16.vlgmr.msrb.gmra.mxu2 %v15504_v30  ;;  %1182 = vmatmul.bf16.vlgmr.msrb.gmra.mxu3 %v15504_v30 }
 0x139   : > { %1450 = vmatpush.bf16.msra.mxu1 %v14357_v60  ;;  %1626 = vmatpush.bf16.msrb.mxu3 %v14377_v61  ;;  %v14350_v60 = vld [vmem:[%s19907_s4 + $0xa4] sm:$0xff] }
 0x13d   : > { %1451 = vmatpush.bf16.msra.mxu1 %v14356_v62  ;;  %1627 = vmatpush.bf16.msrb.mxu3 %v14376_v63 }
 0x141   : > { %1452 = vmatpush.bf16.msra.mxu1 %v14355_v0  ;;  %1628 = vmatpush.bf16.msrb.mxu3 %v14375_v1  ;;  %v14349_v0 = vld [vmem:[%s19907_s4 + $0x9c] sm:$0xff] }
 0x145   : > { %1453 = vmatpush.bf16.msra.mxu1 %v14354_v2  ;;  %1629 = vmatpush.bf16.msrb.mxu3 %v14374_v3  ;;  %v10298_v2 = vld [vmem:[%s19907_s4 + $0x314] sm:$0xf] }
 0x148   : > { %10164 = vmatmul.msk.bf16.vlgmr.msra.gmra.mxu2 %vm595_vm0, %v15508_v53  ;;  %1454 = vmatmul.bf16.vlgmr.msra.gmra.mxu1 %v15504_v30 }
 0x149   : > { %1793 = vmatpush.bf16.msrb.mxu1 %v14385_v4  ;;  %10265 = vmatmul.msk.bf16.vlgmr.msra.gmra.mxu3 %vm595_vm0, %v15508_v53  ;;  %v14348_v4 = vld [vmem:[%s19907_s4 + $0x94] sm:$0xff] }
 0x14a   : > { %1630 = vmatpush.bf16.msrb.mxu3 %v14373_v5  ;;  %v1576_v5 = vunpack.c.l.b16 %v10298_v2 }
 0x14d   : > { %1794 = vmatpush.bf16.msrb.mxu1 %v14384_v6  ;;  %v10397_v6 = vld [vmem:[%s19907_s4 + $0x524] sm:$0xf] }
 0x14e   : > { %1631 = vmatpush.bf16.msrb.mxu3 %v14372_v7  ;;  %v14347_v7 = vld [vmem:[%s19907_s4 + $0x8c] sm:$0xff] }
 0x151   : > { %1795 = vmatpush.bf16.msrb.mxu1 %v14383_v8  ;;  %v1756_v8 = vunpack.c.l.b16 %v10397_v6  ;;  %v14392_v6 = vld [vmem:[%s19907_s4 + $0x514] sm:$0xff] }
 0x152   : > { %1632 = vmatpush.bf16.msrb.mxu3 %v14371_v9  ;;  %v1593_v9 = vpack.c.b16 %v1576_v5, %v1576_v5 }
 0x155   : > { %1796 = vmatpush.bf16.msrb.mxu1 %v14382_v10 }
 0x156   : > { %1633 = vmatpush.bf16.msrb.mxu3 %v14370_v11  ;;  %v14346_v11 = vld [vmem:[%s19907_s4 + $0x84] sm:$0xff] }
 0x159   : > { %1797 = vmatpush.bf16.msrb.mxu1 %v14381_v12  ;;  %1634 = vmatmul.bf16.vlgmr.msrb.gmra.mxu3 %v15504_v30  ;;  %v1773_v12 = vpack.c.b16 %v1756_v8, %v1756_v8  ;;  %v14390_v8 = vld [vmem:[%s19907_s4 + $0x504] sm:$0xff] }
 0x15d   : > { %1798 = vmatpush.bf16.msrb.mxu1 %v14380_v13  ;;  %v1611_v13 = vsel %vm797_vm2, %v1593_v9, 0  ;;  %v14389_v9 = vld [vmem:[%s19907_s4 + $0x4fc] sm:$0xff] }
 0x161   : > { %1799 = vmatpush.bf16.msrb.mxu1 %v14379_v14  ;;  %v1791_v14 = vsel %vm797_vm2, %v1773_v12, 0  ;;  %v14387_v12 = vld [vmem:[%s19907_s4 + $0x4ec] sm:$0xff] }
 0x165   : > { %1800 = vmatpush.bf16.msrb.mxu1 %v14378_v15 }
 0x168   : > { %1801 = vmatmul.bf16.vlgmr.msrb.gmra.mxu1 %v15500_v29 }
 0x1a4   : > { %v810_v16 = vpop.f32.mrf.mxu0  ;;  %v823_v17 = vpop.f32.mrf.mxu1 }
 0x1a5   : > { %v811_v38 = vadd.f32 %v15097_v31, %v810_v16 }
 0x1a7   : > { %v824_v42 = vadd.f32 %v823_v17, %v811_v38  ;;  %v14369_v38 = vld [vmem:[%s19907_s4 + $0x2cc] sm:$0xff] }
 0x1ab   : > { %v836_v18 = vpop.f32.mrf.mxu2  ;;  %v990_v19 = vpop.f32.mrf.mxu3 }
 0x1ac   : > { %v812_v20 = vpop.f32.mrf.mxu0  ;;  %v825_v21 = vpop.f32.mrf.mxu1  ;;  %v991_v32 = vadd.f32 %v15098_v27, %v990_v19  ;;  %v837_v46 = vadd.f32 %v836_v18, %v824_v42  ;;  %v654_v18 = vld [vmem:[%s584_s24] sm:$0x1]  ;;  %v15194_v19 = vmov 0  }
 0x1ad   : > { %vm1223_vm7 = vcmp.gt.f32.partialorder %v654_v18, 0.5  ;;  %v15101_v18 = vld [vmem:[%s19908_s5 + $0x1] ss:$0 sm:$0xff] }
 0x1ae   : > { %v1200_v28 = vpack.c.bf16 %v837_v46, %v837_v46  ;;  %v1224_v20 = vsel %vm1223_vm7, 1, %v15194_v19  ;;  %v14366_v46 = vld [vmem:[%s19907_s4 + $0x2b4] sm:$0xff] }
 0x1af   : > { %v1225_v21 = vperm.slane %v1224_v20, 0 }
 0x1b1   : > { %vm15662_vm8 = vcmp.eq.s32.totalorder %v1225_v21, 1 }
 0x1b3   : > { %v838_v22 = vpop.f32.mrf.mxu2  ;;  %v992_v23 = vpop.f32.mrf.mxu3 }
 0x1b4   : > { %v1016_v25 = vpop.f32.mrf.mxu0  ;;  %v1170_v26 = vpop.f32.mrf.mxu1  ;;  %v13386_v22 = vld [vmem:[%s19909_s6 + $0x35c] sm:$0x1] }
 0x1b5   : > { %v1171_v54 = vadd.f32 %v15099_v47, %v1170_v26  ;;  %v14365_v47 = vld [vmem:[%s19907_s4 + $0x2ac] sm:$0xff] }
 0x1bb   : > { %v1003_v33 = vpop.f32.mrf.mxu2  ;;  %v1183_v34 = vpop.f32.mrf.mxu3 }
 0x1bc   : > { %v1004_v35 = vadd.f32 %v1003_v33, %v991_v32  ;;  %v1018_v36 = vpop.f32.mrf.mxu0  ;;  %v1172_v37 = vpop.f32.mrf.mxu1  ;;  %v1184_v56 = vadd.f32 %v1183_v34, %v1171_v54  ;;  %v14362_v54 = vld [vmem:[%s19907_s4 + $0x294] sm:$0xff] }
 0x1be   : > { %v1017_v39 = vadd.f32 %v1016_v25, %v1004_v35 }
 0x1c0   : > { %v1201_v40 = vpack.c.bf16 %v1017_v39, %v1017_v39  ;;  %v14368_v39 = vld [vmem:[%s19907_s4 + $0x2c4] sm:$0xff] }
 0x1c2   : > { %v1207_v43 = vsel %vm1202_vm6, %v1201_v40, 0 }
 0x1c3   : > { %v1005_v44 = vpop.f32.mrf.mxu2  ;;  %v1185_v45 = vpop.f32.mrf.mxu3  ;;  %1216 = vmatpush.bf16.xpose.msra.mxu0 %v1207_v43 }
 0x1c4   : > { %v14367_v45 = vld [vmem:[%s19907_s4 + $0x2bc] sm:$0xff] }
 0x1c5   : > { %v15617_v49 = vpop.f32.mrf.mxu1 }
 0x1ca   : > { %10165 = vmatmul.msk.bf16.vlgmr.msra.gmra.mxu0 %vm1202_vm6, %v1200_v28  ;;  %v14363_v28 = vld [vmem:[%s19907_s4 + $0x29c] sm:$0xff] }
 0x1cb   : > { %1433 = vmatpush.bf16.msrb.mxu0 %v14353_v41  ;;  %v1196_v57 = vpop.f32.mrf.mxu2 }
 0x1cc   : > { %v1197_v58 = vadd.f32 %v1196_v57, %v1184_v56  ;;  %v15623_v59 = vpop.f32.mrf.mxu3 }
 0x1cd   : > { %v1457_v61 = vpop.f32.mrf.mxu1 }
 0x1ce   : > { %v1253_v62 = vpack.c.bf16 %v1197_v58, %v1197_v58 }
 0x1cf   : > { %1434 = vmatpush.bf16.msrb.mxu0 %v14352_v48  ;;  %v14364_v48 = vld [vmem:[%s19907_s4 + $0x2a4] sm:$0xff] }
 0x1d0   : > { %v1258_v63 = vsel %vm797_vm2, %v1253_v62, 0 }
 0x1d1   : > { %1267 = vmatpush.bf16.msrb.mxu2 %v1258_v63 }
 0x1d3   : > { %1435 = vmatpush.bf16.msrb.mxu0 %v14351_v55  ;;  %v1198_v1 = vpop.f32.mrf.mxu2 }
 0x1d4   : > { %v1470_v3 = vpop.f32.mrf.mxu3 }
 0x1d5   : > { %1613 = vmatpush.bf16.msra.mxu2 %v14369_v38 }
 0x1d7   : > { %1436 = vmatpush.bf16.msrb.mxu0 %v14350_v60 }
 0x1d9   : > { %1614 = vmatpush.bf16.msra.mxu2 %v14368_v39 }
 0x1db   : > { %1437 = vmatpush.bf16.msrb.mxu0 %v14349_v0 }
 0x1dc   : > { %v15644_v10 = vpop.f32.mrf.mxu3 }
 0x1dd   : > { %1615 = vmatpush.bf16.msra.mxu2 %v14367_v45 }
 0x1df   : > { %1438 = vmatpush.bf16.msrb.mxu0 %v14348_v4  ;;  %v14393_v4 = vld [vmem:[%s19907_s4 + $0x51c] sm:$0xff] }
 0x1e1   : > { %1616 = vmatpush.bf16.msra.mxu2 %v14366_v46 }
 0x1e3   : > { %1439 = vmatpush.bf16.msrb.mxu0 %v14347_v7  ;;  %v14391_v7 = vld [vmem:[%s19907_s4 + $0x50c] sm:$0xff] }
 0x1e4   : > { %v1637_v16 = vpop.f32.mrf.mxu3 }
 0x1e5   : > { %v15651_v15 = vpop.f32.mrf.mxu1  ;;  %1617 = vmatpush.bf16.msra.mxu2 %v14365_v47 }
 0x1e7   : > { %1440 = vmatpush.bf16.msrb.mxu0 %v14346_v11  ;;  %v14388_v11 = vld [vmem:[%s19907_s4 + $0x4f4] sm:$0xff] }
 0x1e9   : > { %1618 = vmatpush.bf16.msra.mxu2 %v14364_v48 }
 0x1ea   : > { %1441 = vmatmul.bf16.vlgmr.msrb.gmra.mxu0 %v15500_v29 }
 0x1eb   : > { %1646 = vmatpush.bf16.msra.mxu0 %v1611_v13  ;;  %v14386_v13 = vld [vmem:[%s19907_s4 + $0x4e4] sm:$0xff] }
 0x1ed   : > { %v1804_v17 = vpop.f32.mrf.mxu1  ;;  %1619 = vmatpush.bf16.msra.mxu2 %v14363_v28  ;;  %v15755_v28 = vld [vmem:[%s19909_s6 + $0x60] sm:$0x11] }
 0x1ee   : > { %v15102_v17 = vld [vmem:[%s19908_s5 + $0x5] ss:$0 sm:$0xff] }
 0x1ef   : > { %1826 = vmatpush.bf16.msrb.mxu0 %v1791_v14 }
 0x1f1   : > { %1620 = vmatpush.bf16.msra.mxu2 %v14362_v54  ;;  %v2086_v54 = vunpack.c.l.b16 %v15755_v28 }
 0x1fa   : > { %10364 = vmatmul.msk.bf16.vlgmr.msra.gmra.mxu0 %vm595_vm0, %v15508_v53 }
 0x20a   : > { %10463 = vmatmul.msk.bf16.vlgmr.msrb.gmra.mxu0 %vm595_vm0, %v15508_v53 }
 0x247   : > { %v1218_v23 = vpop.f32.mrf.mxu0 }
 0x248   : > { %v1222_v25 = vmul.f32 0.12309149, %v1218_v23 }
 0x24a   : > { %v1227_v26 = vsel %vm15662_vm8, %v1222_v25, -1e+30 }
 0x24b   : > { %v1228_v27 = vsel %vm595_vm0, %v1227_v26, -inf }
 0x24c   : > { %1229 = vmax.xlane.f32.xlu1 %v1228_v27 }
 0x24f   : > { %v1220_v31 = vpop.f32.mrf.mxu0 }
 0x267   : > { %v15669_v32 = vpop.f32.mrf.mxu0 }
 0x268   : > { %v1443_v21 = vadd.f32 %v15101_v18, %v15669_v32 }
 0x26f   : > { %v1444_v33 = vpop.f32.mrf.mxu0 }
 0x277   : > { %v15671_v34 = vpop.f32.mrf.mxu0 }
 0x27f   : > { %v1650_v35 = vpop.f32.mrf.mxu0 }
 0x280   : > { %v15100_v35 = vld [vmem:[%s19908_s5 + $0x9] ss:$0 sm:$0xff] }
 0x281   : > { %v1803_v38 = vadd.f32 %v15100_v35, %v15651_v15  ;;  %v14416_v35 = vld [vmem:[%s19907_s4 + $0x158] sm:$0xff] }
 0x287   : > { %v15673_v36 = vpop.f32.mrf.mxu0 }
 0x28f   : > { %v1830_v37 = vpop.f32.mrf.mxu0 }
 0x2bf   : > { %v1230_v40 = vpop.xlane.xlu1 %1229 }
 0x2c0   : > { %v1231_v41 = vsub.f32 %v1227_v26, %v1230_v40  ;;  %v1456_v26 = vadd.f32 %v15617_v49, %v1443_v21  ;;  %v14421_v21 = vld [vmem:[%s19907_s4 + $0x180] sm:$0xff] }
 0x2c2   : > { %v1232_v42 = vmul.f32 1.442695, %v1231_v41  ;;  %v1469_v37 = vadd.f32 %v15623_v59, %v1456_v26  ;;  %v14419_v26 = vld [vmem:[%s19907_s4 + $0x170] sm:$0xff] }
 0x2c4   : > { %15125 = vpow2.f32 %v1232_v42  ;;  %v1832_v32 = vpack.c.bf16 %v1469_v37, %v1469_v37  ;;  %v14415_v37 = vld [vmem:[%s19907_s4 + $0x150] sm:$0xff] }
 0x2ca   : > { %v15126_v43 = vpop.eup %15125 }
 0x2cb   : > { %v1234_v44 = vsel %vm595_vm0, %v15126_v43, 0.0 }
 0x2cc   : > { %1235 = vadd.xlane.f32.xlu1 %v1234_v44 }
 0x33f   : > { %v1236_v55 = vpop.xlane.xlu1 %1235 }
 0x340   : > { %15127 = vrcp.f32 %v1236_v55  ;;  %v1248_v60 = vand.u32 2147483648, %v1236_v55  ;;  %v1246_v62 = vand.u32 2147483647, %v1236_v55  ;;  %vm1242_vm10 = vweird.f32 %v1236_v55 }
 0x342   : > { %v1249_v0 = vor.u32 1.1754944e-38, %v1248_v60  ;;  %vm1247_vm12 = vcmp.eq.f32.partialorder %v1246_v62, 8.507059e+37  ;;  %v14341_v62 = vld [vmem:[%s19909_s6 + $0x38] sm:$0xf0] }
 0x346   : > { %v15128_v56 = vpop.eup %15127 }
 0x347   : > { %v1238_v57 = vmul.f32 %v15128_v56, %v1236_v55  ;;  %vm1243_vm9 = vweird.f32 %v15128_v56  ;;  %v2101_v55 = vpack.c.b16 %v2086_v54, %v2086_v54 }
 0x348   : > { %vm1244_vm11 = vmor %vm1242_vm10, %vm1243_vm9 }
 0x349   : > { %v1239_v58 = vsub.f32 1.0, %v1238_v57  ;;  %v10573_v57 = vld [vmem:[%s19909_s6 + $0x48] sm:$0xf] }
 0x34b   : > { %v1240_v61 = vmul.f32 %v15128_v56, %v1239_v58  ;;  %v14344_v58 = vld [vmem:[%s19909_s6 + $0x50] sm:$0xf0] }
 0x34c   : > { %v10574_v60 = vor.u32 %v14344_v58, %v10573_v57  ;;  %v14403_v57 = vld [vmem:[%s19909_s6 + $0xb8] sm:$0xf]  ;;  %v10524_v58 = vld [vmem:[%s19909_s6 + $0xc0] sm:$0xf0] }
 0x34d   : > { %v1241_v63 = vadd.f32 %v15128_v56, %v1240_v61  ;;  %v10561_v61 = vld [vmem:[%s19909_s6 + $0x30] sm:$0xf] }
 0x34f   : > { %v1245_v1 = vsel %vm1244_vm11, %v15128_v56, %v1241_v63  ;;  %v2120_v56 = vsel %vm1995_vm13, %v2101_v55, 0  ;;  %v10562_v63 = vor.u32 %v14341_v62, %v10561_v61  ;;  %v10518_v61 = vld [vmem:[%s19909_s6 + $0xa4] sm:$0xf]  ;;  %v14402_v62 = vld [vmem:[%s19909_s6 + $0xac] sm:$0xf0] }
 0x350   : > { %v1250_v2 = vsel %vm1247_vm12, %v1249_v0, %v1245_v1  ;;  %v10549_v0 = vld [vmem:[%s19909_s6 + $0x18] sm:$0xf]  ;;  %v14338_v1 = vld [vmem:[%s19909_s6 + $0x20] sm:$0xf0] }
 0x351   : > { %v1251_v3 = vmul.f32 %v15126_v43, %v1250_v2  ;;  %v10550_v2 = vor.u32 %v14338_v1, %v10549_v0  ;;  %v14400_v0 = vld [vmem:[%s19909_s6 + $0xa0] sm:$0xf]  ;;  %v10512_v1 = vld [vmem:[%s19909_s6 + $0xa8] sm:$0xf0] }
 0x353   : > { %v1252_v5 = vpack.c.bf16 %v1251_v3, %v1251_v3  ;;  %v10537_v3 = vld [vmem:[%s19909_s6] sm:$0xf] }
 0x355   : > { %10166 = vmatmul.msk.bf16.vlgmr.msrb.gmra.mxu2 %vm595_vm0, %v1252_v5 }
 0x356   : > { %1806 = vmatpush.bf16.msrb.mxu2 %v14393_v4  ;;  %v14335_v4 = vld [vmem:[%s19909_s6 + $0x8] sm:$0xf0] }
 0x357   : > { %v10538_v5 = vor.u32 %v14335_v4, %v10537_v3  ;;  %v10519_v4 = vor.u32 %v14402_v62, %v10518_v61  ;;  %v14345_v61 = vld [vmem:[%s19909_s6 + $0x58] sm:$0xf0] }
 0x35a   : > { %1807 = vmatpush.bf16.msrb.mxu2 %v14392_v6 }
 0x35e   : > { %1808 = vmatpush.bf16.msrb.mxu2 %v14391_v7 }
 0x362   : > { %1809 = vmatpush.bf16.msrb.mxu2 %v14390_v8 }
 0x365   : > { %1621 = vmatmul.bf16.vlgmr.msra.gmra.mxu2 %v15500_v29 }
 0x366   : > { %1810 = vmatpush.bf16.msrb.mxu2 %v14389_v9 }
 0x36a   : > { %1811 = vmatpush.bf16.msrb.mxu2 %v14388_v11 }
 0x36e   : > { %1812 = vmatpush.bf16.msrb.mxu2 %v14387_v12 }
 0x372   : > { %1813 = vmatpush.bf16.msrb.mxu2 %v14386_v13 }
 0x375   : > { %1814 = vmatmul.bf16.vlgmr.msrb.gmra.mxu2 %v15504_v30 }
 0x3d8   : > { %v15727_v14 = vpop.f32.mrf.mxu2 }
 0x3e0   : > { %v1271_v16 = vpop.f32.mrf.mxu2 }
 0x3e8   : > { %v1622_v19 = vpop.f32.mrf.mxu2 }
 0x3e9   : > { %v1623_v20 = vadd.f32 %v15102_v17, %v1622_v19 }
 0x3eb   : > { %v1636_v23 = vadd.f32 %v15644_v10, %v1623_v20 }
 0x3ed   : > { %v1649_v25 = vadd.f32 %v15671_v34, %v1636_v23 }
 0x3ef   : > { %v1833_v27 = vpack.c.bf16 %v1649_v25, %v1649_v25  ;;  %v14420_v25 = vld [vmem:[%s19907_s4 + $0x178] sm:$0xff] }
 0x3f0   : > { %v1624_v31 = vpop.f32.mrf.mxu2 }
 0x3f1   : > { %v1838_v33 = vsel %vm1202_vm6, %v1833_v27, 0  ;;  %v14418_v27 = vld [vmem:[%s19907_s4 + $0x168] sm:$0xff]  ;;  %v14417_v31 = vld [vmem:[%s19907_s4 + $0x160] sm:$0xff] }
 0x3f2   : > { %1847 = vmatpush.bf16.xpose.msra.mxu3 %v1838_v33  ;;  %v15801_v33 = vpack.c.bf16 %v15727_v14, %v15727_v14  ;;  %v14445_v14 = vld [vmem:[%s19907_s4 + $0x560] sm:$0xff] }
 0x3f8   : > { %v1815_v39 = vpop.f32.mrf.mxu2 }
 0x3f9   : > { %v1816_v10 = vadd.f32 %v1815_v39, %v1803_v38  ;;  %10464 = vmatmul.msk.bf16.vlgmr.msra.gmra.mxu3 %vm1202_vm6, %v1832_v32  ;;  %v14414_v38 = vld [vmem:[%s19907_s4 + $0x148] sm:$0xff]  ;;  %v10483_v39 = vld [vmem:[%s19909_s6 + $0xd4] sm:$0x1] }
 0x3fa   : > { %v10482_v32 = vld [vmem:[%s19909_s6 + $0xcc] sm:$0x11] }
 0x3fb   : > { %v1829_v49 = vadd.f32 %v15673_v36, %v1816_v10  ;;  %v14444_v10 = vld [vmem:[%s19907_s4 + $0x558] sm:$0xff] }
 0x3fd   : > { %v1880_v34 = vpack.c.bf16 %v1829_v49, %v1829_v49  ;;  %v1962_v49 = vunpack.c.l.b16 %v10482_v32 }
 0x3ff   : > { %v1885_v40 = vsel %vm797_vm2, %v1880_v34, 0  ;;  %v1964_v34 = vunpack.c.l.b16 %v10483_v39  ;;  %v10575_v39 = vld [vmem:[%s19909_s6 + $0x54] sm:$0xf0] }
 0x400   : > { %v1817_v41 = vpop.f32.mrf.mxu2  ;;  %1894 = vmatpush.bf16.msra.mxu0 %v1885_v40  ;;  %v1963_v40 = vunpack.c.h.b16 %v10482_v32  ;;  %v14343_v32 = vld [vmem:[%s19909_s6 + $0x4c] sm:$0xf] }
 0x401   : > { %v10522_v41 = vld [vmem:[%s19909_s6 + $0xb4] sm:$0xf] }
 0x404   : > { %2131 = vmatpush.bf16.msrb.mxu0 %v2120_v56  ;;  %v10510_v56 = vld [vmem:[%s19909_s6 + $0x9c] sm:$0xf] }
 0x408   : > { %2132 = vmatpush.bf16.msrb.mxu0 %v10574_v60  ;;  %v14401_v60 = vld [vmem:[%s19909_s6 + $0xa4] sm:$0xf0] }
 0x409   : > { %v10511_v3 = vor.u32 %v14401_v60, %v10510_v56  ;;  %v14334_v56 = vld [vmem:[%s19909_s6 + $0x4] sm:$0xf]  ;;  %v10581_v60 = vld [vmem:[%s19909_s6 + $0x50] sm:$0xf] }
 0x40a   : > { %v10582_v62 = vor.u32 %v14345_v61, %v10581_v60  ;;  %v14422_v60 = vld [vmem:[%s19907_s4 + $0x318] sm:$0xff]  ;;  %v14446_v61 = vld [vmem:[%s19907_s4 + $0x568] sm:$0xff] }
 0x40c   : > { %2133 = vmatpush.bf16.msrb.mxu0 %v10562_v63  ;;  %v10527_v63 = vor.u32 %v14403_v57, %v10524_v58  ;;  %v10539_v57 = vld [vmem:[%s19909_s6 + $0xc] sm:$0xf0] }
 0x40d   : > { %v10542_v58 = vor.u32 %v14334_v56, %v10539_v57  ;;  %v14423_v56 = vld [vmem:[%s19907_s4 + $0x320] sm:$0xff]  ;;  %v14447_v57 = vld [vmem:[%s19907_s4 + $0x570] sm:$0xff] }
 0x410   : > { %2134 = vmatpush.bf16.msrb.mxu0 %v10550_v2  ;;  %v14442_v2 = vld [vmem:[%s19907_s4 + $0x548] sm:$0xff] }
 0x414   : > { %2135 = vmatpush.bf16.msrb.mxu0 %v10538_v5  ;;  %v10498_v5 = vld [vmem:[%s19909_s6 + $0x84] sm:$0xf] }
 0x47c   : > { %v1849_v42 = vpop.f32.mrf.mxu3 }
 0x47d   : > { %v1853_v43 = vmul.f32 0.12309149, %v1849_v42  ;;  %v1977_v42 = vpack.c.b16 %v1962_v49, %v1962_v49  ;;  %v14439_v49 = vld [vmem:[%s19907_s4 + $0x530] sm:$0xff] }
 0x47f   : > { %v1854_v44 = vsel %vm15662_vm8, %v1853_v43, -1e+30  ;;  %v1979_v43 = vpack.c.b16 %v1964_v34, %v1964_v34  ;;  %v10578_v34 = vor.u32 %v14343_v32, %v10575_v39  ;;  %v14433_v32 = vld [vmem:[%s19907_s4 + $0x370] sm:$0xff]  ;;  %v14453_v39 = vld [vmem:[%s19907_s4 + $0x5a0] sm:$0xff] }
 0x480   : > { %v1855_v59 = vsel %vm595_vm0, %v1854_v44, -inf }
 0x481   : > { %1856 = vmax.xlane.f32.xlu2 %v1855_v59  ;;  %v10530_v59 = vld [vmem:[%s19909_s6 + $0xbc] sm:$0xf] }
 0x484   : > { %v1851_v15 = vpop.f32.mrf.mxu3 }
 0x485   : > { %v14405_v15 = vld [vmem:[%s19909_s6 + $0xc4] sm:$0xf0] }
 0x486   : > { %v10531_v55 = vor.u32 %v14405_v15, %v10530_v59  ;;  %v14411_v59 = vld [vmem:[%s19907_s4 + $0x130] sm:$0xff]  ;;  %v14337_v15 = vld [vmem:[%s19909_s6 + $0x1c] sm:$0xf] }
 0x4f4   : > { %v1857_v45 = vpop.xlane.xlu2 %1856 }
 0x4f5   : > { %v1858_v46 = vsub.f32 %v1854_v44, %v1857_v45  ;;  %v14404_v44 = vld [vmem:[%s19909_s6 + $0xbc] sm:$0xf0]  ;;  %v1978_v45 = vpack.c.b16 %v1963_v40, %v1963_v40  ;;  %v14412_v40 = vld [vmem:[%s19907_s4 + $0x138] sm:$0xff] }
 0x4f6   : > { %v10523_v54 = vor.u32 %v14404_v44, %v10522_v41  ;;  %v14340_v41 = vld [vmem:[%s19909_s6 + $0x34] sm:$0xf] }
 0x4f7   : > { %v1859_v47 = vmul.f32 1.442695, %v1858_v46  ;;  %v14443_v46 = vld [vmem:[%s19907_s4 + $0x550] sm:$0xff] }
 0x4f9   : > { %15129 = vpow2.f32 %v1859_v47  ;;  %v1997_v47 = vsel %vm1995_vm13, %v1977_v42, 0  ;;  %v10563_v42 = vld [vmem:[%s19909_s6 + $0x3c] sm:$0xf0] }
 0x4fa   : > { %2008 = vmatpush.bf16.msra.mxu1 %v1997_v47  ;;  %v10566_v44 = vor.u32 %v14340_v41, %v10563_v42  ;;  %v1291_v47 = vld [vmem:[%s19909_s6 + $0x68] sm:$0x1]  ;;  %v14431_v41 = vld [vmem:[%s19907_s4 + $0x360] sm:$0xff]  ;;  %v14451_v42 = vld [vmem:[%s19907_s4 + $0x590] sm:$0xff] }
 0x4fe   : > { %2009 = vmatpush.bf16.msra.mxu1 %v10523_v54  ;;  %v14410_v54 = vld [vmem:[%s19907_s4 + $0x128] sm:$0xff] }
 0x4ff   : > { %v15130_v48 = vpop.eup %15129 }
 0x500   : > { %v1861_v36 = vsel %vm595_vm0, %v15130_v48, 0.0 }
 0x501   : > { %1862 = vadd.xlane.f32.xlu2 %v1861_v36  ;;  %v2000_v36 = vsel %vm1995_vm13, %v1978_v45, 0  ;;  %v10551_v45 = vld [vmem:[%s19909_s6 + $0x24] sm:$0xf0] }
 0x502   : > { %2021 = vmatpush.bf16.msrb.mxu3 %v2000_v36  ;;  %2010 = vmatpush.bf16.msra.mxu1 %v10511_v3  ;;  %v14408_v3 = vld [vmem:[%s19907_s4 + $0x118] sm:$0xff] }
 0x506   : > { %2022 = vmatpush.bf16.msrb.mxu3 %v10527_v63  ;;  %v14409_v63 = vld [vmem:[%s19907_s4 + $0x120] sm:$0xff] }
 0x574   : > { %v1863_v6 = vpop.xlane.xlu2 %1862 }
 0x575   : > { %15131 = vrcp.f32 %v1863_v6  ;;  %v1875_v11 = vand.u32 2147483648, %v1863_v6  ;;  %v1873_v13 = vand.u32 2147483647, %v1863_v6  ;;  %vm1869_vm15 = vweird.f32 %v1863_v6 }
 0x577   : > { %v1876_v17 = vor.u32 1.1754944e-38, %v1875_v11  ;;  %vm1874_vm3 = vcmp.eq.f32.partialorder %v1873_v13, 8.507059e+37  ;;  %v2087_v11 = vunpack.c.h.b16 %v15755_v28  ;;  %v10500_v13 = vld [vmem:[%s19909_s6 + $0x90] sm:$0xf0]  ;;  %v10486_v28 = vld [vmem:[%s19909_s6 + $0x6c] sm:$0xf] }
 0x57b   : > { %v15132_v7 = vpop.eup %15131 }
 0x57c   : > { %v1865_v8 = vmul.f32 %v15132_v7, %v1863_v6  ;;  %vm1870_vm14 = vweird.f32 %v15132_v7  ;;  %v14398_v6 = vld [vmem:[%s19909_s6 + $0x8c] sm:$0xf0] }
 0x57d   : > { %vm1871_vm1 = vmor %vm1869_vm15, %vm1870_vm14 }
 0x57e   : > { %v1866_v9 = vsub.f32 1.0, %v1865_v8  ;;  %v14399_v8 = vld [vmem:[%s19909_s6 + $0x94] sm:$0xf0] }
 0x580   : > { %v1867_v12 = vmul.f32 %v15132_v7, %v1866_v9  ;;  %v10515_v9 = vor.u32 %v14400_v0, %v10512_v1  ;;  %v10569_v0 = vld [vmem:[%s19909_s6 + $0x38] sm:$0xf]  ;;  %v14342_v1 = vld [vmem:[%s19909_s6 + $0x40] sm:$0xf0] }
 0x582   : > { %v1868_v16 = vadd.f32 %v15132_v7, %v1867_v12  ;;  %v14397_v12 = vld [vmem:[%s19909_s6 + $0x88] sm:$0xf]  ;;  %2023 = vmatpush.bf16.msrb.mxu3 %v10515_v9  ;;  %v14336_v9 = vld [vmem:[%s19909_s6 + $0x10] sm:$0xf0] }
 0x584   : > { %v1872_v18 = vsel %vm1871_vm1, %v15132_v7, %v1868_v16  ;;  %v10506_v7 = vld [vmem:[%s19909_s6 + $0x8c] sm:$0xf]  ;;  %v14441_v16 = vld [vmem:[%s19907_s4 + $0x540] sm:$0xff] }
 0x585   : > { %v1877_v19 = vsel %vm1874_vm3, %v1876_v17, %v1872_v18  ;;  %v10499_v17 = vor.u32 %v14398_v6, %v10498_v5  ;;  %v10507_v18 = vor.u32 %v14399_v8, %v10506_v7  ;;  %v14339_v5 = vld [vmem:[%s19909_s6 + $0x28] sm:$0xf0]  ;;  %v14407_v7 = vld [vmem:[%s19907_s4 + $0x110] sm:$0xff]  ;;  %v10545_v8 = vld [vmem:[%s19909_s6 + $0x8] sm:$0xf] }
 0x586   : > { %v1878_v20 = vmul.f32 %v15130_v48, %v1877_v19  ;;  %v2003_v48 = vsel %vm1995_vm13, %v1979_v43, 0  ;;  %v14395_v19 = vld [vmem:[%s19909_s6 + $0x74] sm:$0xf0]  ;;  %v14438_v43 = vld [vmem:[%s19907_s4 + $0x528] sm:$0xff] }
 0x587   : > { %2034 = vmatpush.bf16.msra.mxu2 %v2003_v48  ;;  %2011 = vmatpush.bf16.msra.mxu1 %v10499_v17  ;;  %v2088_v48 = vunpack.c.l.b16 %v1291_v47  ;;  %v10816_v47 = vld [vmem:[%s19907_s4 + $0x5a8] sm:$0xf] }
 0x588   : > { %v1879_v23 = vpack.c.bf16 %v1878_v20, %v1878_v20  ;;  %v10494_v20 = vld [vmem:[%s19909_s6 + $0x74] sm:$0xf] }
 0x589   : > { %v2103_v36 = vpack.c.b16 %v2088_v48, %v2088_v48  ;;  %v14424_v48 = vld [vmem:[%s19907_s4 + $0x328] sm:$0xff] }
 0x58a   : > { %10465 = vmatmul.msk.bf16.vlgmr.msra.gmra.mxu0 %vm595_vm0, %v1879_v23  ;;  %v10503_v23 = vor.u32 %v14397_v12, %v10500_v13  ;;  %v14406_v12 = vld [vmem:[%s19907_s4 + $0x108] sm:$0xff] }
 0x58b   : > { %2321 = vmatpush.bf16.msra.mxu0 %v14421_v21  ;;  %2035 = vmatpush.bf16.msra.mxu2 %v10531_v55  ;;  %v14396_v21 = vld [vmem:[%s19909_s6 + $0x7c] sm:$0xf0]  ;;  %v2126_v55 = vsel %vm1995_vm13, %v2103_v36, 0  ;;  %v10618_v13 = vld [vmem:[%s19907_s4 + $0x188] sm:$0xf]  ;;  %v14448_v36 = vld [vmem:[%s19907_s4 + $0x578] sm:$0xff] }
 0x58c   : > { %2024 = vmatpush.bf16.msrb.mxu3 %v10503_v23  ;;  %v2271_v17 = vunpack.c.l.b16 %v10618_v13 }
 0x58f   : > { %2322 = vmatpush.bf16.msra.mxu0 %v14420_v25  ;;  %2036 = vmatpush.bf16.msra.mxu2 %v10519_v4  ;;  %v2102_v25 = vpack.c.b16 %v2087_v11, %v2087_v11  ;;  %v10557_v4 = vld [vmem:[%s19909_s6 + $0x20] sm:$0xf]  ;;  %v10546_v11 = vor.u32 %v14336_v9, %v10545_v8 }
 0x590   : > { %v10558_v6 = vor.u32 %v14339_v5, %v10557_v4 }
 0x593   : > { %2323 = vmatpush.bf16.msra.mxu0 %v14419_v26  ;;  %v14440_v26 = vld [vmem:[%s19907_s4 + $0x538] sm:$0xff]  ;;  %2037 = vmatpush.bf16.msra.mxu2 %v10507_v18 }
 0x597   : > { %2324 = vmatpush.bf16.msra.mxu0 %v14418_v27  ;;  %v14394_v27 = vld [vmem:[%s19909_s6 + $0x70] sm:$0xf] }
 0x59a   : > { %10583 = vmatmul.msk.bf16.vlgmr.msrb.gmra.mxu0 %vm1202_vm6, %v15801_v33 }
 0x59b   : > { %2325 = vmatpush.bf16.msra.mxu0 %v14417_v31  ;;  %v10488_v31 = vld [vmem:[%s19909_s6 + $0x78] sm:$0xf0] }
 0x59f   : > { %2326 = vmatpush.bf16.msra.mxu0 %v14416_v35  ;;  %v10487_v35 = vor.u32 %v14395_v19, %v10486_v28  ;;  %v2288_v28 = vpack.c.b16 %v2271_v17, %v2271_v17 }
 0x5a1   : > { %2012 = vmatpush.bf16.msra.mxu1 %v10487_v35  ;;  %v14435_v35 = vld [vmem:[%s19907_s4 + $0x380] sm:$0xff] }
 0x5a3   : > { %2327 = vmatpush.bf16.msra.mxu0 %v14415_v37  ;;  %v10495_v37 = vor.u32 %v14396_v21, %v10494_v20  ;;  %v14437_v21 = vld [vmem:[%s19907_s4 + $0x390] sm:$0xff] }
 0x5a5   : > { %2038 = vmatpush.bf16.msra.mxu2 %v10495_v37  ;;  %v14434_v37 = vld [vmem:[%s19907_s4 + $0x378] sm:$0xff] }
 0x5a7   : > { %2328 = vmatpush.bf16.msra.mxu0 %v14414_v38  ;;  %v14413_v38 = vld [vmem:[%s19907_s4 + $0x140] sm:$0xff] }
 0x5a9   : > { %2308 = vmatpush.bf16.msrb.mxu2 %v14413_v38 }
 0x5aa   : > { %2329 = vmatmul.bf16.vlgmr.msra.gmra.mxu0 %v15504_v30 }
 0x5ab   : > { %2668 = vmatpush.bf16.msrb.mxu0 %v14445_v14  ;;  %v2123_v14 = vsel %vm1995_vm13, %v2102_v25, 0  ;;  %v2306_v25 = vsel %vm797_vm2, %v2288_v28, 0 }
 0x5ac   : > { %2144 = vmatpush.bf16.msrb.mxu1 %v2123_v14  ;;  %v14429_v14 = vld [vmem:[%s19907_s4 + $0x350] sm:$0xff] }
 0x5ad   : > { %2309 = vmatpush.bf16.msrb.mxu2 %v14412_v40 }
 0x5af   : > { %2669 = vmatpush.bf16.msrb.mxu0 %v14444_v10  ;;  %v10491_v10 = vor.u32 %v14394_v27, %v10488_v31  ;;  %v14436_v27 = vld [vmem:[%s19907_s4 + $0x388] sm:$0xff] }
 0x5b0   : > { %2145 = vmatpush.bf16.msrb.mxu1 %v10578_v34  ;;  %v14452_v34 = vld [vmem:[%s19907_s4 + $0x598] sm:$0xff] }
 0x5b1   : > { %2025 = vmatpush.bf16.msrb.mxu3 %v10491_v10  ;;  %2310 = vmatpush.bf16.msrb.mxu2 %v14411_v59  ;;  %v14428_v10 = vld [vmem:[%s19907_s4 + $0x348] sm:$0xff] }
 0x5b2   : > { %v14450_v59 = vld [vmem:[%s19907_s4 + $0x588] sm:$0xff] }
 0x5b3   : > { %2670 = vmatpush.bf16.msrb.mxu0 %v14443_v46  ;;  %v10554_v46 = vor.u32 %v14337_v15, %v10551_v45  ;;  %v14425_v45 = vld [vmem:[%s19907_s4 + $0x330] sm:$0xff] }
 0x5b4   : > { %2146 = vmatpush.bf16.msrb.mxu1 %v10566_v44  ;;  %v14430_v44 = vld [vmem:[%s19907_s4 + $0x358] sm:$0xff] }
 0x5b5   : > { %2157 = vmatpush.bf16.msra.mxu3 %v2126_v55  ;;  %2311 = vmatpush.bf16.msrb.mxu2 %v14410_v54  ;;  %v2631_v54 = vunpack.c.l.b16 %v10816_v47 }
 0x5b7   : > { %2671 = vmatpush.bf16.msrb.mxu0 %v14442_v2  ;;  %v10570_v2 = vor.u32 %v14342_v1, %v10569_v0 }
 0x5b8   : > { %2147 = vmatpush.bf16.msrb.mxu1 %v10554_v46  ;;  %v14449_v46 = vld [vmem:[%s19907_s4 + $0x580] sm:$0xff] }
 0x5b9   : > { %2158 = vmatpush.bf16.msra.mxu3 %v10582_v62  ;;  %2312 = vmatpush.bf16.msrb.mxu2 %v14409_v63 }
 0x5bb   : > { %2672 = vmatpush.bf16.msrb.mxu0 %v14441_v16  ;;  %v10717_v16 = vld [vmem:[%s19907_s4 + $0x398] sm:$0xf] }
 0x5bc   : > { %2148 = vmatpush.bf16.msrb.mxu1 %v10542_v58  ;;  %v2451_v18 = vunpack.c.l.b16 %v10717_v16  ;;  %v2648_v58 = vpack.c.b16 %v2631_v54, %v2631_v54 }
 0x5bd   : > { %2159 = vmatpush.bf16.msra.mxu3 %v10570_v2  ;;  %2313 = vmatpush.bf16.msrb.mxu2 %v14408_v3 }
 0x5be   : > { %v2468_v19 = vpack.c.b16 %v2451_v18, %v2451_v18  ;;  %v2666_v62 = vsel %vm797_vm2, %v2648_v58, 0  ;;  %v14472_v58 = vld [vmem:[%s19907_s4 + $0x1bc] sm:$0xff] }
 0x5bf   : > { %2673 = vmatpush.bf16.msrb.mxu0 %v14440_v26 }
 0x5c0   : > { %v2486_v26 = vsel %vm797_vm2, %v2468_v19, 0 }
 0x5c1   : > { %2160 = vmatpush.bf16.msra.mxu3 %v10558_v6  ;;  %2314 = vmatpush.bf16.msrb.mxu2 %v14407_v7 }
 0x5c3   : > { %2674 = vmatpush.bf16.msrb.mxu0 %v14439_v49  ;;  %v14432_v49 = vld [vmem:[%s19907_s4 + $0x368] sm:$0xff] }
 0x5c5   : > { %2161 = vmatpush.bf16.msra.mxu3 %v10546_v11  ;;  %2315 = vmatpush.bf16.msrb.mxu2 %v14406_v12 }
 0x5c7   : > { %2675 = vmatpush.bf16.msrb.mxu0 %v14438_v43  ;;  %v14426_v43 = vld [vmem:[%s19907_s4 + $0x338] sm:$0xff] }
 0x5ca   : > { %2676 = vmatmul.bf16.vlgmr.msrb.gmra.mxu0 %v15500_v29 }
 0x607   : > { %v1896_v20 = vpop.f32.mrf.mxu0 }
 0x608   : > { %v1900_v23 = vpack.c.bf16 %v1896_v20, %v1896_v20 }
 0x60a   : > { %10532 = vmatmul.msk.bf16.vlgmr.msra.gmra.mxu1 %vm1202_vm6, %v1900_v23  ;;  %10533 = vmatmul.msk.bf16.vlgmr.msrb.gmra.mxu3 %vm1202_vm6, %v1900_v23 }
 0x60b   : > { %10534 = vmatmul.msk.bf16.vlgmr.msra.gmra.mxu2 %vm1202_vm6, %v1900_v23  ;;  %2501 = vmatpush.bf16.msra.mxu1 %v14437_v21 }
 0x60c   : > { %2341 = vmatpush.bf16.msrb.mxu3 %v2306_v25  ;;  %2521 = vmatpush.bf16.msra.mxu2 %v2486_v26  ;;  %v15105_v25 = vld [vmem:[%s19908_s5 + $0x6] ss:$0 sm:$0xff] }
 0x60f   : > { %v1898_v31 = vpop.f32.mrf.mxu0  ;;  %2502 = vmatpush.bf16.msra.mxu1 %v14436_v27 }
 0x610   : > { %v15104_v31 = vld [vmem:[%s19908_s5 + $0x2] ss:$0 sm:$0xff] }
 0x613   : > { %2503 = vmatpush.bf16.msra.mxu1 %v14435_v35 }
 0x617   : > { %v16022_v38 = vpop.f32.mrf.mxu0  ;;  %2504 = vmatpush.bf16.msra.mxu1 %v14434_v37 }
 0x61a   : > { %10584 = vmatmul.msk.bf16.vlgmr.msrb.gmra.mxu1 %vm1202_vm6, %v15801_v33  ;;  %10585 = vmatmul.msk.bf16.vlgmr.msra.gmra.mxu3 %vm1202_vm6, %v15801_v33  ;;  %v14427_v33 = vld [vmem:[%s19907_s4 + $0x340] sm:$0xff] }
 0x61b   : > { %2316 = vmatmul.bf16.vlgmr.msrb.gmra.mxu2 %v15500_v29  ;;  %2488 = vmatpush.bf16.msra.mxu3 %v14429_v14 }
 0x61c   : > { %2505 = vmatpush.bf16.msra.mxu1 %v14433_v32  ;;  %2681 = vmatpush.bf16.msrb.mxu2 %v14453_v39 }
 0x61f   : > { %v2139_v40 = vpop.f32.mrf.mxu0  ;;  %2489 = vmatpush.bf16.msra.mxu3 %v14428_v10 }
 0x620   : > { %2506 = vmatpush.bf16.msra.mxu1 %v14432_v49  ;;  %2682 = vmatpush.bf16.msrb.mxu2 %v14452_v34  ;;  %v15103_v34 = vld [vmem:[%s19908_s5 + $0xa] ss:$0 sm:$0xff] }
 0x623   : > { %2490 = vmatpush.bf16.msra.mxu3 %v14427_v33 }
 0x624   : > { %2507 = vmatpush.bf16.msra.mxu1 %v14431_v41  ;;  %2683 = vmatpush.bf16.msrb.mxu2 %v14451_v42 }
 0x627   : > { %v16065_v15 = vpop.f32.mrf.mxu0  ;;  %2491 = vmatpush.bf16.msra.mxu3 %v14426_v43 }
 0x628   : > { %2508 = vmatpush.bf16.msra.mxu1 %v14430_v44  ;;  %2684 = vmatpush.bf16.msrb.mxu2 %v14450_v59 }
 0x62a   : > { %10684 = vmatmul.msk.bf16.vlgmr.msrb.gmra.mxu3 %vm595_vm0, %v15508_v53 }
 0x62b   : > { %2509 = vmatmul.bf16.vlgmr.msra.gmra.mxu1 %v15504_v30  ;;  %10783 = vmatmul.msk.bf16.vlgmr.msra.gmra.mxu2 %vm595_vm0, %v15508_v53 }
 0x62c   : > { %2492 = vmatpush.bf16.msra.mxu3 %v14425_v45  ;;  %2685 = vmatpush.bf16.msrb.mxu2 %v14449_v46 }
 0x62f   : > { %v2332_v55 = vpop.f32.mrf.mxu0 }
 0x630   : > { %2493 = vmatpush.bf16.msra.mxu3 %v14424_v48  ;;  %2686 = vmatpush.bf16.msrb.mxu2 %v14448_v36 }
 0x634   : > { %2494 = vmatpush.bf16.msra.mxu3 %v14423_v56  ;;  %2687 = vmatpush.bf16.msrb.mxu2 %v14447_v57  ;;  %v14473_v57 = vld [vmem:[%s19907_s4 + $0x1c4] sm:$0xff] }
 0x638   : > { %2495 = vmatpush.bf16.msra.mxu3 %v14422_v60  ;;  %2688 = vmatpush.bf16.msrb.mxu2 %v14446_v61 }
 0x63b   : > { %2496 = vmatmul.bf16.vlgmr.msra.gmra.mxu3 %v15500_v29  ;;  %2689 = vmatmul.bf16.vlgmr.msrb.gmra.mxu2 %v15504_v30 }
 0x63c   : > { %2701 = vmatpush.bf16.msrb.mxu3 %v2666_v62 }
 0x647   : > { %v2677_v63 = vpop.f32.mrf.mxu0 }
 0x648   : > { %v2678_v42 = vadd.f32 %v15103_v34, %v2677_v63 }
 0x64b   : > { %10882 = vmatmul.msk.bf16.vlgmr.msrb.gmra.mxu3 %vm595_vm0, %v15508_v53 }
 0x64f   : > { %v2679_v0 = vpop.f32.mrf.mxu0 }
 0x687   : > { %v16104_v1 = vpop.f32.mrf.mxu1 }
 0x68d   : > { %v2027_v2 = vpop.f32.mrf.mxu3 }
 0x68e   : > { %v2040_v3 = vpop.f32.mrf.mxu2 }
 0x68f   : > { %v2016_v4 = vpop.f32.mrf.mxu1 }
 0x690   : > { %v14469_v4 = vld [vmem:[%s19907_s4 + $0x1a4] sm:$0xff] }
 0x695   : > { %v2029_v5 = vpop.f32.mrf.mxu3 }
 0x696   : > { %v2042_v6 = vpop.f32.mrf.mxu2  ;;  %v14468_v5 = vld [vmem:[%s19907_s4 + $0x19c] sm:$0xff] }
 0x697   : > { %v2150_v7 = vpop.f32.mrf.mxu1  ;;  %v14467_v6 = vld [vmem:[%s19907_s4 + $0x194] sm:$0xff] }
 0x698   : > { %v16106_v8 = vadd.f32 %v2150_v7, %v2027_v2  ;;  %v14471_v2 = vld [vmem:[%s19907_s4 + $0x1b4] sm:$0xff]  ;;  %v14466_v7 = vld [vmem:[%s19907_s4 + $0x18c] sm:$0xff] }
 0x69d   : > { %v2163_v9 = vpop.f32.mrf.mxu3 }
 0x69e   : > { %v16108_v11 = vadd.f32 %v2163_v9, %v2040_v3  ;;  %v2317_v12 = vpop.f32.mrf.mxu2  ;;  %v14470_v3 = vld [vmem:[%s19907_s4 + $0x1ac] sm:$0xff] }
 0x69f   : > { %v2152_v13 = vpop.f32.mrf.mxu1  ;;  %v2318_v14 = vadd.f32 %v15104_v31, %v2317_v12  ;;  %v10901_v31 = vld [vmem:[%s19909_s6 + $0x138] sm:$0x11] }
 0x6a1   : > { %v2331_v40 = vadd.f32 %v16065_v15, %v2318_v14  ;;  %v2838_v14 = vunpack.c.h.b16 %v10901_v31 }
 0x6a5   : > { %v2165_v16 = vpop.f32.mrf.mxu3 }
 0x6a6   : > { %v2319_v17 = vpop.f32.mrf.mxu2 }
 0x6a8   : > { %v2510_v18 = vpop.f32.mrf.mxu1 }
 0x6ad   : > { %v2343_v28 = vpop.f32.mrf.mxu3 }
 0x6ae   : > { %v2523_v19 = vpop.f32.mrf.mxu2  ;;  %v2344_v41 = vadd.f32 %v2343_v28, %v2331_v40  ;;  %v2853_v40 = vpack.c.b16 %v2838_v14, %v2838_v14  ;;  %v14479_v14 = vld [vmem:[%s19907_s4 + $0x1f4] sm:$0xff] }
 0x6b0   : > { %v2512_v20 = vpop.f32.mrf.mxu1  ;;  %v2707_v43 = vpack.c.bf16 %v2344_v41, %v2344_v41 }
 0x6b5   : > { %v2345_v21 = vpop.f32.mrf.mxu3 }
 0x6b6   : > { %v2525_v23 = vpop.f32.mrf.mxu2 }
 0x6be   : > { %v2497_v26 = vpop.f32.mrf.mxu3  ;;  %v2690_v27 = vpop.f32.mrf.mxu2 }
 0x6bf   : > { %v2498_v35 = vadd.f32 %v15105_v25, %v2497_v26  ;;  %v2691_v44 = vadd.f32 %v2690_v27, %v2678_v42  ;;  %v14497_v26 = vld [vmem:[%s19907_s4 + $0x414] sm:$0xff] }
 0x6c1   : > { %v2511_v37 = vadd.f32 %v2510_v18, %v2498_v35  ;;  %v14496_v35 = vld [vmem:[%s19907_s4 + $0x40c] sm:$0xff] }
 0x6c3   : > { %v2524_v32 = vadd.f32 %v2523_v19, %v2511_v37  ;;  %v2837_v37 = vunpack.c.l.b16 %v10901_v31  ;;  %v14480_v31 = vld [vmem:[%s19907_s4 + $0x1fc] sm:$0xff] }
 0x6c5   : > { %v2708_v39 = vpack.c.bf16 %v2524_v32, %v2524_v32  ;;  %v10902_v32 = vld [vmem:[%s19909_s6 + $0x140] sm:$0x1] }
 0x6c6   : > { %v2499_v10 = vpop.f32.mrf.mxu3  ;;  %v2692_v49 = vpop.f32.mrf.mxu2  ;;  %v2839_v34 = vunpack.c.l.b16 %v10902_v32  ;;  %v14487_v32 = vld [vmem:[%s19907_s4 + $0x3c4] sm:$0xff] }
 0x6c7   : > { %v2713_v33 = vsel %vm1202_vm6, %v2708_v39, 0  ;;  %v2852_v39 = vpack.c.b16 %v2837_v37, %v2837_v37  ;;  %v10941_v10 = vld [vmem:[%s19909_s6 + $0x120] sm:$0xf]  ;;  %v14464_v49 = vld [vmem:[%s19909_s6 + $0x128] sm:$0xf0] }
 0x6c8   : > { %2722 = vmatpush.bf16.xpose.msrb.mxu1 %v2713_v33  ;;  %v14495_v33 = vld [vmem:[%s19907_s4 + $0x404] sm:$0xff]  ;;  %v2854_v42 = vpack.c.b16 %v2839_v34, %v2839_v34  ;;  %v14488_v37 = vld [vmem:[%s19907_s4 + $0x3cc] sm:$0xff]  ;;  %v14475_v34 = vld [vmem:[%s19907_s4 + $0x1d4] sm:$0xff] }
 0x6c9   : > { %v2871_v41 = vsel %vm1995_vm13, %v2852_v39, 0  ;;  %v14478_v39 = vld [vmem:[%s19907_s4 + $0x1ec] sm:$0xff] }
 0x6ca   : > { %2882 = vmatpush.bf16.msra.mxu0 %v2871_v41 }
 0x6ce   : > { %v2703_v59 = vpop.f32.mrf.mxu3 }
 0x6cf   : > { %v2704_v45 = vadd.f32 %v2703_v59, %v2691_v44  ;;  %10883 = vmatmul.msk.bf16.vlgmr.msrb.gmra.mxu1 %vm1202_vm6, %v2707_v43  ;;  %v10949_v43 = vld [vmem:[%s19909_s6 + $0x128] sm:$0xf]  ;;  %v14465_v44 = vld [vmem:[%s19909_s6 + $0x130] sm:$0xf0]  ;;  %v10942_v59 = vor.u32 %v14464_v49, %v10941_v10  ;;  %v14476_v49 = vld [vmem:[%s19907_s4 + $0x1dc] sm:$0xff] }
 0x6d0   : > { %v14477_v10 = vld [vmem:[%s19907_s4 + $0x1e4] sm:$0xff] }
 0x6d1   : > { %v2755_v46 = vpack.c.bf16 %v2704_v45, %v2704_v45  ;;  %v10929_v45 = vld [vmem:[%s19909_s6 + $0x108] sm:$0xf]  ;;  %2883 = vmatpush.bf16.msra.mxu0 %v10942_v59  ;;  %v14484_v59 = vld [vmem:[%s19907_s4 + $0x3ac] sm:$0xff] }
 0x6d3   : > { %v2760_v47 = vsel %vm797_vm2, %v2755_v46, 0  ;;  %v14461_v46 = vld [vmem:[%s19909_s6 + $0x110] sm:$0xf0] }
 0x6d4   : > { %2769 = vmatpush.bf16.msra.mxu3 %v2760_v47  ;;  %v2874_v47 = vsel %vm1995_vm13, %v2853_v40, 0  ;;  %v14454_v40 = vld [vmem:[%s19909_s6 + $0xdc] sm:$0xf] }
 0x6d5   : > { %2895 = vmatpush.bf16.msra.mxu1 %v2874_v47  ;;  %v14483_v47 = vld [vmem:[%s19907_s4 + $0x3a4] sm:$0xff] }
 0x6d6   : > { %v2705_v48 = vpop.f32.mrf.mxu3 }
 0x6d7   : > { %v2877_v48 = vsel %vm1995_vm13, %v2854_v42, 0  ;;  %v14486_v42 = vld [vmem:[%s19907_s4 + $0x3bc] sm:$0xff] }
 0x6d8   : > { %3062 = vmatpush.bf16.msrb.mxu3 %v14473_v57  ;;  %2908 = vmatpush.bf16.msra.mxu2 %v2877_v48  ;;  %v14460_v57 = vld [vmem:[%s19909_s6 + $0x10c] sm:$0xf] }
 0x6dc   : > { %3063 = vmatpush.bf16.msrb.mxu3 %v14472_v58  ;;  %v10937_v58 = vld [vmem:[%s19909_s6 + $0x110] sm:$0xf] }
 0x6e0   : > { %3064 = vmatpush.bf16.msrb.mxu3 %v14471_v2 }
 0x6e4   : > { %3065 = vmatpush.bf16.msrb.mxu3 %v14470_v3 }
 0x6e8   : > { %3066 = vmatpush.bf16.msrb.mxu3 %v14469_v4  ;;  %v14457_v4 = vld [vmem:[%s19909_s6 + $0xf4] sm:$0xf] }
 0x6ec   : > { %3067 = vmatpush.bf16.msrb.mxu3 %v14468_v5  ;;  %v10919_v5 = vld [vmem:[%s19909_s6 + $0xfc] sm:$0xf0] }
 0x6f0   : > { %3068 = vmatpush.bf16.msrb.mxu3 %v14467_v6  ;;  %v14493_v6 = vld [vmem:[%s19907_s4 + $0x3f4] sm:$0xff] }
 0x6f4   : > { %3069 = vmatpush.bf16.msrb.mxu3 %v14466_v7  ;;  %v10925_v7 = vld [vmem:[%s19909_s6 + $0xf8] sm:$0xf] }
 0x74c   : > { %v2724_v36 = vpop.f32.mrf.mxu1 }
 0x74d   : > { %v2728_v54 = vmul.f32 0.12309149, %v2724_v36  ;;  %v14463_v36 = vld [vmem:[%s19909_s6 + $0x124] sm:$0xf] }
 0x74f   : > { %v2729_v15 = vsel %vm15662_vm8, %v2728_v54, -1e+30  ;;  %v10943_v54 = vld [vmem:[%s19909_s6 + $0x12c] sm:$0xf0] }
 0x750   : > { %v2730_v55 = vsel %vm595_vm0, %v2729_v15, -inf }
 0x751   : > { %2731 = vmax.xlane.f32.xlu0 %v2730_v55  ;;  %v10950_v55 = vor.u32 %v14465_v44, %v10949_v43  ;;  %v14474_v43 = vld [vmem:[%s19907_s4 + $0x1cc] sm:$0xff]  ;;  %v14485_v44 = vld [vmem:[%s19907_s4 + $0x3b4] sm:$0xff] }
 0x753   : > { %2909 = vmatpush.bf16.msra.mxu2 %v10950_v55 }
 0x754   : > { %v2726_v56 = vpop.f32.mrf.mxu1 }
 0x755   : > { %v10946_v56 = vor.u32 %v14463_v36, %v10943_v54  ;;  %v14482_v54 = vld [vmem:[%s19907_s4 + $0x39c] sm:$0xff] }
 0x757   : > { %2896 = vmatpush.bf16.msra.mxu1 %v10946_v56  ;;  %v11184_v56 = vld [vmem:[%s19907_s4 + $0x62c] sm:$0xf] }
 0x7c4   : > { %v2732_v60 = vpop.xlane.xlu0 %2731 }
 0x7c5   : > { %v2733_v61 = vsub.f32 %v2729_v15, %v2732_v60  ;;  %v14494_v15 = vld [vmem:[%s19907_s4 + $0x3fc] sm:$0xff] }
 0x7c6   : > { %v14462_v60 = vld [vmem:[%s19909_s6 + $0x118] sm:$0xf0] }
 0x7c7   : > { %v2734_v62 = vmul.f32 1.442695, %v2733_v61  ;;  %v10931_v61 = vld [vmem:[%s19909_s6 + $0x114] sm:$0xf0]  ;;  %v10938_v3 = vor.u32 %v14462_v60, %v10937_v58 }
 0x7c8   : > { %v10934_v2 = vor.u32 %v14460_v57, %v10931_v61  ;;  %v3385_v57 = vunpack.c.l.b16 %v11184_v56 }
 0x7c9   : > { %15133 = vpow2.f32 %v2734_v62  ;;  %v10930_v62 = vor.u32 %v14461_v46, %v10929_v45  ;;  %2910 = vmatpush.bf16.msra.mxu2 %v10938_v3  ;;  %v10986_v45 = vld [vmem:[%s19907_s4 + $0x20c] sm:$0xf]  ;;  %v14504_v3 = vld [vmem:[%s19907_s4 + $0x5dc] sm:$0xff] }
 0x7ca   : > { %2897 = vmatpush.bf16.msra.mxu1 %v10934_v2  ;;  %v3025_v46 = vunpack.c.l.b16 %v10986_v45  ;;  %v3402_v60 = vpack.c.b16 %v3385_v57, %v3385_v57 }
 0x7cb   : > { %2884 = vmatpush.bf16.msra.mxu0 %v10930_v62  ;;  %v14505_v62 = vld [vmem:[%s19907_s4 + $0x5e4] sm:$0xff] }
 0x7cc   : > { %v3042_v48 = vpack.c.b16 %v3025_v46, %v3025_v46  ;;  %v3420_v2 = vsel %vm797_vm2, %v3402_v60, 0 }
 0x7ce   : > { %v3060_v36 = vsel %vm797_vm2, %v3042_v48, 0 }
 0x7cf   : > { %v15134_v63 = vpop.eup %15133 }
 0x7d0   : > { %v2736_v0 = vsel %vm595_vm0, %v15134_v63, 0.0 }
 0x7d1   : > { %2737 = vadd.xlane.f32.xlu1 %v2736_v0  ;;  %v14458_v0 = vld [vmem:[%s19909_s6 + $0xf8] sm:$0xf0] }
 0x844   : > { %v2738_v9 = vpop.xlane.xlu1 %2737 }
 0x845   : > { %15135 = vrcp.f32 %v2738_v9  ;;  %v2750_v17 = vand.u32 2147483648, %v2738_v9  ;;  %v2748_v28 = vand.u32 2147483647, %v2738_v9  ;;  %vm2744_vm5 = vweird.f32 %v2738_v9 }
 0x847   : > { %v2751_v20 = vor.u32 1.1754944e-38, %v2750_v17  ;;  %vm2749_vm9 = vcmp.eq.f32.partialorder %v2748_v28, 8.507059e+37  ;;  %v10922_v17 = vor.u32 %v14457_v4, %v10919_v5  ;;  %v14492_v28 = vld [vmem:[%s19907_s4 + $0x3ec] sm:$0xff]  ;;  %v14503_v5 = vld [vmem:[%s19907_s4 + $0x5d4] sm:$0xff] }
 0x849   : > { %2898 = vmatpush.bf16.msra.mxu1 %v10922_v17 }
 0x84b   : > { %v15136_v12 = vpop.eup %15135 }
 0x84c   : > { %v2740_v13 = vmul.f32 %v15136_v12, %v2738_v9  ;;  %vm2745_vm4 = vweird.f32 %v15136_v12  ;;  %v14459_v9 = vld [vmem:[%s19909_s6 + $0x100] sm:$0xf0] }
 0x84d   : > { %vm2746_vm7 = vmor %vm2744_vm5, %vm2745_vm4 }
 0x84e   : > { %v2741_v16 = vsub.f32 1.0, %v2740_v13  ;;  %v10905_v13 = vld [vmem:[%s19909_s6 + $0xd8] sm:$0xf] }
 0x850   : > { %v2742_v18 = vmul.f32 %v15136_v12, %v2741_v16  ;;  %v14455_v16 = vld [vmem:[%s19909_s6 + $0xe0] sm:$0xf0] }
 0x852   : > { %v2743_v19 = vadd.f32 %v15136_v12, %v2742_v18  ;;  %v10926_v18 = vor.u32 %v14459_v9, %v10925_v7  ;;  %v14501_v9 = vld [vmem:[%s19907_s4 + $0x5c4] sm:$0xff] }
 0x854   : > { %v2747_v21 = vsel %vm2746_vm7, %v15136_v12, %v2743_v19  ;;  %v10913_v19 = vld [vmem:[%s19909_s6 + $0xe0] sm:$0xf]  ;;  %2911 = vmatpush.bf16.msra.mxu2 %v10926_v18  ;;  %v14499_v18 = vld [vmem:[%s19907_s4 + $0x5b4] sm:$0xff] }
 0x855   : > { %v2752_v23 = vsel %vm2749_vm9, %v2751_v20, %v2747_v21  ;;  %v14456_v20 = vld [vmem:[%s19909_s6 + $0xe8] sm:$0xf0]  ;;  %v10906_v21 = vor.u32 %v14455_v16, %v10905_v13  ;;  %v14500_v13 = vld [vmem:[%s19907_s4 + $0x5bc] sm:$0xff] }
 0x856   : > { %v2753_v25 = vmul.f32 %v15134_v63, %v2752_v23  ;;  %v10917_v63 = vld [vmem:[%s19909_s6 + $0xf0] sm:$0xf]  ;;  %v14481_v23 = vld [vmem:[%s19907_s4 + $0x204] sm:$0xff]  ;;  %v14512_v16 = vld [vmem:[%s19907_s4 + $0x61c] sm:$0xff] }
 0x857   : > { %v10918_v12 = vor.u32 %v14458_v0, %v10917_v63 }
 0x858   : > { %v2754_v27 = vpack.c.bf16 %v2753_v25, %v2753_v25  ;;  %v10914_v25 = vor.u32 %v14456_v20, %v10913_v19  ;;  %v14498_v19 = vld [vmem:[%s19907_s4 + $0x5ac] sm:$0xff] }
 0x859   : > { %2885 = vmatpush.bf16.msra.mxu0 %v10918_v12  ;;  %v14513_v12 = vld [vmem:[%s19907_s4 + $0x624] sm:$0xff]  ;;  %v14510_v20 = vld [vmem:[%s19907_s4 + $0x60c] sm:$0xff] }
 0x85a   : > { %10884 = vmatmul.msk.bf16.vlgmr.msra.gmra.mxu3 %vm595_vm0, %v2754_v27  ;;  %v14489_v27 = vld [vmem:[%s19907_s4 + $0x3d4] sm:$0xff]  ;;  %2912 = vmatpush.bf16.msra.mxu2 %v10914_v25  ;;  %v14508_v25 = vld [vmem:[%s19907_s4 + $0x5fc] sm:$0xff] }
 0x85b   : > { %3255 = vmatpush.bf16.msra.mxu3 %v14497_v26  ;;  %v14491_v26 = vld [vmem:[%s19907_s4 + $0x3e4] sm:$0xff] }
 0x85d   : > { %2886 = vmatpush.bf16.msra.mxu0 %v10906_v21 }
 0x85e   : > { %3242 = vmatpush.bf16.msrb.mxu2 %v14489_v27  ;;  %v14507_v27 = vld [vmem:[%s19907_s4 + $0x5f4] sm:$0xff] }
 0x85f   : > { %3256 = vmatpush.bf16.msra.mxu3 %v14496_v35  ;;  %v14490_v35 = vld [vmem:[%s19907_s4 + $0x3dc] sm:$0xff] }
 0x861   : > { %3075 = vmatpush.bf16.msrb.mxu0 %v14481_v23  ;;  %v14509_v23 = vld [vmem:[%s19907_s4 + $0x604] sm:$0xff] }
 0x862   : > { %3243 = vmatpush.bf16.msrb.mxu2 %v14488_v37 }
 0x863   : > { %3257 = vmatpush.bf16.msra.mxu3 %v14495_v33  ;;  %v10907_v33 = vld [vmem:[%s19909_s6 + $0xe4] sm:$0xf0] }
 0x864   : > { %v10910_v41 = vor.u32 %v14454_v40, %v10907_v33 }
 0x865   : > { %3076 = vmatpush.bf16.msrb.mxu0 %v14480_v31  ;;  %v14506_v31 = vld [vmem:[%s19907_s4 + $0x5ec] sm:$0xff] }
 0x866   : > { %3244 = vmatpush.bf16.msrb.mxu2 %v14487_v32  ;;  %2899 = vmatpush.bf16.msra.mxu1 %v10910_v41 }
 0x867   : > { %3258 = vmatpush.bf16.msra.mxu3 %v14494_v15  ;;  %v11085_v15 = vld [vmem:[%s19907_s4 + $0x41c] sm:$0xf] }
 0x868   : > { %v3205_v55 = vunpack.c.l.b16 %v11085_v15 }
 0x869   : > { %3077 = vmatpush.bf16.msrb.mxu0 %v14479_v14 }
 0x86a   : > { %3070 = vmatmul.bf16.vlgmr.msrb.gmra.mxu3 %v15500_v29  ;;  %3245 = vmatpush.bf16.msrb.mxu2 %v14486_v42  ;;  %v3222_v58 = vpack.c.b16 %v3205_v55, %v3205_v55 }
 0x86b   : > { %3259 = vmatpush.bf16.msra.mxu3 %v14493_v6  ;;  %3095 = vmatpush.bf16.msrb.mxu1 %v3060_v36  ;;  %v14502_v6 = vld [vmem:[%s19907_s4 + $0x5cc] sm:$0xff] }
 0x86c   : > { %v3240_v0 = vsel %vm797_vm2, %v3222_v58, 0  ;;  %v15108_v58 = vld [vmem:[%s19908_s5 + $0xb] ss:$0 sm:$0xff] }
 0x86d   : > { %3078 = vmatpush.bf16.msrb.mxu0 %v14478_v39 }
 0x86e   : > { %3246 = vmatpush.bf16.msrb.mxu2 %v14485_v44 }
 0x86f   : > { %3260 = vmatpush.bf16.msra.mxu3 %v14492_v28  ;;  %v14511_v28 = vld [vmem:[%s19907_s4 + $0x614] sm:$0xff] }
 0x871   : > { %3079 = vmatpush.bf16.msrb.mxu0 %v14477_v10 }
 0x872   : > { %3247 = vmatpush.bf16.msrb.mxu2 %v14484_v59 }
 0x873   : > { %3261 = vmatpush.bf16.msra.mxu3 %v14491_v26 }
 0x875   : > { %3080 = vmatpush.bf16.msrb.mxu0 %v14476_v49 }
 0x876   : > { %3248 = vmatpush.bf16.msrb.mxu2 %v14483_v47 }
 0x877   : > { %3262 = vmatpush.bf16.msra.mxu3 %v14490_v35 }
 0x879   : > { %3081 = vmatpush.bf16.msrb.mxu0 %v14475_v34 }
 0x87a   : > { %3263 = vmatmul.bf16.vlgmr.msra.gmra.mxu3 %v15504_v30  ;;  %3249 = vmatpush.bf16.msrb.mxu2 %v14482_v54 }
 0x87d   : > { %3082 = vmatpush.bf16.msrb.mxu0 %v14474_v43 }
 0x8dd   : > { %v2771_v61 = vpop.f32.mrf.mxu3 }
 0x8de   : > { %v2775_v63 = vpack.c.bf16 %v2771_v61, %v2771_v61 }
 0x8e0   : > { %10951 = vmatmul.msk.bf16.vlgmr.msra.gmra.mxu0 %vm1202_vm6, %v2775_v63  ;;  %10952 = vmatmul.msk.bf16.vlgmr.msra.gmra.mxu1 %vm1202_vm6, %v2775_v63 }
 0x8e1   : > { %10953 = vmatmul.msk.bf16.vlgmr.msra.gmra.mxu2 %vm1202_vm6, %v2775_v63  ;;  %3422 = vmatpush.bf16.msra.mxu0 %v14505_v62 }
 0x8e2   : > { %3275 = vmatpush.bf16.msra.mxu1 %v3240_v0  ;;  %3455 = vmatpush.bf16.msra.mxu2 %v3420_v2 }
 0x8e5   : > { %v2773_v4 = vpop.f32.mrf.mxu3  ;;  %3423 = vmatpush.bf16.msra.mxu0 %v14504_v3 }
 0x8e9   : > { %3424 = vmatpush.bf16.msra.mxu0 %v14503_v5 }
 0x8ed   : > { %v3071_v7 = vpop.f32.mrf.mxu3  ;;  %3425 = vmatpush.bf16.msra.mxu0 %v14502_v6 }
 0x8f0   : > { %3083 = vmatmul.bf16.vlgmr.msrb.gmra.mxu0 %v15504_v30  ;;  %11052 = vmatmul.msk.bf16.vlgmr.msrb.gmra.mxu1 %vm595_vm0, %v15508_v53 }
 0x8f1   : > { %3250 = vmatmul.bf16.vlgmr.msrb.gmra.mxu2 %v15500_v29  ;;  %3426 = vmatpush.bf16.msra.mxu0 %v14501_v9 }
 0x8f2   : > { %3435 = vmatpush.bf16.msrb.mxu1 %v14513_v12 }
 0x8f5   : > { %v3073_v17 = vpop.f32.mrf.mxu3  ;;  %3427 = vmatpush.bf16.msra.mxu0 %v14500_v13 }
 0x8f6   : > { %3436 = vmatpush.bf16.msrb.mxu1 %v14512_v16 }
 0x8f9   : > { %3428 = vmatpush.bf16.msra.mxu0 %v14499_v18 }
 0x8fa   : > { %3437 = vmatpush.bf16.msrb.mxu1 %v14511_v28 }
 0x8fd   : > { %v3264_v21 = vpop.f32.mrf.mxu3  ;;  %3429 = vmatpush.bf16.msra.mxu0 %v14498_v19  ;;  %v11269_v19 = vld [vmem:[%s19909_s6 + $0x1a4] sm:$0x11] }
 0x8fe   : > { %3438 = vmatpush.bf16.msrb.mxu1 %v14510_v20  ;;  %v11270_v20 = vld [vmem:[%s19909_s6 + $0x1ac] sm:$0x1] }
 0x900   : > { %11151 = vmatmul.msk.bf16.vlgmr.msra.gmra.mxu1 %vm595_vm0, %v15508_v53  ;;  %3430 = vmatmul.bf16.vlgmr.msra.gmra.mxu0 %v15500_v29  ;;  %v2138_v29 = vadd.f32 %v16022_v38, %v16104_v1 }
 0x901   : > { %11250 = vmatmul.msk.bf16.vlgmr.msra.gmra.mxu2 %vm595_vm0, %v15508_v53 }
 0x902   : > { %3439 = vmatpush.bf16.msrb.mxu1 %v14509_v23  ;;  %v3592_v23 = vunpack.c.h.b16 %v11269_v19 }
 0x905   : > { %v3266_v26 = vpop.f32.mrf.mxu3 }
 0x906   : > { %3440 = vmatpush.bf16.msrb.mxu1 %v14508_v25  ;;  %v3593_v25 = vunpack.c.l.b16 %v11270_v20  ;;  %v11309_v26 = vld [vmem:[%s19909_s6 + $0x18c] sm:$0xf]  ;;  %v14516_v20 = vld [vmem:[%s19909_s6 + $0x154] sm:$0xf0] }
 0x90a   : > { %3441 = vmatpush.bf16.msrb.mxu1 %v14507_v27 }
 0x90e   : > { %3442 = vmatpush.bf16.msrb.mxu1 %v14506_v31  ;;  %v3607_v31 = vpack.c.b16 %v3592_v23, %v3592_v23 }
 0x911   : > { %3443 = vmatmul.bf16.vlgmr.msrb.gmra.mxu1 %v15504_v30  ;;  %v15107_v30 = vld [vmem:[%s19908_s5 + $0x7] ss:$0 sm:$0xff] }
 0x95d   : > { %v2888_v53 = vpop.f32.mrf.mxu0  ;;  %v2901_v35 = vpop.f32.mrf.mxu1 }
 0x95e   : > { %v16382_v37 = vadd.f32 %v2888_v53, %v2138_v29  ;;  %v16385_v14 = vadd.f32 %v2901_v35, %v16106_v8  ;;  %v15106_v8 = vld [vmem:[%s19908_s5 + $0x3] ss:$0 sm:$0xff]  ;;  %v3608_v29 = vpack.c.b16 %v3593_v25, %v3593_v25  ;;  %v14524_v53 = vld [vmem:[%s19909_s6 + $0x194] sm:$0xf0]  ;;  %v14523_v35 = vld [vmem:[%s19909_s6 + $0x190] sm:$0xf] }
 0x95f   : > { %v3072_v45 = vadd.f32 %v15106_v8, %v3071_v7  ;;  %v14520_v8 = vld [vmem:[%s19909_s6 + $0x178] sm:$0xf] }
 0x964   : > { %v2914_v32 = vpop.f32.mrf.mxu2 }
 0x965   : > { %v16388_v39 = vadd.f32 %v2914_v32, %v16108_v11  ;;  %v2890_v10 = vpop.f32.mrf.mxu0  ;;  %v2903_v49 = vpop.f32.mrf.mxu1  ;;  %v11311_v32 = vld [vmem:[%s19909_s6 + $0x198] sm:$0xf0] }
 0x966   : > { %v11317_v10 = vld [vmem:[%s19909_s6 + $0x194] sm:$0xf]  ;;  %v14525_v49 = vld [vmem:[%s19909_s6 + $0x19c] sm:$0xf0] }
 0x96c   : > { %v2916_v34 = vpop.f32.mrf.mxu2 }
 0x96d   : > { %v3084_v40 = vpop.f32.mrf.mxu0  ;;  %v3097_v33 = vpop.f32.mrf.mxu1 }
 0x96e   : > { %v3085_v47 = vadd.f32 %v3084_v40, %v3072_v45  ;;  %v3628_v40 = vsel %vm1995_vm13, %v3607_v31, 0  ;;  %v3675_v31 = vld [vmem:[%s19910_s7] sm:$0x7] }
 0x970   : > { %v3098_v54 = vadd.f32 %v3097_v33, %v3085_v47  ;;  %v3631_v33 = vsel %vm1995_vm13, %v3608_v29, 0  ;;  %v11285_v47 = vld [vmem:[%s19909_s6 + $0x15c] sm:$0xf] }
 0x971   : > { %3662 = vmatpush.bf16.msra.mxu1 %v3631_v33 }
 0x972   : > { %v3461_v57 = vpack.c.bf16 %v3098_v54, %v3098_v54  ;;  %v14517_v54 = vld [vmem:[%s19909_s6 + $0x160] sm:$0xf] }
 0x974   : > { %v3251_v38 = vpop.f32.mrf.mxu2 }
 0x975   : > { %v3086_v1 = vpop.f32.mrf.mxu0  ;;  %v3099_v41 = vpop.f32.mrf.mxu1  ;;  %v3252_v42 = vadd.f32 %v15107_v30, %v3251_v38  ;;  %v11310_v30 = vor.u32 %v14524_v53, %v11309_v26  ;;  %v11314_v38 = vor.u32 %v14523_v35, %v11311_v32  ;;  %v3679_v32 = vperm.slane %v3675_v31, 2 }
 0x976   : > { %v11297_v1 = vld [vmem:[%s19909_s6 + $0x174] sm:$0xf]  ;;  %v11318_v41 = vor.u32 %v14525_v49, %v11317_v10  ;;  %v3677_v49 = vperm.slane %v3675_v31, 0 }
 0x977   : > { %v3265_v11 = vadd.f32 %v3264_v21, %v3252_v42  ;;  %v3591_v21 = vunpack.c.l.b16 %v11269_v19  ;;  %v14521_v42 = vld [vmem:[%s19909_s6 + $0x17c] sm:$0xf0]  ;;  %v11281_v19 = vld [vmem:[%s19909_s6 + $0x14c] sm:$0xf] }
 0x978   : > { %v11298_v45 = vor.u32 %v14521_v42, %v11297_v1  ;;  %3663 = vmatpush.bf16.msra.mxu1 %v11318_v41  ;;  %v11282_v23 = vor.u32 %v14516_v20, %v11281_v19  ;;  %v11340_v19 = vld [vmem:[%s19913_s10 + $0x20] sm:$0xf]  ;;  %v14532_v20 = vld [vmem:[%s19913_s10 + $0x2c] sm:$0xf0] }
 0x979   : > { %v3606_v27 = vpack.c.b16 %v3591_v21, %v3591_v21 }
 0x97b   : > { %v3625_v34 = vsel %vm1995_vm13, %v3606_v27, 0 }
 0x97c   : > { %v3253_v43 = vpop.f32.mrf.mxu2  ;;  %3636 = vmatpush.bf16.msrb.mxu0 %v3625_v34  ;;  %v3678_v34 = vperm.slane %v3675_v31, 1 }
 0x97d   : > { %v3277_v44 = vpop.f32.mrf.mxu1  ;;  %v3431_v59 = vpop.f32.mrf.mxu0  ;;  %v11299_v43 = vld [vmem:[%s19909_s6 + $0x180] sm:$0xf0] }
 0x97e   : > { %v3278_v46 = vadd.f32 %v3277_v44, %v3265_v11  ;;  %v3432_v61 = vadd.f32 %v15108_v58, %v3431_v59  ;;  %v11305_v11 = vld [vmem:[%s19909_s6 + $0x17c] sm:$0xf]  ;;  %v14522_v44 = vld [vmem:[%s19909_s6 + $0x184] sm:$0xf0] }
 0x980   : > { %v3462_v48 = vpack.c.bf16 %v3278_v46, %v3278_v46  ;;  %3637 = vmatpush.bf16.msrb.mxu0 %v11310_v30  ;;  %v11302_v46 = vor.u32 %v14520_v8, %v11299_v43 }
 0x982   : > { %v3467_v36 = vsel %vm1202_vm6, %v3462_v48, 0  ;;  %v11306_v48 = vor.u32 %v14522_v44, %v11305_v11 }
 0x983   : > { %3476 = vmatpush.bf16.xpose.msrb.mxu3 %v3467_v36  ;;  %v14518_v36 = vld [vmem:[%s19909_s6 + $0x164] sm:$0xf0] }
 0x984   : > { %v3457_v15 = vpop.f32.mrf.mxu2  ;;  %3638 = vmatpush.bf16.msrb.mxu0 %v11298_v45  ;;  %3664 = vmatpush.bf16.msra.mxu1 %v11306_v48  ;;  %v11436_v45 = vld [vmem:[%s19913_s10 + $0xe0] sm:$0xf] }
 0x985   : > { %v3279_v55 = vpop.f32.mrf.mxu1  ;;  %v3433_v56 = vpop.f32.mrf.mxu0  ;;  %v11404_v48 = vld [vmem:[%s19913_s10 + $0xa0] sm:$0xf] }
 0x986   : > { %v11293_v55 = vld [vmem:[%s19909_s6 + $0x164] sm:$0xf]  ;;  %v14519_v56 = vld [vmem:[%s19909_s6 + $0x16c] sm:$0xf0] }
 0x98a   : > { %11251 = vmatmul.msk.bf16.vlgmr.msrb.gmra.mxu3 %vm1202_vm6, %v3461_v57  ;;  %v11286_v57 = vor.u32 %v14518_v36, %v11285_v47  ;;  %v14588_v36 = vld [vmem:[%s19913_s10 + $0x1ec] sm:$0xf0] }
 0x98b   : > { %3649 = vmatpush.bf16.msra.mxu3 %v3628_v40 }
 0x98c   : > { %v3459_v60 = vpop.f32.mrf.mxu2  ;;  %3639 = vmatpush.bf16.msrb.mxu0 %v11286_v57 }
 0x98d   : > { %v11294_v60 = vor.u32 %v14519_v56, %v11293_v55  ;;  %v11548_v55 = vld [vmem:[%s19913_s10 + $0x1c0] sm:$0xf]  ;;  %v14584_v56 = vld [vmem:[%s19913_s10 + $0x1cc] sm:$0xf0] }
 0x98e   : > { %v3444_v62 = vpop.f32.mrf.mxu1  ;;  %v11549_v57 = vor.u32 %v14584_v56, %v11548_v55  ;;  %v14542_v55 = vld [vmem:[%s19913_s10 + $0x84] sm:$0xf]  ;;  %v11390_v56 = vld [vmem:[%s19913_s10 + $0x90] sm:$0xf0] }
 0x98f   : > { %v3445_v63 = vadd.f32 %v3444_v62, %v3432_v61  ;;  %3650 = vmatpush.bf16.msra.mxu3 %v11314_v38  ;;  %3665 = vmatpush.bf16.msra.mxu1 %v11294_v60 }
 0x991   : > { %v3458_v0 = vadd.f32 %v3457_v15, %v3445_v63  ;;  %v11287_v15 = vld [vmem:[%s19909_s6 + $0x168] sm:$0xf0] }
 0x992   : > { %v11290_v58 = vor.u32 %v14517_v54, %v11287_v15  ;;  %v14548_v54 = vld [vmem:[%s19913_s10 + $0xac] sm:$0xf0] }
 0x993   : > { %v3509_v2 = vpack.c.bf16 %v3458_v0, %v3458_v0  ;;  %3651 = vmatpush.bf16.msra.mxu3 %v11302_v46  ;;  %3666 = vmatpush.bf16.msra.mxu1 %v11282_v23  ;;  %v11564_v46 = vld [vmem:[%s19913_s10 + $0x1e0] sm:$0xf]  ;;  %v11405_v60 = vor.u32 %v14548_v54, %v11404_v48  ;;  %v14564_v48 = vld [vmem:[%s19913_s10 + $0x12c] sm:$0xf0] }
 0x994   : > { %v11565_v15 = vor.u32 %v14588_v36, %v11564_v46  ;;  %v14578_v36 = vld [vmem:[%s19913_s10 + $0x1a4] sm:$0xf] }
 0x995   : > { %v3514_v3 = vsel %vm797_vm2, %v3509_v2, 0 }
 0x996   : > { %v3446_v4 = vpop.f32.mrf.mxu1  ;;  %3523 = vmatpush.bf16.msrb.mxu2 %v3514_v3 }
 0x997   : > { %3652 = vmatpush.bf16.msra.mxu3 %v11290_v58  ;;  %v11532_v58 = vld [vmem:[%s19913_s10 + $0x1a0] sm:$0xf] }
 0xa0d   : > { %v3478_v5 = vpop.f32.mrf.mxu3 }
 0xa0e   : > { %v3482_v6 = vmul.f32 0.12309149, %v3478_v5 }
 0xa10   : > { %v3483_v7 = vsel %vm15662_vm8, %v3482_v6, -1e+30 }
 0xa11   : > { %v3484_v9 = vsel %vm595_vm0, %v3483_v7, -inf }
 0xa12   : > { %3485 = vmax.xlane.f32.xlu2 %v3484_v9 }
 0xa15   : > { %v3480_v12 = vpop.f32.mrf.mxu3 }
 0xa85   : > { %v3486_v13 = vpop.xlane.xlu2 %3485 }
 0xa86   : > { %v3487_v16 = vsub.f32 %v3483_v7, %v3486_v13  ;;  %v11273_v13 = vld [vmem:[%s19909_s6 + $0x144] sm:$0xf] }
 0xa88   : > { %v3488_v17 = vmul.f32 1.442695, %v3487_v16  ;;  %v14515_v16 = vld [vmem:[%s19909_s6 + $0x14c] sm:$0xf0] }
 0xa8a   : > { %15137 = vpow2.f32 %v3488_v17  ;;  %v14514_v17 = vld [vmem:[%s19909_s6 + $0x148] sm:$0xf] }
 0xa90   : > { %v16405_v18 = vpop.eup %15137 }
 0xa91   : > { %v3490_v28 = vsel %vm595_vm0, %v16405_v18, 0.0 }
 0xa92   : > { %3491 = vadd.xlane.f32.xlu0 %v3490_v28  ;;  %v11274_v28 = vor.u32 %v14515_v16, %v11273_v13 }
 0xa94   : > { %3640 = vmatpush.bf16.msrb.mxu0 %v11274_v28  ;;  %v14536_v28 = vld [vmem:[%s19913_s10 + $0x4c] sm:$0xf0] }
 0xa98   : > { %4180 = vmatpush.bf16.msra.mxu0 %v11565_v15  ;;  %v11534_v15 = vld [vmem:[%s19913_s10 + $0x1b0] sm:$0xf0] }
 0xa9c   : > { %4181 = vmatpush.bf16.msra.mxu0 %v11549_v57  ;;  %v11537_v57 = vor.u32 %v14578_v36, %v11534_v15  ;;  %v14541_v36 = vld [vmem:[%s19913_s10 + $0x74] sm:$0xf0] }
 0xb05   : > { %v3492_v59 = vpop.xlane.xlu0 %3491 }
 0xb06   : > { %15139 = vrcp.f32 %v3492_v59  ;;  %v3504_v0 = vand.u32 2147483648, %v3492_v59  ;;  %v3502_v3 = vand.u32 2147483647, %v3492_v59  ;;  %vm3498_vm11 = vweird.f32 %v3492_v59 }
 0xb08   : > { %v3505_v5 = vor.u32 1.1754944e-38, %v3504_v0  ;;  %vm3503_vm14 = vcmp.eq.f32.partialorder %v3502_v3, 8.507059e+37  ;;  %v11388_v0 = vld [vmem:[%s19913_s10 + $0x80] sm:$0xf] }
 0xb0c   : > { %v15140_v61 = vpop.eup %15139 }
 0xb0d   : > { %v3494_v62 = vmul.f32 %v15140_v61, %v3492_v59  ;;  %vm3499_vm10 = vweird.f32 %v15140_v61 }
 0xb0e   : > { %vm3500_vm12 = vmor %vm3498_vm11, %vm3499_vm10 }
 0xb0f   : > { %v3495_v63 = vsub.f32 1.0, %v3494_v62  ;;  %v14554_v62 = vld [vmem:[%s19913_s10 + $0xe4] sm:$0xf] }
 0xb11   : > { %v3496_v2 = vmul.f32 %v15140_v61, %v3495_v63  ;;  %v11438_v63 = vld [vmem:[%s19913_s10 + $0xf0] sm:$0xf0] }
 0xb12   : > { %v11441_v3 = vor.u32 %v14554_v62, %v11438_v63  ;;  %v14574_v62 = vld [vmem:[%s19913_s10 + $0x184] sm:$0xf] }
 0xb13   : > { %v3497_v4 = vadd.f32 %v15140_v61, %v3496_v2  ;;  %v14544_v2 = vld [vmem:[%s19913_s10 + $0x8c] sm:$0xf0] }
 0xb14   : > { %4206 = vmatpush.bf16.msrb.mxu1 %v11441_v3  ;;  %v11374_v3 = vld [vmem:[%s19913_s10 + $0x70] sm:$0xf0] }
 0xb15   : > { %v3501_v6 = vsel %vm3500_vm12, %v15140_v61, %v3497_v4  ;;  %v14580_v61 = vld [vmem:[%s19913_s10 + $0x1ac] sm:$0xf0] }
 0xb16   : > { %v3506_v7 = vsel %vm3503_vm14, %v3505_v5, %v3501_v6  ;;  %v11533_v4 = vor.u32 %v14580_v61, %v11532_v58  ;;  %v11389_v5 = vor.u32 %v14544_v2, %v11388_v0  ;;  %v11516_v6 = vld [vmem:[%s19913_s10 + $0x180] sm:$0xf]  ;;  %v11393_v58 = vor.u32 %v14542_v55, %v11390_v56  ;;  %v14560_v61 = vld [vmem:[%s19913_s10 + $0x10c] sm:$0xf0]  ;;  %v11518_v0 = vld [vmem:[%s19913_s10 + $0x190] sm:$0xf0] }
 0xb17   : > { %v3507_v9 = vmul.f32 %v16405_v18, %v3506_v7  ;;  %v11275_v18 = vld [vmem:[%s19909_s6 + $0x150] sm:$0xf0]  ;;  %v14576_v7 = vld [vmem:[%s19913_s10 + $0x18c] sm:$0xf0]  ;;  %v14538_v2 = vld [vmem:[%s19913_s10 + $0x64] sm:$0xf] }
 0xb18   : > { %v11278_v21 = vor.u32 %v14514_v17, %v11275_v18  ;;  %4182 = vmatpush.bf16.msra.mxu0 %v11533_v4  ;;  %v11517_v13 = vor.u32 %v14576_v7, %v11516_v6  ;;  %v11356_v17 = vld [vmem:[%s19913_s10 + $0x40] sm:$0xf]  ;;  %v11521_v4 = vor.u32 %v14574_v62, %v11518_v0  ;;  %v11444_v6 = vld [vmem:[%s19913_s10 + $0xe8] sm:$0xf]  ;;  %v14557_v7 = vld [vmem:[%s19913_s10 + $0xf4] sm:$0xf0] }
 0xb19   : > { %v3508_v12 = vpack.c.bf16 %v3507_v9, %v3507_v9  ;;  %v11372_v9 = vld [vmem:[%s19913_s10 + $0x60] sm:$0xf]  ;;  %v11357_v18 = vor.u32 %v14536_v28, %v11356_v17  ;;  %v14534_v17 = vld [vmem:[%s19913_s10 + $0x44] sm:$0xf]  ;;  %v11358_v28 = vld [vmem:[%s19913_s10 + $0x50] sm:$0xf0] }
 0xb1a   : > { %3653 = vmatpush.bf16.msra.mxu3 %v11278_v21  ;;  %v14533_v0 = vld [vmem:[%s19913_s10 + $0x34] sm:$0xf0] }
 0xb1b   : > { %11252 = vmatmul.msk.bf16.vlgmr.msrb.gmra.mxu2 %vm595_vm0, %v3508_v12  ;;  %v14540_v12 = vld [vmem:[%s19913_s10 + $0x6c] sm:$0xf0] }
 0xb1c   : > { %v11373_v16 = vor.u32 %v14540_v12, %v11372_v9  ;;  %4183 = vmatpush.bf16.msra.mxu0 %v11517_v13  ;;  %v11445_v9 = vor.u32 %v14557_v7, %v11444_v6  ;;  %v14570_v12 = vld [vmem:[%s19913_s10 + $0x164] sm:$0xf]  ;;  %v11502_v13 = vld [vmem:[%s19913_s10 + $0x170] sm:$0xf0] }
 0xb9e   : > { %v3525_v25 = vpop.f32.mrf.mxu2 }
 0xb9f   : > { %v3529_v26 = vpack.c.bf16 %v3525_v25, %v3525_v25  ;;  %v11341_v25 = vor.u32 %v14532_v20, %v11340_v19  ;;  %v11361_v19 = vor.u32 %v14534_v17, %v11358_v28  ;;  %v14553_v20 = vld [vmem:[%s19913_s10 + $0xd4] sm:$0xf0]  ;;  %v3690_v17 = vld [vmem:[%s19912_s9] sm:$0x7] }
 0xba1   : > { %11319 = vmatmul.msk.bf16.vlgmr.msrb.gmra.mxu0 %vm1202_vm6, %v3529_v26  ;;  %11320 = vmatmul.msk.bf16.vlgmr.msra.gmra.mxu3 %vm1202_vm6, %v3529_v26 }
 0xba2   : > { %11321 = vmatmul.msk.bf16.vlgmr.msra.gmra.mxu1 %vm1202_vm6, %v3529_v26 }
 0xba6   : > { %v3527_v27 = vpop.f32.mrf.mxu2 }
 0xc1e   : > { %v3642_v29 = vpop.f32.mrf.mxu0 }
 0xc1f   : > { %v3668_v53 = vpop.f32.mrf.mxu1  ;;  %v3672_v10 = vadd.f32 %v3642_v29, %v16382_v37 }
 0xc20   : > { %v3674_v35 = vadd.f32 %v3668_v53, %v16388_v39 }
 0xc21   : > { %v3683_v30 = vadd.f32 %v3677_v49, %v3672_v10 }
 0xc22   : > { %v3685_v40 = vadd.f32 %v3679_v32, %v3674_v35 }
 0xc23   : > { %v3686_v43 = vadd.f32 %v3683_v30, %v15492_v50  ;;  %v11420_v50 = vld [vmem:[%s19913_s10 + $0xc0] sm:$0xf] }
 0xc24   : > { %v3655_v33 = vpop.f32.mrf.mxu3  ;;  %v3688_v8 = vadd.f32 %v3685_v40, %v15496_v52  ;;  %v14528_v40 = vld [vmem:[%s19913_s10 + $0xc] sm:$0xf0]  ;;  %v11500_v30 = vld [vmem:[%s19913_s10 + $0x160] sm:$0xf] }
 0xc25   : > { %v3673_v38 = vadd.f32 %v3655_v33, %v16385_v14  ;;  %v14556_v14 = vld [vmem:[%s19913_s10 + $0xec] sm:$0xf0] }
 0xc26   : > { %v3644_v1 = vpop.f32.mrf.mxu0  ;;  %v3692_v37 = vsel %vm595_vm0, %v3688_v8, 0.0  ;;  %v11437_v52 = vor.u32 %v14556_v14, %v11436_v45  ;;  %v11550_v14 = vld [vmem:[%s19913_s10 + $0x1d0] sm:$0xf0] }
 0xc27   : > { %v3684_v41 = vadd.f32 %v3678_v34, %v3673_v38  ;;  %v3670_v42 = vpop.f32.mrf.mxu1  ;;  %v11324_v34 = vld [vmem:[%s19913_s10] sm:$0xf]  ;;  %v14572_v38 = vld [vmem:[%s19913_s10 + $0x16c] sm:$0xf0]  ;;  %v14586_v1 = vld [vmem:[%s19913_s10 + $0x1e4] sm:$0xf] }
 0xc28   : > { %4167 = vmatpush.bf16.msra.mxu2 %v11437_v52  ;;  %v11325_v33 = vor.u32 %v14528_v40, %v11324_v34  ;;  %v11566_v42 = vld [vmem:[%s19913_s10 + $0x1f0] sm:$0xf0]  ;;  %v14549_v34 = vld [vmem:[%s19913_s10 + $0xb4] sm:$0xf0] }
 0xc29   : > { %v3687_v11 = vadd.f32 %v3684_v41, %v15494_v51  ;;  %v14552_v51 = vld [vmem:[%s19913_s10 + $0xcc] sm:$0xf0]  ;;  %v11501_v41 = vor.u32 %v14572_v38, %v11500_v30  ;;  %v11406_v52 = vld [vmem:[%s19913_s10 + $0xb0] sm:$0xf0]  ;;  %v14562_v30 = vld [vmem:[%s19913_s10 + $0x124] sm:$0xf] }
 0xc2a   : > { %v11421_v47 = vor.u32 %v14552_v51, %v11420_v50  ;;  %v14546_v50 = vld [vmem:[%s19913_s10 + $0xa4] sm:$0xf]  ;;  %v11470_v38 = vld [vmem:[%s19913_s10 + $0x130] sm:$0xf0] }
 0xc2b   : > { %v3691_v39 = vadd.f32 %v3687_v11, %v3686_v43  ;;  %4184 = vmatpush.bf16.msra.mxu0 %v11501_v41  ;;  %v11409_v46 = vor.u32 %v14546_v50, %v11406_v52  ;;  %v11473_v41 = vor.u32 %v14562_v30, %v11470_v38  ;;  %v14558_v50 = vld [vmem:[%s19913_s10 + $0x104] sm:$0xf]  ;;  %v11454_v52 = vld [vmem:[%s19913_s10 + $0x110] sm:$0xf0] }
 0xc2c   : > { %v3657_v44 = vpop.f32.mrf.mxu3  ;;  %4168 = vmatpush.bf16.msra.mxu2 %v11421_v47  ;;  %v11468_v47 = vld [vmem:[%s19913_s10 + $0x120] sm:$0xf] }
 0xc2d   : > { %v3693_v59 = vadd.f32 %v3692_v37, %v3691_v39  ;;  %v11484_v44 = vld [vmem:[%s19913_s10 + $0x140] sm:$0xf]  ;;  %v14568_v37 = vld [vmem:[%s19913_s10 + $0x14c] sm:$0xf0]  ;;  %v11469_v54 = vor.u32 %v14564_v48, %v11468_v47  ;;  %v11380_v48 = vld [vmem:[%s19913_s10 + $0x68] sm:$0xf] }
 0xc2e   : > { %v11485_v45 = vor.u32 %v14568_v37, %v11484_v44  ;;  %v16735_v37 = vld [vmem:[%s19913_s10 + $0x208] sm:$0xff]  ;;  %v11381_v15 = vor.u32 %v14541_v36, %v11380_v48 }
 0xc2f   : > { %3694 = vadd.xlane.f32.xlu1 %v3693_v59  ;;  %v14582_v59 = vld [vmem:[%s19913_s10 + $0x1c4] sm:$0xf] }
 0xc30   : > { %4169 = vmatpush.bf16.msra.mxu2 %v11405_v60  ;;  %v11553_v51 = vor.u32 %v14582_v59, %v11550_v14  ;;  %4185 = vmatpush.bf16.msra.mxu0 %v11485_v45  ;;  %v11452_v60 = vld [vmem:[%s19913_s10 + $0x100] sm:$0xf]  ;;  %v4018_v14 = vunpack.c.l.b16 %v16735_v37 }
 0xc31   : > { %v11453_v63 = vor.u32 %v14560_v61, %v11452_v60  ;;  %v14537_v60 = vld [vmem:[%s19913_s10 + $0x54] sm:$0xf0] }
 0xc32   : > { %v4086_v47 = vpack.c.b16 %v4018_v14, %v4018_v14  ;;  %v14585_v14 = vld [vmem:[%s19913_s10 + $0x1d4] sm:$0xf0] }
 0xc34   : > { %4170 = vmatpush.bf16.msra.mxu2 %v11389_v5  ;;  %4186 = vmatpush.bf16.msra.mxu0 %v11469_v54  ;;  %v11377_v5 = vor.u32 %v14538_v2, %v11374_v3  ;;  %v4162_v56 = vsel %vm797_vm2, %v4086_v47, 0  ;;  %v11332_v3 = vld [vmem:[%s19913_s10 + $0x8] sm:$0xf] }
 0xc38   : > { %4171 = vmatpush.bf16.msra.mxu2 %v11373_v16  ;;  %4187 = vmatpush.bf16.msra.mxu0 %v11453_v63  ;;  %v11505_v16 = vor.u32 %v14570_v12, %v11502_v13  ;;  %v11348_v63 = vld [vmem:[%s19913_s10 + $0x28] sm:$0xf]  ;;  %v3689_v13 = vld [vmem:[%s19911_s8] sm:$0x7] }
 0xc39   : > { %v11349_v2 = vor.u32 %v14533_v0, %v11348_v63  ;;  %v11524_v63 = vld [vmem:[%s19913_s10 + $0x188] sm:$0xf] }
 0xc3c   : > { %4172 = vmatpush.bf16.msra.mxu2 %v11357_v18  ;;  %4245 = vmatpush.bf16.msrb.mxu0 %v11445_v9  ;;  %v11428_v18 = vld [vmem:[%s19913_s10 + $0xc8] sm:$0xf] }
 0xc40   : > { %4173 = vmatpush.bf16.msra.mxu2 %v11341_v25  ;;  %v11486_v25 = vld [vmem:[%s19913_s10 + $0x150] sm:$0xf0] }
 0xc44   : > { %4174 = vmatpush.bf16.msra.mxu2 %v11325_v33 }
 0xca2   : > { %v3695_v21 = vpop.xlane.xlu1 %3694 }
 0xca3   : > { %v3696_v23 = vmul.f32 %v3695_v21, %v15341_v24  ;;  %v11429_v21 = vor.u32 %v14553_v20, %v11428_v18  ;;  %v3724_v18 = vperm.slane %v3689_v13, 0  ;;  %v3726_v20 = vperm.slane %v3689_v13, 2 }
 0xca5   : > { %v16578_v26 = vsub.f32 %v3686_v43, %v3696_v23  ;;  %v16580_v27 = vsub.f32 %v3687_v11, %v3696_v23  ;;  %v16582_v31 = vsub.f32 %v3688_v8, %v3696_v23  ;;  %v14550_v8 = vld [vmem:[%s19913_s10 + $0xc4] sm:$0xf]  ;;  %v11422_v43 = vld [vmem:[%s19913_s10 + $0xd0] sm:$0xf0]  ;;  %v11569_v11 = vor.u32 %v14586_v1, %v11566_v42  ;;  %4246 = vmatpush.bf16.msrb.mxu0 %v11429_v21 }
 0xca6   : > { %v11425_v39 = vor.u32 %v14550_v8, %v11422_v43  ;;  %v14566_v23 = vld [vmem:[%s19913_s10 + $0x144] sm:$0xf]  ;;  %v11326_v8 = vld [vmem:[%s19913_s10 + $0x10] sm:$0xf0]  ;;  %v11396_v43 = vld [vmem:[%s19913_s10 + $0x88] sm:$0xf] }
 0xca7   : > { %v3700_v29 = vmul.f32 %v16578_v26, %v16578_v26  ;;  %v3701_v53 = vmul.f32 %v16580_v27, %v16580_v27  ;;  %v3702_v35 = vmul.f32 %v16582_v31, %v16582_v31  ;;  %4219 = vmatpush.bf16.msrb.mxu2 %v11569_v11  ;;  %v14526_v42 = vld [vmem:[%s19913_s10 + $0x4] sm:$0xf]  ;;  %v3736_v21 = vperm.slane %v3690_v17, 2 }
 0xca8   : > { %4207 = vmatpush.bf16.msrb.mxu1 %v11425_v39  ;;  %v11329_v11 = vor.u32 %v14526_v42, %v11326_v8  ;;  %v14545_v39 = vld [vmem:[%s19913_s10 + $0x94] sm:$0xf0]  ;;  %v11574_v42 = vld [vmem:[%s19913_s10 + $0x1f8] sm:$0xf0] }
 0xca9   : > { %v3703_v32 = vadd.f32 %v3701_v53, %v3700_v29  ;;  %v3704_v10 = vsel %vm595_vm0, %v3702_v35, 0.0  ;;  %v11489_v29 = vor.u32 %v14566_v23, %v11486_v25  ;;  %v14530_v53 = vld [vmem:[%s19913_s10 + $0x24] sm:$0xf]  ;;  %v11342_v35 = vld [vmem:[%s19913_s10 + $0x30] sm:$0xf0]  ;;  %v11397_v45 = vor.u32 %v14545_v39, %v11396_v43 }
 0xcaa   : > { %v3734_v25 = vperm.slane %v3690_v17, 0 }
 0xcab   : > { %v3705_v49 = vadd.f32 %v3704_v10, %v3703_v32  ;;  %4220 = vmatpush.bf16.msrb.mxu2 %v11553_v51  ;;  %v11412_v32 = vld [vmem:[%s19913_s10 + $0xa8] sm:$0xf]  ;;  %v3810_v10 = vld [vmem:[%s19913_s10 + $0x200] sm:$0xff] }
 0xcac   : > { %4208 = vmatpush.bf16.msrb.mxu1 %v11409_v46  ;;  %v4016_v40 = vunpack.c.l.b16 %v3810_v10  ;;  %v11413_v33 = vor.u32 %v14549_v34, %v11412_v32  ;;  %v4017_v44 = vunpack.c.h.b16 %v3810_v10  ;;  %v11457_v46 = vor.u32 %v14558_v50, %v11454_v52  ;;  %v14551_v50 = vld [vmem:[%s19913_s10 + $0xcc] sm:$0xf]  ;;  %v11430_v52 = vld [vmem:[%s19913_s10 + $0xd8] sm:$0xf0] }
 0xcad   : > { %3706 = vadd.xlane.f32.xlu2 %v3705_v49  ;;  %v11345_v49 = vor.u32 %v14530_v53, %v11342_v35  ;;  %v3735_v32 = vperm.slane %v3690_v17, 1  ;;  %v11433_v36 = vor.u32 %v14551_v50, %v11430_v52  ;;  %v14539_v17 = vld [vmem:[%s19913_s10 + $0x6c] sm:$0xf] }
 0xcae   : > { %v4084_v1 = vpack.c.b16 %v4016_v40, %v4016_v40  ;;  %4247 = vmatpush.bf16.msrb.mxu0 %v11413_v33  ;;  %v4085_v51 = vpack.c.b16 %v4017_v44, %v4017_v44  ;;  %v11572_v40 = vld [vmem:[%s19913_s10 + $0x1e8] sm:$0xf]  ;;  %v14589_v33 = vld [vmem:[%s19913_s10 + $0x1f4] sm:$0xf0] }
 0xcaf   : > { %4221 = vmatpush.bf16.msrb.mxu2 %v11537_v57  ;;  %v11573_v8 = vor.u32 %v14589_v33, %v11572_v40  ;;  %v11494_v40 = vld [vmem:[%s19913_s10 + $0x158] sm:$0xf0]  ;;  %v11752_v33 = vld [vmem:[%s19915_s12 + $0x150] sm:$0xf] }
 0xcb0   : > { %4209 = vmatpush.bf16.msrb.mxu1 %v11393_v58  ;;  %v4156_v59 = vsel %vm797_vm2, %v4084_v1, 0  ;;  %v4159_v54 = vsel %vm797_vm2, %v4085_v51, 0  ;;  %v11364_v58 = vld [vmem:[%s19913_s10 + $0x48] sm:$0xf]  ;;  %v14583_v51 = vld [vmem:[%s19913_s10 + $0x1cc] sm:$0xf] }
 0xcb1   : > { %4200 = vmatpush.bf16.msrb.mxu3 %v4156_v59  ;;  %v11365_v62 = vor.u32 %v14537_v60, %v11364_v58  ;;  %v11556_v59 = vld [vmem:[%s19913_s10 + $0x1c8] sm:$0xf]  ;;  %v14579_v58 = vld [vmem:[%s19913_s10 + $0x1ac] sm:$0xf]  ;;  %v11542_v60 = vld [vmem:[%s19913_s10 + $0x1b8] sm:$0xf0] }
 0xcb2   : > { %4248 = vmatpush.bf16.msrb.mxu0 %v11397_v45  ;;  %v11557_v48 = vor.u32 %v14585_v14, %v11556_v59  ;;  %v11545_v0 = vor.u32 %v14579_v58, %v11542_v60  ;;  %v11478_v14 = vld [vmem:[%s19913_s10 + $0x138] sm:$0xf0] }
 0xcb3   : > { %4222 = vmatpush.bf16.msrb.mxu2 %v11521_v4  ;;  %v14529_v4 = vld [vmem:[%s19913_s10 + $0x14] sm:$0xf0] }
 0xcb4   : > { %4210 = vmatpush.bf16.msrb.mxu1 %v11377_v5  ;;  %v11333_v6 = vor.u32 %v14529_v4, %v11332_v3  ;;  %v14543_v3 = vld [vmem:[%s19913_s10 + $0x8c] sm:$0xf]  ;;  %v11398_v4 = vld [vmem:[%s19913_s10 + $0x98] sm:$0xf0] }
 0xcb5   : > { %4239 = vmatpush.bf16.msra.mxu3 %v4159_v54  ;;  %v11540_v54 = vld [vmem:[%s19913_s10 + $0x1a8] sm:$0xf] }
 0xcb6   : > { %4249 = vmatpush.bf16.msrb.mxu0 %v11381_v15 }
 0xcb7   : > { %4223 = vmatpush.bf16.msrb.mxu2 %v11505_v16 }
 0xcb8   : > { %4211 = vmatpush.bf16.msrb.mxu1 %v11361_v19  ;;  %v3725_v19 = vperm.slane %v3689_v13, 1  ;;  %v14573_v13 = vld [vmem:[%s19913_s10 + $0x174] sm:$0xf0] }
 0xcba   : > { %4250 = vmatpush.bf16.msrb.mxu0 %v11365_v62 }
 0xcbb   : > { %4224 = vmatpush.bf16.msrb.mxu2 %v11489_v29 }
 0xcbc   : > { %4212 = vmatpush.bf16.msrb.mxu1 %v11345_v49 }
 0xcbe   : > { %4251 = vmatpush.bf16.msrb.mxu0 %v11349_v2  ;;  %v14577_v2 = vld [vmem:[%s19913_s10 + $0x194] sm:$0xf0] }
 0xcbf   : > { %4225 = vmatpush.bf16.msrb.mxu2 %v11473_v41  ;;  %v14587_v41 = vld [vmem:[%s19913_s10 + $0x1ec] sm:$0xf] }
 0xcc0   : > { %4213 = vmatpush.bf16.msrb.mxu1 %v11329_v11  ;;  %v11577_v45 = vor.u32 %v14587_v41, %v11574_v42  ;;  %v11476_v41 = vld [vmem:[%s19913_s10 + $0x128] sm:$0xf] }
 0xcc2   : > { %4252 = vmatpush.bf16.msrb.mxu0 %v11333_v6  ;;  %v11526_v6 = vld [vmem:[%s19913_s10 + $0x198] sm:$0xf0] }
 0xcc3   : > { %4226 = vmatpush.bf16.msrb.mxu2 %v11457_v46  ;;  %v11558_v46 = vld [vmem:[%s19913_s10 + $0x1d8] sm:$0xf0] }
 0xcc4   : > { %4278 = vmatpush.bf16.msra.mxu1 %v4162_v56  ;;  %v11561_v15 = vor.u32 %v14583_v51, %v11558_v46  ;;  %v14547_v56 = vld [vmem:[%s19913_s10 + $0xac] sm:$0xf]  ;;  %v11460_v51 = vld [vmem:[%s19913_s10 + $0x108] sm:$0xf]  ;;  %v14561_v46 = vld [vmem:[%s19913_s10 + $0x114] sm:$0xf0] }
 0xd20   : > { %v3707_v55 = vpop.xlane.xlu2 %3706 }
 0xd21   : > { %v3708_v57 = vmul.f32 %v3707_v55, %v15341_v24  ;;  %v14581_v55 = vld [vmem:[%s19913_s10 + $0x1b4] sm:$0xf0] }
 0xd23   : > { %v3709_v61 = vadd.f32 1e-12, %v3708_v57  ;;  %v11414_v57 = vld [vmem:[%s19913_s10 + $0xb8] sm:$0xf0] }
 0xd24   : > { %v11417_v62 = vor.u32 %v14547_v56, %v11414_v57  ;;  %v14612_v56 = vld [vmem:[%s19915_s12 + $0xb0] sm:$0xf0]  ;;  %v11461_v57 = vor.u32 %v14561_v46, %v11460_v51  ;;  %v14657_v51 = vld [vmem:[%s19915_s12 + $0x218] sm:$0xf0] }
 0xd25   : > { %15141 = vrsqrt.f32 %v3709_v61  ;;  %vm3716_vm1 = vweird.f32 %v3709_v61 }
 0xd2b   : > { %v15142_v5 = vpop.eup %15141 }
 0xd2c   : > { %v3711_v7 = vmul.f32 %v15142_v5, %v3709_v61  ;;  %vm3717_vm15 = vweird.f32 %v15142_v5  ;;  %v11541_v61 = vor.u32 %v14581_v55, %v11540_v54  ;;  %v14559_v54 = vld [vmem:[%s19913_s10 + $0x10c] sm:$0xf]  ;;  %v11668_v55 = vld [vmem:[%s19915_s12 + $0xa8] sm:$0xf] }
 0xd2d   : > { %vm3718_vm3 = vmor %vm3716_vm1, %vm3717_vm15 }
 0xd2e   : > { %v3712_v9 = vmul.f32 %v15142_v5, %v3711_v7  ;;  %v11525_v7 = vor.u32 %v14577_v2, %v11524_v63  ;;  %v14609_v63 = vld [vmem:[%s19915_s12 + $0x98] sm:$0xf0]  ;;  %v11644_v2 = vld [vmem:[%s19915_s12 + $0x78] sm:$0xf] }
 0xd30   : > { %v3713_v12 = vmul.f32 0.5, %v3712_v9  ;;  %v11401_v9 = vor.u32 %v14543_v3, %v11398_v4  ;;  %v14606_v3 = vld [vmem:[%s19915_s12 + $0x80] sm:$0xf0] }
 0xd31   : > { %v11645_v4 = vor.u32 %v14606_v3, %v11644_v2  ;;  %v14602_v3 = vld [vmem:[%s19915_s12 + $0x64] sm:$0xf] }
 0xd32   : > { %v3714_v16 = vsub.f32 1.5, %v3713_v12  ;;  %v11508_v12 = vld [vmem:[%s19913_s10 + $0x168] sm:$0xf] }
 0xd34   : > { %v3715_v28 = vmul.f32 %v15142_v5, %v3714_v16 }
 0xd36   : > { %v3719_v23 = vsel %vm3718_vm3, %v15142_v5, %v3715_v28  ;;  %v14575_v5 = vld [vmem:[%s19913_s10 + $0x18c] sm:$0xf]  ;;  %v11382_v28 = vld [vmem:[%s19913_s10 + $0x78] sm:$0xf0] }
 0xd37   : > { %v3720_v29 = vmul.f32 %v3719_v23, %v16578_v26  ;;  %v3721_v53 = vmul.f32 %v3719_v23, %v16580_v27  ;;  %v3722_v35 = vmul.f32 %v3719_v23, %v16582_v31  ;;  %v14555_v26 = vld [vmem:[%s19913_s10 + $0xec] sm:$0xf]  ;;  %v11446_v27 = vld [vmem:[%s19913_s10 + $0xf8] sm:$0xf0]  ;;  %v4019_v31 = vunpack.c.h.b16 %v16735_v37 }
 0xd38   : > { %v11449_v37 = vor.u32 %v14555_v26, %v11446_v27  ;;  %v11529_v16 = vor.u32 %v14575_v5, %v11526_v6  ;;  %v11509_v23 = vor.u32 %v14573_v13, %v11508_v12  ;;  %v14633_v26 = vld [vmem:[%s19915_s12 + $0x158] sm:$0xf0]  ;;  %v14603_v5 = vld [vmem:[%s19915_s12 + $0x68] sm:$0xf0] }
 0xd39   : > { %v3730_v10 = vmul.f32 %v3724_v18, %v3720_v29  ;;  %v3731_v49 = vmul.f32 %v3725_v19, %v3721_v53  ;;  %v3732_v34 = vmul.f32 %v3726_v20, %v3722_v35  ;;  %v4087_v43 = vpack.c.b16 %v4019_v31, %v4019_v31  ;;  %v14571_v18 = vld [vmem:[%s19913_s10 + $0x16c] sm:$0xf]  ;;  %v11510_v19 = vld [vmem:[%s19913_s10 + $0x178] sm:$0xf0]  ;;  %v11764_v20 = vld [vmem:[%s19915_s12 + $0x168] sm:$0xf] }
 0xd3a   : > { %v11492_v29 = vld [vmem:[%s19913_s10 + $0x148] sm:$0xf]  ;;  %v14569_v53 = vld [vmem:[%s19913_s10 + $0x154] sm:$0xf0]  ;;  %v11513_v35 = vor.u32 %v14571_v18, %v11510_v19  ;;  %v11753_v59 = vor.u32 %v14633_v26, %v11752_v33  ;;  %v14597_v12 = vld [vmem:[%s19915_s12 + $0x38] sm:$0xf0] }
 0xd3b   : > { %v16794_v30 = vadd.f32 %v3736_v21, %v3732_v34  ;;  %v16796_v38 = vadd.f32 %v3734_v25, %v3730_v10  ;;  %v16798_v1 = vadd.f32 %v3735_v32, %v3731_v49  ;;  %v4165_v47 = vsel %vm797_vm2, %v4087_v43, 0  ;;  %v14636_v21 = vld [vmem:[%s19915_s12 + $0x170] sm:$0xf0]  ;;  %v14535_v32 = vld [vmem:[%s19913_s10 + $0x4c] sm:$0xf] }
 0xd3c   : > { %v11385_v25 = vor.u32 %v14539_v17, %v11382_v28  ;;  %v11366_v10 = vld [vmem:[%s19913_s10 + $0x58] sm:$0xf0]  ;;  %v14567_v49 = vld [vmem:[%s19913_s10 + $0x14c] sm:$0xf]  ;;  %v11765_v34 = vor.u32 %v14636_v21, %v11764_v20  ;;  %v11493_v27 = vor.u32 %v14569_v53, %v11492_v29  ;;  %v14630_v17 = vld [vmem:[%s19915_s12 + $0x140] sm:$0xf0] }
 0xd3d   : > { %v16808_v11 = vpack.c.bf16 %v16794_v30, %v16794_v30  ;;  %v16812_v39 = vpack.c.bf16 %v16796_v38, %v16796_v38  ;;  %v16816_v44 = vpack.c.bf16 %v16798_v1, %v16798_v1  ;;  %v11369_v31 = vor.u32 %v14535_v32, %v11366_v10  ;;  %v14531_v43 = vld [vmem:[%s19913_s10 + $0x2c] sm:$0xf]  ;;  %v11596_v18 = vld [vmem:[%s19915_s12 + $0x18] sm:$0xf]  ;;  %v14594_v19 = vld [vmem:[%s19915_s12 + $0x20] sm:$0xf0] }
 0xd3e   : > { %v11497_v42 = vor.u32 %v14567_v49, %v11494_v40  ;;  %v11728_v20 = vld [vmem:[%s19915_s12 + $0x120] sm:$0xf]  ;;  %v11597_v21 = vor.u32 %v14594_v19, %v11596_v18  ;;  %v14591_v53 = vld [vmem:[%s19915_s12 + $0x8] sm:$0xf0]  ;;  %v11670_v10 = vld [vmem:[%s19915_s12 + $0xb4] sm:$0xf0] }
 0xd3f   : > { %4175 = vmatmul.bf16.vlgmr.msra.gmra.mxu2 %v16812_v39  ;;  %4188 = vmatmul.bf16.vlgmr.msra.gmra.mxu0 %v16816_v44  ;;  %v11584_v29 = vld [vmem:[%s19915_s12] sm:$0xf]  ;;  %v14611_v32 = vld [vmem:[%s19915_s12 + $0xac] sm:$0xf]  ;;  %v14624_v40 = vld [vmem:[%s19915_s12 + $0x110] sm:$0xf0] }
 0xd40   : > { %11578 = vmatmul.msk.bf16.vlgmr.msrb.gmra.mxu3 %vm595_vm0, %v16808_v11  ;;  %4214 = vmatmul.bf16.vlgmr.msrb.gmra.mxu1 %v16812_v39  ;;  %v11673_v49 = vor.u32 %v14611_v32, %v11670_v10  ;;  %v11860_v33 = vld [vmem:[%s19915_s12 + $0x228] sm:$0xf]  ;;  %v14599_v19 = vld [vmem:[%s19915_s12 + $0x4c] sm:$0xf] }
 0xd41   : > { %4258 = vmatpush.bf16.msrb.mxu3 %v11573_v8  ;;  %4284 = vmatpush.bf16.msra.mxu2 %v11449_v37  ;;  %v14565_v8 = vld [vmem:[%s19913_s10 + $0x134] sm:$0xf0]  ;;  %v11350_v37 = vld [vmem:[%s19913_s10 + $0x38] sm:$0xf0]  ;;  %v11908_v10 = vld [vmem:[%s19915_s12 + $0x288] sm:$0xf] }
 0xd42   : > { %4297 = vmatpush.bf16.msrb.mxu1 %v11577_v45  ;;  %4317 = vmatpush.bf16.msra.mxu0 %v4165_v47  ;;  %v14563_v45 = vld [vmem:[%s19913_s10 + $0x12c] sm:$0xf]  ;;  %v11477_v50 = vor.u32 %v14565_v8, %v11476_v41  ;;  %v11353_v52 = vor.u32 %v14531_v43, %v11350_v37  ;;  %v11956_v41 = vld [vmem:[%s19915_s12 + $0x2e8] sm:$0xf]  ;;  %v14608_v43 = vld [vmem:[%s19915_s12 + $0x94] sm:$0xf] }
 0xd43   : > { %v11481_v47 = vor.u32 %v14563_v45, %v11478_v14  ;;  %v11658_v37 = vld [vmem:[%s19915_s12 + $0x9c] sm:$0xf0]  ;;  %v11704_v45 = vld [vmem:[%s19915_s12 + $0xf0] sm:$0xf]  ;;  %v14621_v14 = vld [vmem:[%s19915_s12 + $0xf8] sm:$0xf0] }
 0xd45   : > { %4259 = vmatpush.bf16.msrb.mxu3 %v11557_v48  ;;  %4285 = vmatpush.bf16.msra.mxu2 %v11433_v36  ;;  %v14527_v48 = vld [vmem:[%s19913_s10 + $0xc] sm:$0xf]  ;;  %v11334_v36 = vld [vmem:[%s19913_s10 + $0x18] sm:$0xf0] }
 0xd46   : > { %4298 = vmatpush.bf16.msrb.mxu1 %v11561_v15  ;;  %v11462_v15 = vld [vmem:[%s19913_s10 + $0x118] sm:$0xf0]  ;;  %v11337_v58 = vor.u32 %v14527_v48, %v11334_v36 }
 0xd47   : > { %v11465_v60 = vor.u32 %v14559_v54, %v11462_v15  ;;  %v14681_v48 = vld [vmem:[%s19915_s12 + $0x2d8] sm:$0xf0]  ;;  %v11646_v15 = vld [vmem:[%s19915_s12 + $0x84] sm:$0xf0] }
 0xd48   : > { %v14605_v54 = vld [vmem:[%s19915_s12 + $0x7c] sm:$0xf] }
 0xd49   : > { %4260 = vmatpush.bf16.msrb.mxu3 %v11541_v61  ;;  %4286 = vmatpush.bf16.msra.mxu2 %v11417_v62  ;;  %v11669_v61 = vor.u32 %v14612_v56, %v11668_v55  ;;  %v11656_v62 = vld [vmem:[%s19915_s12 + $0x90] sm:$0xf]  ;;  %v11649_v55 = vor.u32 %v14605_v54, %v11646_v15  ;;  %v11692_v56 = vld [vmem:[%s19915_s12 + $0xd8] sm:$0xf]  ;;  %v14626_v54 = vld [vmem:[%s19915_s12 + $0x124] sm:$0xf] }
 0xd4a   : > { %4299 = vmatpush.bf16.msrb.mxu1 %v11545_v0  ;;  %v11657_v0 = vor.u32 %v14609_v63, %v11656_v62  ;;  %v11932_v63 = vld [vmem:[%s19915_s12 + $0x2b8] sm:$0xf]  ;;  %v11730_v15 = vld [vmem:[%s19915_s12 + $0x12c] sm:$0xf0] }
 0xd4d   : > { %4261 = vmatpush.bf16.msrb.mxu3 %v11525_v7  ;;  %4287 = vmatpush.bf16.msra.mxu2 %v11401_v9  ;;  %v11620_v7 = vld [vmem:[%s19915_s12 + $0x48] sm:$0xf]  ;;  %v11608_v9 = vld [vmem:[%s19915_s12 + $0x30] sm:$0xf] }
 0xd4e   : > { %4300 = vmatpush.bf16.msrb.mxu1 %v11529_v16  ;;  %v11609_v13 = vor.u32 %v14597_v12, %v11608_v9  ;;  %v11740_v16 = vld [vmem:[%s19915_s12 + $0x138] sm:$0xf]  ;;  %v14635_v9 = vld [vmem:[%s19915_s12 + $0x16c] sm:$0xf] }
 0xd4f   : > { %4227 = vmatmul.bf16.vlgmr.msrb.gmra.mxu2 %v16816_v44  ;;  %4253 = vmatmul.bf16.vlgmr.msrb.gmra.mxu0 %v16812_v39  ;;  %v11741_v28 = vor.u32 %v14630_v17, %v11740_v16  ;;  %v11766_v12 = vld [vmem:[%s19915_s12 + $0x174] sm:$0xf0]  ;;  %v11920_v17 = vld [vmem:[%s19915_s12 + $0x2a0] sm:$0xf] }
 0xd50   : > { %11579 = vmatmul.msk.bf16.vlgmr.msra.gmra.mxu3 %vm595_vm0, %v16808_v11  ;;  %11580 = vmatmul.msk.bf16.vlgmr.msra.gmra.mxu1 %vm595_vm0, %v16808_v11  ;;  %v11769_v16 = vor.u32 %v14635_v9, %v11766_v12  ;;  %v11872_v9 = vld [vmem:[%s19915_s12 + $0x240] sm:$0xf] }
 0xd51   : > { %4262 = vmatpush.bf16.msrb.mxu3 %v11509_v23  ;;  %4288 = vmatpush.bf16.msra.mxu2 %v11385_v25  ;;  %v14627_v23 = vld [vmem:[%s19915_s12 + $0x128] sm:$0xf0] }
 0xd52   : > { %4301 = vmatpush.bf16.msrb.mxu1 %v11513_v35  ;;  %5024 = vmatpush.bf16.msrb.mxu0 %v11765_v34  ;;  %v11729_v25 = vor.u32 %v14627_v23, %v11728_v20  ;;  %v11585_v35 = vor.u32 %v14591_v53, %v11584_v29  ;;  %v11716_v34 = vld [vmem:[%s19915_s12 + $0x108] sm:$0xf]  ;;  %v11622_v20 = vld [vmem:[%s19915_s12 + $0x54] sm:$0xf0]  ;;  %v14632_v53 = vld [vmem:[%s19915_s12 + $0x154] sm:$0xf] }
 0xd53   : > { %v11717_v26 = vor.u32 %v14624_v40, %v11716_v34  ;;  %v11812_v23 = vld [vmem:[%s19915_s12 + $0x1c8] sm:$0xf]  ;;  %v14596_v40 = vld [vmem:[%s19915_s12 + $0x34] sm:$0xf] }
 0xd55   : > { %4263 = vmatpush.bf16.msrb.mxu3 %v11493_v27  ;;  %4289 = vmatpush.bf16.msra.mxu2 %v11369_v31  ;;  %v14660_v27 = vld [vmem:[%s19915_s12 + $0x230] sm:$0xf0] }
 0xd56   : > { %4302 = vmatpush.bf16.msrb.mxu1 %v11497_v42  ;;  %5025 = vmatpush.bf16.msrb.mxu0 %v11753_v59  ;;  %v11861_v31 = vor.u32 %v14660_v27, %v11860_v33  ;;  %v14684_v42 = vld [vmem:[%s19915_s12 + $0x2f0] sm:$0xf0]  ;;  %v11661_v59 = vor.u32 %v14608_v43, %v11658_v37  ;;  %v11610_v33 = vld [vmem:[%s19915_s12 + $0x3c] sm:$0xf0]  ;;  %v11800_v27 = vld [vmem:[%s19915_s12 + $0x1b0] sm:$0xf] }
 0xd57   : > { %v11957_v8 = vor.u32 %v14684_v42, %v11956_v41  ;;  %v14629_v42 = vld [vmem:[%s19915_s12 + $0x13c] sm:$0xf]  ;;  %v11896_v37 = vld [vmem:[%s19915_s12 + $0x270] sm:$0xf] }
 0xd59   : > { %4264 = vmatpush.bf16.msrb.mxu3 %v11477_v50  ;;  %4290 = vmatpush.bf16.msra.mxu2 %v11353_v52  ;;  %v11848_v50 = vld [vmem:[%s19915_s12 + $0x210] sm:$0xf]  ;;  %v11705_v52 = vor.u32 %v14621_v14, %v11704_v45  ;;  %v14593_v14 = vld [vmem:[%s19915_s12 + $0x1c] sm:$0xf] }
 0xd5a   : > { %4303 = vmatpush.bf16.msrb.mxu1 %v11481_v47  ;;  %5026 = vmatpush.bf16.msrb.mxu0 %v11741_v28  ;;  %v11849_v46 = vor.u32 %v14657_v51, %v11848_v50  ;;  %v11944_v47 = vld [vmem:[%s19915_s12 + $0x2d0] sm:$0xf]  ;;  %v14675_v28 = vld [vmem:[%s19915_s12 + $0x2a8] sm:$0xf0]  ;;  %v11598_v50 = vld [vmem:[%s19915_s12 + $0x24] sm:$0xf0] }
 0xd5b   : > { %v11945_v36 = vor.u32 %v14681_v48, %v11944_v47  ;;  %v11921_v18 = vor.u32 %v14675_v28, %v11920_v17  ;;  %v11601_v51 = vor.u32 %v14593_v14, %v11598_v50  ;;  %v14642_v47 = vld [vmem:[%s19915_s12 + $0x1a0] sm:$0xf0]  ;;  %v14663_v17 = vld [vmem:[%s19915_s12 + $0x248] sm:$0xf0]  ;;  %v14677_v50 = vld [vmem:[%s19915_s12 + $0x2bc] sm:$0xf] }
 0xd5c   : > { %v14683_v28 = vld [vmem:[%s19915_s12 + $0x2ec] sm:$0xf] }
 0xd5d   : > { %4265 = vmatpush.bf16.msrb.mxu3 %v11461_v57  ;;  %4291 = vmatpush.bf16.msra.mxu2 %v11337_v58  ;;  %v14618_v57 = vld [vmem:[%s19915_s12 + $0xe0] sm:$0xf0]  ;;  %v11836_v58 = vld [vmem:[%s19915_s12 + $0x1f8] sm:$0xf] }
 0xd5e   : > { %4304 = vmatpush.bf16.msrb.mxu1 %v11465_v60  ;;  %5027 = vmatpush.bf16.msrb.mxu0 %v11729_v25  ;;  %v11693_v60 = vor.u32 %v14618_v57, %v11692_v56  ;;  %v14648_v25 = vld [vmem:[%s19915_s12 + $0x1d0] sm:$0xf0]  ;;  %v11733_v56 = vor.u32 %v14626_v54, %v11730_v15  ;;  %v11884_v57 = vld [vmem:[%s19915_s12 + $0x258] sm:$0xf]  ;;  %v14614_v15 = vld [vmem:[%s19915_s12 + $0xc4] sm:$0xf] }
 0xd5f   : > { %11581 = vmatmul.msk.bf16.vlgmr.msra.gmra.mxu0 %vm595_vm0, %v16808_v11  ;;  %v11632_v11 = vld [vmem:[%s19915_s12 + $0x60] sm:$0xf]  ;;  %v11813_v29 = vor.u32 %v14648_v25, %v11812_v23 }
 0xd60   : > { %4266 = vmatmul.bf16.vlgmr.msrb.gmra.mxu3 %v16816_v44  ;;  %4292 = vmatmul.bf16.vlgmr.msra.gmra.mxu2 %v16812_v39  ;;  %v11633_v6 = vor.u32 %v14603_v5, %v11632_v11  ;;  %v14600_v39 = vld [vmem:[%s19915_s12 + $0x50] sm:$0xf0]  ;;  %v11680_v5 = vld [vmem:[%s19915_s12 + $0xc0] sm:$0xf] }
 0xd61   : > { %5011 = vmatpush.bf16.msra.mxu3 %v11669_v61  ;;  %4305 = vmatmul.bf16.vlgmr.msrb.gmra.mxu1 %v16816_v44  ;;  %v11621_v44 = vor.u32 %v14600_v39, %v11620_v7  ;;  %v14654_v61 = vld [vmem:[%s19915_s12 + $0x200] sm:$0xf0]  ;;  %v11824_v7 = vld [vmem:[%s19915_s12 + $0x1e0] sm:$0xf] }
 0xd62   : > { %5028 = vmatpush.bf16.msrb.mxu0 %v11717_v26  ;;  %5037 = vmatpush.bf16.msrb.mxu2 %v11861_v31  ;;  %v11837_v62 = vor.u32 %v14654_v61, %v11836_v58  ;;  %v11613_v26 = vor.u32 %v14596_v40, %v11610_v33  ;;  %v14645_v31 = vld [vmem:[%s19915_s12 + $0x1b8] sm:$0xf0]  ;;  %v14666_v58 = vld [vmem:[%s19915_s12 + $0x260] sm:$0xf0]  ;;  %v14680_v40 = vld [vmem:[%s19915_s12 + $0x2d4] sm:$0xf] }
 0xd63   : > { %5050 = vmatpush.bf16.msra.mxu1 %v11957_v8  ;;  %v11801_v41 = vor.u32 %v14645_v31, %v11800_v27  ;;  %v11742_v8 = vld [vmem:[%s19915_s12 + $0x144] sm:$0xf0]  ;;  %v11885_v61 = vor.u32 %v14666_v58, %v11884_v57  ;;  %v11946_v33 = vld [vmem:[%s19915_s12 + $0x2dc] sm:$0xf0]  ;;  %v14617_v31 = vld [vmem:[%s19915_s12 + $0xdc] sm:$0xf] }
 0xd64   : > { %v11745_v43 = vor.u32 %v14629_v42, %v11742_v8  ;;  %v11694_v42 = vld [vmem:[%s19915_s12 + $0xe4] sm:$0xf0]  ;;  %v14653_v8 = vld [vmem:[%s19915_s12 + $0x1fc] sm:$0xf]  ;;  %v14650_v57 = vld [vmem:[%s19915_s12 + $0x1e4] sm:$0xf] }
 0xd65   : > { %5012 = vmatpush.bf16.msra.mxu3 %v11657_v0  ;;  %v14678_v0 = vld [vmem:[%s19915_s12 + $0x2c0] sm:$0xf0] }
 0xd66   : > { %5029 = vmatpush.bf16.msrb.mxu0 %v11705_v52  ;;  %5038 = vmatpush.bf16.msrb.mxu2 %v11849_v46  ;;  %v11933_v2 = vor.u32 %v14678_v0, %v11932_v63  ;;  %v11788_v46 = vld [vmem:[%s19915_s12 + $0x198] sm:$0xf]  ;;  %v11586_v63 = vld [vmem:[%s19915_s12 + $0xc] sm:$0xf0] }
 0xd67   : > { %5051 = vmatpush.bf16.msra.mxu1 %v11945_v36  ;;  %v11789_v36 = vor.u32 %v14642_v47, %v11788_v46 }
 0xd69   : > { %5013 = vmatpush.bf16.msra.mxu3 %v11645_v4  ;;  %v11634_v4 = vld [vmem:[%s19915_s12 + $0x6c] sm:$0xf0] }
 0xd6a   : > { %5030 = vmatpush.bf16.msrb.mxu0 %v11693_v60  ;;  %5039 = vmatpush.bf16.msrb.mxu2 %v11837_v62  ;;  %v11637_v11 = vor.u32 %v14602_v3, %v11634_v4  ;;  %v14590_v62 = vld [vmem:[%s19915_s12 + $0x4] sm:$0xf]  ;;  %v14639_v3 = vld [vmem:[%s19915_s12 + $0x188] sm:$0xf0] }
 0xd6b   : > { %5052 = vmatpush.bf16.msra.mxu1 %v11933_v2  ;;  %v11589_v0 = vor.u32 %v14590_v62, %v11586_v63  ;;  %v11776_v2 = vld [vmem:[%s19915_s12 + $0x180] sm:$0xf]  ;;  %v14674_v63 = vld [vmem:[%s19915_s12 + $0x2a4] sm:$0xf] }
 0xd6c   : > { %v11777_v4 = vor.u32 %v14639_v3, %v11776_v2 }
 0xd6d   : > { %5014 = vmatpush.bf16.msra.mxu3 %v11633_v6  ;;  %v14615_v6 = vld [vmem:[%s19915_s12 + $0xc8] sm:$0xf0] }
 0xd6e   : > { %v11681_v39 = vor.u32 %v14615_v6, %v11680_v5  ;;  %v11718_v5 = vld [vmem:[%s19915_s12 + $0x114] sm:$0xf0] }
 0xd6f   : > { %5053 = vmatpush.bf16.msra.mxu1 %v11921_v18 }
 0xd70   : > { %5031 = vmatpush.bf16.msrb.mxu0 %v11681_v39  ;;  %v14659_v39 = vld [vmem:[%s19915_s12 + $0x22c] sm:$0xf] }
 0xd71   : > { %5015 = vmatpush.bf16.msra.mxu3 %v11621_v44  ;;  %v14651_v44 = vld [vmem:[%s19915_s12 + $0x1e8] sm:$0xf0] }
 0xd74   : > { %5076 = vmatpush.bf16.msra.mxu0 %v11769_v16 }
 0xd75   : > { %5016 = vmatpush.bf16.msra.mxu3 %v11609_v13  ;;  %v11825_v13 = vor.u32 %v14651_v44, %v11824_v7  ;;  %v11862_v44 = vld [vmem:[%s19915_s12 + $0x234] sm:$0xf0] }
 0xd76   : > { %v11865_v16 = vor.u32 %v14659_v39, %v11862_v44 }
 0xd77   : > { %5040 = vmatpush.bf16.msrb.mxu2 %v11825_v13 }
 0xd79   : > { %5017 = vmatpush.bf16.msra.mxu3 %v11597_v21  ;;  %v11625_v21 = vor.u32 %v14599_v19, %v11622_v20  ;;  %v11873_v19 = vor.u32 %v14663_v17, %v11872_v9  ;;  %v11958_v20 = vld [vmem:[%s19915_s12 + $0x2f4] sm:$0xf0] }
 0xd7a   : > { %v11961_v25 = vor.u32 %v14683_v28, %v11958_v20  ;;  %v11910_v9 = vld [vmem:[%s19915_s12 + $0x294] sm:$0xf0]  ;;  %v14644_v28 = vld [vmem:[%s19915_s12 + $0x1b4] sm:$0xf] }
 0xd7b   : > { %5041 = vmatpush.bf16.msrb.mxu2 %v11813_v29  ;;  %v14620_v29 = vld [vmem:[%s19915_s12 + $0xf4] sm:$0xf] }
 0xd7d   : > { %5018 = vmatpush.bf16.msra.mxu3 %v11585_v35  ;;  %v11754_v35 = vld [vmem:[%s19915_s12 + $0x15c] sm:$0xf0] }
 0xd7e   : > { %v11757_v32 = vor.u32 %v14632_v53, %v11754_v35  ;;  %v11706_v53 = vld [vmem:[%s19915_s12 + $0xfc] sm:$0xf0]  ;;  %v14656_v35 = vld [vmem:[%s19915_s12 + $0x214] sm:$0xf] }
 0xd7f   : > { %5042 = vmatpush.bf16.msrb.mxu2 %v11801_v41 }
 0xd80   : > { %5077 = vmatpush.bf16.msra.mxu0 %v11757_v32  ;;  %v11709_v32 = vor.u32 %v14620_v29, %v11706_v53 }
 0xd81   : > { %5063 = vmatpush.bf16.msrb.mxu3 %v11673_v49  ;;  %v14672_v49 = vld [vmem:[%s19915_s12 + $0x290] sm:$0xf0] }
 0xd82   : > { %v11909_v34 = vor.u32 %v14672_v49, %v11908_v10  ;;  %v11850_v10 = vld [vmem:[%s19915_s12 + $0x21c] sm:$0xf0] }
 0xd83   : > { %5043 = vmatpush.bf16.msrb.mxu2 %v11789_v36 }
 0xd84   : > { %5054 = vmatpush.bf16.msra.mxu1 %v11909_v34  ;;  %5078 = vmatpush.bf16.msra.mxu0 %v11745_v43  ;;  %v11853_v34 = vor.u32 %v14656_v35, %v11850_v10  ;;  %v11838_v43 = vld [vmem:[%s19915_s12 + $0x204] sm:$0xf0]  ;;  %v14641_v35 = vld [vmem:[%s19915_s12 + $0x19c] sm:$0xf] }
 0xd85   : > { %5064 = vmatpush.bf16.msrb.mxu3 %v11661_v59  ;;  %v14669_v59 = vld [vmem:[%s19915_s12 + $0x278] sm:$0xf0]  ;;  %v11841_v14 = vor.u32 %v14653_v8, %v11838_v43 }
 0xd86   : > { %v11897_v45 = vor.u32 %v14669_v59, %v11896_v37 }
 0xd87   : > { %5044 = vmatpush.bf16.msrb.mxu2 %v11777_v4 }
 0xd88   : > { %5055 = vmatpush.bf16.msra.mxu1 %v11897_v45  ;;  %5079 = vmatpush.bf16.msra.mxu0 %v11733_v56  ;;  %v11697_v45 = vor.u32 %v14617_v31, %v11694_v42  ;;  %v11682_v56 = vld [vmem:[%s19915_s12 + $0xcc] sm:$0xf0]  ;;  %v14665_v42 = vld [vmem:[%s19915_s12 + $0x25c] sm:$0xf] }
 0xd89   : > { %5065 = vmatpush.bf16.msrb.mxu3 %v11649_v55  ;;  %v17206_v55 = vld [vmem:[%s19914_s11] sm:$0xf]  ;;  %v11685_v58 = vor.u32 %v14614_v15, %v11682_v56  ;;  %v14610_v15 = vld [vmem:[%s19915_s12 + $0xa0] sm:$0xf0] }
 0xd8a   : > { %v3814_v60 = vperm.slane %v17206_v55, 0 }
 0xd8b   : > { %5089 = vmatpush.bf16.msra.mxu2 %v11865_v16 }
 0xd8c   : > { %5056 = vmatpush.bf16.msra.mxu1 %v11885_v61 }
 0xd8d   : > { %5066 = vmatpush.bf16.msrb.mxu3 %v11637_v11  ;;  %v14623_v11 = vld [vmem:[%s19915_s12 + $0x10c] sm:$0xf] }
 0xd8e   : > { %v11721_v7 = vor.u32 %v14623_v11, %v11718_v5  ;;  %v14647_v11 = vld [vmem:[%s19915_s12 + $0x1cc] sm:$0xf]  ;;  %v11814_v5 = vld [vmem:[%s19915_s12 + $0x1d4] sm:$0xf0] }
 0xd8f   : > { %5090 = vmatpush.bf16.msra.mxu2 %v11853_v34 }
 0xd90   : > { %5080 = vmatpush.bf16.msra.mxu0 %v11721_v7  ;;  %5057 = vmatpush.bf16.msra.mxu1 %v11873_v19  ;;  %v11817_v7 = vor.u32 %v14647_v11, %v11814_v5 }
 0xd91   : > { %5067 = vmatpush.bf16.msrb.mxu3 %v11625_v21 }
 0xd93   : > { %5091 = vmatpush.bf16.msra.mxu2 %v11841_v14  ;;  %v14638_v14 = vld [vmem:[%s19915_s12 + $0x184] sm:$0xf] }
 0xd94   : > { %5102 = vmatpush.bf16.msrb.mxu1 %v11961_v25  ;;  %5081 = vmatpush.bf16.msra.mxu0 %v11709_v32  ;;  %v11790_v32 = vld [vmem:[%s19915_s12 + $0x1a4] sm:$0xf0] }
 0xd95   : > { %5068 = vmatpush.bf16.msrb.mxu3 %v11613_v26  ;;  %v11949_v26 = vor.u32 %v14680_v40, %v11946_v33  ;;  %v11676_v33 = vld [vmem:[%s19915_s12 + $0xb0] sm:$0xf] }
 0xd98   : > { %5103 = vmatpush.bf16.msrb.mxu1 %v11949_v26  ;;  %5082 = vmatpush.bf16.msra.mxu0 %v11697_v45  ;;  %v14613_v26 = vld [vmem:[%s19915_s12 + $0xb8] sm:$0xf0] }
 0xd99   : > { %5069 = vmatpush.bf16.msrb.mxu3 %v11601_v51  ;;  %v3815_v51 = vperm.slane %v17206_v55, 1  ;;  %v11677_v45 = vor.u32 %v14613_v26, %v11676_v33  ;;  %v11760_v33 = vld [vmem:[%s19915_s12 + $0x158] sm:$0xf]  ;;  %v14634_v26 = vld [vmem:[%s19915_s12 + $0x160] sm:$0xf0] }
 0xd9c   : > { %5083 = vmatpush.bf16.msra.mxu0 %v11685_v58  ;;  %v14662_v58 = vld [vmem:[%s19915_s12 + $0x244] sm:$0xf] }
 0xd9d   : > { %5070 = vmatpush.bf16.msrb.mxu3 %v11589_v0  ;;  %v11922_v0 = vld [vmem:[%s19915_s12 + $0x2ac] sm:$0xf0] }
 0xd9e   : > { %v11925_v2 = vor.u32 %v14674_v63, %v11922_v0 }
 0xdbc   : > { %v4189_v52 = vpop.f32.mrf.mxu0 }
 0xdbd   : > { %v17195_v48 = vpop.f32.mrf.mxu1 }
 0xdbe   : > { %v4216_v3 = vadd.f32 %v17195_v48, %v3815_v51  ;;  %v14671_v48 = vld [vmem:[%s19915_s12 + $0x28c] sm:$0xf] }
 0xdc2   : > { %v4176_v6 = vpop.f32.mrf.mxu2 }
 0xdc3   : > { %v4177_v12 = vadd.f32 %v4176_v6, %v3814_v60  ;;  %v4202_v13 = vpop.f32.mrf.mxu3  ;;  %v11826_v60 = vld [vmem:[%s19915_s12 + $0x1ec] sm:$0xf0] }
 0xdc4   : > { %v4191_v18 = vpop.f32.mrf.mxu0  ;;  %v11829_v62 = vor.u32 %v14650_v57, %v11826_v60  ;;  %v3817_v60 = vperm.slane %v17206_v55, 3 }
 0xdc5   : > { %v4190_v21 = vadd.f32 %v4189_v52, %v4177_v12  ;;  %v4217_v23 = vpop.f32.mrf.mxu1  ;;  %v11934_v52 = vld [vmem:[%s19915_s12 + $0x2c4] sm:$0xf0]  ;;  %v11802_v18 = vld [vmem:[%s19915_s12 + $0x1bc] sm:$0xf0] }
 0xdc6   : > { %v11937_v47 = vor.u32 %v14677_v50, %v11934_v52  ;;  %5092 = vmatpush.bf16.msra.mxu2 %v11829_v62  ;;  %v11805_v19 = vor.u32 %v14644_v28, %v11802_v18  ;;  %v11898_v23 = vld [vmem:[%s19915_s12 + $0x27c] sm:$0xf0]  ;;  %v11778_v50 = vld [vmem:[%s19915_s12 + $0x18c] sm:$0xf0]  ;;  %v3816_v52 = vperm.slane %v17206_v55, 2 }
 0xdc7   : > { %v17263_v49 = vadd.f32 %v4202_v13, %v4190_v21  ;;  %v11913_v13 = vor.u32 %v14671_v48, %v11910_v9  ;;  %v14668_v21 = vld [vmem:[%s19915_s12 + $0x274] sm:$0xf]  ;;  %v11781_v56 = vor.u32 %v14638_v14, %v11778_v50  ;;  %v11640_v48 = vld [vmem:[%s19915_s12 + $0x68] sm:$0xf]  ;;  %v11604_v50 = vld [vmem:[%s19915_s12 + $0x20] sm:$0xf] }
 0xdc8   : > { %5104 = vmatpush.bf16.msrb.mxu1 %v11937_v47  ;;  %v11901_v53 = vor.u32 %v14668_v21, %v11898_v23  ;;  %v14604_v9 = vld [vmem:[%s19915_s12 + $0x70] sm:$0xf0] }
 0xdc9   : > { %v4327_v27 = vmul.f32 0.044715, %v17263_v49  ;;  %v4323_v10 = vmul.f32 0.5, %v17263_v49 }
 0xdca   : > { %v4178_v41 = vpop.f32.mrf.mxu2  ;;  %5093 = vmatpush.bf16.msra.mxu2 %v11817_v7 }
 0xdcb   : > { %v4331_v37 = vmul.f32 %v4327_v27, %v17263_v49  ;;  %v4204_v59 = vpop.f32.mrf.mxu3  ;;  %v11793_v27 = vor.u32 %v14641_v35, %v11790_v32 }
 0xdcc   : > { %v17292_v46 = vpop.f32.mrf.mxu0  ;;  %5105 = vmatpush.bf16.msrb.mxu1 %v11925_v2  ;;  %v11652_v2 = vld [vmem:[%s19915_s12 + $0x80] sm:$0xf] }
 0xdcd   : > { %v4335_v36 = vmul.f32 %v4331_v37, %v17263_v49  ;;  %v17295_v54 = vpop.f32.mrf.mxu1  ;;  %v4255_v0 = vadd.f32 %v17292_v46, %v3816_v52  ;;  %v14595_v52 = vld [vmem:[%s19915_s12 + $0x28] sm:$0xf0] }
 0xdce   : > { %5094 = vmatpush.bf16.msra.mxu2 %v11805_v19  ;;  %v14637_v19 = vld [vmem:[%s19915_s12 + $0x178] sm:$0xf0] }
 0xdcf   : > { %v4339_v61 = vadd.f32 %v4335_v36, %v17263_v49  ;;  %v11886_v49 = vld [vmem:[%s19915_s12 + $0x264] sm:$0xf0]  ;;  %v11664_v36 = vld [vmem:[%s19915_s12 + $0x98] sm:$0xf] }
 0xdd0   : > { %5106 = vmatpush.bf16.msrb.mxu1 %v11913_v13  ;;  %v11889_v37 = vor.u32 %v14665_v42, %v11886_v49  ;;  %v11665_v62 = vor.u32 %v14610_v15, %v11664_v36  ;;  %v11772_v13 = vld [vmem:[%s19915_s12 + $0x170] sm:$0xf]  ;;  %v11616_v42 = vld [vmem:[%s19915_s12 + $0x38] sm:$0xf]  ;;  %v14598_v49 = vld [vmem:[%s19915_s12 + $0x40] sm:$0xf0] }
 0xdd1   : > { %v4343_v4 = vmul.f32 0.7978846, %v4339_v61  ;;  %v11874_v61 = vld [vmem:[%s19915_s12 + $0x24c] sm:$0xf0]  ;;  %v11773_v32 = vor.u32 %v14637_v19, %v11772_v13  ;;  %v11617_v14 = vor.u32 %v14598_v49, %v11616_v42  ;;  %v11736_v15 = vld [vmem:[%s19915_s12 + $0x128] sm:$0xf] }
 0xdd2   : > { %v4228_v6 = vpop.f32.mrf.mxu2  ;;  %5095 = vmatpush.bf16.msra.mxu2 %v11793_v27  ;;  %v11877_v63 = vor.u32 %v14662_v58, %v11874_v61  ;;  %v11592_v58 = vld [vmem:[%s19915_s12 + $0x8] sm:$0xf]  ;;  %v14622_v13 = vld [vmem:[%s19915_s12 + $0x100] sm:$0xf0]  ;;  %v14652_v42 = vld [vmem:[%s19915_s12 + $0x1f0] sm:$0xf0] }
 0xdd3   : > { %15143 = vtanh.f32 %v4343_v4  ;;  %v4229_v39 = vadd.f32 %v4228_v6, %v4216_v3  ;;  %v4241_v44 = vpop.f32.mrf.mxu3  ;;  %v14607_v3 = vld [vmem:[%s19915_s12 + $0x88] sm:$0xf0] }
 0xdd4   : > { %v4256_v12 = vpop.f32.mrf.mxu0  ;;  %5107 = vmatpush.bf16.msrb.mxu1 %v11901_v53  ;;  %v11653_v7 = vor.u32 %v14607_v3, %v11652_v2 }
 0xdd5   : > { %v17329_v16 = vadd.f32 %v4241_v44, %v4229_v39  ;;  %v4282_v17 = vpop.f32.mrf.mxu1 }
 0xdd6   : > { %5096 = vmatpush.bf16.msra.mxu2 %v11781_v56  ;;  %v14628_v56 = vld [vmem:[%s19915_s12 + $0x130] sm:$0xf0] }
 0xdd7   : > { %v4328_v20 = vmul.f32 0.044715, %v17329_v16  ;;  %v4324_v17 = vmul.f32 0.5, %v17329_v16  ;;  %v11737_v61 = vor.u32 %v14628_v56, %v11736_v15  ;;  %v11808_v15 = vld [vmem:[%s19915_s12 + $0x1b8] sm:$0xf] }
 0xdd8   : > { %5108 = vmatpush.bf16.msrb.mxu1 %v11889_v37  ;;  %v14646_v56 = vld [vmem:[%s19915_s12 + $0x1c0] sm:$0xf0] }
 0xdd9   : > { %v15144_v25 = vpop.eup %15143  ;;  %v4332_v29 = vmul.f32 %v4328_v20, %v17329_v16  ;;  %v11641_v20 = vor.u32 %v14604_v9, %v11640_v48  ;;  %v11964_v48 = vld [vmem:[%s19915_s12 + $0x2f0] sm:$0xf] }
 0xdda   : > { %v4230_v34 = vpop.f32.mrf.mxu2  ;;  %v4351_v40 = vadd.f32 1.0, %v15144_v25 }
 0xddb   : > { %v4336_v31 = vmul.f32 %v4332_v29, %v17329_v16  ;;  %v4243_v41 = vpop.f32.mrf.mxu3  ;;  %v11628_v29 = vld [vmem:[%s19915_s12 + $0x50] sm:$0xf] }
 0xddc   : > { %v4319_v8 = vpop.f32.mrf.mxu0  ;;  %v4355_v43 = vmul.f32 %v4351_v40, %v4323_v10  ;;  %5109 = vmatpush.bf16.msrb.mxu1 %v11877_v63  ;;  %v11724_v63 = vld [vmem:[%s19915_s12 + $0x110] sm:$0xf] }
 0xddd   : > { %v4340_v59 = vadd.f32 %v4336_v31, %v17329_v16  ;;  %v14601_v16 = vld [vmem:[%s19915_s12 + $0x58] sm:$0xf0] }
 0xdde   : > { %v4306_v51 = vpop.f32.mrf.mxu1  ;;  %v17373_v47 = vpack.c.bf16 %v4355_v43, %v4355_v43  ;;  %v11629_v27 = vor.u32 %v14601_v16, %v11628_v29  ;;  %v11700_v16 = vld [vmem:[%s19915_s12 + $0xe0] sm:$0xf] }
 0xddf   : > { %v4344_v57 = vmul.f32 0.7978846, %v4340_v59  ;;  %v11748_v59 = vld [vmem:[%s19915_s12 + $0x140] sm:$0xf] }
 0xde0   : > { %5019 = vmatmul.bf16.vlgmr.msra.gmra.mxu3 %v17373_v47 }
 0xde1   : > { %15145 = vtanh.f32 %v4344_v57  ;;  %5115 = vmatpush.bf16.msra.mxu3 %v11677_v45  ;;  %v14631_v45 = vld [vmem:[%s19915_s12 + $0x148] sm:$0xf0]  ;;  %v11605_v57 = vor.u32 %v14595_v52, %v11604_v50  ;;  %v11916_v52 = vld [vmem:[%s19915_s12 + $0x290] sm:$0xf] }
 0xde2   : > { %v11749_v36 = vor.u32 %v14631_v45, %v11748_v59  ;;  %v11820_v45 = vld [vmem:[%s19915_s12 + $0x1d0] sm:$0xf] }
 0xde3   : > { %v4267_v55 = vpop.f32.mrf.mxu3  ;;  %v4293_v4 = vpop.f32.mrf.mxu2 }
 0xde4   : > { %v4268_v11 = vadd.f32 %v4267_v55, %v4255_v0  ;;  %v4294_v5 = vadd.f32 %v4293_v4, %v3817_v60  ;;  %v4321_v6 = vpop.f32.mrf.mxu0  ;;  %v14592_v60 = vld [vmem:[%s19915_s12 + $0x10] sm:$0xf0]  ;;  %v14625_v0 = vld [vmem:[%s19915_s12 + $0x118] sm:$0xf0]  ;;  %v11868_v4 = vld [vmem:[%s19915_s12 + $0x230] sm:$0xf] }
 0xde5   : > { %5116 = vmatpush.bf16.msra.mxu3 %v11665_v62  ;;  %v11593_v2 = vor.u32 %v14592_v60, %v11592_v58  ;;  %v11904_v58 = vld [vmem:[%s19915_s12 + $0x278] sm:$0xf]  ;;  %v14670_v60 = vld [vmem:[%s19915_s12 + $0x280] sm:$0xf0] }
 0xde6   : > { %v17397_v39 = vadd.f32 %v17295_v54, %v4268_v11  ;;  %v4307_v46 = vadd.f32 %v4306_v51, %v4294_v5  ;;  %v4308_v44 = vpop.f32.mrf.mxu1  ;;  %v14661_v11 = vld [vmem:[%s19915_s12 + $0x238] sm:$0xf0] }
 0xde7   : > { %v15146_v12 = vpop.eup %15145  ;;  %v11869_v9 = vor.u32 %v14661_v11, %v11868_v4  ;;  %v14640_v4 = vld [vmem:[%s19915_s12 + $0x190] sm:$0xf0] }
 0xde8   : > { %v4329_v54 = vmul.f32 0.044715, %v17397_v39  ;;  %v4320_v28 = vadd.f32 %v4319_v8, %v4307_v46  ;;  %v4352_v18 = vadd.f32 1.0, %v15146_v12  ;;  %v11761_v8 = vor.u32 %v14634_v26, %v11760_v33  ;;  %v11712_v12 = vld [vmem:[%s19915_s12 + $0xf8] sm:$0xf] }
 0xde9   : > { %5117 = vmatpush.bf16.msra.mxu3 %v11653_v7  ;;  %v4325_v3 = vmul.f32 0.5, %v17397_v39  ;;  %v11725_v7 = vor.u32 %v14625_v0, %v11724_v63  ;;  %v14679_v33 = vld [vmem:[%s19915_s12 + $0x2c8] sm:$0xf0]  ;;  %v11905_v63 = vor.u32 %v14670_v60, %v11904_v58  ;;  %v11892_v0 = vld [vmem:[%s19915_s12 + $0x260] sm:$0xf] }
 0xdea   : > { %v4333_v21 = vmul.f32 %v4329_v54, %v17397_v39  ;;  %v4330_v23 = vmul.f32 0.044715, %v4320_v28  ;;  %v4356_v25 = vmul.f32 %v4352_v18, %v4324_v17  ;;  %v4326_v46 = vmul.f32 0.5, %v4320_v28  ;;  %v14658_v18 = vld [vmem:[%s19915_s12 + $0x220] sm:$0xf0] }
 0xdeb   : > { %v4269_v53 = vpop.f32.mrf.mxu3  ;;  %v4295_v35 = vpop.f32.mrf.mxu2 }
 0xdec   : > { %v4337_v10 = vmul.f32 %v4333_v21, %v17397_v39  ;;  %v4334_v34 = vmul.f32 %v4330_v23, %v4320_v28  ;;  %v17421_v40 = vpack.c.bf16 %v4356_v25, %v4356_v25  ;;  %v11713_v21 = vor.u32 %v14622_v13, %v11712_v12  ;;  %v11952_v23 = vld [vmem:[%s19915_s12 + $0x2d8] sm:$0xf]  ;;  %v14682_v25 = vld [vmem:[%s19915_s12 + $0x2e0] sm:$0xf0]  ;;  %v14619_v53 = vld [vmem:[%s19915_s12 + $0xe8] sm:$0xf0] }
 0xded   : > { %5118 = vmatpush.bf16.msra.mxu3 %v11641_v20  ;;  %v11844_v35 = vld [vmem:[%s19915_s12 + $0x200] sm:$0xf] }
 0xdee   : > { %v4341_v31 = vadd.f32 %v4337_v10, %v17397_v39  ;;  %v4338_v41 = vmul.f32 %v4334_v34, %v4320_v28  ;;  %5032 = vmatmul.bf16.vlgmr.msrb.gmra.mxu0 %v17421_v40  ;;  %v14685_v39 = vld [vmem:[%s19915_s12 + $0x2f8] sm:$0xf0]  ;;  %v11701_v10 = vor.u32 %v14619_v53, %v11700_v16  ;;  %v11940_v34 = vld [vmem:[%s19915_s12 + $0x2c0] sm:$0xf] }
 0xdef   : > { %5128 = vmatpush.bf16.msrb.mxu0 %v11773_v32  ;;  %v11965_v19 = vor.u32 %v14685_v39, %v11964_v48  ;;  %v14655_v32 = vld [vmem:[%s19915_s12 + $0x208] sm:$0xf0]  ;;  %v11941_v49 = vor.u32 %v14679_v33, %v11940_v34 }
 0xdf0   : > { %v4345_v43 = vmul.f32 0.7978846, %v4341_v31  ;;  %v4342_v37 = vadd.f32 %v4338_v41, %v4320_v28  ;;  %5071 = vmatmul.bf16.vlgmr.msrb.gmra.mxu3 %v17373_v47  ;;  %v11856_v28 = vld [vmem:[%s19915_s12 + $0x218] sm:$0xf]  ;;  %v11845_v26 = vor.u32 %v14655_v32, %v11844_v35  ;;  %v14616_v31 = vld [vmem:[%s19915_s12 + $0xd0] sm:$0xf0] }
 0xdf1   : > { %5119 = vmatpush.bf16.msra.mxu3 %v11629_v27  ;;  %v11857_v29 = vor.u32 %v14658_v18, %v11856_v28  ;;  %v11688_v27 = vld [vmem:[%s19915_s12 + $0xc8] sm:$0xf] }
 0xdf2   : > { %15147 = vtanh.f32 %v4345_v43  ;;  %v4346_v51 = vmul.f32 0.7978846, %v4342_v37  ;;  %v11832_v41 = vld [vmem:[%s19915_s12 + $0x1e8] sm:$0xf]  ;;  %v14676_v37 = vld [vmem:[%s19915_s12 + $0x2b0] sm:$0xf0] }
 0xdf3   : > { %5129 = vmatpush.bf16.msrb.mxu0 %v11761_v8  ;;  %v11689_v8 = vor.u32 %v14616_v31, %v11688_v27  ;;  %v11928_v43 = vld [vmem:[%s19915_s12 + $0x2a8] sm:$0xf]  ;;  %v11833_v59 = vor.u32 %v14652_v42, %v11832_v41 }
 0xdf4   : > { %15149 = vtanh.f32 %v4346_v51  ;;  %v11929_v50 = vor.u32 %v14676_v37, %v11928_v43  ;;  %v14673_v51 = vld [vmem:[%s19915_s12 + $0x298] sm:$0xf0] }
 0xdf5   : > { %5120 = vmatpush.bf16.msra.mxu3 %v11617_v14  ;;  %v14649_v14 = vld [vmem:[%s19915_s12 + $0x1d8] sm:$0xf0] }
 0xdf7   : > { %5130 = vmatpush.bf16.msrb.mxu0 %v11749_v36  ;;  %v11821_v36 = vor.u32 %v14649_v14, %v11820_v45 }
 0xdf8   : > { %v15148_v62 = vpop.eup %15147 }
 0xdf9   : > { %5121 = vmatpush.bf16.msra.mxu3 %v11605_v57  ;;  %v4353_v55 = vadd.f32 1.0, %v15148_v62  ;;  %v11917_v57 = vor.u32 %v14673_v51, %v11916_v52  ;;  %v11796_v62 = vld [vmem:[%s19915_s12 + $0x1a0] sm:$0xf] }
 0xdfa   : > { %v15150_v5 = vpop.eup %15149 }
 0xdfb   : > { %5131 = vmatpush.bf16.msrb.mxu0 %v11737_v61  ;;  %v4357_v6 = vmul.f32 %v4353_v55, %v4325_v3  ;;  %v4354_v44 = vadd.f32 1.0, %v15150_v5  ;;  %v11809_v61 = vor.u32 %v14646_v56, %v11808_v15  ;;  %v11784_v55 = vld [vmem:[%s19915_s12 + $0x188] sm:$0xf] }
 0xdfc   : > { %v11880_v5 = vld [vmem:[%s19915_s12 + $0x248] sm:$0xf] }
 0xdfd   : > { %5122 = vmatpush.bf16.msra.mxu3 %v11593_v2  ;;  %v17487_v17 = vpack.c.bf16 %v4357_v6, %v4357_v6  ;;  %v4358_v54 = vmul.f32 %v4354_v44, %v4326_v46  ;;  %v14667_v2 = vld [vmem:[%s19915_s12 + $0x268] sm:$0xf0]  ;;  %v14664_v6 = vld [vmem:[%s19915_s12 + $0x250] sm:$0xf0] }
 0xdfe   : > { %5084 = vmatmul.bf16.vlgmr.msra.gmra.mxu0 %v17421_v40  ;;  %v11893_v11 = vor.u32 %v14667_v2, %v11892_v0  ;;  %v11881_v46 = vor.u32 %v14664_v6, %v11880_v5  ;;  %v14697_v0 = vld [vmem:[%s19907_s4 + $0x688] sm:$0xff]  ;;  %v14696_v2 = vld [vmem:[%s19907_s4 + $0x680] sm:$0xff] }
 0xdff   : > { %5045 = vmatmul.bf16.vlgmr.msrb.gmra.mxu2 %v17487_v17  ;;  %5132 = vmatpush.bf16.msrb.mxu0 %v11725_v7  ;;  %v17497_v20 = vpack.c.bf16 %v4358_v54, %v4358_v54  ;;  %v11785_v7 = vor.u32 %v14640_v4, %v11784_v55  ;;  %v14695_v4 = vld [vmem:[%s19907_s4 + $0x678] sm:$0xff] }
 0xe00   : > { %5141 = vmatpush.bf16.msrb.mxu2 %v11869_v9  ;;  %5123 = vmatmul.bf16.vlgmr.msra.gmra.mxu3 %v17373_v47  ;;  %v11953_v47 = vor.u32 %v14682_v25, %v11952_v23 }
 0xe01   : > { %5058 = vmatmul.bf16.vlgmr.msra.gmra.mxu1 %v17497_v20 }
 0xe02   : > { %5154 = vmatpush.bf16.msra.mxu1 %v11965_v19 }
 0xe03   : > { %5133 = vmatpush.bf16.msrb.mxu0 %v11713_v21 }
 0xe04   : > { %5142 = vmatpush.bf16.msrb.mxu2 %v11857_v29 }
 0xe06   : > { %5155 = vmatpush.bf16.msra.mxu1 %v11953_v47 }
 0xe07   : > { %5134 = vmatpush.bf16.msrb.mxu0 %v11701_v10 }
 0xe08   : > { %5143 = vmatpush.bf16.msrb.mxu2 %v11845_v26 }
 0xe0a   : > { %5156 = vmatpush.bf16.msra.mxu1 %v11941_v49 }
 0xe0b   : > { %5135 = vmatpush.bf16.msrb.mxu0 %v11689_v8 }
 0xe0c   : > { %5144 = vmatpush.bf16.msrb.mxu2 %v11833_v59 }
 0xe0e   : > { %5157 = vmatpush.bf16.msra.mxu1 %v11929_v50  ;;  %5136 = vmatmul.bf16.vlgmr.msrb.gmra.mxu0 %v17421_v40  ;;  %v14643_v40 = vld [vmem:[%s19915_s12 + $0x1a8] sm:$0xf0] }
 0xe0f   : > { %5097 = vmatmul.bf16.vlgmr.msra.gmra.mxu2 %v17487_v17  ;;  %v11797_v3 = vor.u32 %v14643_v40, %v11796_v62  ;;  %v14701_v62 = vld [vmem:[%s19907_s4 + $0x6a8] sm:$0xff]  ;;  %v14699_v40 = vld [vmem:[%s19907_s4 + $0x698] sm:$0xff] }
 0xe10   : > { %5145 = vmatpush.bf16.msrb.mxu2 %v11821_v36  ;;  %5384 = vmatpush.bf16.msra.mxu0 %v14701_v62 }
 0xe11   : > { %5110 = vmatmul.bf16.vlgmr.msrb.gmra.mxu1 %v17497_v20 }
 0xe12   : > { %5158 = vmatpush.bf16.msra.mxu1 %v11917_v57 }
 0xe14   : > { %5146 = vmatpush.bf16.msrb.mxu2 %v11809_v61 }
 0xe16   : > { %5159 = vmatpush.bf16.msra.mxu1 %v11905_v63  ;;  %v14698_v63 = vld [vmem:[%s19907_s4 + $0x690] sm:$0xff] }
 0xe18   : > { %5147 = vmatpush.bf16.msrb.mxu2 %v11797_v3 }
 0xe1a   : > { %5160 = vmatpush.bf16.msra.mxu1 %v11893_v11 }
 0xe1c   : > { %5148 = vmatpush.bf16.msrb.mxu2 %v11785_v7 }
 0xe1e   : > { %5161 = vmatpush.bf16.msra.mxu1 %v11881_v46 }
 0xe1f   : > { %5149 = vmatmul.bf16.vlgmr.msrb.gmra.mxu2 %v17487_v17  ;;  %v4491_v17 = vld [vmem:[%s19916_s13] sm:$0x7] }
 0xe20   : > { %v4494_v32 = vperm.slane %v4491_v17, 1  ;;  %v4493_v47 = vperm.slane %v4491_v17, 0  ;;  %v4495_v31 = vperm.slane %v4491_v17, 2  ;;  %v14722_v17 = vld [vmem:[%s19907_s4 + $0xa70] sm:$0xff] }
 0xe21   : > { %5162 = vmatmul.bf16.vlgmr.msra.gmra.mxu1 %v17497_v20 }
 0xe63   : > { %v5020_v44 = vpop.f32.mrf.mxu3 }
 0xe64   : > { %v5021_v33 = vadd.f32 %v5020_v44, %v4493_v47  ;;  %v14705_v47 = vld [vmem:[%s19907_s4 + $0x858] sm:$0xff] }
 0xe6b   : > { %v5022_v48 = vpop.f32.mrf.mxu3  ;;  %v5033_v39 = vpop.f32.mrf.mxu0 }
 0xe6c   : > { %v5034_v41 = vadd.f32 %v5033_v39, %v5021_v33  ;;  %v14688_v33 = vld [vmem:[%s19907_s4 + $0x640] sm:$0xff] }
 0xe73   : > { %v5035_v9 = vpop.f32.mrf.mxu0  ;;  %v5072_v12 = vpop.f32.mrf.mxu3 }
 0xe74   : > { %v5073_v34 = vadd.f32 %v5072_v12, %v4494_v32  ;;  %v14694_v12 = vld [vmem:[%s19907_s4 + $0x670] sm:$0xff]  ;;  %v14689_v32 = vld [vmem:[%s19907_s4 + $0x648] sm:$0xff] }
 0xe7b   : > { %v5074_v13 = vpop.f32.mrf.mxu3  ;;  %v5085_v54 = vpop.f32.mrf.mxu0 }
 0xe7c   : > { %v5086_v26 = vadd.f32 %v5085_v54, %v5073_v34  ;;  %v14725_v13 = vld [vmem:[%s19907_s4 + $0xa88] sm:$0xff]  ;;  %v14692_v54 = vld [vmem:[%s19907_s4 + $0x660] sm:$0xff] }
 0xe7d   : > { %v14721_v34 = vld [vmem:[%s19907_s4 + $0xa68] sm:$0xff] }
 0xe7e   : > { %v5059_v28 = vpop.f32.mrf.mxu1 }
 0xe82   : > { %v5046_v18 = vpop.f32.mrf.mxu2 }
 0xe83   : > { %v5087_v19 = vpop.f32.mrf.mxu0  ;;  %v5124_v21 = vpop.f32.mrf.mxu3  ;;  %v5047_v49 = vadd.f32 %v5046_v18, %v5034_v41  ;;  %v14724_v18 = vld [vmem:[%s19907_s4 + $0xa80] sm:$0xff]  ;;  %v14687_v41 = vld [vmem:[%s19907_s4 + $0x638] sm:$0xff] }
 0xe84   : > { %v5125_v43 = vadd.f32 %v5124_v21, %v4495_v31  ;;  %v14691_v19 = vld [vmem:[%s19907_s4 + $0x658] sm:$0xff]  ;;  %v14707_v21 = vld [vmem:[%s19907_s4 + $0x868] sm:$0xff]  ;;  %v14720_v31 = vld [vmem:[%s19907_s4 + $0xa60] sm:$0xff] }
 0xe85   : > { %v5060_v45 = vadd.f32 %v5059_v28, %v5047_v49  ;;  %v14708_v28 = vld [vmem:[%s19907_s4 + $0x870] sm:$0xff]  ;;  %v14715_v49 = vld [vmem:[%s19907_s4 + $0x8a8] sm:$0xff] }
 0xe86   : > { %v5061_v23 = vpop.f32.mrf.mxu1 }
 0xe87   : > { %v5167_v36 = vadd.f32 %v5060_v45, %v16796_v38  ;;  %v14693_v38 = vld [vmem:[%s19907_s4 + $0x668] sm:$0xff]  ;;  %v14723_v23 = vld [vmem:[%s19907_s4 + $0xa78] sm:$0xff]  ;;  %v14714_v45 = vld [vmem:[%s19907_s4 + $0x8a0] sm:$0xff] }
 0xe88   : > { %5371 = vmatpush.bf16.msrb.mxu3 %v14693_v38 }
 0xe8a   : > { %v5048_v25 = vpop.f32.mrf.mxu2 }
 0xe8b   : > { %v5126_v29 = vpop.f32.mrf.mxu3  ;;  %v5137_v16 = vpop.f32.mrf.mxu0  ;;  %v11998_v25 = vld [vmem:[%s19907_s4 + $0x6b0] sm:$0xf] }
 0xe8c   : > { %v5138_v59 = vadd.f32 %v5137_v16, %v5125_v43  ;;  %5372 = vmatpush.bf16.msrb.mxu3 %v14692_v54  ;;  %v14690_v29 = vld [vmem:[%s19907_s4 + $0x650] sm:$0xff]  ;;  %v14706_v16 = vld [vmem:[%s19907_s4 + $0x860] sm:$0xff] }
 0xe8d   : > { %v12097_v43 = vld [vmem:[%s19907_s4 + $0x8c0] sm:$0xf] }
 0xe8e   : > { %v5111_v53 = vpop.f32.mrf.mxu1 }
 0xe90   : > { %5373 = vmatpush.bf16.msrb.mxu3 %v14691_v19 }
 0xe92   : > { %v5098_v35 = vpop.f32.mrf.mxu2 }
 0xe93   : > { %v5139_v20 = vpop.f32.mrf.mxu0  ;;  %v5099_v42 = vadd.f32 %v5098_v35, %v5086_v26  ;;  %v14704_v26 = vld [vmem:[%s19907_s4 + $0x850] sm:$0xff] }
 0xe94   : > { %5374 = vmatpush.bf16.msrb.mxu3 %v14690_v29 }
 0xe95   : > { %v5112_v37 = vadd.f32 %v5111_v53, %v5099_v42  ;;  %v5331_v53 = vunpack.c.l.b16 %v11998_v25  ;;  %v14703_v42 = vld [vmem:[%s19907_s4 + $0x848] sm:$0xff] }
 0xe96   : > { %v5113_v10 = vpop.f32.mrf.mxu1 }
 0xe97   : > { %v5168_v52 = vadd.f32 %v5112_v37, %v16798_v1  ;;  %v14700_v1 = vld [vmem:[%s19907_s4 + $0x6a0] sm:$0xff]  ;;  %v5348_v35 = vpack.c.b16 %v5331_v53, %v5331_v53  ;;  %v14717_v10 = vld [vmem:[%s19907_s4 + $0x8b8] sm:$0xff]  ;;  %v14686_v37 = vld [vmem:[%s19907_s4 + $0x630] sm:$0xff] }
 0xe98   : > { %5385 = vmatpush.bf16.msra.mxu0 %v14700_v1  ;;  %5375 = vmatpush.bf16.msrb.mxu3 %v14689_v32  ;;  %v14710_v1 = vld [vmem:[%s19907_s4 + $0x880] sm:$0xff]  ;;  %v14731_v32 = vld [vmem:[%s19907_s4 + $0xab8] sm:$0xff] }
 0xe99   : > { %v5172_v57 = vadd.f32 %v5168_v52, %v5167_v36  ;;  %v5369_v20 = vsel %vm797_vm2, %v5348_v35, 0  ;;  %v14753_v35 = vld [vmem:[%s19907_s4 + $0x6ec] sm:$0xff] }
 0xe9a   : > { %v5100_v27 = vpop.f32.mrf.mxu2  ;;  %5404 = vmatpush.bf16.msra.mxu2 %v5369_v20  ;;  %v14752_v20 = vld [vmem:[%s19907_s4 + $0x6e4] sm:$0xff] }
 0xe9b   : > { %v14716_v27 = vld [vmem:[%s19907_s4 + $0x8b0] sm:$0xff] }
 0xe9c   : > { %5386 = vmatpush.bf16.msra.mxu0 %v14699_v40  ;;  %5376 = vmatpush.bf16.msrb.mxu3 %v14688_v33  ;;  %v14729_v33 = vld [vmem:[%s19907_s4 + $0xaa8] sm:$0xff] }
 0xe9e   : > { %v5163_v8 = vpop.f32.mrf.mxu1  ;;  %5564 = vmatpush.bf16.msrb.mxu2 %v14717_v10  ;;  %v14730_v10 = vld [vmem:[%s19907_s4 + $0xab0] sm:$0xff] }
 0xea0   : > { %5387 = vmatpush.bf16.msra.mxu0 %v14698_v63  ;;  %5377 = vmatpush.bf16.msrb.mxu3 %v14687_v41  ;;  %v14728_v41 = vld [vmem:[%s19907_s4 + $0xaa0] sm:$0xff] }
 0xea2   : > { %v5150_v14 = vpop.f32.mrf.mxu2  ;;  %5565 = vmatpush.bf16.msrb.mxu2 %v14716_v27  ;;  %v12315_v27 = vld [vmem:[%s19907_s4 + $0x734] sm:$0xf] }
 0xea3   : > { %v5151_v50 = vadd.f32 %v5150_v14, %v5138_v59  ;;  %v14702_v59 = vld [vmem:[%s19907_s4 + $0x840] sm:$0xff]  ;;  %v5514_v14 = vunpack.c.l.b16 %v12097_v43  ;;  %v14727_v43 = vld [vmem:[%s19907_s4 + $0xa98] sm:$0xff] }
 0xea4   : > { %5388 = vmatpush.bf16.msra.mxu0 %v14697_v0  ;;  %5378 = vmatpush.bf16.msrb.mxu3 %v14686_v37  ;;  %v14747_v37 = vld [vmem:[%s19907_s4 + $0x6bc] sm:$0xff] }
 0xea5   : > { %v5164_v51 = vadd.f32 %v5163_v8, %v5151_v50  ;;  %v14719_v8 = vld [vmem:[%s19907_s4 + $0xa58] sm:$0xff]  ;;  %v5531_v50 = vpack.c.b16 %v5514_v14, %v5514_v14  ;;  %v12513_v14 = vld [vmem:[%s19907_s4 + $0xb54] sm:$0xf] }
 0xea6   : > { %v5165_v15 = vpop.f32.mrf.mxu1  ;;  %5566 = vmatpush.bf16.msrb.mxu2 %v14715_v49  ;;  %v5962_v49 = vunpack.c.l.b16 %v12315_v27 }
 0xea7   : > { %v5169_v56 = vadd.f32 %v5164_v51, %v16794_v30  ;;  %v14709_v30 = vld [vmem:[%s19907_s4 + $0x878] sm:$0xff]  ;;  %v5549_v51 = vsel %vm797_vm2, %v5531_v50, 0  ;;  %v6322_v50 = vunpack.c.l.b16 %v12513_v14 }
 0xea8   : > { %5551 = vmatpush.bf16.msrb.mxu1 %v14709_v30  ;;  %5389 = vmatpush.bf16.msra.mxu0 %v14696_v2 }
 0xea9   : > { %v5173_v58 = vsel %vm595_vm0, %v5169_v56, 0.0  ;;  %5584 = vmatpush.bf16.msra.mxu3 %v5549_v51  ;;  %v14746_v51 = vld [vmem:[%s19907_s4 + $0x6b4] sm:$0xff] }
 0xeaa   : > { %v5152_v60 = vpop.f32.mrf.mxu2  ;;  %v5174_v61 = vadd.f32 %v5173_v58, %v5172_v57  ;;  %5567 = vmatpush.bf16.msrb.mxu2 %v14714_v45  ;;  %v14712_v57 = vld [vmem:[%s19907_s4 + $0x890] sm:$0xff] }
 0xeab   : > { %v14711_v60 = vld [vmem:[%s19907_s4 + $0x888] sm:$0xff] }
 0xeac   : > { %5175 = vadd.xlane.f32.xlu0 %v5174_v61  ;;  %5390 = vmatpush.bf16.msra.mxu0 %v14695_v4  ;;  %v12196_v61 = vld [vmem:[%s19907_s4 + $0xad0] sm:$0xf]  ;;  %v5171_v4 = vld [vmem:[%s19918_s15] sm:$0x7] }
 0xead   : > { %5552 = vmatpush.bf16.msrb.mxu1 %v14708_v28  ;;  %v5694_v62 = vunpack.c.l.b16 %v12196_v61  ;;  %v14775_v61 = vld [vmem:[%s19907_s4 + $0x92c] sm:$0xff] }
 0xeaf   : > { %v5711_v38 = vpack.c.b16 %v5694_v62, %v5694_v62  ;;  %v14774_v62 = vld [vmem:[%s19907_s4 + $0x924] sm:$0xff] }
 0xeb0   : > { %5391 = vmatpush.bf16.msra.mxu0 %v14694_v12 }
 0xeb1   : > { %5553 = vmatpush.bf16.msrb.mxu1 %v14707_v21  ;;  %v5729_v63 = vsel %vm797_vm2, %v5711_v38, 0  ;;  %v14772_v38 = vld [vmem:[%s19907_s4 + $0x914] sm:$0xff] }
 0xeb4   : > { %5731 = vmatpush.bf16.msrb.mxu0 %v14725_v13  ;;  %v5217_v13 = vperm.slane %v5171_v4, 2 }
 0xeb5   : > { %5554 = vmatpush.bf16.msrb.mxu1 %v14706_v16 }
 0xeb8   : > { %5732 = vmatpush.bf16.msrb.mxu0 %v14724_v18 }
 0xeb9   : > { %5555 = vmatpush.bf16.msrb.mxu1 %v14705_v47  ;;  %v14751_v47 = vld [vmem:[%s19907_s4 + $0x6dc] sm:$0xff] }
 0xebc   : > { %5733 = vmatpush.bf16.msrb.mxu0 %v14723_v23 }
 0xebd   : > { %5556 = vmatpush.bf16.msrb.mxu1 %v14704_v26  ;;  %v14749_v26 = vld [vmem:[%s19907_s4 + $0x6cc] sm:$0xff] }
 0xec0   : > { %5734 = vmatpush.bf16.msrb.mxu0 %v14722_v17  ;;  %v14732_v17 = vld [vmem:[%s19907_s4 + $0xac0] sm:$0xff] }
 0xec1   : > { %5557 = vmatpush.bf16.msrb.mxu1 %v14703_v42  ;;  %v14748_v42 = vld [vmem:[%s19907_s4 + $0x6c4] sm:$0xff] }
 0xec4   : > { %5735 = vmatpush.bf16.msrb.mxu0 %v14721_v34  ;;  %v14750_v34 = vld [vmem:[%s19907_s4 + $0x6d4] sm:$0xff] }
 0xec5   : > { %5558 = vmatpush.bf16.msrb.mxu1 %v14702_v59  ;;  %v5979_v59 = vpack.c.b16 %v5962_v49, %v5962_v49 }
 0xec8   : > { %5736 = vmatpush.bf16.msrb.mxu0 %v14720_v31  ;;  %v12414_v31 = vld [vmem:[%s19907_s4 + $0x944] sm:$0xf] }
 0xec9   : > { %5764 = vmatpush.bf16.msra.mxu1 %v5729_v63 }
 0xecc   : > { %5737 = vmatpush.bf16.msrb.mxu0 %v14719_v8  ;;  %v6142_v8 = vunpack.c.l.b16 %v12414_v31  ;;  %v14759_v31 = vld [vmem:[%s19907_s4 + $0x71c] sm:$0xff] }
 0xece   : > { %v6159_v45 = vpack.c.b16 %v6142_v8, %v6142_v8  ;;  %v14758_v8 = vld [vmem:[%s19907_s4 + $0x714] sm:$0xff] }
 0xf1f   : > { %v5176_v3 = vpop.xlane.xlu0 %5175 }
 0xf20   : > { %v5177_v55 = vmul.f32 %v5176_v3, %v15341_v24  ;;  %v5170_v3 = vld [vmem:[%s19917_s14] sm:$0x7] }
 0xf22   : > { %v17631_v11 = vsub.f32 %v5167_v36, %v5177_v55  ;;  %v17633_v5 = vsub.f32 %v5168_v52, %v5177_v55  ;;  %v17635_v6 = vsub.f32 %v5169_v56, %v5177_v55  ;;  %v14718_v52 = vld [vmem:[%s19907_s4 + $0xa50] sm:$0xff]  ;;  %v14713_v36 = vld [vmem:[%s19907_s4 + $0x898] sm:$0xff] }
 0xf23   : > { %5738 = vmatpush.bf16.msrb.mxu0 %v14718_v52  ;;  %5568 = vmatpush.bf16.msrb.mxu2 %v14713_v36  ;;  %v14726_v52 = vld [vmem:[%s19907_s4 + $0xa90] sm:$0xff]  ;;  %v6339_v36 = vpack.c.b16 %v6322_v50, %v6322_v50 }
 0xf24   : > { %v5181_v7 = vmul.f32 %v17631_v11, %v17631_v11  ;;  %v5182_v46 = vmul.f32 %v17633_v5, %v17633_v5  ;;  %v5183_v44 = vmul.f32 %v17635_v6, %v17635_v6 }
 0xf26   : > { %v5184_v48 = vadd.f32 %v5182_v46, %v5181_v7  ;;  %v5185_v39 = vsel %vm595_vm0, %v5183_v44, 0.0  ;;  %v5205_v46 = vperm.slane %v5170_v3, 0  ;;  %v5206_v44 = vperm.slane %v5170_v3, 1 }
 0xf27   : > { %5569 = vmatpush.bf16.msrb.mxu2 %v14712_v57  ;;  %v14777_v57 = vld [vmem:[%s19907_s4 + $0x93c] sm:$0xff] }
 0xf28   : > { %v5186_v9 = vadd.f32 %v5185_v39, %v5184_v48  ;;  %v5207_v48 = vperm.slane %v5170_v3, 2  ;;  %v5215_v39 = vperm.slane %v5171_v4, 0 }
 0xf2a   : > { %5187 = vadd.xlane.f32.xlu1 %v5186_v9  ;;  %v5216_v9 = vperm.slane %v5171_v4, 1 }
 0xf2b   : > { %5570 = vmatpush.bf16.msrb.mxu2 %v14711_v60  ;;  %v14776_v60 = vld [vmem:[%s19907_s4 + $0x934] sm:$0xff] }
 0xf2f   : > { %5571 = vmatpush.bf16.msrb.mxu2 %v14710_v1  ;;  %v14773_v1 = vld [vmem:[%s19907_s4 + $0x91c] sm:$0xff] }
 0xf9d   : > { %v5188_v15 = vpop.xlane.xlu1 %5187 }
 0xf9e   : > { %v5189_v56 = vmul.f32 %v5188_v15, %v15341_v24  ;;  %v5997_v15 = vsel %vm797_vm2, %v5979_v59, 0 }
 0xfa0   : > { %v5190_v58 = vadd.f32 1e-12, %v5189_v56  ;;  %v6177_v56 = vsel %vm797_vm2, %v6159_v45, 0  ;;  %v14757_v45 = vld [vmem:[%s19907_s4 + $0x70c] sm:$0xff] }
 0xfa2   : > { %15151 = vrsqrt.f32 %v5190_v58  ;;  %vm5197_vm5 = vweird.f32 %v5190_v58 }
 0xfa8   : > { %v15152_v30 = vpop.eup %15151 }
 0xfa9   : > { %v5192_v40 = vmul.f32 %v15152_v30, %v5190_v58  ;;  %vm5198_vm4 = vweird.f32 %v15152_v30  ;;  %v6357_v58 = vsel %vm797_vm2, %v6339_v36, 0  ;;  %v14755_v36 = vld [vmem:[%s19907_s4 + $0x6fc] sm:$0xff] }
 0xfaa   : > { %vm5199_vm7 = vmor %vm5197_vm5, %vm5198_vm4 }
 0xfab   : > { %v5193_v0 = vmul.f32 %v15152_v30, %v5192_v40  ;;  %v14770_v40 = vld [vmem:[%s19907_s4 + $0x904] sm:$0xff] }
 0xfad   : > { %v5194_v2 = vmul.f32 0.5, %v5193_v0 }
 0xfaf   : > { %v5195_v55 = vsub.f32 1.5, %v5194_v2 }
 0xfb1   : > { %v5196_v7 = vmul.f32 %v15152_v30, %v5195_v55 }
 0xfb3   : > { %v5200_v12 = vsel %vm5199_vm7, %v15152_v30, %v5196_v7  ;;  %v14771_v30 = vld [vmem:[%s19907_s4 + $0x90c] sm:$0xff] }
 0xfb4   : > { %v5201_v54 = vmul.f32 %v5200_v12, %v17631_v11  ;;  %v5202_v28 = vmul.f32 %v5200_v12, %v17633_v5  ;;  %v5203_v18 = vmul.f32 %v5200_v12, %v17635_v6  ;;  %v14733_v6 = vld [vmem:[%s19907_s4 + $0xac8] sm:$0xff] }
 0xfb6   : > { %v5211_v19 = vmul.f32 %v5205_v46, %v5201_v54  ;;  %v5212_v21 = vmul.f32 %v5206_v44, %v5202_v28  ;;  %v5213_v23 = vmul.f32 %v5207_v48, %v5203_v18 }
 0xfb8   : > { %v17759_v25 = vadd.f32 %v5215_v39, %v5211_v19  ;;  %v17761_v29 = vadd.f32 %v5216_v9, %v5212_v21  ;;  %v17763_v16 = vadd.f32 %v5217_v13, %v5213_v23  ;;  %v15109_v39 = vld [vmem:[%s19908_s5 + $0x10] ss:$0 sm:$0xff]  ;;  %v15110_v9 = vld [vmem:[%s19908_s5 + $0xc] ss:$0 sm:$0xff] }
 0xfba   : > { %v17767_v53 = vpack.c.bf16 %v17759_v25, %v17759_v25  ;;  %v17771_v11 = vpack.c.bf16 %v17761_v29, %v17761_v29  ;;  %v17775_v5 = vpack.c.bf16 %v17763_v16, %v17763_v16 }
 0xfbc   : > { %5379 = vmatmul.bf16.vlgmr.msrb.gmra.mxu3 %v17767_v53  ;;  %5392 = vmatmul.bf16.vlgmr.msra.gmra.mxu0 %v17771_v11 }
 0xfbd   : > { %12064 = vmatmul.msk.bf16.vlgmr.msra.gmra.mxu2 %vm595_vm0, %v17775_v5  ;;  %5559 = vmatmul.bf16.vlgmr.msrb.gmra.mxu1 %v17767_v53 }
 0xfbe   : > { %5744 = vmatpush.bf16.msrb.mxu3 %v14733_v6  ;;  %5999 = vmatpush.bf16.msra.mxu0 %v14753_v35 }
 0xfc2   : > { %5745 = vmatpush.bf16.msrb.mxu3 %v14732_v17  ;;  %6000 = vmatpush.bf16.msra.mxu0 %v14752_v20  ;;  %v14761_v17 = vld [vmem:[%s19907_s4 + $0x72c] sm:$0xff] }
 0xfc6   : > { %5746 = vmatpush.bf16.msrb.mxu3 %v14731_v32  ;;  %6001 = vmatpush.bf16.msra.mxu0 %v14751_v47 }
 0xfca   : > { %5747 = vmatpush.bf16.msrb.mxu3 %v14730_v10  ;;  %6002 = vmatpush.bf16.msra.mxu0 %v14750_v34  ;;  %v14760_v34 = vld [vmem:[%s19907_s4 + $0x724] sm:$0xff] }
 0xfcc   : > { %12163 = vmatmul.msk.bf16.vlgmr.msra.gmra.mxu3 %vm595_vm0, %v17775_v5  ;;  %5739 = vmatmul.bf16.vlgmr.msrb.gmra.mxu0 %v17767_v53 }
 0xfcd   : > { %5572 = vmatmul.bf16.vlgmr.msrb.gmra.mxu2 %v17771_v11  ;;  %12262 = vmatmul.msk.bf16.vlgmr.msra.gmra.mxu1 %vm595_vm0, %v17775_v5 }
 0xfce   : > { %5748 = vmatpush.bf16.msrb.mxu3 %v14729_v33  ;;  %6003 = vmatpush.bf16.msra.mxu0 %v14749_v26  ;;  %v15111_v26 = vld [vmem:[%s19908_s5 + $0x14] ss:$0 sm:$0xff] }
 0xfd2   : > { %5749 = vmatpush.bf16.msrb.mxu3 %v14728_v41  ;;  %6004 = vmatpush.bf16.msra.mxu0 %v14748_v42 }
 0xfd6   : > { %5750 = vmatpush.bf16.msrb.mxu3 %v14727_v43  ;;  %6005 = vmatpush.bf16.msra.mxu0 %v14747_v37 }
 0xfda   : > { %5751 = vmatpush.bf16.msrb.mxu3 %v14726_v52  ;;  %6006 = vmatpush.bf16.msra.mxu0 %v14746_v51  ;;  %v14756_v52 = vld [vmem:[%s19907_s4 + $0x704] sm:$0xff] }
 0xfdd   : > { %5752 = vmatmul.bf16.vlgmr.msrb.gmra.mxu3 %v17771_v11  ;;  %6007 = vmatmul.bf16.vlgmr.msra.gmra.mxu0 %v17767_v53 }
 0xfde   : > { %6032 = vmatpush.bf16.msra.mxu3 %v5997_v15  ;;  %6212 = vmatpush.bf16.msrb.mxu0 %v6177_v56  ;;  %v14754_v56 = vld [vmem:[%s19907_s4 + $0x6f4] sm:$0xff] }
 0xfe2   : > { %6192 = vmatpush.bf16.msrb.mxu3 %v14777_v57  ;;  %6392 = vmatpush.bf16.msra.mxu0 %v6357_v58  ;;  %v14785_v58 = vld [vmem:[%s19907_s4 + $0xb0c] sm:$0xff] }
 0xfe6   : > { %6193 = vmatpush.bf16.msrb.mxu3 %v14776_v60  ;;  %v14784_v60 = vld [vmem:[%s19907_s4 + $0xb04] sm:$0xff] }
 0xfea   : > { %6194 = vmatpush.bf16.msrb.mxu3 %v14775_v61 }
 0xfed   : > { %12381 = vmatmul.msk.bf16.vlgmr.msra.gmra.mxu3 %vm595_vm0, %v17775_v5  ;;  %12480 = vmatmul.msk.bf16.vlgmr.msrb.gmra.mxu0 %vm595_vm0, %v17775_v5 }
 0xfee   : > { %6195 = vmatpush.bf16.msrb.mxu3 %v14774_v62 }
 0xff2   : > { %6196 = vmatpush.bf16.msrb.mxu3 %v14773_v1  ;;  %v14783_v1 = vld [vmem:[%s19907_s4 + $0xafc] sm:$0xff] }
 0xff6   : > { %6197 = vmatpush.bf16.msrb.mxu3 %v14772_v38  ;;  %v14782_v38 = vld [vmem:[%s19907_s4 + $0xaf4] sm:$0xff] }
 0xffa   : > { %6198 = vmatpush.bf16.msrb.mxu3 %v14771_v30 }
 0xffd   : > { %12579 = vmatmul.msk.bf16.vlgmr.msra.gmra.mxu0 %vm595_vm0, %v17775_v5 }
 0xffe   : > { %6199 = vmatpush.bf16.msrb.mxu3 %v14770_v40 }
0x1001   : > { %6200 = vmatmul.bf16.vlgmr.msrb.gmra.mxu3 %v17771_v11 }
0x1039   : > { %v5393_v63 = vpop.f32.mrf.mxu0 }
0x103a   : > { %v5560_v0 = vpop.f32.mrf.mxu1 }
0x103b   : > { %v5561_v12 = vadd.f32 %v15109_v39, %v5560_v0  ;;  %v14780_v0 = vld [vmem:[%s19907_s4 + $0xae4] sm:$0xff]  ;;  %v15112_v39 = vld [vmem:[%s19908_s5 + $0xd] ss:$0 sm:$0xff] }
0x103f   : > { %v5380_v2 = vpop.f32.mrf.mxu3 }
0x1040   : > { %v5406_v3 = vpop.f32.mrf.mxu2  ;;  %v5381_v28 = vadd.f32 %v15110_v9, %v5380_v2 }
0x1041   : > { %v5395_v55 = vpop.f32.mrf.mxu0 }
0x1042   : > { %v5562_v4 = vpop.f32.mrf.mxu1  ;;  %v5394_v6 = vadd.f32 %v5393_v63, %v5381_v28  ;;  %v14781_v63 = vld [vmem:[%s19907_s4 + $0xaec] sm:$0xff]  ;;  %v14778_v55 = vld [vmem:[%s19907_s4 + $0xad4] sm:$0xff] }
0x1044   : > { %v5407_v10 = vadd.f32 %v5406_v3, %v5394_v6  ;;  %v14779_v3 = vld [vmem:[%s19907_s4 + $0xadc] sm:$0xff] }
0x1046   : > { %v5770_v27 = vpack.c.bf16 %v5407_v10, %v5407_v10  ;;  %v14765_v10 = vld [vmem:[%s19907_s4 + $0x8dc] sm:$0xff] }
0x1047   : > { %v5382_v7 = vpop.f32.mrf.mxu3 }
0x1048   : > { %v5408_v46 = vpop.f32.mrf.mxu2 }
0x1049   : > { %v5740_v44 = vpop.f32.mrf.mxu0 }
0x104a   : > { %v5766_v48 = vpop.f32.mrf.mxu1  ;;  %v5741_v41 = vadd.f32 %v15111_v26, %v5740_v44  ;;  %v14762_v26 = vld [vmem:[%s19907_s4 + $0x8c4] sm:$0xff] }
0x104f   : > { %v5586_v13 = vpop.f32.mrf.mxu3 }
0x1050   : > { %v5573_v54 = vpop.f32.mrf.mxu2 }
0x1051   : > { %v5574_v18 = vadd.f32 %v5573_v54, %v5561_v12  ;;  %v5742_v19 = vpop.f32.mrf.mxu0 }
0x1052   : > { %v5768_v21 = vpop.f32.mrf.mxu1  ;;  %v14769_v19 = vld [vmem:[%s19907_s4 + $0x8fc] sm:$0xff] }
0x1053   : > { %v5587_v23 = vadd.f32 %v5586_v13, %v5574_v18  ;;  %v14768_v21 = vld [vmem:[%s19907_s4 + $0x8f4] sm:$0xff] }
0x1055   : > { %v5771_v35 = vpack.c.bf16 %v5587_v23, %v5587_v23 }
0x1057   : > { %v5776_v20 = vsel %vm1202_vm6, %v5771_v35, 0  ;;  %v5588_v32 = vpop.f32.mrf.mxu3 }
0x1058   : > { %v5575_v47 = vpop.f32.mrf.mxu2  ;;  %5785 = vmatpush.bf16.xpose.msra.mxu2 %v5776_v20  ;;  %v14767_v32 = vld [vmem:[%s19907_s4 + $0x8ec] sm:$0xff] }
0x1059   : > { %v14766_v47 = vld [vmem:[%s19907_s4 + $0x8e4] sm:$0xff] }
0x105a   : > { %v6008_v33 = vpop.f32.mrf.mxu0 }
0x105b   : > { %v6009_v9 = vadd.f32 %v15112_v39, %v6008_v33  ;;  %v14763_v33 = vld [vmem:[%s19907_s4 + $0x8cc] sm:$0xff]  ;;  %v15113_v39 = vld [vmem:[%s19908_s5 + $0x15] ss:$0 sm:$0xff] }
0x105f   : > { %12263 = vmatmul.msk.bf16.vlgmr.msra.gmra.mxu2 %vm1202_vm6, %v5770_v27 }
0x1060   : > { %6012 = vmatpush.bf16.msrb.mxu2 %v14761_v17  ;;  %v5753_v42 = vpop.f32.mrf.mxu3 }
0x1061   : > { %v5754_v49 = vadd.f32 %v5753_v42, %v5741_v41 }
0x1062   : > { %v6010_v43 = vpop.f32.mrf.mxu0 }
0x1063   : > { %v5767_v37 = vadd.f32 %v5766_v48, %v5754_v49 }
0x1064   : > { %6013 = vmatpush.bf16.msrb.mxu2 %v14760_v34  ;;  %v14764_v34 = vld [vmem:[%s19907_s4 + $0x8d4] sm:$0xff] }
0x1065   : > { %v5818_v59 = vpack.c.bf16 %v5767_v37, %v5767_v37 }
0x1067   : > { %v5823_v14 = vsel %vm797_vm2, %v5818_v59, 0 }
0x1068   : > { %6014 = vmatpush.bf16.msrb.mxu2 %v14759_v31  ;;  %v5755_v50 = vpop.f32.mrf.mxu3  ;;  %5832 = vmatpush.bf16.msrb.mxu1 %v5823_v14 }
0x106a   : > { %v17911_v51 = vpop.f32.mrf.mxu0 }
0x106c   : > { %6015 = vmatpush.bf16.msrb.mxu2 %v14758_v8  ;;  %6179 = vmatpush.bf16.msra.mxu1 %v14769_v19 }
0x1070   : > { %6016 = vmatpush.bf16.msrb.mxu2 %v14757_v45  ;;  %v17916_v15 = vpop.f32.mrf.mxu3  ;;  %6180 = vmatpush.bf16.msra.mxu1 %v14768_v21 }
0x1072   : > { %v6216_v57 = vpop.f32.mrf.mxu0 }
0x1073   : > { %v14791_v57 = vld [vmem:[%s19907_s4 + $0xb3c] sm:$0xff] }
0x1074   : > { %6017 = vmatpush.bf16.msrb.mxu2 %v14756_v52  ;;  %6181 = vmatpush.bf16.msra.mxu1 %v14767_v32  ;;  %v14793_v52 = vld [vmem:[%s19907_s4 + $0xb4c] sm:$0xff] }
0x1078   : > { %6018 = vmatpush.bf16.msrb.mxu2 %v14755_v36  ;;  %v6036_v61 = vpop.f32.mrf.mxu3  ;;  %6182 = vmatpush.bf16.msra.mxu1 %v14766_v47  ;;  %v18037_v47 = vld [vmem:[%s19909_s6 + $0x210] sm:$0x11] }
0x1079   : > { %v14788_v61 = vld [vmem:[%s19907_s4 + $0xb24] sm:$0xff] }
0x107a   : > { %v17928_v62 = vpop.f32.mrf.mxu0 }
0x107c   : > { %6019 = vmatpush.bf16.msrb.mxu2 %v14754_v56  ;;  %6183 = vmatpush.bf16.msra.mxu1 %v14765_v10  ;;  %v14792_v56 = vld [vmem:[%s19907_s4 + $0xb44] sm:$0xff]  ;;  %v6651_v10 = vunpack.c.l.b16 %v18037_v47 }
0x107f   : > { %6020 = vmatmul.bf16.vlgmr.msrb.gmra.mxu2 %v17771_v11 }
0x1080   : > { %6359 = vmatpush.bf16.msra.mxu2 %v14785_v58  ;;  %6184 = vmatpush.bf16.msra.mxu1 %v14764_v34  ;;  %v14790_v58 = vld [vmem:[%s19907_s4 + $0xb34] sm:$0xff]  ;;  %v6666_v34 = vpack.c.b16 %v6651_v10, %v6651_v10  ;;  %v14802_v10 = vld [vmem:[%s19909_s6 + $0x25c] sm:$0xf0] }
0x1082   : > { %v6396_v40 = vpop.f32.mrf.mxu0 }
0x1084   : > { %6360 = vmatpush.bf16.msra.mxu2 %v14784_v60  ;;  %v17936_v30 = vpop.f32.mrf.mxu3  ;;  %6185 = vmatpush.bf16.msra.mxu1 %v14763_v33  ;;  %v14789_v60 = vld [vmem:[%s19907_s4 + $0xb2c] sm:$0xff]  ;;  %v6685_v33 = vsel %vm1995_vm13, %v6666_v34, 0 }
0x1088   : > { %6361 = vmatpush.bf16.msra.mxu2 %v14783_v1  ;;  %6186 = vmatpush.bf16.msra.mxu1 %v14762_v26  ;;  %v14787_v1 = vld [vmem:[%s19907_s4 + $0xb1c] sm:$0xff]  ;;  %v12689_v26 = vld [vmem:[%s19909_s6 + $0x1f8] sm:$0xf] }
0x108c   : > { %6362 = vmatpush.bf16.msra.mxu2 %v14782_v38  ;;  %v6203_v2 = vpop.f32.mrf.mxu3  ;;  %v14786_v38 = vld [vmem:[%s19907_s4 + $0xb14] sm:$0xff] }
0x1090   : > { %6363 = vmatpush.bf16.msra.mxu2 %v14781_v63 }
0x1094   : > { %6364 = vmatpush.bf16.msra.mxu2 %v14780_v0  ;;  %v15114_v0 = vld [vmem:[%s19908_s5 + $0x11] ss:$0 sm:$0xff] }
0x1098   : > { %6365 = vmatpush.bf16.msra.mxu2 %v14779_v3 }
0x109c   : > { %6366 = vmatpush.bf16.msra.mxu2 %v14778_v55 }
0x109f   : > { %6367 = vmatmul.bf16.vlgmr.msra.gmra.mxu2 %v17767_v53 }
0x10e2   : > { %v5787_v4 = vpop.f32.mrf.mxu2 }
0x10e3   : > { %v5791_v7 = vmul.f32 0.12309149, %v5787_v4 }
0x10e5   : > { %v5792_v46 = vsel %vm15662_vm8, %v5791_v7, -1e+30 }
0x10e6   : > { %v5793_v44 = vsel %vm595_vm0, %v5792_v46, -inf }
0x10e7   : > { %5794 = vmax.xlane.f32.xlu2 %v5793_v44 }
0x10ea   : > { %v5789_v48 = vpop.f32.mrf.mxu2 }
0x1102   : > { %v6021_v12 = vpop.f32.mrf.mxu2 }
0x1103   : > { %v17957_v13 = vadd.f32 %v6021_v12, %v6009_v9 }
0x1105   : > { %v6035_v48 = vadd.f32 %v17916_v15, %v17957_v13 }
0x1107   : > { %v6398_v9 = vpack.c.bf16 %v6035_v48, %v6035_v48  ;;  %v14816_v48 = vld [vmem:[%s19907_s4 + $0x788] sm:$0xff] }
0x110a   : > { %v6023_v54 = vpop.f32.mrf.mxu2 }
0x1122   : > { %v17959_v28 = vpop.f32.mrf.mxu2 }
0x1123   : > { %v6369_v12 = vadd.f32 %v15113_v39, %v17959_v28  ;;  %v14815_v39 = vld [vmem:[%s19907_s4 + $0x780] sm:$0xff] }
0x112a   : > { %v6370_v18 = vpop.f32.mrf.mxu2 }
0x115a   : > { %v5795_v23 = vpop.xlane.xlu2 %5794 }
0x115b   : > { %v5796_v6 = vsub.f32 %v5792_v46, %v5795_v23 }
0x115d   : > { %v5797_v35 = vmul.f32 1.442695, %v5796_v6 }
0x115f   : > { %15153 = vpow2.f32 %v5797_v35 }
0x1165   : > { %v15154_v17 = vpop.eup %15153 }
0x1166   : > { %v5799_v20 = vsel %vm595_vm0, %v15154_v17, 0.0 }
0x1167   : > { %5800 = vadd.xlane.f32.xlu0 %v5799_v20 }
0x11da   : > { %v5801_v27 = vpop.xlane.xlu0 %5800 }
0x11db   : > { %15155 = vrcp.f32 %v5801_v27  ;;  %v5813_v49 = vand.u32 2147483648, %v5801_v27  ;;  %v5811_v43 = vand.u32 2147483647, %v5801_v27  ;;  %vm5807_vm10 = vweird.f32 %v5801_v27 }
0x11dd   : > { %v5814_v59 = vor.u32 1.1754944e-38, %v5813_v49  ;;  %vm5812_vm12 = vcmp.eq.f32.partialorder %v5811_v43, 8.507059e+37  ;;  %v14738_v43 = vld [vmem:[%s19909_s6 + $0x1d0] sm:$0xf0] }
0x11e1   : > { %v15156_v31 = vpop.eup %15155 }
0x11e2   : > { %v5803_v41 = vmul.f32 %v15156_v31, %v5801_v27  ;;  %vm5808_vm9 = vweird.f32 %v15156_v31  ;;  %v14744_v27 = vld [vmem:[%s19909_s6 + $0x200] sm:$0xf0] }
0x11e3   : > { %vm5809_vm11 = vmor %vm5807_vm10, %vm5808_vm9 }
0x11e4   : > { %v5804_v42 = vsub.f32 1.0, %v5803_v41  ;;  %v12677_v41 = vld [vmem:[%s19909_s6 + $0x1e0] sm:$0xf] }
0x11e6   : > { %v5805_v8 = vmul.f32 %v15156_v31, %v5804_v42  ;;  %v14741_v42 = vld [vmem:[%s19909_s6 + $0x1e8] sm:$0xf0] }
0x11e7   : > { %v12678_v49 = vor.u32 %v14741_v42, %v12677_v41  ;;  %v14804_v41 = vld [vmem:[%s19909_s6 + $0x26c] sm:$0xf0]  ;;  %v12628_v42 = vld [vmem:[%s19909_s6 + $0x258] sm:$0xf0] }
0x11e8   : > { %v5806_v37 = vadd.f32 %v15156_v31, %v5805_v8  ;;  %v12665_v8 = vld [vmem:[%s19909_s6 + $0x1c8] sm:$0xf] }
0x11ea   : > { %v5810_v45 = vsel %vm5809_vm11, %v15156_v31, %v5806_v37  ;;  %v12690_v31 = vor.u32 %v14744_v27, %v12689_v26  ;;  %v12666_v37 = vor.u32 %v14738_v43, %v12665_v8  ;;  %v14800_v27 = vld [vmem:[%s19909_s6 + $0x250] sm:$0xf]  ;;  %v12626_v8 = vld [vmem:[%s19909_s6 + $0x24c] sm:$0xf]  ;;  %v14801_v43 = vld [vmem:[%s19909_s6 + $0x254] sm:$0xf0] }
0x11eb   : > { %v5815_v14 = vsel %vm5812_vm12, %v5814_v59, %v5810_v45  ;;  %v12653_v59 = vld [vmem:[%s19909_s6 + $0x1b0] sm:$0xf]  ;;  %v14735_v45 = vld [vmem:[%s19909_s6 + $0x1b8] sm:$0xf0] }
0x11ec   : > { %v5816_v50 = vmul.f32 %v15154_v17, %v5815_v14  ;;  %v12654_v14 = vor.u32 %v14735_v45, %v12653_v59  ;;  %v12282_v45 = vld [vmem:[%s19909_s6 + $0x218] sm:$0x1] }
0x11ee   : > { %v5817_v36 = vpack.c.bf16 %v5816_v50, %v5816_v50 }
0x11f0   : > { %12264 = vmatmul.msk.bf16.vlgmr.msrb.gmra.mxu1 %vm595_vm0, %v5817_v36 }
0x11f1   : > { %6372 = vmatpush.bf16.msrb.mxu1 %v14793_v52 }
0x11f5   : > { %6373 = vmatpush.bf16.msrb.mxu1 %v14792_v56 }
0x11f9   : > { %6374 = vmatpush.bf16.msrb.mxu1 %v14791_v57 }
0x11fd   : > { %6375 = vmatpush.bf16.msrb.mxu1 %v14790_v58 }
0x1200   : > { %6187 = vmatmul.bf16.vlgmr.msra.gmra.mxu1 %v17767_v53 }
0x1201   : > { %6376 = vmatpush.bf16.msrb.mxu1 %v14789_v60 }
0x1205   : > { %6377 = vmatpush.bf16.msrb.mxu1 %v14788_v61 }
0x1209   : > { %6378 = vmatpush.bf16.msrb.mxu1 %v14787_v1 }
0x120d   : > { %6379 = vmatpush.bf16.msrb.mxu1 %v14786_v38 }
0x1210   : > { %6380 = vmatmul.bf16.vlgmr.msrb.gmra.mxu1 %v17771_v11 }
0x126d   : > { %v18013_v40 = vpop.f32.mrf.mxu1 }
0x1275   : > { %v5836_v63 = vpop.f32.mrf.mxu1 }
0x127d   : > { %v6188_v2 = vpop.f32.mrf.mxu1 }
0x127e   : > { %v6189_v3 = vadd.f32 %v15114_v0, %v6188_v2  ;;  %v14821_v2 = vld [vmem:[%s19907_s4 + $0x7b0] sm:$0xff] }
0x1280   : > { %v6202_v55 = vadd.f32 %v17936_v30, %v6189_v3 }
0x1282   : > { %v6215_v4 = vadd.f32 %v17911_v51, %v6202_v55  ;;  %v14820_v55 = vld [vmem:[%s19907_s4 + $0x7a8] sm:$0xff] }
0x1284   : > { %v6399_v7 = vpack.c.bf16 %v6215_v4, %v6215_v4  ;;  %v14819_v4 = vld [vmem:[%s19907_s4 + $0x7a0] sm:$0xff] }
0x1285   : > { %v6190_v46 = vpop.f32.mrf.mxu1 }
0x1286   : > { %v6404_v44 = vsel %vm1202_vm6, %v6399_v7, 0  ;;  %v14818_v7 = vld [vmem:[%s19907_s4 + $0x798] sm:$0xff]  ;;  %v14817_v46 = vld [vmem:[%s19907_s4 + $0x790] sm:$0xff] }
0x1287   : > { %6413 = vmatpush.bf16.xpose.msra.mxu3 %v6404_v44  ;;  %v18083_v44 = vpack.c.bf16 %v18013_v40, %v18013_v40  ;;  %v14845_v40 = vld [vmem:[%s19907_s4 + $0xb90] sm:$0xff] }
0x128d   : > { %v6381_v54 = vpop.f32.mrf.mxu1 }
0x128e   : > { %v6382_v18 = vadd.f32 %v6381_v54, %v6369_v12  ;;  %12580 = vmatmul.msk.bf16.vlgmr.msra.gmra.mxu3 %vm1202_vm6, %v6398_v9  ;;  %v14814_v9 = vld [vmem:[%s19907_s4 + $0x778] sm:$0xff]  ;;  %v12599_v12 = vld [vmem:[%s19909_s6 + $0x284] sm:$0x1]  ;;  %v14844_v54 = vld [vmem:[%s19907_s4 + $0xb88] sm:$0xff] }
0x1290   : > { %v6395_v51 = vadd.f32 %v17928_v62, %v6382_v18  ;;  %v6530_v18 = vunpack.c.l.b16 %v12599_v12 }
0x1292   : > { %v6446_v30 = vpack.c.bf16 %v6395_v51, %v6395_v51  ;;  %v12598_v51 = vld [vmem:[%s19909_s6 + $0x27c] sm:$0x11] }
0x1294   : > { %v6451_v19 = vsel %vm797_vm2, %v6446_v30, 0  ;;  %v6529_v30 = vunpack.c.h.b16 %v12598_v51 }
0x1295   : > { %v6383_v21 = vpop.f32.mrf.mxu1  ;;  %6460 = vmatpush.bf16.msrb.mxu0 %v6451_v19  ;;  %v6528_v19 = vunpack.c.l.b16 %v12598_v51 }
0x1296   : > { %v6545_v21 = vpack.c.b16 %v6530_v18, %v6530_v18  ;;  %v14839_v18 = vld [vmem:[%s19907_s4 + $0xb60] sm:$0xff] }
0x1299   : > { %6696 = vmatpush.bf16.msra.mxu0 %v6685_v33 }
0x129d   : > { %6697 = vmatpush.bf16.msra.mxu0 %v12690_v31  ;;  %v12638_v31 = vld [vmem:[%s19909_s6 + $0x264] sm:$0xf] }
0x12a1   : > { %6698 = vmatpush.bf16.msra.mxu0 %v12678_v49  ;;  %v12639_v49 = vor.u32 %v14804_v41, %v12638_v31  ;;  %v12661_v41 = vld [vmem:[%s19909_s6 + $0x1b8] sm:$0xf] }
0x12a5   : > { %6699 = vmatpush.bf16.msra.mxu0 %v12666_v37  ;;  %v14842_v37 = vld [vmem:[%s19907_s4 + $0xb78] sm:$0xff] }
0x12a9   : > { %6700 = vmatpush.bf16.msra.mxu0 %v12654_v14  ;;  %v12622_v14 = vld [vmem:[%s19909_s6 + $0x23c] sm:$0xf] }
0x1311   : > { %v6415_v23 = vpop.f32.mrf.mxu3 }
0x1312   : > { %v6419_v15 = vmul.f32 0.12309149, %v6415_v23  ;;  %v12646_v23 = vld [vmem:[%s19909_s6 + $0x26c] sm:$0xf] }
0x1314   : > { %v6420_v13 = vsel %vm15662_vm8, %v6419_v15, -1e+30  ;;  %v14805_v15 = vld [vmem:[%s19909_s6 + $0x274] sm:$0xf0] }
0x1315   : > { %v6421_v6 = vsel %vm595_vm0, %v6420_v13, -inf }
0x1316   : > { %6422 = vmax.xlane.f32.xlu1 %v6421_v6  ;;  %v14803_v6 = vld [vmem:[%s19909_s6 + $0x268] sm:$0xf] }
0x1319   : > { %v6417_v28 = vpop.f32.mrf.mxu3 }
0x131a   : > { %v12640_v28 = vld [vmem:[%s19909_s6 + $0x270] sm:$0xf0] }
0x131b   : > { %v12643_v26 = vor.u32 %v14803_v6, %v12640_v28  ;;  %v14742_v6 = vld [vmem:[%s19909_s6 + $0x1f0] sm:$0xf0]  ;;  %v14811_v28 = vld [vmem:[%s19907_s4 + $0x760] sm:$0xff] }
0x1389   : > { %v6423_v35 = vpop.xlane.xlu1 %6422 }
0x138a   : > { %v6424_v17 = vsub.f32 %v6420_v13, %v6423_v35  ;;  %v6544_v13 = vpack.c.b16 %v6529_v30, %v6529_v30  ;;  %v6543_v35 = vpack.c.b16 %v6528_v19, %v6528_v19  ;;  %v12697_v30 = vld [vmem:[%s19909_s6 + $0x200] sm:$0xf]  ;;  %v14745_v19 = vld [vmem:[%s19909_s6 + $0x208] sm:$0xf0] }
0x138c   : > { %v6425_v20 = vmul.f32 1.442695, %v6424_v17  ;;  %v14843_v17 = vld [vmem:[%s19907_s4 + $0xb80] sm:$0xff]  ;;  %v6565_v34 = vsel %vm1995_vm13, %v6544_v13, 0  ;;  %v6562_v33 = vsel %vm1995_vm13, %v6543_v35, 0 }
0x138d   : > { %6586 = vmatpush.bf16.msrb.mxu3 %v6565_v34  ;;  %6573 = vmatpush.bf16.msrb.mxu2 %v6562_v33  ;;  %v12685_v13 = vld [vmem:[%s19909_s6 + $0x1e8] sm:$0xf]  ;;  %v14807_v33 = vld [vmem:[%s19907_s4 + $0x740] sm:$0xff] }
0x138e   : > { %15157 = vpow2.f32 %v6425_v20  ;;  %v6568_v20 = vsel %vm1995_vm13, %v6545_v21, 0  ;;  %v14812_v21 = vld [vmem:[%s19907_s4 + $0x768] sm:$0xff]  ;;  %v12686_v35 = vor.u32 %v14742_v6, %v12685_v13 }
0x138f   : > { %6599 = vmatpush.bf16.msra.mxu1 %v6568_v20  ;;  %v14739_v20 = vld [vmem:[%s19909_s6 + $0x1d8] sm:$0xf0]  ;;  %v14808_v34 = vld [vmem:[%s19907_s4 + $0x748] sm:$0xff] }
0x1391   : > { %6587 = vmatpush.bf16.msrb.mxu3 %v12643_v26  ;;  %6574 = vmatpush.bf16.msrb.mxu2 %v12639_v49  ;;  %v6652_v26 = vunpack.c.h.b16 %v18037_v47  ;;  %v14743_v47 = vld [vmem:[%s19909_s6 + $0x1fc] sm:$0xf] }
0x1394   : > { %v15158_v32 = vpop.eup %15157 }
0x1395   : > { %v6427_v62 = vsel %vm595_vm0, %v15158_v32, 0.0 }
0x1396   : > { %6428 = vadd.xlane.f32.xlu2 %v6427_v62  ;;  %v12634_v62 = vld [vmem:[%s19909_s6 + $0x254] sm:$0xf] }
0x1397   : > { %v12635_v59 = vor.u32 %v14802_v10, %v12634_v62  ;;  %v14809_v10 = vld [vmem:[%s19907_s4 + $0x750] sm:$0xff] }
0x1409   : > { %v6429_v50 = vpop.xlane.xlu2 %6428 }
0x140a   : > { %15159 = vrcp.f32 %v6429_v50  ;;  %v6441_v57 = vand.u32 2147483648, %v6429_v50  ;;  %v6439_v60 = vand.u32 2147483647, %v6429_v50  ;;  %vm6435_vm15 = vweird.f32 %v6429_v50 }
0x140c   : > { %v6442_v1 = vor.u32 1.1754944e-38, %v6441_v57  ;;  %vm6440_vm3 = vcmp.eq.f32.partialorder %v6439_v60, 8.507059e+37  ;;  %v12616_v57 = vld [vmem:[%s19909_s6 + $0x240] sm:$0xf0]  ;;  %v14798_v60 = vld [vmem:[%s19909_s6 + $0x23c] sm:$0xf0] }
0x1410   : > { %v15160_v52 = vpop.eup %15159 }
0x1411   : > { %v6431_v36 = vmul.f32 %v15160_v52, %v6429_v50  ;;  %vm6436_vm14 = vweird.f32 %v15160_v52  ;;  %v14799_v50 = vld [vmem:[%s19909_s6 + $0x244] sm:$0xf0] }
0x1412   : > { %vm6437_vm1 = vmor %vm6435_vm15, %vm6436_vm14 }
0x1413   : > { %v6432_v56 = vsub.f32 1.0, %v6431_v36  ;;  %v14797_v36 = vld [vmem:[%s19909_s6 + $0x238] sm:$0xf] }
0x1415   : > { %v6433_v58 = vmul.f32 %v15160_v52, %v6432_v56  ;;  %v12627_v56 = vor.u32 %v14801_v43, %v12626_v8  ;;  %v14806_v8 = vld [vmem:[%s19907_s4 + $0x738] sm:$0xff]  ;;  %v12691_v43 = vld [vmem:[%s19909_s6 + $0x204] sm:$0xf0] }
0x1417   : > { %v6434_v61 = vadd.f32 %v15160_v52, %v6433_v58  ;;  %v12614_v58 = vld [vmem:[%s19909_s6 + $0x234] sm:$0xf]  ;;  %6575 = vmatpush.bf16.msrb.mxu2 %v12627_v56 }
0x1418   : > { %v14734_v56 = vld [vmem:[%s19909_s6 + $0x1b4] sm:$0xf] }
0x1419   : > { %v6438_v38 = vsel %vm6437_vm1, %v15160_v52, %v6434_v61  ;;  %v12631_v52 = vor.u32 %v14800_v27, %v12628_v42  ;;  %v14841_v61 = vld [vmem:[%s19907_s4 + $0xb70] sm:$0xff]  ;;  %v6667_v27 = vpack.c.b16 %v6652_v26, %v6652_v26  ;;  %v14736_v42 = vld [vmem:[%s19909_s6 + $0x1c0] sm:$0xf0] }
0x141a   : > { %v6443_v63 = vsel %vm6440_vm3, %v6442_v1, %v6438_v38  ;;  %v6653_v1 = vunpack.c.l.b16 %v12282_v45  ;;  %v12623_v38 = vor.u32 %v14799_v50, %v12622_v14  ;;  %v12662_v49 = vor.u32 %v14736_v42, %v12661_v41  ;;  %v12679_v45 = vld [vmem:[%s19909_s6 + $0x1ec] sm:$0xf0]  ;;  %v14737_v50 = vld [vmem:[%s19909_s6 + $0x1cc] sm:$0xf]  ;;  %v14851_v26 = vld [vmem:[%s19907_s4 + $0xbc0] sm:$0xff] }
0x141b   : > { %v6444_v0 = vmul.f32 %v15158_v32, %v6443_v63  ;;  %v12647_v32 = vor.u32 %v14805_v15, %v12646_v23  ;;  %v12610_v63 = vld [vmem:[%s19909_s6 + $0x224] sm:$0xf]  ;;  %6588 = vmatpush.bf16.msrb.mxu3 %v12631_v52  ;;  %v12698_v23 = vor.u32 %v14745_v19, %v12697_v30  ;;  %v14838_v15 = vld [vmem:[%s19907_s4 + $0xb58] sm:$0xff]  ;;  %v6688_v31 = vsel %vm1995_vm13, %v6667_v27, 0  ;;  %v14848_v41 = vld [vmem:[%s19907_s4 + $0xba8] sm:$0xff] }
0x141c   : > { %v12667_v52 = vld [vmem:[%s19909_s6 + $0x1d4] sm:$0xf0]  ;;  %v14833_v30 = vld [vmem:[%s19907_s4 + $0x9a0] sm:$0xff]  ;;  %vm9812_vm3 = vcmask 57344  }
0x141d   : > { %v6445_v3 = vpack.c.bf16 %v6444_v0, %v6444_v0  ;;  %6600 = vmatpush.bf16.msra.mxu1 %v12647_v32  ;;  %v14796_v0 = vld [vmem:[%s19909_s6 + $0x22c] sm:$0xf0]  ;;  %v14810_v32 = vld [vmem:[%s19907_s4 + $0x758] sm:$0xff]  ;;  %v14847_v42 = vld [vmem:[%s19907_s4 + $0xba0] sm:$0xff] }
0x141e   : > { %v14850_v27 = vld [vmem:[%s19907_s4 + $0xbb8] sm:$0xff] }
0x141f   : > { %12581 = vmatmul.msk.bf16.vlgmr.msrb.gmra.mxu0 %vm595_vm0, %v6445_v3  ;;  %v12615_v3 = vor.u32 %v14798_v60, %v12614_v58  ;;  %v12734_v60 = vld [vmem:[%s19907_s4 + $0x7b8] sm:$0xf] }
0x1420   : > { %6886 = vmatpush.bf16.msrb.mxu0 %v14821_v2  ;;  %v12619_v2 = vor.u32 %v14797_v36, %v12616_v57  ;;  %v12670_v36 = vor.u32 %v14737_v50, %v12667_v52  ;;  %v12655_v57 = vld [vmem:[%s19909_s6 + $0x1bc] sm:$0xf0] }
0x1421   : > { %6601 = vmatpush.bf16.msra.mxu1 %v12635_v59  ;;  %6576 = vmatpush.bf16.msrb.mxu2 %v12615_v3  ;;  %v14740_v59 = vld [vmem:[%s19909_s6 + $0x1e4] sm:$0xf]  ;;  %v12658_v58 = vor.u32 %v14734_v56, %v12655_v57 }
0x1422   : > { %6589 = vmatpush.bf16.msrb.mxu3 %v12619_v2  ;;  %v12682_v14 = vor.u32 %v14740_v59, %v12679_v45  ;;  %v14837_v2 = vld [vmem:[%s19907_s4 + $0x9c0] sm:$0xff] }
0x1424   : > { %6887 = vmatpush.bf16.msrb.mxu0 %v14820_v55  ;;  %v14794_v55 = vld [vmem:[%s19909_s6 + $0x220] sm:$0xf] }
0x1425   : > { %6602 = vmatpush.bf16.msra.mxu1 %v12623_v38 }
0x1428   : > { %6888 = vmatpush.bf16.msrb.mxu0 %v14819_v4  ;;  %v12604_v4 = vld [vmem:[%s19909_s6 + $0x228] sm:$0xf0] }
0x1429   : > { %v12607_v12 = vor.u32 %v14794_v55, %v12604_v4  ;;  %v14828_v55 = vld [vmem:[%s19907_s4 + $0x978] sm:$0xff] }
0x142a   : > { %v14836_v4 = vld [vmem:[%s19907_s4 + $0x9b8] sm:$0xff] }
0x142b   : > { %6590 = vmatpush.bf16.msrb.mxu3 %v12607_v12  ;;  %v14834_v12 = vld [vmem:[%s19907_s4 + $0x9a8] sm:$0xff] }
0x142c   : > { %6889 = vmatpush.bf16.msrb.mxu0 %v14818_v7  ;;  %v14840_v7 = vld [vmem:[%s19907_s4 + $0xb68] sm:$0xff] }
0x142f   : > { %12699 = vmatmul.msk.bf16.vlgmr.msra.gmra.mxu0 %vm1202_vm6, %v18083_v44 }
0x1430   : > { %6890 = vmatpush.bf16.msrb.mxu0 %v14817_v46  ;;  %v6668_v46 = vpack.c.b16 %v6653_v1, %v6653_v1 }
0x1432   : > { %v6691_v51 = vsel %vm1995_vm13, %v6668_v46, 0 }
0x1433   : > { %6722 = vmatpush.bf16.msra.mxu3 %v6691_v51  ;;  %v14825_v51 = vld [vmem:[%s19907_s4 + $0x960] sm:$0xff] }
0x1434   : > { %6891 = vmatpush.bf16.msrb.mxu0 %v14816_v48  ;;  %v12602_v48 = vld [vmem:[%s19909_s6 + $0x21c] sm:$0xf] }
0x1437   : > { %6723 = vmatpush.bf16.msra.mxu3 %v12698_v23  ;;  %v14824_v23 = vld [vmem:[%s19907_s4 + $0x958] sm:$0xff] }
0x1438   : > { %6892 = vmatpush.bf16.msrb.mxu0 %v14815_v39  ;;  %v14795_v39 = vld [vmem:[%s19909_s6 + $0x224] sm:$0xf0] }
0x143b   : > { %6724 = vmatpush.bf16.msra.mxu3 %v12686_v35 }
0x143c   : > { %6893 = vmatpush.bf16.msrb.mxu0 %v14814_v9  ;;  %v12611_v9 = vor.u32 %v14796_v0, %v12610_v63  ;;  %v14829_v63 = vld [vmem:[%s19907_s4 + $0x980] sm:$0xff] }
0x143e   : > { %6603 = vmatpush.bf16.msra.mxu1 %v12611_v9 }
0x143f   : > { %6894 = vmatmul.bf16.vlgmr.msrb.gmra.mxu0 %v17771_v11 }
0x1440   : > { %7233 = vmatpush.bf16.msra.mxu0 %v14845_v40  ;;  %v14813_v40 = vld [vmem:[%s19907_s4 + $0x770] sm:$0xff] }
0x1442   : > { %6873 = vmatpush.bf16.msrb.mxu1 %v14813_v40  ;;  %v14826_v40 = vld [vmem:[%s19907_s4 + $0x968] sm:$0xff] }
0x1444   : > { %7234 = vmatpush.bf16.msra.mxu0 %v14844_v54  ;;  %v12603_v54 = vor.u32 %v14795_v39, %v12602_v48  ;;  %v14827_v48 = vld [vmem:[%s19907_s4 + $0x970] sm:$0xff] }
0x1445   : > { %v14835_v39 = vld [vmem:[%s19907_s4 + $0x9b0] sm:$0xff] }
0x1446   : > { %6577 = vmatpush.bf16.msrb.mxu2 %v12603_v54  ;;  %6874 = vmatpush.bf16.msrb.mxu1 %v14812_v21  ;;  %v12932_v21 = vld [vmem:[%s19907_s4 + $0xbd8] sm:$0xf] }
0x1447   : > { %v7196_v13 = vunpack.c.l.b16 %v12932_v21 }
0x1448   : > { %7235 = vmatpush.bf16.msra.mxu0 %v14843_v17  ;;  %v12673_v17 = vld [vmem:[%s19909_s6 + $0x1d0] sm:$0xf] }
0x1449   : > { %v12674_v62 = vor.u32 %v14739_v20, %v12673_v17  ;;  %v7213_v35 = vpack.c.b16 %v7196_v13, %v7196_v13  ;;  %v14822_v17 = vld [vmem:[%s19907_s4 + $0x948] sm:$0xff] }
0x144a   : > { %6875 = vmatpush.bf16.msrb.mxu1 %v14811_v28  ;;  %6709 = vmatpush.bf16.msra.mxu2 %v6688_v31  ;;  %v14831_v28 = vld [vmem:[%s19907_s4 + $0x990] sm:$0xff]  ;;  %v14830_v20 = vld [vmem:[%s19907_s4 + $0x988] sm:$0xff] }
0x144b   : > { %6725 = vmatpush.bf16.msra.mxu3 %v12674_v62  ;;  %v14849_v31 = vld [vmem:[%s19907_s4 + $0xbb0] sm:$0xff] }
0x144c   : > { %7236 = vmatpush.bf16.msra.mxu0 %v14842_v37  ;;  %v12694_v37 = vor.u32 %v14743_v47, %v12691_v43 }
0x144e   : > { %6876 = vmatpush.bf16.msrb.mxu1 %v14810_v32  ;;  %6710 = vmatpush.bf16.msra.mxu2 %v12694_v37  ;;  %v7231_v32 = vsel %vm797_vm2, %v7213_v35, 0 }
0x144f   : > { %6726 = vmatpush.bf16.msra.mxu3 %v12662_v49  ;;  %v14846_v49 = vld [vmem:[%s19907_s4 + $0xb98] sm:$0xff] }
0x1450   : > { %7237 = vmatpush.bf16.msra.mxu0 %v14841_v61  ;;  %v6836_v61 = vunpack.c.l.b16 %v12734_v60 }
0x1452   : > { %6877 = vmatpush.bf16.msrb.mxu1 %v14809_v10  ;;  %6711 = vmatpush.bf16.msra.mxu2 %v12682_v14  ;;  %v6853_v1 = vpack.c.b16 %v6836_v61, %v6836_v61  ;;  %v14853_v10 = vld [vmem:[%s19907_s4 + $0xbd0] sm:$0xff] }
0x1454   : > { %7238 = vmatpush.bf16.msra.mxu0 %v14840_v7  ;;  %v6871_v3 = vsel %vm797_vm2, %v6853_v1, 0  ;;  %v12833_v7 = vld [vmem:[%s19907_s4 + $0x9c8] sm:$0xf] }
0x1455   : > { %v7016_v9 = vunpack.c.l.b16 %v12833_v7 }
0x1456   : > { %6878 = vmatpush.bf16.msrb.mxu1 %v14808_v34  ;;  %6712 = vmatpush.bf16.msra.mxu2 %v12670_v36  ;;  %v14852_v34 = vld [vmem:[%s19907_s4 + $0xbc8] sm:$0xff] }
0x1457   : > { %v7033_v54 = vpack.c.b16 %v7016_v9, %v7016_v9 }
0x1458   : > { %7239 = vmatpush.bf16.msra.mxu0 %v14839_v18 }
0x1459   : > { %v7051_v19 = vsel %vm797_vm2, %v7033_v54, 0 }
0x145a   : > { %6879 = vmatpush.bf16.msrb.mxu1 %v14807_v33  ;;  %6713 = vmatpush.bf16.msra.mxu2 %v12658_v58 }
0x145c   : > { %7240 = vmatpush.bf16.msra.mxu0 %v14838_v15  ;;  %v14832_v15 = vld [vmem:[%s19907_s4 + $0x998] sm:$0xff] }
0x145e   : > { %6880 = vmatpush.bf16.msrb.mxu1 %v14806_v8 }
0x145f   : > { %7241 = vmatmul.bf16.vlgmr.msra.gmra.mxu0 %v17767_v53 }
0x149c   : > { %v6462_v38 = vpop.f32.mrf.mxu0 }
0x149d   : > { %v6466_v0 = vpack.c.bf16 %v6462_v38, %v6462_v38 }
0x149f   : > { %12648 = vmatmul.msk.bf16.vlgmr.msrb.gmra.mxu2 %vm1202_vm6, %v6466_v0  ;;  %12649 = vmatmul.msk.bf16.vlgmr.msrb.gmra.mxu3 %vm1202_vm6, %v6466_v0 }
0x14a0   : > { %12650 = vmatmul.msk.bf16.vlgmr.msra.gmra.mxu1 %vm1202_vm6, %v6466_v0  ;;  %7053 = vmatpush.bf16.msrb.mxu3 %v14829_v63 }
0x14a1   : > { %7066 = vmatpush.bf16.msra.mxu1 %v14837_v2  ;;  %6906 = vmatpush.bf16.msrb.mxu2 %v6871_v3  ;;  %v15117_v3 = vld [vmem:[%s19908_s5 + $0x12] ss:$0 sm:$0xff] }
0x14a4   : > { %v6464_v46 = vpop.f32.mrf.mxu0  ;;  %7054 = vmatpush.bf16.msrb.mxu3 %v14828_v55 }
0x14a5   : > { %7067 = vmatpush.bf16.msra.mxu1 %v14836_v4  ;;  %v15116_v46 = vld [vmem:[%s19908_s5 + $0xe] ss:$0 sm:$0xff] }
0x14a8   : > { %7055 = vmatpush.bf16.msrb.mxu3 %v14827_v48 }
0x14a9   : > { %7068 = vmatpush.bf16.msra.mxu1 %v14835_v39 }
0x14ac   : > { %v18315_v18 = vpop.f32.mrf.mxu0  ;;  %7056 = vmatpush.bf16.msrb.mxu3 %v14826_v40 }
0x14ad   : > { %7069 = vmatpush.bf16.msra.mxu1 %v14834_v12 }
0x14af   : > { %12700 = vmatmul.msk.bf16.vlgmr.msra.gmra.mxu2 %vm1202_vm6, %v18083_v44  ;;  %12701 = vmatmul.msk.bf16.vlgmr.msra.gmra.mxu3 %vm1202_vm6, %v18083_v44  ;;  %v14823_v44 = vld [vmem:[%s19907_s4 + $0x950] sm:$0xff] }
0x14b0   : > { %6881 = vmatmul.bf16.vlgmr.msrb.gmra.mxu1 %v17767_v53  ;;  %7057 = vmatpush.bf16.msrb.mxu3 %v14825_v51 }
0x14b1   : > { %7070 = vmatpush.bf16.msra.mxu1 %v14833_v30  ;;  %7086 = vmatpush.bf16.msra.mxu2 %v7051_v19 }
0x14b4   : > { %v6704_v6 = vpop.f32.mrf.mxu0  ;;  %7058 = vmatpush.bf16.msrb.mxu3 %v14824_v23 }
0x14b5   : > { %7071 = vmatpush.bf16.msra.mxu1 %v14832_v15  ;;  %v15115_v15 = vld [vmem:[%s19908_s5 + $0x16] ss:$0 sm:$0xff] }
0x14b8   : > { %7059 = vmatpush.bf16.msrb.mxu3 %v14823_v44 }
0x14b9   : > { %7072 = vmatpush.bf16.msra.mxu1 %v14831_v28 }
0x14bc   : > { %v6895_v62 = vpop.f32.mrf.mxu0  ;;  %7060 = vmatpush.bf16.msrb.mxu3 %v14822_v17 }
0x14bd   : > { %7073 = vmatpush.bf16.msra.mxu1 %v14830_v20 }
0x14bf   : > { %12800 = vmatmul.msk.bf16.vlgmr.msrb.gmra.mxu2 %vm595_vm0, %v17775_v5  ;;  %7061 = vmatmul.bf16.vlgmr.msrb.gmra.mxu3 %v17767_v53 }
0x14c0   : > { %7266 = vmatpush.bf16.msra.mxu3 %v7231_v32  ;;  %7074 = vmatmul.bf16.vlgmr.msra.gmra.mxu1 %v17771_v11 }
0x14c1   : > { %7246 = vmatpush.bf16.msrb.mxu2 %v14853_v10 }
0x14c4   : > { %v6897_v33 = vpop.f32.mrf.mxu0 }
0x14c5   : > { %7247 = vmatpush.bf16.msrb.mxu2 %v14852_v34 }
0x14c9   : > { %7248 = vmatpush.bf16.msrb.mxu2 %v14851_v26 }
0x14cd   : > { %7249 = vmatpush.bf16.msrb.mxu2 %v14850_v27  ;;  %v14873_v27 = vld [vmem:[%s19907_s4 + $0x7f4] sm:$0xff] }
0x14cf   : > { %12899 = vmatmul.msk.bf16.vlgmr.msra.gmra.mxu2 %vm595_vm0, %v17775_v5  ;;  %12998 = vmatmul.msk.bf16.vlgmr.msra.gmra.mxu3 %vm595_vm0, %v17775_v5 }
0x14d1   : > { %7250 = vmatpush.bf16.msrb.mxu2 %v14849_v31  ;;  %v14872_v31 = vld [vmem:[%s19907_s4 + $0x7ec] sm:$0xff] }
0x14d5   : > { %7251 = vmatpush.bf16.msrb.mxu2 %v14848_v41 }
0x14d9   : > { %7252 = vmatpush.bf16.msrb.mxu2 %v14847_v42 }
0x14dc   : > { %v7242_v8 = vpop.f32.mrf.mxu0 }
0x14dd   : > { %7253 = vmatpush.bf16.msrb.mxu2 %v14846_v49  ;;  %v7243_v6 = vadd.f32 %v15115_v15, %v7242_v8 }
0x14e0   : > { %7254 = vmatmul.bf16.vlgmr.msrb.gmra.mxu2 %v17771_v11 }
0x14e4   : > { %v7244_v47 = vpop.f32.mrf.mxu0 }
0x151d   : > { %v6605_v43 = vpop.f32.mrf.mxu1 }
0x1522   : > { %v18384_v37 = vpop.f32.mrf.mxu2  ;;  %v6592_v59 = vpop.f32.mrf.mxu3 }
0x1525   : > { %v6607_v45 = vpop.f32.mrf.mxu1 }
0x1526   : > { %v14869_v45 = vld [vmem:[%s19907_s4 + $0x7d4] sm:$0xff] }
0x152a   : > { %v6581_v14 = vpop.f32.mrf.mxu2  ;;  %v6594_v50 = vpop.f32.mrf.mxu3 }
0x152b   : > { %v14868_v14 = vld [vmem:[%s19907_s4 + $0x7cc] sm:$0xff]  ;;  %v14867_v50 = vld [vmem:[%s19907_s4 + $0x7c4] sm:$0xff] }
0x152d   : > { %v6882_v52 = vpop.f32.mrf.mxu1 }
0x152e   : > { %v6883_v40 = vadd.f32 %v15116_v46, %v6882_v52  ;;  %v14866_v52 = vld [vmem:[%s19907_s4 + $0x7bc] sm:$0xff] }
0x1530   : > { %v6896_v51 = vadd.f32 %v6895_v62, %v6883_v40 }
0x1532   : > { %v6715_v36 = vpop.f32.mrf.mxu2  ;;  %v6728_v56 = vpop.f32.mrf.mxu3 }
0x1533   : > { %v18386_v57 = vadd.f32 %v6715_v36, %v6592_v59  ;;  %v18388_v58 = vadd.f32 %v6728_v56, %v6605_v43  ;;  %v14871_v43 = vld [vmem:[%s19907_s4 + $0x7e4] sm:$0xff]  ;;  %v14870_v59 = vld [vmem:[%s19907_s4 + $0x7dc] sm:$0xff] }
0x1535   : > { %v6884_v60 = vpop.f32.mrf.mxu1 }
0x153a   : > { %v6717_v61 = vpop.f32.mrf.mxu2  ;;  %v6730_v1 = vpop.f32.mrf.mxu3 }
0x153d   : > { %v7075_v38 = vpop.f32.mrf.mxu1 }
0x1542   : > { %v6908_v63 = vpop.f32.mrf.mxu2  ;;  %v7062_v0 = vpop.f32.mrf.mxu3 }
0x1543   : > { %v7063_v7 = vadd.f32 %v15117_v3, %v7062_v0  ;;  %v6909_v19 = vadd.f32 %v6908_v63, %v6896_v51  ;;  %v13057_v51 = vld [vmem:[%s19909_s6 + $0x2d0] sm:$0xf] }
0x1545   : > { %v7077_v2 = vpop.f32.mrf.mxu1  ;;  %v7076_v48 = vadd.f32 %v7075_v38, %v7063_v7  ;;  %v7272_v13 = vpack.c.bf16 %v6909_v19, %v6909_v19  ;;  %v14897_v7 = vld [vmem:[%s19907_s4 + $0xa44] sm:$0xff] }
0x154a   : > { %v6910_v55 = vpop.f32.mrf.mxu2  ;;  %v7064_v4 = vpop.f32.mrf.mxu3 }
0x1552   : > { %v7088_v39 = vpop.f32.mrf.mxu2  ;;  %v7268_v9 = vpop.f32.mrf.mxu3 }
0x1553   : > { %v7089_v12 = vadd.f32 %v7088_v39, %v7076_v48  ;;  %v13017_v48 = vld [vmem:[%s19909_s6 + $0x2e8] sm:$0x11]  ;;  %v14896_v39 = vld [vmem:[%s19907_s4 + $0xa3c] sm:$0xff] }
0x1554   : > { %v7403_v40 = vunpack.c.h.b16 %v13017_v48 }
0x1555   : > { %v7273_v54 = vpack.c.bf16 %v7089_v12, %v7089_v12  ;;  %v13018_v12 = vld [vmem:[%s19909_s6 + $0x2f0] sm:$0x1] }
0x1556   : > { %v7404_v19 = vunpack.c.l.b16 %v13018_v12  ;;  %v14887_v12 = vld [vmem:[%s19907_s4 + $0x9f4] sm:$0xff] }
0x1557   : > { %v7278_v30 = vsel %vm1202_vm6, %v7273_v54, 0 }
0x1558   : > { %7287 = vmatpush.bf16.xpose.msrb.mxu1 %v7278_v30  ;;  %v14864_v30 = vld [vmem:[%s19909_s6 + $0x2d8] sm:$0xf0] }
0x155a   : > { %v7090_v21 = vpop.f32.mrf.mxu2  ;;  %v7270_v23 = vpop.f32.mrf.mxu3 }
0x155b   : > { %v7418_v21 = vpack.c.b16 %v7403_v40, %v7403_v40  ;;  %v14895_v23 = vld [vmem:[%s19907_s4 + $0xa34] sm:$0xff]  ;;  %v14879_v40 = vld [vmem:[%s19907_s4 + $0x824] sm:$0xff] }
0x155f   : > { %12999 = vmatmul.msk.bf16.vlgmr.msrb.gmra.mxu1 %vm1202_vm6, %v7272_v13  ;;  %v7419_v13 = vpack.c.b16 %v7404_v19, %v7404_v19  ;;  %v14875_v19 = vld [vmem:[%s19907_s4 + $0x804] sm:$0xff] }
0x1563   : > { %v7255_v44 = vpop.f32.mrf.mxu2 }
0x1564   : > { %v7256_v28 = vadd.f32 %v7255_v44, %v7243_v6  ;;  %v13065_v6 = vld [vmem:[%s19909_s6 + $0x2d8] sm:$0xf]  ;;  %v14865_v44 = vld [vmem:[%s19909_s6 + $0x2e0] sm:$0xf0] }
0x1566   : > { %v7269_v35 = vadd.f32 %v7268_v9, %v7256_v28  ;;  %v7402_v9 = vunpack.c.l.b16 %v13017_v48  ;;  %v13058_v28 = vor.u32 %v14864_v30, %v13057_v51  ;;  %v14880_v48 = vld [vmem:[%s19907_s4 + $0x82c] sm:$0xff]  ;;  %v14877_v51 = vld [vmem:[%s19907_s4 + $0x814] sm:$0xff] }
0x1567   : > { %v14876_v30 = vld [vmem:[%s19907_s4 + $0x80c] sm:$0xff] }
0x1568   : > { %v7320_v17 = vpack.c.bf16 %v7269_v35, %v7269_v35  ;;  %v7417_v54 = vpack.c.b16 %v7402_v9, %v7402_v9  ;;  %v13045_v35 = vld [vmem:[%s19909_s6 + $0x2b8] sm:$0xf]  ;;  %v14888_v9 = vld [vmem:[%s19907_s4 + $0x9fc] sm:$0xff] }
0x156a   : > { %v7325_v20 = vsel %vm797_vm2, %v7320_v17, 0  ;;  %v7436_v15 = vsel %vm1995_vm13, %v7417_v54, 0  ;;  %v14861_v17 = vld [vmem:[%s19909_s6 + $0x2c0] sm:$0xf0]  ;;  %v14878_v54 = vld [vmem:[%s19907_s4 + $0x81c] sm:$0xff] }
0x156b   : > { %v7257_v32 = vpop.f32.mrf.mxu2  ;;  %7334 = vmatpush.bf16.msrb.mxu3 %v7325_v20  ;;  %7447 = vmatpush.bf16.msrb.mxu0 %v7436_v15  ;;  %v7439_v20 = vsel %vm1995_vm13, %v7418_v21, 0  ;;  %v14854_v21 = vld [vmem:[%s19909_s6 + $0x28c] sm:$0xf] }
0x156c   : > { %v7442_v32 = vsel %vm1995_vm13, %v7419_v13, 0  ;;  %7460 = vmatpush.bf16.msra.mxu1 %v7439_v20  ;;  %v14886_v13 = vld [vmem:[%s19907_s4 + $0x9ec] sm:$0xff]  ;;  %v14883_v20 = vld [vmem:[%s19907_s4 + $0x9d4] sm:$0xff] }
0x156d   : > { %7473 = vmatpush.bf16.msra.mxu2 %v7442_v32 }
0x156f   : > { %7627 = vmatpush.bf16.msra.mxu3 %v14873_v27  ;;  %v14860_v27 = vld [vmem:[%s19909_s6 + $0x2bc] sm:$0xf]  ;;  %7448 = vmatpush.bf16.msrb.mxu0 %v13058_v28 }
0x1570   : > { %v14884_v28 = vld [vmem:[%s19907_s4 + $0x9dc] sm:$0xff] }
0x1573   : > { %7628 = vmatpush.bf16.msra.mxu3 %v14872_v31  ;;  %v13053_v31 = vld [vmem:[%s19909_s6 + $0x2c0] sm:$0xf] }
0x1577   : > { %7629 = vmatpush.bf16.msra.mxu3 %v14871_v43 }
0x157b   : > { %7630 = vmatpush.bf16.msra.mxu3 %v14870_v59 }
0x157f   : > { %7631 = vmatpush.bf16.msra.mxu3 %v14869_v45  ;;  %v14857_v45 = vld [vmem:[%s19909_s6 + $0x2a4] sm:$0xf] }
0x1583   : > { %7632 = vmatpush.bf16.msra.mxu3 %v14868_v14  ;;  %v13035_v14 = vld [vmem:[%s19909_s6 + $0x2ac] sm:$0xf0] }
0x1587   : > { %7633 = vmatpush.bf16.msra.mxu3 %v14867_v50  ;;  %v14893_v50 = vld [vmem:[%s19907_s4 + $0xa24] sm:$0xff] }
0x158b   : > { %7634 = vmatpush.bf16.msra.mxu3 %v14866_v52  ;;  %v13041_v52 = vld [vmem:[%s19909_s6 + $0x2a8] sm:$0xf] }
0x15dc   : > { %v7289_v62 = vpop.f32.mrf.mxu1 }
0x15dd   : > { %v7293_v10 = vmul.f32 0.12309149, %v7289_v62  ;;  %v14863_v62 = vld [vmem:[%s19909_s6 + $0x2d4] sm:$0xf] }
0x15df   : > { %v7294_v34 = vsel %vm15662_vm8, %v7293_v10, -1e+30  ;;  %v13059_v10 = vld [vmem:[%s19909_s6 + $0x2dc] sm:$0xf0] }
0x15e0   : > { %v7295_v33 = vsel %vm595_vm0, %v7294_v34, -inf }
0x15e1   : > { %7296 = vmax.xlane.f32.xlu0 %v7295_v33  ;;  %v13066_v33 = vor.u32 %v14865_v44, %v13065_v6  ;;  %v14874_v6 = vld [vmem:[%s19907_s4 + $0x7fc] sm:$0xff]  ;;  %v14885_v44 = vld [vmem:[%s19907_s4 + $0x9e4] sm:$0xff] }
0x15e3   : > { %7474 = vmatpush.bf16.msra.mxu2 %v13066_v33 }
0x15e4   : > { %v7291_v26 = vpop.f32.mrf.mxu1 }
0x15e5   : > { %v13062_v26 = vor.u32 %v14863_v62, %v13059_v10  ;;  %v14882_v10 = vld [vmem:[%s19907_s4 + $0x9cc] sm:$0xff] }
0x15e7   : > { %7461 = vmatpush.bf16.msra.mxu1 %v13062_v26  ;;  %v13300_v26 = vld [vmem:[%s19907_s4 + $0xc5c] sm:$0xf] }
0x1654   : > { %v7297_v41 = vpop.xlane.xlu0 %7296 }
0x1655   : > { %v7298_v42 = vsub.f32 %v7294_v34, %v7297_v41  ;;  %v14894_v34 = vld [vmem:[%s19907_s4 + $0xa2c] sm:$0xff] }
0x1656   : > { %v14862_v41 = vld [vmem:[%s19909_s6 + $0x2c8] sm:$0xf0] }
0x1657   : > { %v7299_v49 = vmul.f32 1.442695, %v7298_v42  ;;  %v13047_v42 = vld [vmem:[%s19909_s6 + $0x2c4] sm:$0xf0]  ;;  %v13054_v59 = vor.u32 %v14862_v41, %v13053_v31 }
0x1658   : > { %v13050_v43 = vor.u32 %v14860_v27, %v13047_v42  ;;  %v7950_v27 = vunpack.c.l.b16 %v13300_v26 }
0x1659   : > { %15161 = vpow2.f32 %v7299_v49  ;;  %v13046_v49 = vor.u32 %v14861_v17, %v13045_v35  ;;  %7475 = vmatpush.bf16.msra.mxu2 %v13054_v59  ;;  %v13102_v35 = vld [vmem:[%s19907_s4 + $0x83c] sm:$0xf]  ;;  %v14904_v59 = vld [vmem:[%s19907_s4 + $0xc0c] sm:$0xff] }
0x165a   : > { %7462 = vmatpush.bf16.msra.mxu1 %v13050_v43  ;;  %v7590_v17 = vunpack.c.l.b16 %v13102_v35  ;;  %v7967_v41 = vpack.c.b16 %v7950_v27, %v7950_v27 }
0x165b   : > { %7449 = vmatpush.bf16.msrb.mxu0 %v13046_v49  ;;  %v14905_v49 = vld [vmem:[%s19907_s4 + $0xc14] sm:$0xff] }
0x165c   : > { %v7607_v32 = vpack.c.b16 %v7590_v17, %v7590_v17  ;;  %v7985_v43 = vsel %vm797_vm2, %v7967_v41, 0 }
0x165e   : > { %v7625_v62 = vsel %vm797_vm2, %v7607_v32, 0 }
0x165f   : > { %v15162_v8 = vpop.eup %15161 }
0x1660   : > { %v7301_v47 = vsel %vm595_vm0, %v15162_v8, 0.0 }
0x1661   : > { %7302 = vadd.xlane.f32.xlu1 %v7301_v47  ;;  %v14858_v47 = vld [vmem:[%s19909_s6 + $0x2a8] sm:$0xf0] }
0x16d4   : > { %v7303_v36 = vpop.xlane.xlu1 %7302 }
0x16d5   : > { %15163 = vrcp.f32 %v7303_v36  ;;  %v7315_v1 = vand.u32 2147483648, %v7303_v36  ;;  %v7313_v63 = vand.u32 2147483647, %v7303_v36  ;;  %vm7309_vm5 = vweird.f32 %v7303_v36 }
0x16d7   : > { %v7316_v2 = vor.u32 1.1754944e-38, %v7315_v1  ;;  %vm7314_vm9 = vcmp.eq.f32.partialorder %v7313_v63, 8.507059e+37  ;;  %v13038_v1 = vor.u32 %v14857_v45, %v13035_v14  ;;  %v14892_v63 = vld [vmem:[%s19907_s4 + $0xa1c] sm:$0xff]  ;;  %v14903_v14 = vld [vmem:[%s19907_s4 + $0xc04] sm:$0xff] }
0x16d9   : > { %7463 = vmatpush.bf16.msra.mxu1 %v13038_v1 }
0x16db   : > { %v15164_v56 = vpop.eup %15163 }
0x16dc   : > { %v7305_v60 = vmul.f32 %v15164_v56, %v7303_v36  ;;  %vm7310_vm4 = vweird.f32 %v15164_v56  ;;  %v14859_v36 = vld [vmem:[%s19909_s6 + $0x2b0] sm:$0xf0] }
0x16dd   : > { %vm7311_vm7 = vmor %vm7309_vm5, %vm7310_vm4  ;;  %vm9838_vm5 = vcmask 0  }
0x16de   : > { %v7306_v61 = vsub.f32 1.0, %v7305_v60  ;;  %v13021_v60 = vld [vmem:[%s19909_s6 + $0x288] sm:$0xf] }
0x16e0   : > { %v7307_v38 = vmul.f32 %v15164_v56, %v7306_v61  ;;  %v14855_v61 = vld [vmem:[%s19909_s6 + $0x290] sm:$0xf0] }
0x16e2   : > { %v7308_v0 = vadd.f32 %v15164_v56, %v7307_v38  ;;  %v13042_v38 = vor.u32 %v14859_v36, %v13041_v52  ;;  %v14901_v36 = vld [vmem:[%s19907_s4 + $0xbf4] sm:$0xff] }
0x16e4   : > { %v7312_v3 = vsel %vm7311_vm7, %v15164_v56, %v7308_v0  ;;  %v13029_v0 = vld [vmem:[%s19909_s6 + $0x290] sm:$0xf]  ;;  %7476 = vmatpush.bf16.msra.mxu2 %v13042_v38  ;;  %v14899_v38 = vld [vmem:[%s19907_s4 + $0xbe4] sm:$0xff] }
0x16e5   : > { %v7317_v55 = vsel %vm7314_vm9, %v7316_v2, %v7312_v3  ;;  %v14856_v2 = vld [vmem:[%s19909_s6 + $0x298] sm:$0xf0]  ;;  %v13022_v3 = vor.u32 %v14855_v61, %v13021_v60  ;;  %v14900_v60 = vld [vmem:[%s19907_s4 + $0xbec] sm:$0xff] }
0x16e6   : > { %v7318_v4 = vmul.f32 %v15162_v8, %v7317_v55  ;;  %v13033_v8 = vld [vmem:[%s19909_s6 + $0x2a0] sm:$0xf]  ;;  %v14881_v55 = vld [vmem:[%s19907_s4 + $0x834] sm:$0xff]  ;;  %v14912_v61 = vld [vmem:[%s19907_s4 + $0xc4c] sm:$0xff] }
0x16e7   : > { %v13034_v56 = vor.u32 %v14858_v47, %v13033_v8 }
0x16e8   : > { %v7319_v46 = vpack.c.bf16 %v7318_v4, %v7318_v4  ;;  %v13030_v4 = vor.u32 %v14856_v2, %v13029_v0  ;;  %v14898_v0 = vld [vmem:[%s19907_s4 + $0xbdc] sm:$0xff] }
0x16e9   : > { %7450 = vmatpush.bf16.msrb.mxu0 %v13034_v56  ;;  %v14913_v56 = vld [vmem:[%s19907_s4 + $0xc54] sm:$0xff]  ;;  %v14910_v2 = vld [vmem:[%s19907_s4 + $0xc3c] sm:$0xff] }
0x16ea   : > { %13000 = vmatmul.msk.bf16.vlgmr.msrb.gmra.mxu3 %vm595_vm0, %v7319_v46  ;;  %v14889_v46 = vld [vmem:[%s19907_s4 + $0xa04] sm:$0xff]  ;;  %7477 = vmatpush.bf16.msra.mxu2 %v13030_v4  ;;  %v14908_v4 = vld [vmem:[%s19907_s4 + $0xc2c] sm:$0xff] }
0x16eb   : > { %7820 = vmatpush.bf16.msrb.mxu3 %v14897_v7  ;;  %v14891_v7 = vld [vmem:[%s19907_s4 + $0xa14] sm:$0xff] }
0x16ed   : > { %7451 = vmatpush.bf16.msrb.mxu0 %v13022_v3 }
0x16ee   : > { %7807 = vmatpush.bf16.msrb.mxu2 %v14889_v46  ;;  %v14907_v46 = vld [vmem:[%s19907_s4 + $0xc24] sm:$0xff] }
0x16ef   : > { %7821 = vmatpush.bf16.msrb.mxu3 %v14896_v39  ;;  %v14890_v39 = vld [vmem:[%s19907_s4 + $0xa0c] sm:$0xff] }
0x16f1   : > { %7640 = vmatpush.bf16.msra.mxu0 %v14881_v55  ;;  %v14909_v55 = vld [vmem:[%s19907_s4 + $0xc34] sm:$0xff] }
0x16f2   : > { %7808 = vmatpush.bf16.msrb.mxu2 %v14888_v9 }
0x16f3   : > { %7822 = vmatpush.bf16.msrb.mxu3 %v14895_v23  ;;  %v13023_v23 = vld [vmem:[%s19909_s6 + $0x294] sm:$0xf0] }
0x16f4   : > { %v13026_v15 = vor.u32 %v14854_v21, %v13023_v23 }
0x16f5   : > { %7641 = vmatpush.bf16.msra.mxu0 %v14880_v48  ;;  %v14906_v48 = vld [vmem:[%s19907_s4 + $0xc1c] sm:$0xff] }
0x16f6   : > { %7809 = vmatpush.bf16.msrb.mxu2 %v14887_v12  ;;  %7464 = vmatpush.bf16.msra.mxu1 %v13026_v15 }
0x16f7   : > { %7823 = vmatpush.bf16.msrb.mxu3 %v14894_v34  ;;  %v13201_v34 = vld [vmem:[%s19907_s4 + $0xa4c] sm:$0xf] }
0x16f8   : > { %v7770_v33 = vunpack.c.l.b16 %v13201_v34 }
0x16f9   : > { %7642 = vmatpush.bf16.msra.mxu0 %v14879_v40 }
0x16fa   : > { %7635 = vmatmul.bf16.vlgmr.msra.gmra.mxu3 %v17767_v53  ;;  %7810 = vmatpush.bf16.msrb.mxu2 %v14886_v13  ;;  %v7787_v31 = vpack.c.b16 %v7770_v33, %v7770_v33 }
0x16fb   : > { %7824 = vmatpush.bf16.msrb.mxu3 %v14893_v50  ;;  %7660 = vmatpush.bf16.msrb.mxu1 %v7625_v62  ;;  %v14902_v50 = vld [vmem:[%s19907_s4 + $0xbfc] sm:$0xff] }
0x16fc   : > { %v7805_v47 = vsel %vm797_vm2, %v7787_v31, 0  ;;  %v15120_v31 = vld [vmem:[%s19908_s5 + $0x17] ss:$0 sm:$0xff] }
0x16fd   : > { %7643 = vmatpush.bf16.msra.mxu0 %v14878_v54 }
0x16fe   : > { %7811 = vmatpush.bf16.msrb.mxu2 %v14885_v44 }
0x16ff   : > { %7825 = vmatpush.bf16.msrb.mxu3 %v14892_v63  ;;  %v14911_v63 = vld [vmem:[%s19907_s4 + $0xc44] sm:$0xff] }
0x1701   : > { %7644 = vmatpush.bf16.msra.mxu0 %v14877_v51 }
0x1702   : > { %7812 = vmatpush.bf16.msrb.mxu2 %v14884_v28 }
0x1703   : > { %7826 = vmatpush.bf16.msrb.mxu3 %v14891_v7 }
0x1705   : > { %7645 = vmatpush.bf16.msra.mxu0 %v14876_v30 }
0x1706   : > { %7813 = vmatpush.bf16.msrb.mxu2 %v14883_v20 }
0x1707   : > { %7827 = vmatpush.bf16.msrb.mxu3 %v14890_v39 }
0x1709   : > { %7646 = vmatpush.bf16.msra.mxu0 %v14875_v19 }
0x170a   : > { %7828 = vmatmul.bf16.vlgmr.msrb.gmra.mxu3 %v17771_v11  ;;  %7814 = vmatpush.bf16.msrb.mxu2 %v14882_v10 }
0x170d   : > { %7647 = vmatpush.bf16.msra.mxu0 %v14874_v6 }
0x176d   : > { %v7336_v42 = vpop.f32.mrf.mxu3 }
0x176e   : > { %v7340_v8 = vpack.c.bf16 %v7336_v42, %v7336_v42 }
0x1770   : > { %13067 = vmatmul.msk.bf16.vlgmr.msrb.gmra.mxu0 %vm1202_vm6, %v7340_v8  ;;  %13068 = vmatmul.msk.bf16.vlgmr.msra.gmra.mxu1 %vm1202_vm6, %v7340_v8 }
0x1771   : > { %13069 = vmatmul.msk.bf16.vlgmr.msra.gmra.mxu2 %vm1202_vm6, %v7340_v8  ;;  %7987 = vmatpush.bf16.msrb.mxu0 %v14905_v49 }
0x1772   : > { %7840 = vmatpush.bf16.msra.mxu1 %v7805_v47  ;;  %8020 = vmatpush.bf16.msra.mxu2 %v7985_v43 }
0x1775   : > { %v7338_v45 = vpop.f32.mrf.mxu3  ;;  %7988 = vmatpush.bf16.msrb.mxu0 %v14904_v59 }
0x1779   : > { %7989 = vmatpush.bf16.msrb.mxu0 %v14903_v14 }
0x177d   : > { %v7636_v52 = vpop.f32.mrf.mxu3  ;;  %7990 = vmatpush.bf16.msrb.mxu0 %v14902_v50 }
0x1780   : > { %7648 = vmatmul.bf16.vlgmr.msra.gmra.mxu0 %v17771_v11  ;;  %13168 = vmatmul.msk.bf16.vlgmr.msrb.gmra.mxu1 %vm595_vm0, %v17775_v5 }
0x1781   : > { %7815 = vmatmul.bf16.vlgmr.msrb.gmra.mxu2 %v17767_v53  ;;  %7991 = vmatpush.bf16.msrb.mxu0 %v14901_v36 }
0x1782   : > { %8000 = vmatpush.bf16.msrb.mxu1 %v14913_v56 }
0x1785   : > { %v7638_v1 = vpop.f32.mrf.mxu3  ;;  %7992 = vmatpush.bf16.msrb.mxu0 %v14900_v60 }
0x1786   : > { %8001 = vmatpush.bf16.msrb.mxu1 %v14912_v61 }
0x1789   : > { %7993 = vmatpush.bf16.msrb.mxu0 %v14899_v38 }
0x178a   : > { %8002 = vmatpush.bf16.msrb.mxu1 %v14911_v63 }
0x178d   : > { %v7829_v3 = vpop.f32.mrf.mxu3  ;;  %7994 = vmatpush.bf16.msrb.mxu0 %v14898_v0  ;;  %v13385_v0 = vld [vmem:[%s19909_s6 + $0x354] sm:$0x11] }
0x178e   : > { %8003 = vmatpush.bf16.msrb.mxu1 %v14910_v2  ;;  %v8156_v2 = vunpack.c.l.b16 %v13385_v0 }
0x1790   : > { %13267 = vmatmul.msk.bf16.vlgmr.msra.gmra.mxu1 %vm595_vm0, %v17775_v5  ;;  %7995 = vmatmul.bf16.vlgmr.msrb.gmra.mxu0 %v17767_v53  ;;  %v6703_v53 = vadd.f32 %v18315_v18, %v18384_v37 }
0x1791   : > { %13366 = vmatmul.msk.bf16.vlgmr.msra.gmra.mxu2 %vm595_vm0, %v17775_v5 }
0x1792   : > { %8004 = vmatpush.bf16.msrb.mxu1 %v14909_v55  ;;  %v8158_v55 = vunpack.c.l.b16 %v13386_v22 }
0x1795   : > { %v7831_v7 = vpop.f32.mrf.mxu3 }
0x1796   : > { %8005 = vmatpush.bf16.msrb.mxu1 %v14908_v4  ;;  %v13425_v4 = vld [vmem:[%s19909_s6 + $0x33c] sm:$0xf]  ;;  %v8171_v7 = vpack.c.b16 %v8156_v2, %v8156_v2 }
0x179a   : > { %8006 = vmatpush.bf16.msrb.mxu1 %v14907_v46 }
0x179e   : > { %8007 = vmatpush.bf16.msrb.mxu1 %v14906_v48  ;;  %v8173_v48 = vpack.c.b16 %v8158_v55, %v8158_v55 }
0x17a1   : > { %8008 = vmatmul.bf16.vlgmr.msrb.gmra.mxu1 %v17771_v11  ;;  %v15119_v11 = vld [vmem:[%s19908_s5 + $0x13] ss:$0 sm:$0xff] }
0x17ed   : > { %v7453_v5 = vpop.f32.mrf.mxu0  ;;  %v7466_v39 = vpop.f32.mrf.mxu1 }
0x17ee   : > { %v18661_v9 = vadd.f32 %v7453_v5, %v6703_v53  ;;  %v18664_v40 = vadd.f32 %v7466_v39, %v18386_v57  ;;  %v15118_v57 = vld [vmem:[%s19908_s5 + $0xf] ss:$0 sm:$0xff]  ;;  %v14924_v53 = vld [vmem:[%s19909_s6 + $0x344] sm:$0xf0]  ;;  %v14923_v5 = vld [vmem:[%s19909_s6 + $0x340] sm:$0xf] }
0x17ef   : > { %v7637_v35 = vadd.f32 %v15118_v57, %v7636_v52  ;;  %v13427_v39 = vld [vmem:[%s19909_s6 + $0x348] sm:$0xf0]  ;;  %v13415_v57 = vld [vmem:[%s19909_s6 + $0x330] sm:$0xf0] }
0x17f4   : > { %v7479_v12 = vpop.f32.mrf.mxu2 }
0x17f5   : > { %v18667_v54 = vadd.f32 %v7479_v12, %v18388_v58  ;;  %v7455_v51 = vpop.f32.mrf.mxu0  ;;  %v7468_v30 = vpop.f32.mrf.mxu1  ;;  %v13433_v12 = vld [vmem:[%s19909_s6 + $0x344] sm:$0xf] }
0x17f6   : > { %v14925_v51 = vld [vmem:[%s19909_s6 + $0x34c] sm:$0xf0]  ;;  %v8190_v30 = vsel %vm1995_vm13, %v8171_v7, 0  ;;  %v13438_v7 = vld [vmem:[%s19910_s7 + $0x3] sm:$0x7] }
0x17f7   : > { %8201 = vmatpush.bf16.msra.mxu0 %v8190_v30 }
0x17fc   : > { %v7481_v19 = vpop.f32.mrf.mxu2 }
0x17fd   : > { %v7649_v21 = vpop.f32.mrf.mxu0  ;;  %v7662_v23 = vpop.f32.mrf.mxu1 }
0x17fe   : > { %v7650_v20 = vadd.f32 %v7649_v21, %v7637_v35  ;;  %v8196_v21 = vsel %vm1995_vm13, %v8173_v48, 0 }
0x17ff   : > { %8227 = vmatpush.bf16.msra.mxu1 %v8196_v21 }
0x1800   : > { %v7663_v10 = vadd.f32 %v7662_v23, %v7650_v20  ;;  %v13426_v23 = vor.u32 %v14924_v53, %v13425_v4 }
0x1802   : > { %v8026_v27 = vpack.c.bf16 %v7663_v10, %v7663_v10  ;;  %8202 = vmatpush.bf16.msra.mxu0 %v13426_v23  ;;  %v13403_v10 = vld [vmem:[%s19909_s6 + $0x318] sm:$0xf0] }
0x1804   : > { %v7816_v18 = vpop.f32.mrf.mxu2 }
0x1805   : > { %v7651_v37 = vpop.f32.mrf.mxu0  ;;  %v7664_v15 = vpop.f32.mrf.mxu1  ;;  %v7817_v13 = vadd.f32 %v15119_v11, %v7816_v18  ;;  %v13430_v11 = vor.u32 %v14923_v5, %v13427_v39  ;;  %v13413_v18 = vld [vmem:[%s19909_s6 + $0x324] sm:$0xf]  ;;  %v8245_v5 = vperm.slane %v13438_v7, 2 }
0x1806   : > { %v13434_v37 = vor.u32 %v14925_v51, %v13433_v12  ;;  %v14921_v15 = vld [vmem:[%s19909_s6 + $0x32c] sm:$0xf0]  ;;  %v8243_v12 = vperm.slane %v13438_v7, 0  ;;  %v8244_v51 = vperm.slane %v13438_v7, 1 }
0x1807   : > { %v7830_v58 = vadd.f32 %v7829_v3, %v7817_v13  ;;  %v8157_v3 = vunpack.c.h.b16 %v13385_v0  ;;  %v14920_v13 = vld [vmem:[%s19909_s6 + $0x328] sm:$0xf] }
0x1808   : > { %v13418_v35 = vor.u32 %v14920_v13, %v13415_v57  ;;  %8228 = vmatpush.bf16.msra.mxu1 %v13434_v37  ;;  %v14916_v0 = vld [vmem:[%s19909_s6 + $0x304] sm:$0xf0] }
0x1809   : > { %v8172_v46 = vpack.c.b16 %v8157_v3, %v8157_v3 }
0x180b   : > { %v8193_v19 = vsel %vm1995_vm13, %v8172_v46, 0 }
0x180c   : > { %v7818_v6 = vpop.f32.mrf.mxu2 }
0x180d   : > { %v7842_v44 = vpop.f32.mrf.mxu1  ;;  %v7996_v28 = vpop.f32.mrf.mxu0  ;;  %v13421_v6 = vld [vmem:[%s19909_s6 + $0x32c] sm:$0xf] }
0x180e   : > { %v7843_v17 = vadd.f32 %v7842_v44, %v7830_v58  ;;  %v7997_v42 = vadd.f32 %v15120_v31, %v7996_v28  ;;  %v14922_v58 = vld [vmem:[%s19909_s6 + $0x334] sm:$0xf0]  ;;  %v13414_v28 = vor.u32 %v14921_v15, %v13413_v18 }
0x180f   : > { %v13422_v20 = vor.u32 %v14922_v58, %v13421_v6 }
0x1810   : > { %v8027_v32 = vpack.c.bf16 %v7843_v17, %v7843_v17  ;;  %v13401_v17 = vld [vmem:[%s19909_s6 + $0x30c] sm:$0xf]  ;;  %8203 = vmatpush.bf16.msra.mxu0 %v13414_v28  ;;  %v13750_v28 = vld [vmem:[%s19913_s10 + $0x3f0] sm:$0xf] }
0x1811   : > { %8229 = vmatpush.bf16.msra.mxu1 %v13422_v20  ;;  %v14988_v20 = vld [vmem:[%s19913_s10 + $0x3fc] sm:$0xf0] }
0x1812   : > { %v8032_v62 = vsel %vm1202_vm6, %v8027_v32, 0  ;;  %v14918_v32 = vld [vmem:[%s19909_s6 + $0x314] sm:$0xf0] }
0x1813   : > { %8041 = vmatpush.bf16.xpose.msra.mxu3 %v8032_v62  ;;  %v14917_v62 = vld [vmem:[%s19909_s6 + $0x310] sm:$0xf] }
0x1814   : > { %v8022_v34 = vpop.f32.mrf.mxu2 }
0x1815   : > { %v7844_v33 = vpop.f32.mrf.mxu1  ;;  %v7998_v26 = vpop.f32.mrf.mxu0 }
0x1816   : > { %v14919_v33 = vld [vmem:[%s19909_s6 + $0x31c] sm:$0xf0]  ;;  %v13402_v26 = vor.u32 %v14918_v32, %v13401_v17  ;;  %v13590_v17 = vld [vmem:[%s19913_s10 + $0x2b0] sm:$0xf] }
0x1817   : > { %v14948_v32 = vld [vmem:[%s19913_s10 + $0x2bc] sm:$0xf0] }
0x1818   : > { %8204 = vmatpush.bf16.msra.mxu0 %v13402_v26  ;;  %v13718_v26 = vld [vmem:[%s19913_s10 + $0x3b0] sm:$0xf] }
0x181a   : > { %13367 = vmatmul.msk.bf16.vlgmr.msra.gmra.mxu3 %vm1202_vm6, %v8026_v27  ;;  %v13406_v27 = vor.u32 %v14917_v62, %v13403_v10  ;;  %v13751_v62 = vor.u32 %v14988_v20, %v13750_v28  ;;  %v13734_v10 = vld [vmem:[%s19913_s10 + $0x3d0] sm:$0xf] }
0x181b   : > { %8214 = vmatpush.bf16.msrb.mxu3 %v8193_v19  ;;  %v13654_v28 = vld [vmem:[%s19913_s10 + $0x330] sm:$0xf] }
0x181c   : > { %v8024_v41 = vpop.f32.mrf.mxu2 }
0x181e   : > { %v8009_v49 = vpop.f32.mrf.mxu1 }
0x181f   : > { %v8010_v8 = vadd.f32 %v8009_v49, %v7997_v42  ;;  %8215 = vmatpush.bf16.msrb.mxu3 %v13430_v11 }
0x1821   : > { %v8023_v47 = vadd.f32 %v8022_v34, %v8010_v8  ;;  %v13409_v34 = vld [vmem:[%s19909_s6 + $0x314] sm:$0xf] }
0x1822   : > { %v13410_v31 = vor.u32 %v14919_v33, %v13409_v34  ;;  %v14984_v34 = vld [vmem:[%s19913_s10 + $0x3dc] sm:$0xf0] }
0x1823   : > { %v8074_v43 = vpack.c.bf16 %v8023_v47, %v8023_v47  ;;  %8216 = vmatpush.bf16.msrb.mxu3 %v13418_v35  ;;  %v13735_v33 = vor.u32 %v14984_v34, %v13734_v10  ;;  %v13576_v10 = vld [vmem:[%s19913_s10 + $0x2a0] sm:$0xf0] }
0x1824   : > { %8230 = vmatpush.bf16.msra.mxu1 %v13410_v31  ;;  %v14980_v31 = vld [vmem:[%s19913_s10 + $0x3bc] sm:$0xf0] }
0x1825   : > { %v8079_v59 = vsel %vm797_vm2, %v8074_v43, 0 }
0x1826   : > { %v8011_v45 = vpop.f32.mrf.mxu1  ;;  %8088 = vmatpush.bf16.msrb.mxu2 %v8079_v59 }
0x1827   : > { %8217 = vmatpush.bf16.msrb.mxu3 %v13406_v27  ;;  %v13591_v27 = vor.u32 %v14948_v32, %v13590_v17  ;;  %v14978_v17 = vld [vmem:[%s19913_s10 + $0x3b4] sm:$0xf]  ;;  %v13720_v32 = vld [vmem:[%s19913_s10 + $0x3c0] sm:$0xf0] }
0x1828   : > { %v13723_v34 = vor.u32 %v14978_v17, %v13720_v32 }
0x189d   : > { %v8043_v14 = vpop.f32.mrf.mxu3 }
0x189e   : > { %v8047_v50 = vmul.f32 0.12309149, %v8043_v14 }
0x18a0   : > { %v8048_v52 = vsel %vm15662_vm8, %v8047_v50, -1e+30 }
0x18a1   : > { %v8049_v36 = vsel %vm595_vm0, %v8048_v52, -inf }
0x18a2   : > { %8050 = vmax.xlane.f32.xlu2 %v8049_v36 }
0x18a5   : > { %v8045_v56 = vpop.f32.mrf.mxu3 }
0x18a6   : > { %v13389_v56 = vld [vmem:[%s19909_s6 + $0x2f4] sm:$0xf] }
0x1915   : > { %v8051_v60 = vpop.xlane.xlu2 %8050 }
0x1916   : > { %v8052_v61 = vsub.f32 %v8048_v52, %v8051_v60  ;;  %v14915_v60 = vld [vmem:[%s19909_s6 + $0x2fc] sm:$0xf0] }
0x1918   : > { %v8053_v1 = vmul.f32 1.442695, %v8052_v61  ;;  %v14914_v61 = vld [vmem:[%s19909_s6 + $0x2f8] sm:$0xf] }
0x191a   : > { %15165 = vpow2.f32 %v8053_v1  ;;  %v13390_v1 = vor.u32 %v14915_v60, %v13389_v56  ;;  %v13542_v60 = vld [vmem:[%s19913_s10 + $0x250] sm:$0xf] }
0x191c   : > { %8205 = vmatpush.bf16.msra.mxu0 %v13390_v1 }
0x1920   : > { %v18684_v38 = vpop.eup %15165  ;;  %8750 = vmatpush.bf16.msrb.mxu0 %v13751_v62  ;;  %v14942_v62 = vld [vmem:[%s19913_s10 + $0x294] sm:$0xf] }
0x1921   : > { %v8055_v63 = vsel %vm595_vm0, %v18684_v38, 0.0 }
0x1922   : > { %8056 = vadd.xlane.f32.xlu0 %v8055_v63  ;;  %v13397_v63 = vld [vmem:[%s19909_s6 + $0x2fc] sm:$0xf] }
0x1923   : > { %v13398_v2 = vor.u32 %v14916_v0, %v13397_v63  ;;  %v14932_v63 = vld [vmem:[%s19913_s10 + $0x23c] sm:$0xf0] }
0x1924   : > { %8751 = vmatpush.bf16.msrb.mxu0 %v13735_v33  ;;  %v13579_v33 = vor.u32 %v14942_v62, %v13576_v10 }
0x1925   : > { %8231 = vmatpush.bf16.msra.mxu1 %v13398_v2 }
0x1995   : > { %v8057_v44 = vpop.xlane.xlu0 %8056 }
0x1996   : > { %15167 = vrcp.f32 %v8057_v44  ;;  %v8069_v8 = vand.u32 2147483648, %v8057_v44  ;;  %v8067_v43 = vand.u32 2147483647, %v8057_v44  ;;  %vm8063_vm10 = vweird.f32 %v8057_v44 }
0x1998   : > { %v8070_v45 = vor.u32 1.1754944e-38, %v8069_v8  ;;  %vm8068_vm12 = vcmp.eq.f32.partialorder %v8067_v43, 8.507059e+37  ;;  %v14944_v8 = vld [vmem:[%s19913_s10 + $0x29c] sm:$0xf0]  ;;  %v13719_v43 = vor.u32 %v14980_v31, %v13718_v26  ;;  %v13638_v26 = vld [vmem:[%s19913_s10 + $0x310] sm:$0xf] }
0x1999   : > { %v14974_v31 = vld [vmem:[%s19913_s10 + $0x394] sm:$0xf] }
0x199a   : > { %8752 = vmatpush.bf16.msrb.mxu0 %v13719_v43 }
0x199c   : > { %v15168_v41 = vpop.eup %15167 }
0x199d   : > { %v8059_v42 = vmul.f32 %v15168_v41, %v8057_v44  ;;  %vm8064_vm8 = vweird.f32 %v15168_v41  ;;  %v13622_v44 = vld [vmem:[%s19913_s10 + $0x2f0] sm:$0xf] }
0x199e   : > { %vm8065_vm11 = vmor %vm8063_vm10, %vm8064_vm8 }
0x199f   : > { %v8060_v49 = vsub.f32 1.0, %v8059_v42  ;;  %v13624_v42 = vld [vmem:[%s19913_s10 + $0x300] sm:$0xf0] }
0x19a1   : > { %v8061_v47 = vmul.f32 %v15168_v41, %v8060_v49  ;;  %v13574_v49 = vld [vmem:[%s19913_s10 + $0x290] sm:$0xf] }
0x19a3   : > { %v8062_v59 = vadd.f32 %v15168_v41, %v8061_v47 }
0x19a5   : > { %v8066_v14 = vsel %vm8065_vm11, %v15168_v41, %v8062_v59  ;;  %v14954_v41 = vld [vmem:[%s19913_s10 + $0x2f4] sm:$0xf]  ;;  %v13575_v59 = vor.u32 %v14944_v8, %v13574_v49  ;;  %v13560_v8 = vld [vmem:[%s19913_s10 + $0x280] sm:$0xf0] }
0x19a6   : > { %v8071_v50 = vsel %vm8068_vm12, %v8070_v45, %v8066_v14  ;;  %v13627_v47 = vor.u32 %v14954_v41, %v13624_v42  ;;  %v13702_v45 = vld [vmem:[%s19913_s10 + $0x390] sm:$0xf]  ;;  %v14976_v14 = vld [vmem:[%s19913_s10 + $0x39c] sm:$0xf0]  ;;  %v13704_v42 = vld [vmem:[%s19913_s10 + $0x3a0] sm:$0xf0] }
0x19a7   : > { %v8072_v52 = vmul.f32 %v18684_v38, %v8071_v50  ;;  %v13391_v38 = vld [vmem:[%s19909_s6 + $0x300] sm:$0xf0]  ;;  %v13558_v50 = vld [vmem:[%s19913_s10 + $0x270] sm:$0xf]  ;;  %v14938_v49 = vld [vmem:[%s19913_s10 + $0x274] sm:$0xf] }
0x19a8   : > { %v13394_v22 = vor.u32 %v14914_v61, %v13391_v38  ;;  %8776 = vmatpush.bf16.msrb.mxu1 %v13627_v47  ;;  %v14936_v61 = vld [vmem:[%s19913_s10 + $0x25c] sm:$0xf0]  ;;  %v13526_v38 = vld [vmem:[%s19913_s10 + $0x230] sm:$0xf]  ;;  %v13707_v47 = vor.u32 %v14974_v31, %v13704_v42  ;;  %v13563_v43 = vor.u32 %v14938_v49, %v13560_v8  ;;  %v13534_v31 = vld [vmem:[%s19913_s10 + $0x238] sm:$0xf] }
0x19a9   : > { %v8073_v36 = vpack.c.bf16 %v8072_v52, %v8072_v52  ;;  %v14940_v52 = vld [vmem:[%s19913_s10 + $0x27c] sm:$0xf0]  ;;  %v13543_v1 = vor.u32 %v14936_v61, %v13542_v60  ;;  %v13527_v2 = vor.u32 %v14932_v63, %v13526_v38  ;;  %v13544_v60 = vld [vmem:[%s19913_s10 + $0x260] sm:$0xf0]  ;;  %v13614_v61 = vld [vmem:[%s19913_s10 + $0x2d8] sm:$0xf] }
0x19aa   : > { %8218 = vmatpush.bf16.msrb.mxu3 %v13394_v22  ;;  %v13559_v56 = vor.u32 %v14940_v52, %v13558_v50  ;;  %v14970_v50 = vld [vmem:[%s19913_s10 + $0x374] sm:$0xf]  ;;  %v13688_v52 = vld [vmem:[%s19913_s10 + $0x380] sm:$0xf0]  ;;  %v14953_v38 = vld [vmem:[%s19913_s10 + $0x2e4] sm:$0xf0] }
0x19ab   : > { %13368 = vmatmul.msk.bf16.vlgmr.msrb.gmra.mxu2 %vm595_vm0, %v8073_v36  ;;  %v13703_v36 = vor.u32 %v14976_v14, %v13702_v45  ;;  %v14957_v45 = vld [vmem:[%s19913_s10 + $0x304] sm:$0xf0]  ;;  %v13615_v63 = vor.u32 %v14953_v38, %v13614_v61  ;;  %v13518_v49 = vld [vmem:[%s19913_s10 + $0x218] sm:$0xf] }
0x19ac   : > { %v14929_v8 = vld [vmem:[%s19913_s10 + $0x224] sm:$0xf0] }
0x19ad   : > { %8753 = vmatpush.bf16.msrb.mxu0 %v13703_v36  ;;  %v13691_v36 = vor.u32 %v14970_v50, %v13688_v52  ;;  %v13439_v50 = vld [vmem:[%s19911_s8 + $0x3] sm:$0x7] }
0x19ae   : > { %v8293_v61 = vperm.slane %v13439_v50, 1 }
0x1a2e   : > { %v8090_v3 = vpop.f32.mrf.mxu2 }
0x1a2f   : > { %v8094_v55 = vpack.c.bf16 %v8090_v3, %v8090_v3 }
0x1a31   : > { %13435 = vmatmul.msk.bf16.vlgmr.msra.gmra.mxu0 %vm1202_vm6, %v8094_v55  ;;  %13436 = vmatmul.msk.bf16.vlgmr.msrb.gmra.mxu3 %vm1202_vm6, %v8094_v55 }
0x1a32   : > { %13437 = vmatmul.msk.bf16.vlgmr.msra.gmra.mxu1 %vm1202_vm6, %v8094_v55 }
0x1a36   : > { %v8092_v4 = vpop.f32.mrf.mxu2 }
0x1aae   : > { %v8207_v46 = vpop.f32.mrf.mxu0 }
0x1aaf   : > { %v8233_v48 = vpop.f32.mrf.mxu1  ;;  %v8237_v39 = vadd.f32 %v8207_v46, %v18661_v9 }
0x1ab0   : > { %v8239_v53 = vadd.f32 %v8233_v48, %v18667_v54 }
0x1ab1   : > { %v8249_v21 = vadd.f32 %v8243_v12, %v8237_v39  ;;  %v13510_v12 = vld [vmem:[%s19913_s10 + $0x210] sm:$0xf] }
0x1ab2   : > { %v8251_v30 = vadd.f32 %v8245_v5, %v8239_v53 }
0x1ab3   : > { %v8252_v13 = vadd.f32 %v8249_v21, %v17759_v25  ;;  %v13606_v25 = vld [vmem:[%s19913_s10 + $0x2d0] sm:$0xf]  ;;  %v14972_v21 = vld [vmem:[%s19913_s10 + $0x37c] sm:$0xf0] }
0x1ab4   : > { %v8220_v19 = vpop.f32.mrf.mxu3  ;;  %v8254_v15 = vadd.f32 %v8251_v30, %v17763_v16 }
0x1ab5   : > { %v8238_v23 = vadd.f32 %v8220_v19, %v18664_v40  ;;  %v14956_v40 = vld [vmem:[%s19913_s10 + $0x2fc] sm:$0xf0]  ;;  %v13686_v19 = vld [vmem:[%s19913_s10 + $0x370] sm:$0xf] }
0x1ab6   : > { %v8209_v11 = vpop.f32.mrf.mxu0  ;;  %v8260_v9 = vsel %vm595_vm0, %v8254_v15, 0.0  ;;  %v13623_v16 = vor.u32 %v14956_v40, %v13622_v44  ;;  %v13736_v44 = vld [vmem:[%s19913_s10 + $0x3e0] sm:$0xf0]  ;;  %v14946_v40 = vld [vmem:[%s19913_s10 + $0x2b4] sm:$0xf] }
0x1ab7   : > { %v8250_v18 = vadd.f32 %v8244_v51, %v8238_v23  ;;  %v8235_v37 = vpop.f32.mrf.mxu1  ;;  %v14928_v51 = vld [vmem:[%s19913_s10 + $0x21c] sm:$0xf0]  ;;  %v14986_v23 = vld [vmem:[%s19913_s10 + $0x3f4] sm:$0xf]  ;;  %v13687_v11 = vor.u32 %v14972_v21, %v13686_v19  ;;  %v13656_v19 = vld [vmem:[%s19913_s10 + $0x340] sm:$0xf0] }
0x1ab8   : > { %8737 = vmatpush.bf16.msra.mxu2 %v13623_v16  ;;  %v13511_v30 = vor.u32 %v14928_v51, %v13510_v12  ;;  %v14950_v37 = vld [vmem:[%s19913_s10 + $0x2d4] sm:$0xf] }
0x1ab9   : > { %v8253_v57 = vadd.f32 %v8250_v18, %v17761_v29  ;;  %v14952_v29 = vld [vmem:[%s19913_s10 + $0x2dc] sm:$0xf0]  ;;  %v13752_v18 = vld [vmem:[%s19913_s10 + $0x400] sm:$0xf0]  ;;  %8754 = vmatpush.bf16.msrb.mxu0 %v13687_v11  ;;  %v14926_v11 = vld [vmem:[%s19913_s10 + $0x214] sm:$0xf] }
0x1aba   : > { %v13607_v35 = vor.u32 %v14952_v29, %v13606_v25  ;;  %v13592_v25 = vld [vmem:[%s19913_s10 + $0x2c0] sm:$0xf0] }
0x1abb   : > { %v8259_v54 = vadd.f32 %v8253_v57, %v8252_v13  ;;  %v13595_v29 = vor.u32 %v14946_v40, %v13592_v25  ;;  %v13640_v40 = vld [vmem:[%s19913_s10 + $0x320] sm:$0xf0] }
0x1abc   : > { %v8222_v6 = vpop.f32.mrf.mxu3  ;;  %8738 = vmatpush.bf16.msra.mxu2 %v13607_v35  ;;  %v14964_v35 = vld [vmem:[%s19913_s10 + $0x33c] sm:$0xf0] }
0x1abd   : > { %v8261_v58 = vadd.f32 %v8260_v9, %v8259_v54  ;;  %v13670_v54 = vld [vmem:[%s19913_s10 + $0x350] sm:$0xf]  ;;  %v14968_v6 = vld [vmem:[%s19913_s10 + $0x35c] sm:$0xf0]  ;;  %v14982_v9 = vld [vmem:[%s19913_s10 + $0x3d4] sm:$0xf]  ;;  %v13655_v20 = vor.u32 %v14964_v35, %v13654_v28 }
0x1abe   : > { %v13739_v16 = vor.u32 %v14982_v9, %v13736_v44  ;;  %v14958_v44 = vld [vmem:[%s19913_s10 + $0x314] sm:$0xf]  ;;  %v13566_v28 = vld [vmem:[%s19913_s10 + $0x278] sm:$0xf]  ;;  %v14941_v35 = vld [vmem:[%s19913_s10 + $0x284] sm:$0xf0] }
0x1abf   : > { %8262 = vadd.xlane.f32.xlu1 %v8261_v58  ;;  %v13671_v58 = vor.u32 %v14968_v6, %v13670_v54  ;;  %v19014_v54 = vld [vmem:[%s19913_s10 + $0x418] sm:$0xff] }
0x1ac0   : > { %8739 = vmatpush.bf16.msra.mxu2 %v13591_v27  ;;  %v14960_v27 = vld [vmem:[%s19913_s10 + $0x31c] sm:$0xf0] }
0x1ac1   : > { %8755 = vmatpush.bf16.msrb.mxu0 %v13671_v58  ;;  %v13639_v41 = vor.u32 %v14960_v27, %v13638_v26  ;;  %v8588_v58 = vunpack.c.l.b16 %v19014_v54 }
0x1ac4   : > { %8740 = vmatpush.bf16.msra.mxu2 %v13575_v59  ;;  %v13630_v59 = vld [vmem:[%s19913_s10 + $0x2f8] sm:$0xf] }
0x1ac5   : > { %8756 = vmatpush.bf16.msrb.mxu0 %v13655_v20  ;;  %v13631_v14 = vor.u32 %v14957_v45, %v13630_v59  ;;  %v13567_v20 = vor.u32 %v14941_v35, %v13566_v28  ;;  %v13726_v35 = vld [vmem:[%s19913_s10 + $0x3b8] sm:$0xf] }
0x1ac8   : > { %8741 = vmatpush.bf16.msra.mxu2 %v13559_v56  ;;  %v14934_v56 = vld [vmem:[%s19913_s10 + $0x254] sm:$0xf] }
0x1ac9   : > { %8757 = vmatpush.bf16.msrb.mxu0 %v13639_v41  ;;  %v14933_v41 = vld [vmem:[%s19913_s10 + $0x244] sm:$0xf0] }
0x1aca   : > { %v13535_v42 = vor.u32 %v14933_v41, %v13534_v31  ;;  %v14977_v41 = vld [vmem:[%s19913_s10 + $0x3a4] sm:$0xf0] }
0x1acc   : > { %8742 = vmatpush.bf16.msra.mxu2 %v13543_v1  ;;  %v13547_v1 = vor.u32 %v14934_v56, %v13544_v60  ;;  %v8292_v60 = vperm.slane %v13439_v50, 0 }
0x1acd   : > { %8815 = vmatpush.bf16.msra.mxu0 %v13631_v14 }
0x1ad0   : > { %8743 = vmatpush.bf16.msra.mxu2 %v13527_v2 }
0x1ad1   : > { %8816 = vmatpush.bf16.msra.mxu0 %v13615_v63 }
0x1ad4   : > { %8744 = vmatpush.bf16.msra.mxu2 %v13511_v30  ;;  %v14962_v30 = vld [vmem:[%s19913_s10 + $0x334] sm:$0xf] }
0x1b32   : > { %v8263_v0 = vpop.xlane.xlu1 %8262 }
0x1b33   : > { %v8264_v22 = vmul.f32 %v8263_v0, %v15341_v24  ;;  %v14966_v0 = vld [vmem:[%s19913_s10 + $0x354] sm:$0xf] }
0x1b35   : > { %v18857_v3 = vsub.f32 %v8252_v13, %v8264_v22  ;;  %v18859_v55 = vsub.f32 %v8253_v57, %v8264_v22  ;;  %v18861_v4 = vsub.f32 %v8254_v15, %v8264_v22  ;;  %v13608_v15 = vld [vmem:[%s19913_s10 + $0x2e0] sm:$0xf0]  ;;  %v13755_v13 = vor.u32 %v14986_v23, %v13752_v18 }
0x1b36   : > { %v13611_v57 = vor.u32 %v14950_v37, %v13608_v15  ;;  %v13672_v22 = vld [vmem:[%s19913_s10 + $0x360] sm:$0xf0]  ;;  %v13659_v23 = vor.u32 %v14962_v30, %v13656_v19  ;;  %v13582_v37 = vld [vmem:[%s19913_s10 + $0x298] sm:$0xf] }
0x1b37   : > { %v8268_v7 = vmul.f32 %v18857_v3, %v18857_v3  ;;  %v8269_v46 = vmul.f32 %v18859_v55, %v18859_v55  ;;  %v8270_v48 = vmul.f32 %v18861_v4, %v18861_v4  ;;  %8789 = vmatpush.bf16.msrb.mxu2 %v13755_v13  ;;  %v13675_v2 = vor.u32 %v14966_v0, %v13672_v22  ;;  %v13512_v18 = vld [vmem:[%s19913_s10 + $0x220] sm:$0xf0]  ;;  %v14945_v13 = vld [vmem:[%s19913_s10 + $0x2a4] sm:$0xf0] }
0x1b38   : > { %8777 = vmatpush.bf16.msrb.mxu1 %v13611_v57  ;;  %v13515_v15 = vor.u32 %v14926_v11, %v13512_v18  ;;  %v13583_v9 = vor.u32 %v14945_v13, %v13582_v37 }
0x1b39   : > { %v8271_v53 = vadd.f32 %v8269_v46, %v8268_v7  ;;  %v8272_v5 = vsel %vm595_vm0, %v8270_v48, 0.0  ;;  %v14930_v7 = vld [vmem:[%s19913_s10 + $0x234] sm:$0xf]  ;;  %v13528_v46 = vld [vmem:[%s19913_s10 + $0x240] sm:$0xf0] }
0x1b3a   : > { %v13598_v48 = vld [vmem:[%s19913_s10 + $0x2b8] sm:$0xf] }
0x1b3b   : > { %v8273_v39 = vadd.f32 %v8272_v5, %v8271_v53  ;;  %8790 = vmatpush.bf16.msrb.mxu2 %v13739_v16  ;;  %v13505_v53 = vld [vmem:[%s19913_s10 + $0x410] sm:$0xff]  ;;  %v13531_v5 = vor.u32 %v14930_v7, %v13528_v46  ;;  %v13643_v16 = vor.u32 %v14958_v44, %v13640_v40  ;;  %v13616_v44 = vld [vmem:[%s19913_s10 + $0x2e8] sm:$0xf0]  ;;  %v14983_v40 = vld [vmem:[%s19913_s10 + $0x3dc] sm:$0xf] }
0x1b3c   : > { %8778 = vmatpush.bf16.msrb.mxu1 %v13595_v29  ;;  %v8586_v12 = vunpack.c.l.b16 %v13505_v53  ;;  %v8587_v57 = vunpack.c.h.b16 %v13505_v53  ;;  %v8656_v29 = vpack.c.b16 %v8588_v58, %v8588_v58  ;;  %v14951_v58 = vld [vmem:[%s19913_s10 + $0x2dc] sm:$0xf] }
0x1b3d   : > { %8274 = vadd.xlane.f32.xlu2 %v8273_v39  ;;  %v14949_v39 = vld [vmem:[%s19913_s10 + $0x2c4] sm:$0xf0]  ;;  %v13619_v28 = vor.u32 %v14951_v58, %v13616_v44  ;;  %v13646_v44 = vld [vmem:[%s19913_s10 + $0x318] sm:$0xf] }
0x1b3e   : > { %v13599_v51 = vor.u32 %v14949_v39, %v13598_v48  ;;  %v8654_v21 = vpack.c.b16 %v8586_v12, %v8586_v12  ;;  %v8655_v25 = vpack.c.b16 %v8587_v57, %v8587_v57  ;;  %v8732_v62 = vsel %vm797_vm2, %v8656_v29, 0  ;;  %v13758_v39 = vld [vmem:[%s19913_s10 + $0x3f8] sm:$0xf]  ;;  %v14989_v12 = vld [vmem:[%s19913_s10 + $0x404] sm:$0xf0] }
0x1b3f   : > { %8791 = vmatpush.bf16.msrb.mxu2 %v13723_v34  ;;  %v13550_v34 = vld [vmem:[%s19913_s10 + $0x258] sm:$0xf]  ;;  %v13759_v11 = vor.u32 %v14989_v12, %v13758_v39  ;;  %v14067_v39 = vld [vmem:[%s19915_s12 + $0x450] sm:$0xf]  ;;  %v15033_v12 = vld [vmem:[%s19915_s12 + $0x458] sm:$0xf0] }
0x1b40   : > { %8779 = vmatpush.bf16.msrb.mxu1 %v13579_v33  ;;  %8817 = vmatpush.bf16.msra.mxu0 %v13599_v51  ;;  %v8726_v6 = vsel %vm797_vm2, %v8654_v21, 0  ;;  %v8729_v17 = vsel %vm797_vm2, %v8655_v25, 0  ;;  %v14937_v33 = vld [vmem:[%s19913_s10 + $0x264] sm:$0xf0]  ;;  %v14987_v21 = vld [vmem:[%s19913_s10 + $0x3fc] sm:$0xf] }
0x1b41   : > { %8770 = vmatpush.bf16.msra.mxu3 %v8726_v6  ;;  %v13551_v27 = vor.u32 %v14937_v33, %v13550_v34  ;;  %v13744_v25 = vld [vmem:[%s19913_s10 + $0x3e8] sm:$0xf0] }
0x1b42   : > { %v13728_v34 = vld [vmem:[%s19913_s10 + $0x3c8] sm:$0xf0] }
0x1b43   : > { %8792 = vmatpush.bf16.msrb.mxu2 %v13707_v47 }
0x1b44   : > { %8780 = vmatpush.bf16.msrb.mxu1 %v13563_v43  ;;  %8818 = vmatpush.bf16.msra.mxu0 %v13583_v9  ;;  %v13519_v43 = vor.u32 %v14929_v8, %v13518_v49  ;;  %v14985_v9 = vld [vmem:[%s19913_s10 + $0x3e4] sm:$0xf0]  ;;  %v13584_v49 = vld [vmem:[%s19913_s10 + $0x2a8] sm:$0xf0]  ;;  %v14975_v8 = vld [vmem:[%s19913_s10 + $0x39c] sm:$0xf] }
0x1b45   : > { %8809 = vmatpush.bf16.msrb.mxu3 %v8729_v17  ;;  %v13747_v17 = vor.u32 %v14983_v40, %v13744_v25  ;;  %v14961_v40 = vld [vmem:[%s19913_s10 + $0x324] sm:$0xf0] }
0x1b47   : > { %8793 = vmatpush.bf16.msrb.mxu2 %v13691_v36  ;;  %v13440_v36 = vld [vmem:[%s19912_s9 + $0x3] sm:$0x7] }
0x1b48   : > { %8781 = vmatpush.bf16.msrb.mxu1 %v13547_v1  ;;  %8819 = vmatpush.bf16.msra.mxu0 %v13567_v20  ;;  %v8294_v1 = vperm.slane %v13439_v50, 2  ;;  %v8304_v38 = vperm.slane %v13440_v36, 2  ;;  %v8302_v0 = vperm.slane %v13440_v36, 0  ;;  %v8303_v46 = vperm.slane %v13440_v36, 1  ;;  %v14981_v20 = vld [vmem:[%s19913_s10 + $0x3c4] sm:$0xf0] }
0x1b49   : > { %v13727_v33 = vor.u32 %v14981_v20, %v13726_v35  ;;  %v13568_v36 = vld [vmem:[%s19913_s10 + $0x288] sm:$0xf0]  ;;  %v15012_v20 = vld [vmem:[%s19915_s12 + $0x3b0] sm:$0xf0] }
0x1b4a   : > { %v13648_v35 = vld [vmem:[%s19913_s10 + $0x328] sm:$0xf0] }
0x1b4b   : > { %8794 = vmatpush.bf16.msrb.mxu2 %v13675_v2 }
0x1b4c   : > { %8782 = vmatpush.bf16.msrb.mxu1 %v13531_v5  ;;  %8820 = vmatpush.bf16.msra.mxu0 %v13551_v27  ;;  %v13710_v27 = vld [vmem:[%s19913_s10 + $0x398] sm:$0xf] }
0x1b4f   : > { %8795 = vmatpush.bf16.msrb.mxu2 %v13659_v23  ;;  %v13760_v23 = vld [vmem:[%s19913_s10 + $0x408] sm:$0xf0] }
0x1b50   : > { %8783 = vmatpush.bf16.msrb.mxu1 %v13515_v15  ;;  %8821 = vmatpush.bf16.msra.mxu0 %v13535_v42  ;;  %v13763_v6 = vor.u32 %v14987_v21, %v13760_v23  ;;  %v14943_v42 = vld [vmem:[%s19913_s10 + $0x29c] sm:$0xf]  ;;  %v14965_v23 = vld [vmem:[%s19913_s10 + $0x344] sm:$0xf0] }
0x1b53   : > { %8796 = vmatpush.bf16.msrb.mxu2 %v13643_v16 }
0x1b54   : > { %8848 = vmatpush.bf16.msra.mxu1 %v8732_v62  ;;  %8822 = vmatpush.bf16.msra.mxu0 %v13519_v43  ;;  %v13600_v62 = vld [vmem:[%s19913_s10 + $0x2c8] sm:$0xf0]  ;;  %v13711_v43 = vor.u32 %v14977_v41, %v13710_v27  ;;  %v15006_v41 = vld [vmem:[%s19915_s12 + $0x380] sm:$0xf0] }
0x1bb0   : > { %v8275_v32 = vpop.xlane.xlu2 %8274 }
0x1bb1   : > { %v8276_v10 = vmul.f32 %v8275_v32, %v15341_v24  ;;  %v14947_v32 = vld [vmem:[%s19913_s10 + $0x2bc] sm:$0xf] }
0x1bb3   : > { %v8277_v26 = vadd.f32 1e-12, %v8276_v10  ;;  %v14979_v10 = vld [vmem:[%s19913_s10 + $0x3bc] sm:$0xf] }
0x1bb4   : > { %v13731_v31 = vor.u32 %v14979_v10, %v13728_v34 }
0x1bb5   : > { %15169 = vrsqrt.f32 %v8277_v26  ;;  %vm8284_vm14 = vweird.f32 %v8277_v26 }
0x1bbb   : > { %v15170_v47 = vpop.eup %15169 }
0x1bbc   : > { %v8279_v59 = vmul.f32 %v15170_v47, %v8277_v26  ;;  %vm8285_vm6 = vweird.f32 %v15170_v47  ;;  %v13603_v26 = vor.u32 %v14947_v32, %v13600_v62  ;;  %v13647_v32 = vor.u32 %v14961_v40, %v13646_v44  ;;  %v14259_v40 = vld [vmem:[%s19915_s12 + $0x5d0] sm:$0xf] }
0x1bbd   : > { %vm8286_vm15 = vmor %vm8284_vm14, %vm8285_vm6 }
0x1bbe   : > { %v8280_v45 = vmul.f32 %v15170_v47, %v8279_v59  ;;  %v13587_v59 = vor.u32 %v14943_v42, %v13584_v49  ;;  %v15003_v49 = vld [vmem:[%s19915_s12 + $0x368] sm:$0xf0] }
0x1bc0   : > { %v8281_v14 = vmul.f32 0.5, %v8280_v45  ;;  %v13694_v45 = vld [vmem:[%s19913_s10 + $0x378] sm:$0xf] }
0x1bc2   : > { %v8282_v52 = vsub.f32 1.5, %v8281_v14  ;;  %v14973_v14 = vld [vmem:[%s19913_s10 + $0x384] sm:$0xf0] }
0x1bc4   : > { %v8283_v56 = vmul.f32 %v15170_v47, %v8282_v52  ;;  %v14939_v52 = vld [vmem:[%s19913_s10 + $0x27c] sm:$0xf] }
0x1bc6   : > { %v8287_v63 = vsel %vm8286_vm15, %v15170_v47, %v8283_v56  ;;  %v13712_v47 = vld [vmem:[%s19913_s10 + $0x3a8] sm:$0xf0]  ;;  %v14971_v56 = vld [vmem:[%s19913_s10 + $0x37c] sm:$0xf] }
0x1bc7   : > { %v8288_v22 = vmul.f32 %v8287_v63, %v18857_v3  ;;  %v8289_v2 = vmul.f32 %v8287_v63, %v18859_v55  ;;  %v8290_v7 = vmul.f32 %v8287_v63, %v18861_v4  ;;  %v14955_v3 = vld [vmem:[%s19913_s10 + $0x2fc] sm:$0xf]  ;;  %v13632_v55 = vld [vmem:[%s19913_s10 + $0x308] sm:$0xf0]  ;;  %v8589_v4 = vunpack.c.h.b16 %v19014_v54  ;;  %v13742_v54 = vld [vmem:[%s19913_s10 + $0x3d8] sm:$0xf] }
0x1bc8   : > { %v13635_v57 = vor.u32 %v14955_v3, %v13632_v55  ;;  %v13743_v29 = vor.u32 %v14985_v9, %v13742_v54  ;;  %v13715_v50 = vor.u32 %v14975_v8, %v13712_v47  ;;  %v13571_v63 = vor.u32 %v14939_v52, %v13568_v36  ;;  %v14963_v54 = vld [vmem:[%s19913_s10 + $0x33c] sm:$0xf]  ;;  %v13935_v47 = vld [vmem:[%s19915_s12 + $0x348] sm:$0xf]  ;;  %v13911_v36 = vld [vmem:[%s19915_s12 + $0x318] sm:$0xf] }
0x1bc9   : > { %v8298_v48 = vmul.f32 %v8292_v60, %v8288_v22  ;;  %v8299_v53 = vmul.f32 %v8293_v61, %v8289_v2  ;;  %v8300_v5 = vmul.f32 %v8294_v1, %v8290_v7  ;;  %v8657_v18 = vpack.c.b16 %v8589_v4, %v8589_v4  ;;  %v13696_v60 = vld [vmem:[%s19913_s10 + $0x388] sm:$0xf0]  ;;  %v14079_v61 = vld [vmem:[%s19915_s12 + $0x468] sm:$0xf]  ;;  %v15036_v1 = vld [vmem:[%s19915_s12 + $0x470] sm:$0xf0] }
0x1bca   : > { %v14969_v22 = vld [vmem:[%s19913_s10 + $0x364] sm:$0xf0]  ;;  %v13699_v2 = vor.u32 %v14971_v56, %v13696_v60  ;;  %v14935_v7 = vld [vmem:[%s19913_s10 + $0x25c] sm:$0xf]  ;;  %v13662_v4 = vld [vmem:[%s19913_s10 + $0x338] sm:$0xf] }
0x1bcb   : > { %v19073_v51 = vadd.f32 %v8304_v38, %v8300_v5  ;;  %v19075_v30 = vadd.f32 %v8302_v0, %v8298_v48  ;;  %v19077_v19 = vadd.f32 %v8303_v46, %v8299_v53  ;;  %v8735_v16 = vsel %vm797_vm2, %v8657_v18, 0  ;;  %v13678_v0 = vld [vmem:[%s19913_s10 + $0x358] sm:$0xf]  ;;  %v13552_v46 = vld [vmem:[%s19913_s10 + $0x268] sm:$0xf0] }
0x1bcc   : > { %v13695_v38 = vor.u32 %v14973_v14, %v13694_v45  ;;  %v14967_v48 = vld [vmem:[%s19913_s10 + $0x35c] sm:$0xf]  ;;  %v14080_v53 = vor.u32 %v15036_v1, %v14079_v61  ;;  %v13680_v5 = vld [vmem:[%s19913_s10 + $0x368] sm:$0xf0]  ;;  %v13679_v3 = vor.u32 %v14969_v22, %v13678_v0  ;;  %v13555_v55 = vor.u32 %v14935_v7, %v13552_v46  ;;  %v14055_v14 = vld [vmem:[%s19915_s12 + $0x438] sm:$0xf] }
0x1bcd   : > { %v19087_v37 = vpack.c.bf16 %v19073_v51, %v19073_v51  ;;  %v19091_v15 = vpack.c.bf16 %v19075_v30, %v19075_v30  ;;  %v19095_v13 = vpack.c.bf16 %v19077_v19, %v19077_v19  ;;  %v13683_v21 = vor.u32 %v14967_v48, %v13680_v5  ;;  %v13536_v18 = vld [vmem:[%s19913_s10 + $0x248] sm:$0xf0]  ;;  %v14994_v56 = vld [vmem:[%s19915_s12 + $0x320] sm:$0xf0]  ;;  %v14043_v60 = vld [vmem:[%s19915_s12 + $0x420] sm:$0xf] }
0x1bce   : > { %v13663_v9 = vor.u32 %v14965_v23, %v13662_v4  ;;  %v13912_v61 = vor.u32 %v14994_v56, %v13911_v36  ;;  %v15027_v1 = vld [vmem:[%s19915_s12 + $0x428] sm:$0xf0]  ;;  %v13985_v7 = vld [vmem:[%s19915_s12 + $0x3b4] sm:$0xf0]  ;;  %v14031_v48 = vld [vmem:[%s19915_s12 + $0x408] sm:$0xf] }
0x1bcf   : > { %8745 = vmatmul.bf16.vlgmr.msra.gmra.mxu2 %v19091_v15  ;;  %8758 = vmatmul.bf16.vlgmr.msrb.gmra.mxu0 %v19095_v13  ;;  %v14991_v0 = vld [vmem:[%s19915_s12 + $0x308] sm:$0xf0]  ;;  %v14175_v5 = vld [vmem:[%s19915_s12 + $0x528] sm:$0xf]  ;;  %v15084_v4 = vld [vmem:[%s19915_s12 + $0x5f0] sm:$0xf0] }
0x1bd0   : > { %13764 = vmatmul.msk.bf16.vlgmr.msra.gmra.mxu3 %vm595_vm0, %v19087_v37  ;;  %8784 = vmatmul.bf16.vlgmr.msrb.gmra.mxu1 %v19091_v15  ;;  %v15008_v23 = vld [vmem:[%s19915_s12 + $0x394] sm:$0xf]  ;;  %v14999_v36 = vld [vmem:[%s19915_s12 + $0x34c] sm:$0xf]  ;;  %v13937_v56 = vld [vmem:[%s19915_s12 + $0x354] sm:$0xf0] }
0x1bd1   : > { %8828 = vmatpush.bf16.msra.mxu3 %v13759_v11  ;;  %8854 = vmatpush.bf16.msra.mxu2 %v13635_v57  ;;  %v14931_v11 = vld [vmem:[%s19913_s10 + $0x23c] sm:$0xf]  ;;  %v14068_v57 = vor.u32 %v15033_v12, %v14067_v39  ;;  %v15060_v12 = vld [vmem:[%s19915_s12 + $0x530] sm:$0xf0] }
0x1bd2   : > { %8867 = vmatpush.bf16.msrb.mxu1 %v13763_v6  ;;  %8887 = vmatpush.bf16.msrb.mxu0 %v8735_v16  ;;  %v13664_v6 = vld [vmem:[%s19913_s10 + $0x348] sm:$0xf0]  ;;  %v13539_v58 = vor.u32 %v14931_v11, %v13536_v18  ;;  %v14927_v16 = vld [vmem:[%s19913_s10 + $0x21c] sm:$0xf]  ;;  %v13973_v11 = vld [vmem:[%s19915_s12 + $0x39c] sm:$0xf0] }
0x1bd3   : > { %v13667_v25 = vor.u32 %v14963_v54, %v13664_v6  ;;  %v13976_v18 = vor.u32 %v15008_v23, %v13973_v11  ;;  %v15021_v54 = vld [vmem:[%s19915_s12 + $0x3f8] sm:$0xf0]  ;;  %v14163_v6 = vld [vmem:[%s19915_s12 + $0x510] sm:$0xf] }
0x1bd4   : > { %v14211_v23 = vld [vmem:[%s19915_s12 + $0x570] sm:$0xf]  ;;  %v15069_v11 = vld [vmem:[%s19915_s12 + $0x578] sm:$0xf0] }
0x1bd5   : > { %8829 = vmatpush.bf16.msra.mxu3 %v13743_v29  ;;  %8855 = vmatpush.bf16.msra.mxu2 %v13619_v28  ;;  %v13520_v29 = vld [vmem:[%s19913_s10 + $0x228] sm:$0xf0]  ;;  %v14959_v28 = vld [vmem:[%s19913_s10 + $0x31c] sm:$0xf] }
0x1bd6   : > { %8868 = vmatpush.bf16.msrb.mxu1 %v13747_v17  ;;  %v13983_v17 = vld [vmem:[%s19915_s12 + $0x3a8] sm:$0xf]  ;;  %v13523_v62 = vor.u32 %v14927_v16, %v13520_v29  ;;  %v13651_v10 = vor.u32 %v14959_v28, %v13648_v35  ;;  %v15005_v29 = vld [vmem:[%s19915_s12 + $0x37c] sm:$0xf] }
0x1bd7   : > { %v13984_v34 = vor.u32 %v15012_v20, %v13983_v17  ;;  %v13961_v28 = vld [vmem:[%s19915_s12 + $0x384] sm:$0xf0]  ;;  %v14007_v17 = vld [vmem:[%s19915_s12 + $0x3d8] sm:$0xf]  ;;  %v15018_v20 = vld [vmem:[%s19915_s12 + $0x3e0] sm:$0xf0] }
0x1bd8   : > { %v13964_v35 = vor.u32 %v15005_v29, %v13961_v28  ;;  %v14045_v29 = vld [vmem:[%s19915_s12 + $0x42c] sm:$0xf0]  ;;  %v19485_v28 = vld [vmem:[%s19914_s11 + $0x4] sm:$0xf] }
0x1bd9   : > { %8830 = vmatpush.bf16.msra.mxu3 %v13727_v33  ;;  %8856 = vmatpush.bf16.msra.mxu2 %v13603_v26  ;;  %v13971_v33 = vld [vmem:[%s19915_s12 + $0x390] sm:$0xf]  ;;  %v15009_v26 = vld [vmem:[%s19915_s12 + $0x398] sm:$0xf0] }
0x1bda   : > { %8869 = vmatpush.bf16.msrb.mxu1 %v13731_v31  ;;  %v13972_v27 = vor.u32 %v15009_v26, %v13971_v33  ;;  %v13959_v31 = vld [vmem:[%s19915_s12 + $0x378] sm:$0xf]  ;;  %v15078_v26 = vld [vmem:[%s19915_s12 + $0x5c0] sm:$0xf0] }
0x1bdb   : > { %v13960_v42 = vor.u32 %v15006_v41, %v13959_v31  ;;  %v14247_v33 = vld [vmem:[%s19915_s12 + $0x5b8] sm:$0xf]  ;;  %v15002_v31 = vld [vmem:[%s19915_s12 + $0x364] sm:$0xf]  ;;  %v13949_v41 = vld [vmem:[%s19915_s12 + $0x36c] sm:$0xf0] }
0x1bdd   : > { %8831 = vmatpush.bf16.msra.mxu3 %v13711_v43  ;;  %8857 = vmatpush.bf16.msra.mxu2 %v13587_v59  ;;  %v13923_v43 = vld [vmem:[%s19915_s12 + $0x330] sm:$0xf]  ;;  %v14997_v59 = vld [vmem:[%s19915_s12 + $0x338] sm:$0xf0] }
0x1bde   : > { %8870 = vmatpush.bf16.msrb.mxu1 %v13715_v50  ;;  %v13924_v45 = vor.u32 %v14997_v59, %v13923_v43  ;;  %v15030_v50 = vld [vmem:[%s19915_s12 + $0x440] sm:$0xf0]  ;;  %v14081_v43 = vld [vmem:[%s19915_s12 + $0x474] sm:$0xf0] }
0x1bdf   : > { %8797 = vmatmul.bf16.vlgmr.msrb.gmra.mxu2 %v19095_v13  ;;  %8823 = vmatmul.bf16.vlgmr.msra.gmra.mxu0 %v19091_v15  ;;  %v14056_v52 = vor.u32 %v15030_v50, %v14055_v14  ;;  %v14235_v14 = vld [vmem:[%s19915_s12 + $0x5a0] sm:$0xf]  ;;  %v15075_v50 = vld [vmem:[%s19915_s12 + $0x5a8] sm:$0xf0] }
0x1be0   : > { %13765 = vmatmul.msk.bf16.vlgmr.msrb.gmra.mxu3 %vm595_vm0, %v19087_v37  ;;  %13766 = vmatmul.msk.bf16.vlgmr.msra.gmra.mxu1 %vm595_vm0, %v19087_v37 }
0x1be1   : > { %8832 = vmatpush.bf16.msra.mxu3 %v13695_v38  ;;  %8858 = vmatpush.bf16.msra.mxu2 %v13571_v63  ;;  %v14044_v38 = vor.u32 %v15027_v1, %v14043_v60  ;;  %v13899_v63 = vld [vmem:[%s19915_s12 + $0x300] sm:$0xf]  ;;  %v13940_v60 = vor.u32 %v14999_v36, %v13937_v56  ;;  %v15048_v1 = vld [vmem:[%s19915_s12 + $0x4d0] sm:$0xf0]  ;;  %v14273_v36 = vld [vmem:[%s19915_s12 + $0x5f4] sm:$0xf0] }
0x1be2   : > { %8871 = vmatpush.bf16.msrb.mxu1 %v13699_v2  ;;  %9596 = vmatpush.bf16.msra.mxu0 %v14080_v53  ;;  %v13900_v22 = vor.u32 %v14991_v0, %v13899_v63  ;;  %v15011_v2 = vld [vmem:[%s19915_s12 + $0x3ac] sm:$0xf]  ;;  %v15024_v53 = vld [vmem:[%s19915_s12 + $0x410] sm:$0xf0]  ;;  %v14069_v0 = vld [vmem:[%s19915_s12 + $0x45c] sm:$0xf0] }
0x1be3   : > { %v13988_v46 = vor.u32 %v15011_v2, %v13985_v7  ;;  %v14032_v39 = vor.u32 %v15024_v53, %v14031_v48  ;;  %v15032_v63 = vld [vmem:[%s19915_s12 + $0x454] sm:$0xf]  ;;  %v14223_v2 = vld [vmem:[%s19915_s12 + $0x588] sm:$0xf]  ;;  %v13925_v53 = vld [vmem:[%s19915_s12 + $0x33c] sm:$0xf0] }
0x1be4   : > { %v15072_v7 = vld [vmem:[%s19915_s12 + $0x590] sm:$0xf0] }
0x1be5   : > { %8833 = vmatpush.bf16.msra.mxu3 %v13679_v3  ;;  %8859 = vmatpush.bf16.msra.mxu2 %v13555_v55  ;;  %v14176_v3 = vor.u32 %v15060_v12, %v14175_v5  ;;  %v14271_v55 = vld [vmem:[%s19915_s12 + $0x5e8] sm:$0xf]  ;;  %v14996_v48 = vld [vmem:[%s19915_s12 + $0x334] sm:$0xf]  ;;  %v15045_v12 = vld [vmem:[%s19915_s12 + $0x4b8] sm:$0xf0] }
0x1be6   : > { %8872 = vmatpush.bf16.msrb.mxu1 %v13683_v21  ;;  %9597 = vmatpush.bf16.msra.mxu0 %v14068_v57  ;;  %v14272_v21 = vor.u32 %v15084_v4, %v14271_v55  ;;  %v14019_v57 = vld [vmem:[%s19915_s12 + $0x3f0] sm:$0xf]  ;;  %v13928_v5 = vor.u32 %v14996_v48, %v13925_v53  ;;  %v15029_v55 = vld [vmem:[%s19915_s12 + $0x43c] sm:$0xf]  ;;  %v14057_v4 = vld [vmem:[%s19915_s12 + $0x444] sm:$0xf0] }
0x1be7   : > { %v14261_v48 = vld [vmem:[%s19915_s12 + $0x5dc] sm:$0xf0] }
0x1be9   : > { %8834 = vmatpush.bf16.msra.mxu3 %v13663_v9  ;;  %8860 = vmatpush.bf16.msra.mxu2 %v13539_v58  ;;  %v14020_v9 = vor.u32 %v15021_v54, %v14019_v57  ;;  %v15057_v58 = vld [vmem:[%s19915_s12 + $0x518] sm:$0xf0]  ;;  %v13913_v54 = vld [vmem:[%s19915_s12 + $0x324] sm:$0xf0] }
0x1bea   : > { %8873 = vmatpush.bf16.msrb.mxu1 %v13667_v25  ;;  %9598 = vmatpush.bf16.msra.mxu0 %v14056_v52  ;;  %v14164_v44 = vor.u32 %v15057_v58, %v14163_v6  ;;  %v15081_v25 = vld [vmem:[%s19915_s12 + $0x5d8] sm:$0xf0]  ;;  %v14236_v52 = vor.u32 %v15075_v50, %v14235_v14  ;;  %v14103_v58 = vld [vmem:[%s19915_s12 + $0x498] sm:$0xf]  ;;  %v15083_v14 = vld [vmem:[%s19915_s12 + $0x5ec] sm:$0xf] }
0x1beb   : > { %v14260_v16 = vor.u32 %v15081_v25, %v14259_v40  ;;  %v14993_v57 = vld [vmem:[%s19915_s12 + $0x31c] sm:$0xf] }
0x1bed   : > { %8835 = vmatpush.bf16.msra.mxu3 %v13647_v32  ;;  %8861 = vmatpush.bf16.msra.mxu2 %v13523_v62  ;;  %v14151_v32 = vld [vmem:[%s19915_s12 + $0x4f8] sm:$0xf]  ;;  %v14008_v62 = vor.u32 %v15018_v20, %v14007_v17  ;;  %v15066_v20 = vld [vmem:[%s19915_s12 + $0x560] sm:$0xf0] }
0x1bee   : > { %8874 = vmatpush.bf16.msrb.mxu1 %v13651_v10  ;;  %9599 = vmatpush.bf16.msra.mxu0 %v14044_v38  ;;  %v15054_v10 = vld [vmem:[%s19915_s12 + $0x500] sm:$0xf0]  ;;  %v14199_v17 = vld [vmem:[%s19915_s12 + $0x558] sm:$0xf] }
0x1bef   : > { %13767 = vmatmul.msk.bf16.vlgmr.msrb.gmra.mxu0 %vm595_vm0, %v19087_v37  ;;  %v13947_v37 = vld [vmem:[%s19915_s12 + $0x360] sm:$0xf] }
0x1bf0   : > { %8836 = vmatmul.bf16.vlgmr.msra.gmra.mxu3 %v19095_v13  ;;  %8862 = vmatmul.bf16.vlgmr.msra.gmra.mxu2 %v19091_v15  ;;  %v13948_v8 = vor.u32 %v15003_v49, %v13947_v37  ;;  %v15000_v15 = vld [vmem:[%s19915_s12 + $0x350] sm:$0xf0]  ;;  %v13995_v37 = vld [vmem:[%s19915_s12 + $0x3c0] sm:$0xf]  ;;  %v15015_v49 = vld [vmem:[%s19915_s12 + $0x3c8] sm:$0xf0] }
0x1bf1   : > { %9583 = vmatpush.bf16.msrb.mxu3 %v13984_v34  ;;  %8875 = vmatmul.bf16.vlgmr.msrb.gmra.mxu1 %v19095_v13  ;;  %v13936_v13 = vor.u32 %v15000_v15, %v13935_v47  ;;  %v14152_v34 = vor.u32 %v15054_v10, %v14151_v32  ;;  %v13996_v47 = vor.u32 %v15015_v49, %v13995_v37  ;;  %v15051_v15 = vld [vmem:[%s19915_s12 + $0x4e8] sm:$0xf0]  ;;  %v8384_v32 = vperm.slane %v19485_v28, 0  ;;  %v14990_v10 = vld [vmem:[%s19915_s12 + $0x304] sm:$0xf] }
0x1bf2   : > { %9600 = vmatpush.bf16.msra.mxu0 %v14032_v39  ;;  %9609 = vmatpush.bf16.msrb.mxu2 %v14176_v3  ;;  %v14115_v39 = vld [vmem:[%s19915_s12 + $0x4b0] sm:$0xf] }
0x1bf3   : > { %9622 = vmatpush.bf16.msra.mxu1 %v14272_v21  ;;  %v14116_v3 = vor.u32 %v15045_v12, %v14115_v39  ;;  %v14060_v21 = vor.u32 %v15029_v55, %v14057_v4  ;;  %v15017_v39 = vld [vmem:[%s19915_s12 + $0x3dc] sm:$0xf]  ;;  %v14153_v4 = vld [vmem:[%s19915_s12 + $0x504] sm:$0xf0] }
0x1bf4   : > { %v15053_v55 = vld [vmem:[%s19915_s12 + $0x4fc] sm:$0xf] }
0x1bf5   : > { %9584 = vmatpush.bf16.msrb.mxu3 %v13972_v27  ;;  %v14248_v27 = vor.u32 %v15078_v26, %v14247_v33  ;;  %v14091_v26 = vld [vmem:[%s19915_s12 + $0x480] sm:$0xf] }
0x1bf6   : > { %9601 = vmatpush.bf16.msra.mxu0 %v14020_v9  ;;  %9610 = vmatpush.bf16.msrb.mxu2 %v14164_v44  ;;  %v13916_v9 = vor.u32 %v14993_v57, %v13913_v54  ;;  %v15042_v44 = vld [vmem:[%s19915_s12 + $0x4a0] sm:$0xf0]  ;;  %v15077_v57 = vld [vmem:[%s19915_s12 + $0x5bc] sm:$0xf]  ;;  %v14249_v54 = vld [vmem:[%s19915_s12 + $0x5c4] sm:$0xf0] }
0x1bf7   : > { %9623 = vmatpush.bf16.msra.mxu1 %v14260_v16  ;;  %v14104_v25 = vor.u32 %v15042_v44, %v14103_v58  ;;  %v15026_v16 = vld [vmem:[%s19915_s12 + $0x424] sm:$0xf]  ;;  %v14252_v58 = vor.u32 %v15077_v57, %v14249_v54  ;;  %v8386_v57 = vperm.slane %v19485_v28, 2 }
0x1bf9   : > { %9585 = vmatpush.bf16.msrb.mxu3 %v13960_v42  ;;  %v13952_v42 = vor.u32 %v15002_v31, %v13949_v41  ;;  %v15023_v41 = vld [vmem:[%s19915_s12 + $0x40c] sm:$0xf] }
0x1bfa   : > { %9602 = vmatpush.bf16.msra.mxu0 %v14008_v62  ;;  %9611 = vmatpush.bf16.msrb.mxu2 %v14152_v34  ;;  %v14200_v62 = vor.u32 %v15066_v20, %v14199_v17  ;;  %v13901_v34 = vld [vmem:[%s19915_s12 + $0x30c] sm:$0xf0] }
0x1bfb   : > { %9624 = vmatpush.bf16.msra.mxu1 %v14248_v27  ;;  %v13904_v33 = vor.u32 %v14990_v10, %v13901_v34  ;;  %v15039_v27 = vld [vmem:[%s19915_s12 + $0x488] sm:$0xf0]  ;;  %v14141_v20 = vld [vmem:[%s19915_s12 + $0x4ec] sm:$0xf0]  ;;  %v15074_v10 = vld [vmem:[%s19915_s12 + $0x5a4] sm:$0xf] }
0x1bfc   : > { %v14092_v31 = vor.u32 %v15039_v27, %v14091_v26  ;;  %v14237_v34 = vld [vmem:[%s19915_s12 + $0x5ac] sm:$0xf0] }
0x1bfd   : > { %9586 = vmatpush.bf16.msrb.mxu3 %v13948_v8  ;;  %v14139_v8 = vld [vmem:[%s19915_s12 + $0x4e0] sm:$0xf] }
0x1bfe   : > { %v14140_v59 = vor.u32 %v15051_v15, %v14139_v8  ;;  %9603 = vmatpush.bf16.msra.mxu0 %v13996_v47  ;;  %v15059_v8 = vld [vmem:[%s19915_s12 + $0x52c] sm:$0xf]  ;;  %v14177_v47 = vld [vmem:[%s19915_s12 + $0x534] sm:$0xf0]  ;;  %v14187_v15 = vld [vmem:[%s19915_s12 + $0x540] sm:$0xf] }
0x1bff   : > { %9625 = vmatpush.bf16.msra.mxu1 %v14236_v52 }
0x1c00   : > { %9612 = vmatpush.bf16.msrb.mxu2 %v14140_v59  ;;  %v14180_v59 = vor.u32 %v15059_v8, %v14177_v47  ;;  %v14225_v47 = vld [vmem:[%s19915_s12 + $0x594] sm:$0xf0] }
0x1c01   : > { %9587 = vmatpush.bf16.msrb.mxu3 %v13936_v13  ;;  %v15035_v13 = vld [vmem:[%s19915_s12 + $0x46c] sm:$0xf] }
0x1c05   : > { %9588 = vmatpush.bf16.msrb.mxu3 %v13924_v45  ;;  %v14084_v45 = vor.u32 %v15035_v13, %v14081_v43 }
0x1c07   : > { %9648 = vmatpush.bf16.msrb.mxu0 %v14084_v45  ;;  %v15063_v45 = vld [vmem:[%s19915_s12 + $0x548] sm:$0xf0] }
0x1c08   : > { %v14188_v52 = vor.u32 %v15063_v45, %v14187_v15  ;;  %v15044_v45 = vld [vmem:[%s19915_s12 + $0x4b4] sm:$0xf] }
0x1c09   : > { %9589 = vmatpush.bf16.msrb.mxu3 %v13912_v61  ;;  %v14127_v61 = vld [vmem:[%s19915_s12 + $0x4c8] sm:$0xf] }
0x1c0a   : > { %v14128_v38 = vor.u32 %v15048_v1, %v14127_v61  ;;  %v14276_v61 = vor.u32 %v15083_v14, %v14273_v36  ;;  %v15020_v1 = vld [vmem:[%s19915_s12 + $0x3f4] sm:$0xf]  ;;  %v14117_v14 = vld [vmem:[%s19915_s12 + $0x4bc] sm:$0xf0] }
0x1c0b   : > { %v15068_v36 = vld [vmem:[%s19915_s12 + $0x574] sm:$0xf] }
0x1c0c   : > { %9613 = vmatpush.bf16.msrb.mxu2 %v14128_v38  ;;  %v14021_v38 = vld [vmem:[%s19915_s12 + $0x3fc] sm:$0xf0] }
0x1c0d   : > { %9590 = vmatpush.bf16.msrb.mxu3 %v13900_v22  ;;  %v14072_v22 = vor.u32 %v15032_v63, %v14069_v0  ;;  %v15056_v63 = vld [vmem:[%s19915_s12 + $0x514] sm:$0xf]  ;;  %v14024_v0 = vor.u32 %v15020_v1, %v14021_v38  ;;  %v15041_v38 = vld [vmem:[%s19915_s12 + $0x49c] sm:$0xf] }
0x1c0f   : > { %9649 = vmatpush.bf16.msrb.mxu0 %v14072_v22  ;;  %v14165_v22 = vld [vmem:[%s19915_s12 + $0x51c] sm:$0xf0] }
0x1c10   : > { %9614 = vmatpush.bf16.msrb.mxu2 %v14116_v3  ;;  %v14009_v3 = vld [vmem:[%s19915_s12 + $0x3e4] sm:$0xf0] }
0x1c11   : > { %9635 = vmatpush.bf16.msra.mxu3 %v13988_v46  ;;  %v14224_v46 = vor.u32 %v15072_v7, %v14223_v2  ;;  %v14168_v7 = vor.u32 %v15056_v63, %v14165_v22  ;;  %v14105_v63 = vld [vmem:[%s19915_s12 + $0x4a4] sm:$0xf0] }
0x1c13   : > { %9626 = vmatpush.bf16.msra.mxu1 %v14224_v46  ;;  %9650 = vmatpush.bf16.msrb.mxu0 %v14060_v21  ;;  %v15080_v46 = vld [vmem:[%s19915_s12 + $0x5d4] sm:$0xf] }
0x1c14   : > { %9615 = vmatpush.bf16.msrb.mxu2 %v14104_v25  ;;  %v14264_v53 = vor.u32 %v15080_v46, %v14261_v48  ;;  %v13991_v46 = vld [vmem:[%s19915_s12 + $0x3b0] sm:$0xf]  ;;  %v15013_v48 = vld [vmem:[%s19915_s12 + $0x3b8] sm:$0xf0] }
0x1c15   : > { %9636 = vmatpush.bf16.msra.mxu3 %v13976_v18  ;;  %v14212_v18 = vor.u32 %v15069_v11, %v14211_v23  ;;  %v14012_v11 = vor.u32 %v15017_v39, %v14009_v3 }
0x1c17   : > { %9627 = vmatpush.bf16.msra.mxu1 %v14212_v18  ;;  %v14156_v18 = vor.u32 %v15053_v55, %v14153_v4 }
0x1c18   : > { %9616 = vmatpush.bf16.msrb.mxu2 %v14092_v31  ;;  %v15047_v31 = vld [vmem:[%s19915_s12 + $0x4cc] sm:$0xf] }
0x1c19   : > { %9637 = vmatpush.bf16.msra.mxu3 %v13964_v35  ;;  %v14048_v35 = vor.u32 %v15026_v16, %v14045_v29  ;;  %v15014_v16 = vld [vmem:[%s19915_s12 + $0x3c4] sm:$0xf]  ;;  %v13997_v29 = vld [vmem:[%s19915_s12 + $0x3cc] sm:$0xf0] }
0x1c1a   : > { %v14000_v17 = vor.u32 %v15014_v16, %v13997_v29 }
0x1c1b   : > { %9651 = vmatpush.bf16.msrb.mxu0 %v14048_v35  ;;  %9628 = vmatpush.bf16.msra.mxu1 %v14200_v62  ;;  %v15050_v35 = vld [vmem:[%s19915_s12 + $0x4e4] sm:$0xf] }
0x1c1c   : > { %9661 = vmatpush.bf16.msra.mxu2 %v14180_v59  ;;  %v14144_v62 = vor.u32 %v15050_v35, %v14141_v20  ;;  %v15062_v35 = vld [vmem:[%s19915_s12 + $0x544] sm:$0xf]  ;;  %v14189_v20 = vld [vmem:[%s19915_s12 + $0x54c] sm:$0xf0] }
0x1c1d   : > { %9638 = vmatpush.bf16.msra.mxu3 %v13952_v42  ;;  %v14033_v42 = vld [vmem:[%s19915_s12 + $0x414] sm:$0xf0] }
0x1c1e   : > { %v14036_v49 = vor.u32 %v15023_v41, %v14033_v42  ;;  %v14129_v41 = vld [vmem:[%s19915_s12 + $0x4d4] sm:$0xf0] }
0x1c1f   : > { %9629 = vmatpush.bf16.msra.mxu1 %v14188_v52 }
0x1c20   : > { %9652 = vmatpush.bf16.msrb.mxu0 %v14036_v49  ;;  %9662 = vmatpush.bf16.msra.mxu2 %v14168_v7 }
0x1c21   : > { %9639 = vmatpush.bf16.msra.mxu3 %v13940_v60 }
0x1c23   : > { %9674 = vmatpush.bf16.msrb.mxu1 %v14276_v61 }
0x1c24   : > { %9653 = vmatpush.bf16.msrb.mxu0 %v14024_v0  ;;  %9663 = vmatpush.bf16.msra.mxu2 %v14156_v18  ;;  %v14093_v18 = vld [vmem:[%s19915_s12 + $0x48c] sm:$0xf0] }
0x1c25   : > { %9640 = vmatpush.bf16.msra.mxu3 %v13928_v5 }
0x1c27   : > { %9675 = vmatpush.bf16.msrb.mxu1 %v14264_v53  ;;  %v14108_v53 = vor.u32 %v15041_v38, %v14105_v63 }
0x1c28   : > { %9654 = vmatpush.bf16.msrb.mxu0 %v14012_v11  ;;  %9664 = vmatpush.bf16.msra.mxu2 %v14144_v62  ;;  %v15038_v11 = vld [vmem:[%s19915_s12 + $0x484] sm:$0xf]  ;;  %v14192_v62 = vor.u32 %v15062_v35, %v14189_v20  ;;  %v14992_v35 = vld [vmem:[%s19915_s12 + $0x310] sm:$0xf0] }
0x1c29   : > { %9641 = vmatpush.bf16.msra.mxu3 %v13916_v9  ;;  %v14096_v16 = vor.u32 %v15038_v11, %v14093_v18  ;;  %v13919_v11 = vld [vmem:[%s19915_s12 + $0x320] sm:$0xf]  ;;  %v14995_v18 = vld [vmem:[%s19915_s12 + $0x328] sm:$0xf0] }
0x1c2b   : > { %9676 = vmatpush.bf16.msrb.mxu1 %v14252_v58  ;;  %v13979_v58 = vld [vmem:[%s19915_s12 + $0x398] sm:$0xf] }
0x1c2c   : > { %9655 = vmatpush.bf16.msrb.mxu0 %v14000_v17  ;;  %v8387_v17 = vperm.slane %v19485_v28, 3 }
0x1c2d   : > { %9642 = vmatpush.bf16.msra.mxu3 %v13904_v33  ;;  %v14240_v33 = vor.u32 %v15074_v10, %v14237_v34  ;;  %v13967_v34 = vld [vmem:[%s19915_s12 + $0x380] sm:$0xf] }
0x1c2f   : > { %9677 = vmatpush.bf16.msrb.mxu1 %v14240_v33  ;;  %v15007_v33 = vld [vmem:[%s19915_s12 + $0x388] sm:$0xf0] }
0x1c4c   : > { %v8759_v6 = vpop.f32.mrf.mxu0 }
0x1c4d   : > { %v19474_v40 = vpop.f32.mrf.mxu1 }
0x1c52   : > { %v8746_v37 = vpop.f32.mrf.mxu2 }
0x1c53   : > { %v8747_v13 = vadd.f32 %v8746_v37, %v8384_v32  ;;  %v8772_v43 = vpop.f32.mrf.mxu3  ;;  %v14132_v37 = vor.u32 %v15047_v31, %v14129_v41 }
0x1c54   : > { %v8761_v50 = vpop.f32.mrf.mxu0 }
0x1c55   : > { %v8760_v56 = vadd.f32 %v8759_v6, %v8747_v13  ;;  %v8787_v60 = vpop.f32.mrf.mxu1  ;;  %v8385_v6 = vperm.slane %v19485_v28, 1  ;;  %9665 = vmatpush.bf16.msra.mxu2 %v14132_v37  ;;  %v14120_v50 = vor.u32 %v15044_v45, %v14117_v14  ;;  %v15037_v14 = vld [vmem:[%s19915_s12 + $0x478] sm:$0xf0] }
0x1c57   : > { %v19542_v2 = vadd.f32 %v8772_v43, %v8760_v56  ;;  %v8786_v26 = vadd.f32 %v19474_v40, %v8385_v6  ;;  %v15071_v40 = vld [vmem:[%s19915_s12 + $0x58c] sm:$0xf]  ;;  %v14213_v56 = vld [vmem:[%s19915_s12 + $0x57c] sm:$0xf0] }
0x1c58   : > { %v14228_v13 = vor.u32 %v15071_v40, %v14225_v47  ;;  %v14216_v1 = vor.u32 %v15068_v36, %v14213_v56  ;;  %v15004_v40 = vld [vmem:[%s19915_s12 + $0x370] sm:$0xf0] }
0x1c59   : > { %v8897_v5 = vmul.f32 0.044715, %v19542_v2  ;;  %9666 = vmatpush.bf16.msra.mxu2 %v14120_v50  ;;  %v8893_v0 = vmul.f32 0.5, %v19542_v2 }
0x1c5a   : > { %v8748_v12 = vpop.f32.mrf.mxu2  ;;  %9678 = vmatpush.bf16.msrb.mxu1 %v14228_v13 }
0x1c5b   : > { %v8901_v21 = vmul.f32 %v8897_v5, %v19542_v2  ;;  %v8774_v23 = vpop.f32.mrf.mxu3  ;;  %v15065_v12 = vld [vmem:[%s19915_s12 + $0x55c] sm:$0xf] }
0x1c5c   : > { %v19571_v9 = vpop.f32.mrf.mxu0  ;;  %v13992_v23 = vor.u32 %v15013_v48, %v13991_v46  ;;  %v15034_v46 = vld [vmem:[%s19915_s12 + $0x460] sm:$0xf0] }
0x1c5d   : > { %v8905_v44 = vmul.f32 %v8901_v21, %v19542_v2  ;;  %v19574_v25 = vpop.f32.mrf.mxu1  ;;  %9667 = vmatpush.bf16.msra.mxu2 %v14108_v53  ;;  %v8825_v10 = vadd.f32 %v19571_v9, %v8386_v57 }
0x1c5e   : > { %9679 = vmatpush.bf16.msrb.mxu1 %v14216_v1 }
0x1c5f   : > { %v8909_v32 = vadd.f32 %v8905_v44, %v19542_v2  ;;  %v14201_v2 = vld [vmem:[%s19915_s12 + $0x564] sm:$0xf0]  ;;  %v15010_v44 = vld [vmem:[%s19915_s12 + $0x3a0] sm:$0xf0] }
0x1c60   : > { %v14204_v4 = vor.u32 %v15065_v12, %v14201_v2  ;;  %v14998_v12 = vld [vmem:[%s19915_s12 + $0x340] sm:$0xf0] }
0x1c61   : > { %v8913_v27 = vmul.f32 0.7978846, %v8909_v32  ;;  %v13980_v32 = vor.u32 %v15010_v44, %v13979_v58  ;;  %9668 = vmatpush.bf16.msra.mxu2 %v14096_v16  ;;  %v14051_v58 = vld [vmem:[%s19915_s12 + $0x428] sm:$0xf]  ;;  %v15028_v44 = vld [vmem:[%s19915_s12 + $0x430] sm:$0xf0]  ;;  %v13920_v16 = vor.u32 %v14995_v18, %v13919_v11 }
0x1c62   : > { %v8798_v42 = vpop.f32.mrf.mxu2  ;;  %9680 = vmatpush.bf16.msrb.mxu1 %v14204_v4  ;;  %v14063_v4 = vld [vmem:[%s19915_s12 + $0x440] sm:$0xf]  ;;  %v14231_v11 = vld [vmem:[%s19915_s12 + $0x590] sm:$0xf]  ;;  %v15073_v18 = vld [vmem:[%s19915_s12 + $0x598] sm:$0xf0] }
0x1c63   : > { %15171 = vtanh.f32 %v8913_v27  ;;  %v8799_v49 = vadd.f32 %v8798_v42, %v8786_v26  ;;  %v8811_v8 = vpop.f32.mrf.mxu3  ;;  %v13968_v42 = vor.u32 %v15007_v33, %v13967_v34 }
0x1c64   : > { %v8826_v15 = vpop.f32.mrf.mxu0 }
0x1c65   : > { %v19608_v43 = vadd.f32 %v8811_v8, %v8799_v49  ;;  %v8852_v59 = vpop.f32.mrf.mxu1  ;;  %v13955_v8 = vld [vmem:[%s19915_s12 + $0x368] sm:$0xf]  ;;  %v14087_v15 = vld [vmem:[%s19915_s12 + $0x470] sm:$0xf] }
0x1c66   : > { %9681 = vmatpush.bf16.msrb.mxu1 %v14192_v62  ;;  %v13956_v50 = vor.u32 %v15004_v40, %v13955_v8  ;;  %v14088_v38 = vor.u32 %v15037_v14, %v14087_v15  ;;  %v15025_v62 = vld [vmem:[%s19915_s12 + $0x418] sm:$0xf0]  ;;  %v14027_v40 = vld [vmem:[%s19915_s12 + $0x3f8] sm:$0xf] }
0x1c67   : > { %v8898_v52 = vmul.f32 0.044715, %v19608_v43  ;;  %v8894_v13 = vmul.f32 0.5, %v19608_v43 }
0x1c69   : > { %v15172_v60 = vpop.eup %15171  ;;  %v8902_v61 = vmul.f32 %v8898_v52, %v19608_v43 }
0x1c6a   : > { %v8800_v22 = vpop.f32.mrf.mxu2  ;;  %v8921_v7 = vadd.f32 1.0, %v15172_v60  ;;  %v13943_v60 = vld [vmem:[%s19915_s12 + $0x350] sm:$0xf] }
0x1c6b   : > { %v8906_v5 = vmul.f32 %v8902_v61, %v19608_v43  ;;  %v8813_v39 = vpop.f32.mrf.mxu3 }
0x1c6c   : > { %v8889_v3 = vpop.f32.mrf.mxu0  ;;  %v8925_v55 = vmul.f32 %v8921_v7, %v8893_v0  ;;  %v14075_v7 = vld [vmem:[%s19915_s12 + $0x458] sm:$0xf] }
0x1c6d   : > { %v8910_v21 = vadd.f32 %v8906_v5, %v19608_v43  ;;  %v15001_v43 = vld [vmem:[%s19915_s12 + $0x358] sm:$0xf0]  ;;  %v13931_v39 = vld [vmem:[%s19915_s12 + $0x338] sm:$0xf]  ;;  %v14076_v2 = vor.u32 %v15034_v46, %v14075_v7  ;;  %v14003_v46 = vld [vmem:[%s19915_s12 + $0x3c8] sm:$0xf] }
0x1c6e   : > { %v8876_v54 = vpop.f32.mrf.mxu1  ;;  %v19652_v6 = vpack.c.bf16 %v8925_v55, %v8925_v55  ;;  %v13944_v48 = vor.u32 %v15001_v43, %v13943_v60  ;;  %v14015_v60 = vld [vmem:[%s19915_s12 + $0x3e0] sm:$0xf]  ;;  %v15019_v43 = vld [vmem:[%s19915_s12 + $0x3e8] sm:$0xf0] }
0x1c6f   : > { %v8914_v29 = vmul.f32 0.7978846, %v8910_v21  ;;  %v15031_v21 = vld [vmem:[%s19915_s12 + $0x448] sm:$0xf0] }
0x1c70   : > { %9591 = vmatmul.bf16.vlgmr.msrb.gmra.mxu3 %v19652_v6 }
0x1c71   : > { %15173 = vtanh.f32 %v8914_v29  ;;  %9687 = vmatpush.bf16.msrb.mxu3 %v13992_v23  ;;  %v13932_v23 = vor.u32 %v14998_v12, %v13931_v39  ;;  %v13907_v29 = vld [vmem:[%s19915_s12 + $0x308] sm:$0xf] }
0x1c73   : > { %v8837_v28 = vpop.f32.mrf.mxu3  ;;  %v8863_v26 = vpop.f32.mrf.mxu2 }
0x1c74   : > { %v8838_v27 = vadd.f32 %v8837_v28, %v8825_v10  ;;  %v8864_v31 = vadd.f32 %v8863_v26, %v8387_v17  ;;  %v8891_v41 = vpop.f32.mrf.mxu0  ;;  %v14052_v17 = vor.u32 %v15028_v44, %v14051_v58  ;;  %v13908_v10 = vor.u32 %v14992_v35, %v13907_v29  ;;  %v14183_v28 = vld [vmem:[%s19915_s12 + $0x530] sm:$0xf]  ;;  %v15061_v26 = vld [vmem:[%s19915_s12 + $0x538] sm:$0xf0]  ;;  %v15046_v58 = vld [vmem:[%s19915_s12 + $0x4c0] sm:$0xf0] }
0x1c75   : > { %9688 = vmatpush.bf16.msrb.mxu3 %v13980_v32  ;;  %v14039_v32 = vld [vmem:[%s19915_s12 + $0x410] sm:$0xf]  ;;  %v14184_v8 = vor.u32 %v15061_v26, %v14183_v28  ;;  %v14232_v44 = vor.u32 %v15073_v18, %v14231_v11  ;;  %v15070_v29 = vld [vmem:[%s19915_s12 + $0x580] sm:$0xf0]  ;;  %v14195_v26 = vld [vmem:[%s19915_s12 + $0x548] sm:$0xf] }
0x1c76   : > { %v19676_v37 = vadd.f32 %v19574_v25, %v8838_v27  ;;  %v8877_v9 = vadd.f32 %v8876_v54, %v8864_v31  ;;  %v8878_v49 = vpop.f32.mrf.mxu1  ;;  %v14064_v54 = vor.u32 %v15031_v21, %v14063_v4  ;;  %v14040_v41 = vor.u32 %v15025_v62, %v14039_v32  ;;  %v14135_v4 = vld [vmem:[%s19915_s12 + $0x4d0] sm:$0xf]  ;;  %v15049_v21 = vld [vmem:[%s19915_s12 + $0x4d8] sm:$0xf0]  ;;  %v14207_v32 = vld [vmem:[%s19915_s12 + $0x560] sm:$0xf] }
0x1c77   : > { %v15174_v47 = vpop.eup %15173  ;;  %v14279_v49 = vld [vmem:[%s19915_s12 + $0x5f0] sm:$0xf]  ;;  %v15067_v62 = vld [vmem:[%s19915_s12 + $0x568] sm:$0xf0] }
0x1c78   : > { %v8899_v25 = vmul.f32 0.044715, %v19676_v37  ;;  %v8890_v59 = vadd.f32 %v8889_v3, %v8877_v9  ;;  %v8922_v45 = vadd.f32 1.0, %v15174_v47  ;;  %v8895_v34 = vmul.f32 0.5, %v19676_v37  ;;  %v15022_v47 = vld [vmem:[%s19915_s12 + $0x400] sm:$0xf0] }
0x1c79   : > { %9689 = vmatpush.bf16.msrb.mxu3 %v13968_v42  ;;  %v14208_v28 = vor.u32 %v15067_v62, %v14207_v32 }
0x1c7a   : > { %v8903_v52 = vmul.f32 %v8899_v25, %v19676_v37  ;;  %v8900_v36 = vmul.f32 0.044715, %v8890_v59  ;;  %v8926_v56 = vmul.f32 %v8922_v45, %v8894_v13  ;;  %v8896_v42 = vmul.f32 0.5, %v8890_v59  ;;  %v14171_v25 = vld [vmem:[%s19915_s12 + $0x518] sm:$0xf] }
0x1c7b   : > { %v8839_v61 = vpop.f32.mrf.mxu3  ;;  %v8865_v1 = vpop.f32.mrf.mxu2 }
0x1c7c   : > { %v8907_v63 = vmul.f32 %v8903_v52, %v19676_v37  ;;  %v8904_v0 = vmul.f32 %v8900_v36, %v8890_v59  ;;  %v19700_v22 = vpack.c.bf16 %v8926_v56, %v8926_v56  ;;  %v14267_v52 = vld [vmem:[%s19915_s12 + $0x5d8] sm:$0xf]  ;;  %v15082_v36 = vld [vmem:[%s19915_s12 + $0x5e0] sm:$0xf0]  ;;  %v14159_v61 = vld [vmem:[%s19915_s12 + $0x500] sm:$0xf] }
0x1c7d   : > { %9690 = vmatpush.bf16.msrb.mxu3 %v13956_v50  ;;  %v14028_v50 = vor.u32 %v15022_v47, %v14027_v40  ;;  %v15055_v1 = vld [vmem:[%s19915_s12 + $0x508] sm:$0xf0] }
0x1c7e   : > { %v8911_v53 = vadd.f32 %v8907_v63, %v19676_v37  ;;  %v8908_v5 = vmul.f32 %v8904_v0, %v8890_v59  ;;  %9604 = vmatmul.bf16.vlgmr.msra.gmra.mxu0 %v19700_v22  ;;  %v15085_v37 = vld [vmem:[%s19915_s12 + $0x5f8] sm:$0xf0]  ;;  %v14255_v63 = vld [vmem:[%s19915_s12 + $0x5c0] sm:$0xf]  ;;  %v15079_v0 = vld [vmem:[%s19915_s12 + $0x5c8] sm:$0xf0]  ;;  %v14160_v7 = vor.u32 %v15055_v1, %v14159_v61 }
0x1c7f   : > { %9700 = vmatpush.bf16.msra.mxu0 %v14088_v38  ;;  %v14280_v45 = vor.u32 %v15085_v37, %v14279_v49  ;;  %v14016_v38 = vor.u32 %v15019_v43, %v14015_v60  ;;  %v14256_v39 = vor.u32 %v15079_v0, %v14255_v63 }
0x1c80   : > { %v8915_v3 = vmul.f32 0.7978846, %v8911_v53  ;;  %v8912_v55 = vadd.f32 %v8908_v5, %v8890_v59  ;;  %9643 = vmatmul.bf16.vlgmr.msra.gmra.mxu3 %v19652_v6  ;;  %v15058_v59 = vld [vmem:[%s19915_s12 + $0x520] sm:$0xf0]  ;;  %v14147_v53 = vld [vmem:[%s19915_s12 + $0x4e8] sm:$0xf] }
0x1c81   : > { %9691 = vmatpush.bf16.msrb.mxu3 %v13944_v48  ;;  %v14172_v56 = vor.u32 %v15058_v59, %v14171_v25  ;;  %v15016_v48 = vld [vmem:[%s19915_s12 + $0x3d0] sm:$0xf0] }
0x1c82   : > { %15175 = vtanh.f32 %v8915_v3  ;;  %v8916_v57 = vmul.f32 0.7978846, %v8912_v55  ;;  %v15052_v5 = vld [vmem:[%s19915_s12 + $0x4f0] sm:$0xf0]  ;;  %v14004_v12 = vor.u32 %v15016_v48, %v14003_v46 }
0x1c83   : > { %9701 = vmatpush.bf16.msra.mxu0 %v14076_v2  ;;  %v14243_v2 = vld [vmem:[%s19915_s12 + $0x5a8] sm:$0xf]  ;;  %v15076_v3 = vld [vmem:[%s19915_s12 + $0x5b0] sm:$0xf0]  ;;  %v14148_v55 = vor.u32 %v15052_v5, %v14147_v53 }
0x1c84   : > { %15177 = vtanh.f32 %v8916_v57  ;;  %v14136_v57 = vor.u32 %v15049_v21, %v14135_v4 }
0x1c85   : > { %9692 = vmatpush.bf16.msrb.mxu3 %v13932_v23  ;;  %v14244_v23 = vor.u32 %v15076_v3, %v14243_v2 }
0x1c87   : > { %9702 = vmatpush.bf16.msra.mxu0 %v14064_v54  ;;  %v14123_v54 = vld [vmem:[%s19915_s12 + $0x4b8] sm:$0xf] }
0x1c88   : > { %v15176_v20 = vpop.eup %15175  ;;  %v14124_v35 = vor.u32 %v15046_v58, %v14123_v54 }
0x1c89   : > { %9693 = vmatpush.bf16.msrb.mxu3 %v13920_v16  ;;  %v8923_v33 = vadd.f32 1.0, %v15176_v20  ;;  %v14219_v16 = vld [vmem:[%s19915_s12 + $0x578] sm:$0xf] }
0x1c8a   : > { %v15178_v27 = vpop.eup %15177  ;;  %v14220_v20 = vor.u32 %v15070_v29, %v14219_v16 }
0x1c8b   : > { %9703 = vmatpush.bf16.msra.mxu0 %v14052_v17  ;;  %v8927_v31 = vmul.f32 %v8923_v33, %v8895_v34  ;;  %v8924_v9 = vadd.f32 1.0, %v15178_v27  ;;  %v14111_v17 = vld [vmem:[%s19915_s12 + $0x4a0] sm:$0xf]  ;;  %v14099_v34 = vld [vmem:[%s19915_s12 + $0x488] sm:$0xf] }
0x1c8c   : > { %v15040_v33 = vld [vmem:[%s19915_s12 + $0x490] sm:$0xf0] }
0x1c8d   : > { %9694 = vmatpush.bf16.msrb.mxu3 %v13908_v10  ;;  %v19766_v15 = vpack.c.bf16 %v8927_v31, %v8927_v31  ;;  %v8928_v13 = vmul.f32 %v8924_v9, %v8896_v42  ;;  %v15064_v27 = vld [vmem:[%s19915_s12 + $0x550] sm:$0xf0]  ;;  %v14100_v31 = vor.u32 %v15040_v33, %v14099_v34 }
0x1c8e   : > { %9656 = vmatmul.bf16.vlgmr.msrb.gmra.mxu0 %v19700_v22 }
0x1c8f   : > { %9617 = vmatmul.bf16.vlgmr.msrb.gmra.mxu2 %v19766_v15  ;;  %9704 = vmatpush.bf16.msra.mxu0 %v14040_v41  ;;  %v19776_v14 = vpack.c.bf16 %v8928_v13, %v8928_v13  ;;  %v14196_v41 = vor.u32 %v15064_v27, %v14195_v26 }
0x1c90   : > { %9713 = vmatpush.bf16.msrb.mxu2 %v14184_v8  ;;  %9695 = vmatmul.bf16.vlgmr.msrb.gmra.mxu3 %v19652_v6  ;;  %v14268_v6 = vor.u32 %v15082_v36, %v14267_v52 }
0x1c91   : > { %9630 = vmatmul.bf16.vlgmr.msra.gmra.mxu1 %v19776_v14 }
0x1c92   : > { %9726 = vmatpush.bf16.msra.mxu1 %v14280_v45 }
0x1c93   : > { %9705 = vmatpush.bf16.msra.mxu0 %v14028_v50 }
0x1c94   : > { %9714 = vmatpush.bf16.msrb.mxu2 %v14172_v56 }
0x1c96   : > { %9727 = vmatpush.bf16.msra.mxu1 %v14268_v6 }
0x1c97   : > { %9706 = vmatpush.bf16.msra.mxu0 %v14016_v38 }
0x1c98   : > { %9715 = vmatpush.bf16.msrb.mxu2 %v14160_v7 }
0x1c9a   : > { %9728 = vmatpush.bf16.msra.mxu1 %v14256_v39 }
0x1c9b   : > { %9707 = vmatpush.bf16.msra.mxu0 %v14004_v12 }
0x1c9c   : > { %9716 = vmatpush.bf16.msrb.mxu2 %v14148_v55 }
0x1c9e   : > { %9729 = vmatpush.bf16.msra.mxu1 %v14244_v23  ;;  %9708 = vmatmul.bf16.vlgmr.msra.gmra.mxu0 %v19700_v22  ;;  %v15043_v22 = vld [vmem:[%s19915_s12 + $0x4a8] sm:$0xf0] }
0x1c9f   : > { %9669 = vmatmul.bf16.vlgmr.msra.gmra.mxu2 %v19766_v15  ;;  %v14112_v10 = vor.u32 %v15043_v22, %v14111_v17 }
0x1ca0   : > { %9717 = vmatpush.bf16.msrb.mxu2 %v14136_v57 }
0x1ca1   : > { %9682 = vmatmul.bf16.vlgmr.msrb.gmra.mxu1 %v19776_v14 }
0x1ca2   : > { %9730 = vmatpush.bf16.msra.mxu1 %v14232_v44 }
0x1ca4   : > { %9718 = vmatpush.bf16.msrb.mxu2 %v14124_v35 }
0x1ca6   : > { %9731 = vmatpush.bf16.msra.mxu1 %v14220_v20 }
0x1ca8   : > { %9719 = vmatpush.bf16.msrb.mxu2 %v14112_v10 }
0x1caa   : > { %9732 = vmatpush.bf16.msra.mxu1 %v14208_v28 }
0x1cac   : > { %9720 = vmatpush.bf16.msrb.mxu2 %v14100_v31 }
0x1cae   : > { %9733 = vmatpush.bf16.msra.mxu1 %v14196_v41 }
0x1caf   : > { %9721 = vmatmul.bf16.vlgmr.msrb.gmra.mxu2 %v19766_v15  ;;  %v13896_v15 = vld [vmem:[%s19916_s13 + $0x3] sm:$0x7] }
0x1cb0   : > { %v9066_v61 = vperm.slane %v13896_v15, 1  ;;  %v9065_v1 = vperm.slane %v13896_v15, 0  ;;  %v9067_v46 = vperm.slane %v13896_v15, 2 }
0x1cb1   : > { %9734 = vmatmul.bf16.vlgmr.msra.gmra.mxu1 %v19776_v14 }
0x1cf3   : > { %v9592_v42 = vpop.f32.mrf.mxu3 }
0x1cf4   : > { %v9593_v63 = vadd.f32 %v9592_v42, %v9065_v1 }
0x1cfb   : > { %v9594_v9 = vpop.f32.mrf.mxu3  ;;  %v9605_v49 = vpop.f32.mrf.mxu0 }
0x1cfc   : > { %v9606_v48 = vadd.f32 %v9605_v49, %v9593_v63  ;;  %v14281_v49 = vld [vmem:[%s19917_s14 + $0x3] sm:$0x7] }
0x1d03   : > { %v9607_v37 = vpop.f32.mrf.mxu0  ;;  %v9644_v8 = vpop.f32.mrf.mxu3 }
0x1d04   : > { %v9645_v38 = vadd.f32 %v9644_v8, %v9066_v61  ;;  %v14282_v37 = vld [vmem:[%s19918_s15 + $0x3] sm:$0x7] }
0x1d0b   : > { %v9646_v40 = vpop.f32.mrf.mxu3  ;;  %v9657_v47 = vpop.f32.mrf.mxu0 }
0x1d0c   : > { %v9658_v0 = vadd.f32 %v9657_v47, %v9645_v38  ;;  %v9780_v40 = vperm.slane %v14281_v49, 1  ;;  %v9781_v47 = vperm.slane %v14281_v49, 2 }
0x1d0e   : > { %v9631_v13 = vpop.f32.mrf.mxu1 }
0x1d12   : > { %v9618_v25 = vpop.f32.mrf.mxu2 }
0x1d13   : > { %v9659_v59 = vpop.f32.mrf.mxu0  ;;  %v9696_v45 = vpop.f32.mrf.mxu3  ;;  %v9619_v5 = vadd.f32 %v9618_v25, %v9606_v48 }
0x1d14   : > { %v9697_v12 = vadd.f32 %v9696_v45, %v9067_v46  ;;  %v9789_v59 = vperm.slane %v14282_v37, 0  ;;  %v9790_v45 = vperm.slane %v14282_v37, 1 }
0x1d15   : > { %v9632_v55 = vadd.f32 %v9631_v13, %v9619_v5  ;;  %v9798_v13 = vld [vmem:[%s19919_s16] sm:$0x7] }
0x1d16   : > { %v9633_v50 = vpop.f32.mrf.mxu1  ;;  %v9802_v1 = vperm.slane %v9798_v13, 2 }
0x1d17   : > { %v9739_v18 = vadd.f32 %v9632_v55, %v19075_v30 }
0x1d1a   : > { %v9620_v52 = vpop.f32.mrf.mxu2 }
0x1d1b   : > { %v9698_v36 = vpop.f32.mrf.mxu3  ;;  %v9709_v56 = vpop.f32.mrf.mxu0 }
0x1d1c   : > { %v9710_v3 = vadd.f32 %v9709_v56, %v9697_v12  ;;  %v9791_v56 = vperm.slane %v14282_v37, 2 }
0x1d1e   : > { %v9683_v60 = vpop.f32.mrf.mxu1 }
0x1d22   : > { %v9670_v43 = vpop.f32.mrf.mxu2 }
0x1d23   : > { %v9711_v14 = vpop.f32.mrf.mxu0  ;;  %v9671_v53 = vadd.f32 %v9670_v43, %v9658_v0  ;;  %v9801_v43 = vperm.slane %v9798_v13, 1 }
0x1d25   : > { %v9684_v2 = vadd.f32 %v9683_v60, %v9671_v53  ;;  %v9800_v60 = vperm.slane %v9798_v13, 0 }
0x1d26   : > { %v9685_v6 = vpop.f32.mrf.mxu1 }
0x1d27   : > { %v9740_v23 = vadd.f32 %v9684_v2, %v19077_v19  ;;  %v9817_v2 = vld [vmem:[#allocation2] sm:$0x1] }
0x1d29   : > { %v9746_v58 = vadd.f32 %v9740_v23, %v9739_v18 }
0x1d2a   : > { %v9672_v7 = vpop.f32.mrf.mxu2 }
0x1d2e   : > { %v9735_v39 = vpop.f32.mrf.mxu1 }
0x1d32   : > { %v9722_v4 = vpop.f32.mrf.mxu2 }
0x1d33   : > { %v9723_v21 = vadd.f32 %v9722_v4, %v9710_v3 }
0x1d35   : > { %v9736_v11 = vadd.f32 %v9735_v39, %v9723_v21 }
0x1d36   : > { %v9737_v57 = vpop.f32.mrf.mxu1 }
0x1d37   : > { %v9741_v54 = vadd.f32 %v9736_v11, %v19073_v51 }
0x1d39   : > { %v9747_v44 = vsel %vm595_vm0, %v9741_v54, 0.0 }
0x1d3a   : > { %v9724_v16 = vpop.f32.mrf.mxu2  ;;  %v9748_v29 = vadd.f32 %v9747_v44, %v9746_v58 }
0x1d3c   : > { %9749 = vadd.xlane.f32.xlu0 %v9748_v29 }
0x1daf   : > { %v9750_v35 = vpop.xlane.xlu0 %9749 }
0x1db0   : > { %v9751_v17 = vmul.f32 %v9750_v35, %v15341_v24 }
0x1db2   : > { %v9752_v22 = vsub.f32 %v9739_v18, %v9751_v17  ;;  %v9753_v20 = vsub.f32 %v9740_v23, %v9751_v17  ;;  %v9754_v32 = vsub.f32 %v9741_v54, %v9751_v17 }
0x1db4   : > { %v9755_v62 = vmul.f32 %v9752_v22, %v9752_v22  ;;  %v9756_v19 = vmul.f32 %v9753_v20, %v9753_v20  ;;  %v9757_v10 = vmul.f32 %v9754_v32, %v9754_v32 }
0x1db6   : > { %v9758_v34 = vadd.f32 %v9756_v19, %v9755_v62  ;;  %v9759_v30 = vsel %vm595_vm0, %v9757_v10, 0.0 }
0x1db8   : > { %v9760_v33 = vadd.f32 %v9759_v30, %v9758_v34 }
0x1dba   : > { %9761 = vadd.xlane.f32.xlu1 %v9760_v33 }
0x1e2d   : > { %v9762_v51 = vpop.xlane.xlu1 %9761 }
0x1e2e   : > { %v9763_v28 = vmul.f32 %v9762_v51, %v15341_v24  ;;  %v9779_v24 = vperm.slane %v14281_v49, 0 }
0x1e30   : > { %v9764_v26 = vadd.f32 1e-12, %v9763_v28 }
0x1e32   : > { %15179 = vrsqrt.f32 %v9764_v26  ;;  %vm9771_vm0 = vweird.f32 %v9764_v26 }
0x1e38   : > { %v15180_v27 = vpop.eup %15179 }
0x1e39   : > { %v9766_v31 = vmul.f32 %v15180_v27, %v9764_v26  ;;  %vm9772_vm2 = vweird.f32 %v15180_v27 }
0x1e3a   : > { %vm9773_vm1 = vmor %vm9771_vm0, %vm9772_vm2 }
0x1e3b   : > { %v9767_v41 = vmul.f32 %v15180_v27, %v9766_v31 }
0x1e3d   : > { %v9768_v42 = vmul.f32 0.5, %v9767_v41 }
0x1e3f   : > { %v9769_v9 = vsub.f32 1.5, %v9768_v42 }
0x1e41   : > { %v9770_v8 = vmul.f32 %v15180_v27, %v9769_v9 }
0x1e43   : > { %v9774_v25 = vsel %vm9773_vm1, %v15180_v27, %v9770_v8 }
0x1e44   : > { %v9775_v50 = vmul.f32 %v9774_v25, %v9752_v22  ;;  %v9776_v52 = vmul.f32 %v9774_v25, %v9753_v20  ;;  %v9777_v36 = vmul.f32 %v9774_v25, %v9754_v32 }
0x1e46   : > { %v9785_v15 = vmul.f32 %v9779_v24, %v9775_v50  ;;  %v9786_v14 = vmul.f32 %v9780_v40, %v9776_v52  ;;  %v9787_v61 = vmul.f32 %v9781_v47, %v9777_v36 }
0x1e48   : > { %v9795_v6 = vadd.f32 %v9789_v59, %v9785_v15  ;;  %v9796_v38 = vadd.f32 %v9790_v45, %v9786_v14  ;;  %v9797_v63 = vadd.f32 %v9791_v56, %v9787_v61 }
0x1e4a   : > { %v9806_v0 = vmul.f32 %v9800_v60, %v9795_v6  ;;  %v9807_v7 = vmul.f32 %v9801_v43, %v9796_v38  ;;  %v9808_v46 = vmul.f32 %v9802_v1, %v9797_v63 }
0x1e4c   : > { %v9809_v48 = vsel %vm1995_vm13, %v9806_v0, 0.0  ;;  %v9810_v53 = vsel %vm1995_vm13, %v9807_v7, 0.0  ;;  %v9813_v39 = vsel %vm9812_vm3, %v9808_v46, 0.0 }
0x1e4d   : > { %v9811_v5 = vadd.f32 %v9810_v53, %v9809_v48 }
0x1e4f   : > { %v9814_v12 = vadd.f32 %v9813_v39, %v9811_v5 }
0x1e51   : > { %9815 = vadd.xlane.f32.xlu2 %v9814_v12 }
0x1ec4   : > { %v9816_v3 = vpop.xlane.xlu2 %9815 }
0x1ec5   : > { %v9818_v55 = vadd.f32 %v9817_v2, %v9816_v3 }
0x1ec7   : > { %v14283_v4 = vmul.f32 -1.442695, %v9818_v55 }
0x1ec9   : > { %15181 = vpow2.f32 %v14283_v4 }
0x1ecf   : > { %v15182_v21 = vpop.eup %15181 }
0x1ed0   : > { %v9822_v23 = vadd.f32 1.0, %v15182_v21 }
0x1ed2   : > { %15183 = vrcp.f32 %v9822_v23  ;;  %v9834_v54 = vand.u32 2147483648, %v9822_v23  ;;  %v9832_v44 = vand.u32 2147483647, %v9822_v23  ;;  %vm9828_vm13 = vweird.f32 %v9822_v23 }
0x1ed4   : > { %v9835_v29 = vor.u32 1.1754944e-38, %v9834_v54  ;;  %vm9833_vm9 = vcmp.eq.f32.partialorder %v9832_v44, 8.507059e+37 }
0x1ed8   : > { %v15184_v11 = vpop.eup %15183 }
0x1ed9   : > { %v9824_v18 = vmul.f32 %v15184_v11, %v9822_v23  ;;  %vm9829_vm4 = vweird.f32 %v15184_v11 }
0x1eda   : > { %vm9830_vm7 = vmor %vm9828_vm13, %vm9829_vm4 }
0x1edb   : > { %v9825_v57 = vsub.f32 1.0, %v9824_v18 }
0x1edd   : > { %v9826_v58 = vmul.f32 %v15184_v11, %v9825_v57 }
0x1edf   : > { %v9827_v16 = vadd.f32 %v15184_v11, %v9826_v58 }
0x1ee1   : > { %v9831_v35 = vsel %vm9830_vm7, %v15184_v11, %v9827_v16 }
0x1ee2   : > { %v9836_v17 = vsel %vm9833_vm9, %v9835_v29, %v9831_v35 }
0x1ee3   : > { %9839 = vst.msk [vmem:[%s587_s25] sm:$0x1] %vm9838_vm5, %v9836_v17 }
0x1ee4 PF: > { %s30_s29 = sadd.s32 1, %s15191_s29  }
0x1ee5   : > { %p27_p4 = scmp.ge.s32.totalorder %s30_s29, 4  }
0x1ee7   :  { %29 = sbr.rel (!%p27_p4) target bundleno = 4 (0x4), region = 187 }

</bundles_post_ra>
